<compile_context>
chip_gen: v7x
topology: tpu7x:2x2x1
jax: 0.10.0
libtpu: 0.0.40
codegen_flags: <defaults>
</compile_context>

<pallas_src>
import functools
import math

import jax
import jax.numpy as jnp
from jax.experimental import pallas as pl
from jax.experimental.pallas import tpu as pltpu

VMEM = pltpu.MemorySpace.VMEM
EPS = 1e-5            # PyTorch LayerNorm default eps
D_MODEL = 32
NHEAD = 4
N_ENC = 2
N_DEC = 2
DFF = 2048            # nn.Transformer default dim_feedforward
N_FEAT = 3            # Lorenz-63 state dimension
WSLOT_COLS = 128      # every small weight lives in a lane-aligned (D, 128) slot


# ------------------------------- slab layout ------------------------------- #

def build_layout(n_enc, n_dec):
    """Weight-slot / bias-row layout shared by pack_params() and the kernel."""
    wslot, brow = {}, {}

    def w(name):
        wslot[name] = len(wslot)

    def b(name):
        brow[name] = len(brow)

    w("out")                                    # linear_out weight, zero-padded to 128 cols
    for j in range(N_FEAT):
        b(f"emb.w{j}")                          # linear_enc weight rows (f32, elementwise embed)
    b("emb.b")
    b("out.b")
    for i in range(n_enc):
        pf = f"e{i}."
        w(pf + "wqkv"); w(pf + "wo")
        for n in ("bqkv", "bo", "ln1g", "ln1b", "ln2g", "ln2b", "b2"):
            b(pf + n)
    for i in range(n_dec):
        pf = f"d{i}."
        w(pf + "s_wqkv"); w(pf + "s_wo"); w(pf + "c_wq"); w(pf + "c_wkv"); w(pf + "c_wo")
        for n in ("s_bqkv", "s_bo", "c_bq", "c_bkv", "c_bo",
                  "ln1g", "ln1b", "ln2g", "ln2b", "ln3g", "ln3b", "b2"):
            b(pf + n)
    b("encnorm.g"); b("encnorm.b"); b("decnorm.g"); b("decnorm.b")
    return wslot, brow


# ----------------------------- fused Pallas kernel ----------------------------- #

def _fused_kernel(enc_ref, dec_ref, wbuf_ref, w1_ref, w2_ref, bias_ref, b1_ref,
                  out_ref, *, nhead, n_enc, n_dec, wslot, brow):
    f32, bf16 = jnp.float32, jnp.bfloat16
    B, Ss, Fin = enc_ref.shape
    St = dec_ref.shape[1]
    D = wbuf_ref.shape[1]
    Dh = D // nhead

    def W(name, width=None):
        s = wslot[name]
        return wbuf_ref[s] if width is None else wbuf_ref[s, :, :width]      # bf16

    def Br(name, width):
        r = brow[name]
        return bias_ref[r:r + 1, :width]                                     # (1, width) f32

    def mm(a, w):
        # MXU matmul: bf16 operands (weights already stored bf16), f32 accumulation.
        return jnp.dot(a.astype(bf16), w, preferred_element_type=f32)

    def layer_norm(x, g, b):
        mu = jnp.mean(x, axis=-1, keepdims=True)
        var = jnp.mean(jnp.square(x - mu), axis=-1, keepdims=True)
        return (x - mu) * jax.lax.rsqrt(var + EPS) * g + b

    def mha(q, k, v, wo_name, bo_name, b_, sq, sk):
        # q/k/v: (b_*s, D) f32; softmax scale already folded into the q projection.
        q3 = q.reshape(b_, sq, D).astype(bf16)
        k3 = k.reshape(b_, sk, D).astype(bf16)
        v3 = v.reshape(b_, sk, D).astype(bf16)
        wo = W(wo_name, D)                                                   # (D, D) bf16
        acc = None
        # Per-head loop kept on purpose: each head is the doc-validated 3-D single-batch-dim
        # einsum (a 4-D two-batch-dim dot_general is not guaranteed to lower on Mosaic).
        # No head concat: head outputs accumulate straight into the output projection.
        for h in range(nhead):
            sl = slice(h * Dh, (h + 1) * Dh)
            s = jnp.einsum("bqd,bkd->bqk", q3[..., sl], k3[..., sl],
                           preferred_element_type=f32)
            m = jnp.max(s, axis=-1, keepdims=True)
            e = jnp.exp(s - m)
            prob = e * pl.reciprocal(jnp.sum(e, axis=-1, keepdims=True), approx=True)
            o = jnp.einsum("bqk,bkd->bqd", prob.astype(bf16), v3[..., sl],
                           preferred_element_type=f32)
            c = mm(o.reshape(b_ * sq, Dh), wo[sl, :])
            acc = c if acc is None else acc + c
        return acc + Br(bo_name, D)

    def self_attn(x, wn, bn, won, bon, b_, s_):
        qkv = mm(x, W(wn, 3 * D)) + Br(bn, 3 * D)            # fused q|k|v projection (one pass)
        return mha(qkv[:, :D], qkv[:, D:2 * D], qkv[:, 2 * D:3 * D], won, bon, b_, s_, s_)

    def cross_attn(x, mem_, wqn, bqn, wkvn, bkvn, won, bon, b_, sq, sk):
        q = mm(x, W(wqn, D)) + Br(bqn, D)
        kv = mm(mem_, W(wkvn, 2 * D)) + Br(bkvn, 2 * D)      # fused k|v projection
        return mha(q, kv[:, :D], kv[:, D:2 * D], won, bon, b_, sq, sk)

    def ffn(x, li, pfx):
        h = jnp.maximum(mm(x, w1_ref[li]) + b1_ref[li], 0.0).astype(bf16)    # (N, dff) kept bf16
        return jnp.dot(h, w2_ref[li], preferred_element_type=f32) + Br(pfx + "b2", D)

    def embed(x):
        # linear_enc on 3 raw features: elementwise multiply-adds (no feature padding needed).
        r = Br("emb.b", D)
        for j in range(Fin):
            r = r + x[:, j:j + 1] * Br(f"emb.w{j}", D)
        return r

    # --- embeddings (PyTorch forward applies linear_enc to BOTH encoder and decoder inputs) ---
    src = embed(enc_ref[...].reshape(B * Ss, Fin))
    tgt = embed(dec_ref[...].reshape(B * St, Fin))

    # --- encoder stack (post-norm) + final encoder LayerNorm ---
    x = src
    for i in range(n_enc):
        pf = f"e{i}."
        a = self_attn(x, pf + "wqkv", pf + "bqkv", pf + "wo", pf + "bo", B, Ss)
        x = layer_norm(x + a, Br(pf + "ln1g", D), Br(pf + "ln1b", D))
        f = ffn(x, i, pf)
        x = layer_norm(x + f, Br(pf + "ln2g", D), Br(pf + "ln2b", D))
    mem = layer_norm(x, Br("encnorm.g", D), Br("encnorm.b", D))

    # --- decoder stack (post-norm) + final decoder LayerNorm ---
    y = tgt
    for i in range(n_dec):
        pf = f"d{i}."
        a = self_attn(y, pf + "s_wqkv", pf + "s_bqkv", pf + "s_wo", pf + "s_bo", B, St)
        y = layer_norm(y + a, Br(pf + "ln1g", D), Br(pf + "ln1b", D))
        a = cross_attn(y, mem, pf + "c_wq", pf + "c_bq", pf + "c_wkv", pf + "c_bkv",
                       pf + "c_wo", pf + "c_bo", B, St, Ss)
        y = layer_norm(y + a, Br(pf + "ln2g", D), Br(pf + "ln2b", D))
        f = ffn(y, n_enc + i, pf)
        y = layer_norm(y + f, Br(pf + "ln3g", D), Br(pf + "ln3b", D))
    y = layer_norm(y, Br("decnorm.g", D), Br("decnorm.b", D))

    # --- lane-dense final projection; slice the 3 real features in-kernel before the store ---
    res = mm(y, W("out")) + Br("out.b", WSLOT_COLS)          # (N, 128), cols >= 3 are exact zeros
    fo = out_ref.shape[2]
    out_ref[...] = res[:, :fo].reshape(B, St, fo)


# --------------------------------- model glue --------------------------------- #

def transformer_predictor(packed, encoder, decoder, *, nhead, n_enc, n_dec, wslot, brow):
    B, Ss, F = encoder.shape
    St = decoder.shape[1]
    kernel = functools.partial(_fused_kernel, nhead=nhead, n_enc=n_enc, n_dec=n_dec,
                               wslot=wslot, brow=brow)
    # No grid -> single TensorCore invocation.  For large batch on v7x, add a leading grid
    # axis over batch with dimension_semantics=("parallel",) so both cores get work.
    return pl.pallas_call(
        kernel,
        out_shape=jax.ShapeDtypeStruct((B, St, F), jnp.float32),
        in_specs=[pl.BlockSpec(memory_space=VMEM)] * 7,
        out_specs=pl.BlockSpec(memory_space=VMEM),
        compiler_params=pltpu.CompilerParams(vmem_limit_bytes=32 * 1024 * 1024),
    )(encoder, decoder, packed["wbuf"], packed["w1"], packed["w2"],
      packed["bias"], packed["b1"])


# -------------------------------- parameters -------------------------------- #

def init_params(key, d_model=D_MODEL, nhead=NHEAD, n_enc=N_ENC, n_dec=N_DEC, dff=DFF):
    """Logical parameters in math layout (y = x @ W + b).

    To load real PyTorch weights: nn.Linear.weight is (out, in) -> transpose;
    nn.MultiheadAttention.in_proj_weight is (3D, D) row-stacked [q; k; v] -> transpose to the
    (D, 3D) column-stacked q|k|v used here (cross-attention splits it into wq (D,D), wkv (D,2D)).
    """
    ks = iter(jax.random.split(key, 1024))

    def rnd(*shape, s=0.05):
        return s * jax.random.normal(next(ks), shape, jnp.float32)

    def ln():
        return dict(g=jnp.ones((d_model,), jnp.float32),
                    b=jnp.zeros((d_model,), jnp.float32))

    def enc_layer():
        return dict(wqkv=rnd(d_model, 3 * d_model), bqkv=rnd(3 * d_model),
                    wo=rnd(d_model, d_model), bo=rnd(d_model),
                    ln1=ln(), ln2=ln(),
                    w1=rnd(d_model, dff), b1=rnd(dff),
                    w2=rnd(dff, d_model), b2=rnd(d_model))

    def dec_layer():
        return dict(s_wqkv=rnd(d_model, 3 * d_model), s_bqkv=rnd(3 * d_model),
                    s_wo=rnd(d_model, d_model), s_bo=rnd(d_model),
                    c_wq=rnd(d_model, d_model), c_bq=rnd(d_model),
                    c_wkv=rnd(d_model, 2 * d_model), c_bkv=rnd(2 * d_model),
                    c_wo=rnd(d_model, d_model), c_bo=rnd(d_model),
                    ln1=ln(), ln2=ln(), ln3=ln(),
                    w1=rnd(d_model, dff), b1=rnd(dff),
                    w2=rnd(dff, d_model), b2=rnd(d_model))

    return dict(emb_w=rnd(N_FEAT, d_model), emb_b=rnd(d_model),
                out_w=rnd(d_model, N_FEAT), out_b=rnd(N_FEAT),
                enc=[enc_layer() for _ in range(n_enc)],
                dec=[dec_layer() for _ in range(n_dec)],
                enc_norm=ln(), dec_norm=ln())


def pack_params(params, wslot, brow, d_model=D_MODEL, nhead=NHEAD,
                n_enc=N_ENC, n_dec=N_DEC, dff=DFF):
    """One-time packing of logical params into a few contiguous slabs:

      wbuf : (n_slots, D, 128) bf16 -- all d_model-row weights, lane-aligned slots
      w1   : (n_ffn, D, dff)   bf16 -- FFN first linears
      w2   : (n_ffn, dff, D)   bf16 -- FFN second linears
      bias : (n_rows, 128)     f32  -- every bias / LayerNorm vector (one row each)
      b1   : (n_ffn, 1, dff)   f32  -- FFN first-linear biases

    The softmax scale 1/sqrt(Dh) is folded into the q-projection weights & biases here,
    so the kernel applies no per-score multiply.
    """
    D = d_model
    scale = 1.0 / math.sqrt(D // nhead)
    n_ffn = n_enc + n_dec

    wbuf = jnp.zeros((len(wslot), D, WSLOT_COLS), jnp.float32)
    bias = jnp.zeros((len(brow), WSLOT_COLS), jnp.float32)
    w1 = jnp.zeros((n_ffn, D, dff), jnp.float32)
    w2 = jnp.zeros((n_ffn, dff, D), jnp.float32)
    b1 = jnp.zeros((n_ffn, 1, dff), jnp.float32)

    def put_w(buf, name, mat):
        return buf.at[wslot[name], :mat.shape[0], :mat.shape[1]].set(mat)

    def put_b(buf, name, vec):
        return buf.at[brow[name], :vec.shape[0]].set(vec)

    for j in range(N_FEAT):
        bias = put_b(bias, f"emb.w{j}", params["emb_w"][j])
    bias = put_b(bias, "emb.b", params["emb_b"])
    wbuf = put_w(wbuf, "out", params["out_w"])
    bias = put_b(bias, "out.b", params["out_b"])

    def fold_q(w, b):   # fold softmax scale into the q columns
        return (w.at[:, :D].set(w[:, :D] * scale), b.at[:D].set(b[:D] * scale))

    for i, L in enumerate(params["enc"]):
        pf = f"e{i}."
        wq, bq = fold_q(L["wqkv"], L["bqkv"])
        wbuf = put_w(wbuf, pf + "wqkv", wq); bias = put_b(bias, pf + "bqkv", bq)
        wbuf = put_w(wbuf, pf + "wo", L["wo"]); bias = put_b(bias, pf + "bo", L["bo"])
        for nm, v in (("ln1g", L["ln1"]["g"]), ("ln1b", L["ln1"]["b"]),
                      ("ln2g", L["ln2"]["g"]), ("ln2b", L["ln2"]["b"]), ("b2", L["b2"])):
            bias = put_b(bias, pf + nm, v)
        w1 = w1.at[i].set(L["w1"]); w2 = w2.at[i].set(L["w2"]); b1 = b1.at[i, 0].set(L["b1"])

    for i, L in enumerate(params["dec"]):
        pf = f"d{i}."
        wq, bq = fold_q(L["s_wqkv"], L["s_bqkv"])
        wbuf = put_w(wbuf, pf + "s_wqkv", wq); bias = put_b(bias, pf + "s_bqkv", bq)
        wbuf = put_w(wbuf, pf + "s_wo", L["s_wo"]); bias = put_b(bias, pf + "s_bo", L["s_bo"])
        wbuf = put_w(wbuf, pf + "c_wq", L["c_wq"] * scale)
        bias = put_b(bias, pf + "c_bq", L["c_bq"] * scale)
        wbuf = put_w(wbuf, pf + "c_wkv", L["c_wkv"]); bias = put_b(bias, pf + "c_bkv", L["c_bkv"])
        wbuf = put_w(wbuf, pf + "c_wo", L["c_wo"]); bias = put_b(bias, pf + "c_bo", L["c_bo"])
        for nm, v in (("ln1g", L["ln1"]["g"]), ("ln1b", L["ln1"]["b"]),
                      ("ln2g", L["ln2"]["g"]), ("ln2b", L["ln2"]["b"]),
                      ("ln3g", L["ln3"]["g"]), ("ln3b", L["ln3"]["b"]), ("b2", L["b2"])):
            bias = put_b(bias, pf + nm, v)
        j = n_enc + i
        w1 = w1.at[j].set(L["w1"]); w2 = w2.at[j].set(L["w2"]); b1 = b1.at[j, 0].set(L["b1"])

    bias = put_b(bias, "encnorm.g", params["enc_norm"]["g"])
    bias = put_b(bias, "encnorm.b", params["enc_norm"]["b"])
    bias = put_b(bias, "decnorm.g", params["dec_norm"]["g"])
    bias = put_b(bias, "decnorm.b", params["dec_norm"]["b"])

    return dict(wbuf=wbuf.astype(jnp.bfloat16), w1=w1.astype(jnp.bfloat16),
                w2=w2.astype(jnp.bfloat16), bias=bias, b1=b1)


# ---------------------------- pure-JAX f32 reference ---------------------------- #

def reference_forward(p, enc, dec, nhead=NHEAD):
    D = p["emb_b"].shape[0]
    Dh = D // nhead
    scale = 1.0 / math.sqrt(Dh)

    def ln(x, g, b):
        mu = x.mean(-1, keepdims=True)
        var = ((x - mu) ** 2).mean(-1, keepdims=True)
        return (x - mu) / jnp.sqrt(var + EPS) * g + b

    def mha(q_in, kv_in, wq, bq, wk, bk, wv, bv, wo, bo):
        B, Sq, _ = q_in.shape
        Sk = kv_in.shape[1]
        q = (q_in @ wq + bq).reshape(B, Sq, nhead, Dh)
        k = (kv_in @ wk + bk).reshape(B, Sk, nhead, Dh)
        v = (kv_in @ wv + bv).reshape(B, Sk, nhead, Dh)
        s = jnp.einsum("bqhd,bkhd->bhqk", q, k) * scale
        a = jax.nn.softmax(s, axis=-1)
        o = jnp.einsum("bhqk,bkhd->bqhd", a, v).reshape(B, Sq, D)
        return o @ wo + bo

    def ffn(x, w1, b1, w2, b2):
        return jnp.maximum(x @ w1 + b1, 0.0) @ w2 + b2

    x = enc @ p["emb_w"] + p["emb_b"]
    for L in p["enc"]:
        w, b = L["wqkv"], L["bqkv"]
        a = mha(x, x, w[:, :D], b[:D], w[:, D:2 * D], b[D:2 * D],
                w[:, 2 * D:], b[2 * D:], L["wo"], L["bo"])
        x = ln(x + a, L["ln1"]["g"], L["ln1"]["b"])
        x = ln(x + ffn(x, L["w1"], L["b1"], L["w2"], L["b2"]), L["ln2"]["g"], L["ln2"]["b"])
    mem = ln(x, p["enc_norm"]["g"], p["enc_norm"]["b"])

    y = dec @ p["emb_w"] + p["emb_b"]   # PyTorch forward applies linear_enc to the decoder input
    for L in p["dec"]:
        w, b = L["s_wqkv"], L["s_bqkv"]
        a = mha(y, y, w[:, :D], b[:D], w[:, D:2 * D], b[D:2 * D],
                w[:, 2 * D:], b[2 * D:], L["s_wo"], L["s_bo"])
        y = ln(y + a, L["ln1"]["g"], L["ln1"]["b"])
        a = mha(y, mem, L["c_wq"], L["c_bq"], L["c_wkv"][:, :D], L["c_bkv"][:D],
                L["c_wkv"][:, D:], L["c_bkv"][D:], L["c_wo"], L["c_bo"])
        y = ln(y + a, L["ln2"]["g"], L["ln2"]["b"])
        y = ln(y + ffn(y, L["w1"], L["b1"], L["w2"], L["b2"]), L["ln3"]["g"], L["ln3"]["b"])
    y = ln(y, p["dec_norm"]["g"], p["dec_norm"]["b"])
    return y @ p["out_w"] + p["out_b"]


# ------------------------------------- main ------------------------------------ #

if __name__ == "__main__":
    key = jax.random.PRNGKey(0)
    pk, ek, dk = jax.random.split(key, 3)

    wslot, brow = build_layout(N_ENC, N_DEC)
    params = init_params(pk)
    packed = pack_params(params, wslot, brow)

    B, S_src, S_tgt = 2, 8, 8
    enc_in = jax.random.normal(ek, (B, S_src, N_FEAT), jnp.float32)   # Lorenz-63 state: 3 feats
    dec_in = jax.random.normal(dk, (B, S_tgt, N_FEAT), jnp.float32)

    fwd = jax.jit(functools.partial(transformer_predictor, nhead=NHEAD,
                                    n_enc=N_ENC, n_dec=N_DEC, wslot=wslot, brow=brow))
    out = fwd(packed, enc_in, dec_in)
    jax.block_until_ready(out)

    assert out.shape == (B, S_tgt, N_FEAT), out.shape
    assert bool(jnp.all(jnp.isfinite(out)))

    # Tolerance check against a pure-f32 reference (bf16 MXU + approx reciprocal => not bitwise).
    ref = reference_forward(params, enc_in, dec_in)
    err = float(jnp.max(jnp.abs(out - ref)))
    assert err < 8e-2, f"max |pallas - reference| = {err}"
    print("KERNEL_OK")
</pallas_src>

<mosaic_0001>
module attributes {stable_mosaic.version = 11 : i64} {
  func.func @_fused_kernel(%arg0: memref<2x8x3xf32, #tpu.memory_space<vmem>>, %arg1: memref<2x8x3xf32, #tpu.memory_space<vmem>>, %arg2: memref<15x32x128xbf16, #tpu.memory_space<vmem>>, %arg3: memref<4x32x2048xbf16, #tpu.memory_space<vmem>>, %arg4: memref<4x2048x32xbf16, #tpu.memory_space<vmem>>, %arg5: memref<47x128xf32, #tpu.memory_space<vmem>>, %arg6: memref<4x1x2048xf32, #tpu.memory_space<vmem>>, %arg7: memref<2x8x3xf32, #tpu.memory_space<vmem>>) attributes {dimension_semantics = [], scalar_prefetch = 0 : i64, scratch_operands = 0 : i64, tpu.core_type = #tpu.core_type<tc>} {
    %c0 = arith.constant 0 : index
    %c0_0 = arith.constant 0 : index
    %c0_1 = arith.constant 0 : index
    %0 = vector.load %arg0[%c0, %c0_0, %c0_1] : memref<2x8x3xf32, #tpu.memory_space<vmem>>, vector<2x8x3xf32>
    %1 = vector.shape_cast %0 : vector<2x8x3xf32> to vector<16x3xf32>
    %c3 = arith.constant 3 : index
    %c0_2 = arith.constant 0 : index
    %2 = vector.load %arg5[%c3, %c0_2] : memref<47x128xf32, #tpu.memory_space<vmem>>, vector<1x32xf32>
    %3 = vector.extract_strided_slice %1 {offsets = [0, 0], sizes = [16, 1], strides = [1, 1]} : vector<16x3xf32> to vector<16x1xf32>
    %c0_3 = arith.constant 0 : index
    %c0_4 = arith.constant 0 : index
    %4 = vector.load %arg5[%c0_3, %c0_4] : memref<47x128xf32, #tpu.memory_space<vmem>>, vector<1x32xf32>
    %5 = vector.broadcast %3 : vector<16x1xf32> to vector<16x32xf32>
    %6 = vector.broadcast %4 : vector<1x32xf32> to vector<16x32xf32>
    %7 = arith.mulf %5, %6 : vector<16x32xf32>
    %8 = vector.broadcast %2 : vector<1x32xf32> to vector<16x32xf32>
    %9 = arith.addf %8, %7 : vector<16x32xf32>
    %10 = vector.extract_strided_slice %1 {offsets = [0, 1], sizes = [16, 1], strides = [1, 1]} : vector<16x3xf32> to vector<16x1xf32>
    %c1 = arith.constant 1 : index
    %c0_5 = arith.constant 0 : index
    %11 = vector.load %arg5[%c1, %c0_5] : memref<47x128xf32, #tpu.memory_space<vmem>>, vector<1x32xf32>
    %12 = vector.broadcast %10 : vector<16x1xf32> to vector<16x32xf32>
    %13 = vector.broadcast %11 : vector<1x32xf32> to vector<16x32xf32>
    %14 = arith.mulf %12, %13 : vector<16x32xf32>
    %15 = arith.addf %9, %14 : vector<16x32xf32>
    %16 = vector.extract_strided_slice %1 {offsets = [0, 2], sizes = [16, 1], strides = [1, 1]} : vector<16x3xf32> to vector<16x1xf32>
    %c2 = arith.constant 2 : index
    %c0_6 = arith.constant 0 : index
    %17 = vector.load %arg5[%c2, %c0_6] : memref<47x128xf32, #tpu.memory_space<vmem>>, vector<1x32xf32>
    %18 = vector.broadcast %16 : vector<16x1xf32> to vector<16x32xf32>
    %19 = vector.broadcast %17 : vector<1x32xf32> to vector<16x32xf32>
    %20 = arith.mulf %18, %19 : vector<16x32xf32>
    %21 = arith.addf %15, %20 : vector<16x32xf32>
    %c0_7 = arith.constant 0 : index
    %c0_8 = arith.constant 0 : index
    %c0_9 = arith.constant 0 : index
    %22 = vector.load %arg1[%c0_7, %c0_8, %c0_9] : memref<2x8x3xf32, #tpu.memory_space<vmem>>, vector<2x8x3xf32>
    %23 = vector.shape_cast %22 : vector<2x8x3xf32> to vector<16x3xf32>
    %c3_10 = arith.constant 3 : index
    %c0_11 = arith.constant 0 : index
    %24 = vector.load %arg5[%c3_10, %c0_11] : memref<47x128xf32, #tpu.memory_space<vmem>>, vector<1x32xf32>
    %25 = vector.extract_strided_slice %23 {offsets = [0, 0], sizes = [16, 1], strides = [1, 1]} : vector<16x3xf32> to vector<16x1xf32>
    %c0_12 = arith.constant 0 : index
    %c0_13 = arith.constant 0 : index
    %26 = vector.load %arg5[%c0_12, %c0_13] : memref<47x128xf32, #tpu.memory_space<vmem>>, vector<1x32xf32>
    %27 = vector.broadcast %25 : vector<16x1xf32> to vector<16x32xf32>
    %28 = vector.broadcast %26 : vector<1x32xf32> to vector<16x32xf32>
    %29 = arith.mulf %27, %28 : vector<16x32xf32>
    %30 = vector.broadcast %24 : vector<1x32xf32> to vector<16x32xf32>
    %31 = arith.addf %30, %29 : vector<16x32xf32>
    %32 = vector.extract_strided_slice %23 {offsets = [0, 1], sizes = [16, 1], strides = [1, 1]} : vector<16x3xf32> to vector<16x1xf32>
    %c1_14 = arith.constant 1 : index
    %c0_15 = arith.constant 0 : index
    %33 = vector.load %arg5[%c1_14, %c0_15] : memref<47x128xf32, #tpu.memory_space<vmem>>, vector<1x32xf32>
    %34 = vector.broadcast %32 : vector<16x1xf32> to vector<16x32xf32>
    %35 = vector.broadcast %33 : vector<1x32xf32> to vector<16x32xf32>
    %36 = arith.mulf %34, %35 : vector<16x32xf32>
    %37 = arith.addf %31, %36 : vector<16x32xf32>
    %38 = vector.extract_strided_slice %23 {offsets = [0, 2], sizes = [16, 1], strides = [1, 1]} : vector<16x3xf32> to vector<16x1xf32>
    %c2_16 = arith.constant 2 : index
    %c0_17 = arith.constant 0 : index
    %39 = vector.load %arg5[%c2_16, %c0_17] : memref<47x128xf32, #tpu.memory_space<vmem>>, vector<1x32xf32>
    %40 = vector.broadcast %38 : vector<16x1xf32> to vector<16x32xf32>
    %41 = vector.broadcast %39 : vector<1x32xf32> to vector<16x32xf32>
    %42 = arith.mulf %40, %41 : vector<16x32xf32>
    %43 = arith.addf %37, %42 : vector<16x32xf32>
    %c1_18 = arith.constant 1 : index
    %c0_19 = arith.constant 0 : index
    %c0_20 = arith.constant 0 : index
    %44 = vector.load %arg2[%c1_18, %c0_19, %c0_20] : memref<15x32x128xbf16, #tpu.memory_space<vmem>>, vector<1x32x96xbf16>
    %45 = vector.shape_cast %44 : vector<1x32x96xbf16> to vector<32x96xbf16>
    %46 = arith.truncf %21 : vector<16x32xf32> to vector<16x32xbf16>
    %cst = arith.constant dense<0.000000e+00> : vector<16x96xf32>
    %47 = tpu.matmul %46, %45, %cst {dimension_numbers = #tpu.dot_dimension_numbers<[1], [0], [0], [1], [0, 0, 1, 1], [], []>} : vector<16x32xbf16>, vector<32x96xbf16>, vector<16x96xf32> -> vector<16x96xf32>
    %c5 = arith.constant 5 : index
    %c0_21 = arith.constant 0 : index
    %48 = vector.load %arg5[%c5, %c0_21] : memref<47x128xf32, #tpu.memory_space<vmem>>, vector<1x96xf32>
    %49 = vector.broadcast %48 : vector<1x96xf32> to vector<16x96xf32>
    %50 = arith.addf %47, %49 : vector<16x96xf32>
    %51 = vector.extract_strided_slice %50 {offsets = [0, 0], sizes = [16, 32], strides = [1, 1]} : vector<16x96xf32> to vector<16x32xf32>
    %52 = vector.extract_strided_slice %50 {offsets = [0, 32], sizes = [16, 32], strides = [1, 1]} : vector<16x96xf32> to vector<16x32xf32>
    %53 = vector.extract_strided_slice %50 {offsets = [0, 64], sizes = [16, 32], strides = [1, 1]} : vector<16x96xf32> to vector<16x32xf32>
    %54 = vector.shape_cast %51 : vector<16x32xf32> to vector<2x8x32xf32>
    %55 = arith.truncf %54 : vector<2x8x32xf32> to vector<2x8x32xbf16>
    %56 = vector.shape_cast %52 : vector<16x32xf32> to vector<2x8x32xf32>
    %57 = arith.truncf %56 : vector<2x8x32xf32> to vector<2x8x32xbf16>
    %58 = vector.shape_cast %53 : vector<16x32xf32> to vector<2x8x32xf32>
    %59 = arith.truncf %58 : vector<2x8x32xf32> to vector<2x8x32xbf16>
    %c2_22 = arith.constant 2 : index
    %c0_23 = arith.constant 0 : index
    %c0_24 = arith.constant 0 : index
    %60 = vector.load %arg2[%c2_22, %c0_23, %c0_24] : memref<15x32x128xbf16, #tpu.memory_space<vmem>>, vector<1x32x32xbf16>
    %61 = vector.shape_cast %60 : vector<1x32x32xbf16> to vector<32x32xbf16>
    %62 = vector.extract_strided_slice %55 {offsets = [0, 0, 0], sizes = [2, 8, 8], strides = [1, 1, 1]} : vector<2x8x32xbf16> to vector<2x8x8xbf16>
    %63 = vector.extract_strided_slice %57 {offsets = [0, 0, 0], sizes = [2, 8, 8], strides = [1, 1, 1]} : vector<2x8x32xbf16> to vector<2x8x8xbf16>
    "tpu.trace_start"() <{level = 10 : i32, message = "bqd,bkd->bqk"}> : () -> ()
    %cst_25 = arith.constant dense<0.000000e+00> : vector<2x8x8xf32>
    %64 = tpu.matmul %62, %63, %cst_25 {dimension_numbers = #tpu.dot_dimension_numbers<[2], [2], [1], [1], [0, 0, 0, 1, 1, 1], [0], [0]>} : vector<2x8x8xbf16>, vector<2x8x8xbf16>, vector<2x8x8xf32> -> vector<2x8x8xf32>
    "tpu.trace_stop"() : () -> ()
    %cst_26 = arith.constant dense<0xFF800000> : vector<2x8xf32>
    %65 = vector.multi_reduction <maximumf>, %64, %cst_26 [2] : vector<2x8x8xf32> to vector<2x8xf32>
    %66 = vector.shape_cast %65 : vector<2x8xf32> to vector<2x8x1xf32>
    %67 = vector.broadcast %66 : vector<2x8x1xf32> to vector<2x8x8xf32>
    %68 = arith.subf %64, %67 : vector<2x8x8xf32>
    %69 = math.exp %68 : vector<2x8x8xf32>
    %cst_27 = arith.constant dense<0.000000e+00> : vector<2x8xf32>
    %70 = vector.multi_reduction <add>, %69, %cst_27 [2] : vector<2x8x8xf32> to vector<2x8xf32>
    %71 = vector.shape_cast %70 : vector<2x8xf32> to vector<2x8x1xf32>
    %72 = tpu.reciprocal %71 {approx = true} : vector<2x8x1xf32> -> vector<2x8x1xf32>
    %73 = vector.broadcast %72 : vector<2x8x1xf32> to vector<2x8x8xf32>
    %74 = arith.mulf %69, %73 : vector<2x8x8xf32>
    %75 = arith.truncf %74 : vector<2x8x8xf32> to vector<2x8x8xbf16>
    %76 = vector.extract_strided_slice %59 {offsets = [0, 0, 0], sizes = [2, 8, 8], strides = [1, 1, 1]} : vector<2x8x32xbf16> to vector<2x8x8xbf16>
    "tpu.trace_start"() <{level = 10 : i32, message = "bqk,bkd->bqd"}> : () -> ()
    %cst_28 = arith.constant dense<0.000000e+00> : vector<2x8x8xf32>
    %77 = tpu.matmul %75, %76, %cst_28 {dimension_numbers = #tpu.dot_dimension_numbers<[2], [1], [1], [2], [0, 0, 0, 1, 1, 2], [0], [0]>} : vector<2x8x8xbf16>, vector<2x8x8xbf16>, vector<2x8x8xf32> -> vector<2x8x8xf32>
    "tpu.trace_stop"() : () -> ()
    %78 = vector.shape_cast %77 : vector<2x8x8xf32> to vector<16x8xf32>
    %79 = vector.extract_strided_slice %61 {offsets = [0, 0], sizes = [8, 32], strides = [1, 1]} : vector<32x32xbf16> to vector<8x32xbf16>
    %80 = arith.truncf %78 : vector<16x8xf32> to vector<16x8xbf16>
    %cst_29 = arith.constant dense<0.000000e+00> : vector<16x32xf32>
    %81 = tpu.matmul %80, %79, %cst_29 {dimension_numbers = #tpu.dot_dimension_numbers<[1], [0], [0], [1], [0, 0, 1, 1], [], []>} : vector<16x8xbf16>, vector<8x32xbf16>, vector<16x32xf32> -> vector<16x32xf32>
    %82 = vector.extract_strided_slice %55 {offsets = [0, 0, 8], sizes = [2, 8, 8], strides = [1, 1, 1]} : vector<2x8x32xbf16> to vector<2x8x8xbf16>
    %83 = vector.extract_strided_slice %57 {offsets = [0, 0, 8], sizes = [2, 8, 8], strides = [1, 1, 1]} : vector<2x8x32xbf16> to vector<2x8x8xbf16>
    "tpu.trace_start"() <{level = 10 : i32, message = "bqd,bkd->bqk"}> : () -> ()
    %cst_30 = arith.constant dense<0.000000e+00> : vector<2x8x8xf32>
    %84 = tpu.matmul %82, %83, %cst_30 {dimension_numbers = #tpu.dot_dimension_numbers<[2], [2], [1], [1], [0, 0, 0, 1, 1, 1], [0], [0]>} : vector<2x8x8xbf16>, vector<2x8x8xbf16>, vector<2x8x8xf32> -> vector<2x8x8xf32>
    "tpu.trace_stop"() : () -> ()
    %cst_31 = arith.constant dense<0xFF800000> : vector<2x8xf32>
    %85 = vector.multi_reduction <maximumf>, %84, %cst_31 [2] : vector<2x8x8xf32> to vector<2x8xf32>
    %86 = vector.shape_cast %85 : vector<2x8xf32> to vector<2x8x1xf32>
    %87 = vector.broadcast %86 : vector<2x8x1xf32> to vector<2x8x8xf32>
    %88 = arith.subf %84, %87 : vector<2x8x8xf32>
    %89 = math.exp %88 : vector<2x8x8xf32>
    %cst_32 = arith.constant dense<0.000000e+00> : vector<2x8xf32>
    %90 = vector.multi_reduction <add>, %89, %cst_32 [2] : vector<2x8x8xf32> to vector<2x8xf32>
    %91 = vector.shape_cast %90 : vector<2x8xf32> to vector<2x8x1xf32>
    %92 = tpu.reciprocal %91 {approx = true} : vector<2x8x1xf32> -> vector<2x8x1xf32>
    %93 = vector.broadcast %92 : vector<2x8x1xf32> to vector<2x8x8xf32>
    %94 = arith.mulf %89, %93 : vector<2x8x8xf32>
    %95 = arith.truncf %94 : vector<2x8x8xf32> to vector<2x8x8xbf16>
    %96 = vector.extract_strided_slice %59 {offsets = [0, 0, 8], sizes = [2, 8, 8], strides = [1, 1, 1]} : vector<2x8x32xbf16> to vector<2x8x8xbf16>
    "tpu.trace_start"() <{level = 10 : i32, message = "bqk,bkd->bqd"}> : () -> ()
    %cst_33 = arith.constant dense<0.000000e+00> : vector<2x8x8xf32>
    %97 = tpu.matmul %95, %96, %cst_33 {dimension_numbers = #tpu.dot_dimension_numbers<[2], [1], [1], [2], [0, 0, 0, 1, 1, 2], [0], [0]>} : vector<2x8x8xbf16>, vector<2x8x8xbf16>, vector<2x8x8xf32> -> vector<2x8x8xf32>
    "tpu.trace_stop"() : () -> ()
    %98 = vector.shape_cast %97 : vector<2x8x8xf32> to vector<16x8xf32>
    %99 = vector.extract_strided_slice %61 {offsets = [8, 0], sizes = [8, 32], strides = [1, 1]} : vector<32x32xbf16> to vector<8x32xbf16>
    %100 = arith.truncf %98 : vector<16x8xf32> to vector<16x8xbf16>
    %cst_34 = arith.constant dense<0.000000e+00> : vector<16x32xf32>
    %101 = tpu.matmul %100, %99, %cst_34 {dimension_numbers = #tpu.dot_dimension_numbers<[1], [0], [0], [1], [0, 0, 1, 1], [], []>} : vector<16x8xbf16>, vector<8x32xbf16>, vector<16x32xf32> -> vector<16x32xf32>
    %102 = arith.addf %81, %101 : vector<16x32xf32>
    %103 = vector.extract_strided_slice %55 {offsets = [0, 0, 16], sizes = [2, 8, 8], strides = [1, 1, 1]} : vector<2x8x32xbf16> to vector<2x8x8xbf16>
    %104 = vector.extract_strided_slice %57 {offsets = [0, 0, 16], sizes = [2, 8, 8], strides = [1, 1, 1]} : vector<2x8x32xbf16> to vector<2x8x8xbf16>
    "tpu.trace_start"() <{level = 10 : i32, message = "bqd,bkd->bqk"}> : () -> ()
    %cst_35 = arith.constant dense<0.000000e+00> : vector<2x8x8xf32>
    %105 = tpu.matmul %103, %104, %cst_35 {dimension_numbers = #tpu.dot_dimension_numbers<[2], [2], [1], [1], [0, 0, 0, 1, 1, 1], [0], [0]>} : vector<2x8x8xbf16>, vector<2x8x8xbf16>, vector<2x8x8xf32> -> vector<2x8x8xf32>
    "tpu.trace_stop"() : () -> ()
    %cst_36 = arith.constant dense<0xFF800000> : vector<2x8xf32>
    %106 = vector.multi_reduction <maximumf>, %105, %cst_36 [2] : vector<2x8x8xf32> to vector<2x8xf32>
    %107 = vector.shape_cast %106 : vector<2x8xf32> to vector<2x8x1xf32>
    %108 = vector.broadcast %107 : vector<2x8x1xf32> to vector<2x8x8xf32>
    %109 = arith.subf %105, %108 : vector<2x8x8xf32>
    %110 = math.exp %109 : vector<2x8x8xf32>
    %cst_37 = arith.constant dense<0.000000e+00> : vector<2x8xf32>
    %111 = vector.multi_reduction <add>, %110, %cst_37 [2] : vector<2x8x8xf32> to vector<2x8xf32>
    %112 = vector.shape_cast %111 : vector<2x8xf32> to vector<2x8x1xf32>
    %113 = tpu.reciprocal %112 {approx = true} : vector<2x8x1xf32> -> vector<2x8x1xf32>
    %114 = vector.broadcast %113 : vector<2x8x1xf32> to vector<2x8x8xf32>
    %115 = arith.mulf %110, %114 : vector<2x8x8xf32>
    %116 = arith.truncf %115 : vector<2x8x8xf32> to vector<2x8x8xbf16>
    %117 = vector.extract_strided_slice %59 {offsets = [0, 0, 16], sizes = [2, 8, 8], strides = [1, 1, 1]} : vector<2x8x32xbf16> to vector<2x8x8xbf16>
    "tpu.trace_start"() <{level = 10 : i32, message = "bqk,bkd->bqd"}> : () -> ()
    %cst_38 = arith.constant dense<0.000000e+00> : vector<2x8x8xf32>
    %118 = tpu.matmul %116, %117, %cst_38 {dimension_numbers = #tpu.dot_dimension_numbers<[2], [1], [1], [2], [0, 0, 0, 1, 1, 2], [0], [0]>} : vector<2x8x8xbf16>, vector<2x8x8xbf16>, vector<2x8x8xf32> -> vector<2x8x8xf32>
    "tpu.trace_stop"() : () -> ()
    %119 = vector.shape_cast %118 : vector<2x8x8xf32> to vector<16x8xf32>
    %120 = vector.extract_strided_slice %61 {offsets = [16, 0], sizes = [8, 32], strides = [1, 1]} : vector<32x32xbf16> to vector<8x32xbf16>
    %121 = arith.truncf %119 : vector<16x8xf32> to vector<16x8xbf16>
    %cst_39 = arith.constant dense<0.000000e+00> : vector<16x32xf32>
    %122 = tpu.matmul %121, %120, %cst_39 {dimension_numbers = #tpu.dot_dimension_numbers<[1], [0], [0], [1], [0, 0, 1, 1], [], []>} : vector<16x8xbf16>, vector<8x32xbf16>, vector<16x32xf32> -> vector<16x32xf32>
    %123 = arith.addf %102, %122 : vector<16x32xf32>
    %124 = vector.extract_strided_slice %55 {offsets = [0, 0, 24], sizes = [2, 8, 8], strides = [1, 1, 1]} : vector<2x8x32xbf16> to vector<2x8x8xbf16>
    %125 = vector.extract_strided_slice %57 {offsets = [0, 0, 24], sizes = [2, 8, 8], strides = [1, 1, 1]} : vector<2x8x32xbf16> to vector<2x8x8xbf16>
    "tpu.trace_start"() <{level = 10 : i32, message = "bqd,bkd->bqk"}> : () -> ()
    %cst_40 = arith.constant dense<0.000000e+00> : vector<2x8x8xf32>
    %126 = tpu.matmul %124, %125, %cst_40 {dimension_numbers = #tpu.dot_dimension_numbers<[2], [2], [1], [1], [0, 0, 0, 1, 1, 1], [0], [0]>} : vector<2x8x8xbf16>, vector<2x8x8xbf16>, vector<2x8x8xf32> -> vector<2x8x8xf32>
    "tpu.trace_stop"() : () -> ()
    %cst_41 = arith.constant dense<0xFF800000> : vector<2x8xf32>
    %127 = vector.multi_reduction <maximumf>, %126, %cst_41 [2] : vector<2x8x8xf32> to vector<2x8xf32>
    %128 = vector.shape_cast %127 : vector<2x8xf32> to vector<2x8x1xf32>
    %129 = vector.broadcast %128 : vector<2x8x1xf32> to vector<2x8x8xf32>
    %130 = arith.subf %126, %129 : vector<2x8x8xf32>
    %131 = math.exp %130 : vector<2x8x8xf32>
    %cst_42 = arith.constant dense<0.000000e+00> : vector<2x8xf32>
    %132 = vector.multi_reduction <add>, %131, %cst_42 [2] : vector<2x8x8xf32> to vector<2x8xf32>
    %133 = vector.shape_cast %132 : vector<2x8xf32> to vector<2x8x1xf32>
    %134 = tpu.reciprocal %133 {approx = true} : vector<2x8x1xf32> -> vector<2x8x1xf32>
    %135 = vector.broadcast %134 : vector<2x8x1xf32> to vector<2x8x8xf32>
    %136 = arith.mulf %131, %135 : vector<2x8x8xf32>
    %137 = arith.truncf %136 : vector<2x8x8xf32> to vector<2x8x8xbf16>
    %138 = vector.extract_strided_slice %59 {offsets = [0, 0, 24], sizes = [2, 8, 8], strides = [1, 1, 1]} : vector<2x8x32xbf16> to vector<2x8x8xbf16>
    "tpu.trace_start"() <{level = 10 : i32, message = "bqk,bkd->bqd"}> : () -> ()
    %cst_43 = arith.constant dense<0.000000e+00> : vector<2x8x8xf32>
    %139 = tpu.matmul %137, %138, %cst_43 {dimension_numbers = #tpu.dot_dimension_numbers<[2], [1], [1], [2], [0, 0, 0, 1, 1, 2], [0], [0]>} : vector<2x8x8xbf16>, vector<2x8x8xbf16>, vector<2x8x8xf32> -> vector<2x8x8xf32>
    "tpu.trace_stop"() : () -> ()
    %140 = vector.shape_cast %139 : vector<2x8x8xf32> to vector<16x8xf32>
    %141 = vector.extract_strided_slice %61 {offsets = [24, 0], sizes = [8, 32], strides = [1, 1]} : vector<32x32xbf16> to vector<8x32xbf16>
    %142 = arith.truncf %140 : vector<16x8xf32> to vector<16x8xbf16>
    %cst_44 = arith.constant dense<0.000000e+00> : vector<16x32xf32>
    %143 = tpu.matmul %142, %141, %cst_44 {dimension_numbers = #tpu.dot_dimension_numbers<[1], [0], [0], [1], [0, 0, 1, 1], [], []>} : vector<16x8xbf16>, vector<8x32xbf16>, vector<16x32xf32> -> vector<16x32xf32>
    %144 = arith.addf %123, %143 : vector<16x32xf32>
    %c6 = arith.constant 6 : index
    %c0_45 = arith.constant 0 : index
    %145 = vector.load %arg5[%c6, %c0_45] : memref<47x128xf32, #tpu.memory_space<vmem>>, vector<1x32xf32>
    %146 = vector.broadcast %145 : vector<1x32xf32> to vector<16x32xf32>
    %147 = arith.addf %144, %146 : vector<16x32xf32>
    %148 = arith.addf %21, %147 : vector<16x32xf32>
    %c7 = arith.constant 7 : index
    %c0_46 = arith.constant 0 : index
    %149 = vector.load %arg5[%c7, %c0_46] : memref<47x128xf32, #tpu.memory_space<vmem>>, vector<1x32xf32>
    %c8 = arith.constant 8 : index
    %c0_47 = arith.constant 0 : index
    %150 = vector.load %arg5[%c8, %c0_47] : memref<47x128xf32, #tpu.memory_space<vmem>>, vector<1x32xf32>
    %cst_48 = arith.constant dense<0.000000e+00> : vector<16xf32>
    %151 = vector.multi_reduction <add>, %148, %cst_48 [1] : vector<16x32xf32> to vector<16xf32>
    %152 = vector.shape_cast %151 : vector<16xf32> to vector<16x1xf32>
    %cst_49 = arith.constant 3.200000e+01 : f32
    %153 = vector.broadcast %cst_49 : f32 to vector<16x1xf32>
    %154 = arith.divf %152, %153 : vector<16x1xf32>
    %155 = vector.broadcast %154 : vector<16x1xf32> to vector<16x32xf32>
    %156 = arith.subf %148, %155 : vector<16x32xf32>
    %157 = arith.mulf %156, %156 : vector<16x32xf32>
    %cst_50 = arith.constant dense<0.000000e+00> : vector<16xf32>
    %158 = vector.multi_reduction <add>, %157, %cst_50 [1] : vector<16x32xf32> to vector<16xf32>
    %159 = vector.shape_cast %158 : vector<16xf32> to vector<16x1xf32>
    %cst_51 = arith.constant 3.200000e+01 : f32
    %160 = vector.broadcast %cst_51 : f32 to vector<16x1xf32>
    %161 = arith.divf %159, %160 : vector<16x1xf32>
    %162 = vector.broadcast %154 : vector<16x1xf32> to vector<16x32xf32>
    %163 = arith.subf %148, %162 : vector<16x32xf32>
    %cst_52 = arith.constant 9.99999974E-6 : f32
    %164 = vector.broadcast %cst_52 : f32 to vector<16x1xf32>
    %165 = arith.addf %161, %164 : vector<16x1xf32>
    %166 = math.rsqrt %165 : vector<16x1xf32>
    %167 = vector.broadcast %166 : vector<16x1xf32> to vector<16x32xf32>
    %168 = arith.mulf %163, %167 : vector<16x32xf32>
    %169 = vector.broadcast %149 : vector<1x32xf32> to vector<16x32xf32>
    %170 = arith.mulf %168, %169 : vector<16x32xf32>
    %171 = vector.broadcast %150 : vector<1x32xf32> to vector<16x32xf32>
    %172 = arith.addf %170, %171 : vector<16x32xf32>
    %c0_53 = arith.constant 0 : index
    %c0_54 = arith.constant 0 : index
    %c0_55 = arith.constant 0 : index
    %173 = vector.load %arg3[%c0_53, %c0_54, %c0_55] : memref<4x32x2048xbf16, #tpu.memory_space<vmem>>, vector<1x32x2048xbf16>
    %174 = vector.shape_cast %173 : vector<1x32x2048xbf16> to vector<32x2048xbf16>
    %175 = arith.truncf %172 : vector<16x32xf32> to vector<16x32xbf16>
    %cst_56 = arith.constant dense<0.000000e+00> : vector<16x2048xf32>
    %176 = tpu.matmul %175, %174, %cst_56 {dimension_numbers = #tpu.dot_dimension_numbers<[1], [0], [0], [1], [0, 0, 1, 1], [], []>} : vector<16x32xbf16>, vector<32x2048xbf16>, vector<16x2048xf32> -> vector<16x2048xf32>
    %c0_57 = arith.constant 0 : index
    %c0_58 = arith.constant 0 : index
    %c0_59 = arith.constant 0 : index
    %177 = vector.load %arg6[%c0_57, %c0_58, %c0_59] : memref<4x1x2048xf32, #tpu.memory_space<vmem>>, vector<1x1x2048xf32>
    %178 = vector.shape_cast %177 : vector<1x1x2048xf32> to vector<1x2048xf32>
    %179 = vector.broadcast %178 : vector<1x2048xf32> to vector<16x2048xf32>
    %180 = arith.addf %176, %179 : vector<16x2048xf32>
    %cst_60 = arith.constant 0.000000e+00 : f32
    %181 = vector.broadcast %cst_60 : f32 to vector<16x2048xf32>
    %182 = arith.maximumf %180, %181 : vector<16x2048xf32>
    %183 = arith.truncf %182 : vector<16x2048xf32> to vector<16x2048xbf16>
    %c0_61 = arith.constant 0 : index
    %c0_62 = arith.constant 0 : index
    %c0_63 = arith.constant 0 : index
    %184 = vector.load %arg4[%c0_61, %c0_62, %c0_63] : memref<4x2048x32xbf16, #tpu.memory_space<vmem>>, vector<1x2048x32xbf16>
    %185 = vector.shape_cast %184 : vector<1x2048x32xbf16> to vector<2048x32xbf16>
    %cst_64 = arith.constant dense<0.000000e+00> : vector<16x32xf32>
    %186 = tpu.matmul %183, %185, %cst_64 {dimension_numbers = #tpu.dot_dimension_numbers<[1], [0], [0], [1], [0, 0, 1, 1], [], []>} : vector<16x2048xbf16>, vector<2048x32xbf16>, vector<16x32xf32> -> vector<16x32xf32>
    %c11 = arith.constant 11 : index
    %c0_65 = arith.constant 0 : index
    %187 = vector.load %arg5[%c11, %c0_65] : memref<47x128xf32, #tpu.memory_space<vmem>>, vector<1x32xf32>
    %188 = vector.broadcast %187 : vector<1x32xf32> to vector<16x32xf32>
    %189 = arith.addf %186, %188 : vector<16x32xf32>
    %190 = arith.addf %172, %189 : vector<16x32xf32>
    %c9 = arith.constant 9 : index
    %c0_66 = arith.constant 0 : index
    %191 = vector.load %arg5[%c9, %c0_66] : memref<47x128xf32, #tpu.memory_space<vmem>>, vector<1x32xf32>
    %c10 = arith.constant 10 : index
    %c0_67 = arith.constant 0 : index
    %192 = vector.load %arg5[%c10, %c0_67] : memref<47x128xf32, #tpu.memory_space<vmem>>, vector<1x32xf32>
    %cst_68 = arith.constant dense<0.000000e+00> : vector<16xf32>
    %193 = vector.multi_reduction <add>, %190, %cst_68 [1] : vector<16x32xf32> to vector<16xf32>
    %194 = vector.shape_cast %193 : vector<16xf32> to vector<16x1xf32>
    %cst_69 = arith.constant 3.200000e+01 : f32
    %195 = vector.broadcast %cst_69 : f32 to vector<16x1xf32>
    %196 = arith.divf %194, %195 : vector<16x1xf32>
    %197 = vector.broadcast %196 : vector<16x1xf32> to vector<16x32xf32>
    %198 = arith.subf %190, %197 : vector<16x32xf32>
    %199 = arith.mulf %198, %198 : vector<16x32xf32>
    %cst_70 = arith.constant dense<0.000000e+00> : vector<16xf32>
    %200 = vector.multi_reduction <add>, %199, %cst_70 [1] : vector<16x32xf32> to vector<16xf32>
    %201 = vector.shape_cast %200 : vector<16xf32> to vector<16x1xf32>
    %cst_71 = arith.constant 3.200000e+01 : f32
    %202 = vector.broadcast %cst_71 : f32 to vector<16x1xf32>
    %203 = arith.divf %201, %202 : vector<16x1xf32>
    %204 = vector.broadcast %196 : vector<16x1xf32> to vector<16x32xf32>
    %205 = arith.subf %190, %204 : vector<16x32xf32>
    %cst_72 = arith.constant 9.99999974E-6 : f32
    %206 = vector.broadcast %cst_72 : f32 to vector<16x1xf32>
    %207 = arith.addf %203, %206 : vector<16x1xf32>
    %208 = math.rsqrt %207 : vector<16x1xf32>
    %209 = vector.broadcast %208 : vector<16x1xf32> to vector<16x32xf32>
    %210 = arith.mulf %205, %209 : vector<16x32xf32>
    %211 = vector.broadcast %191 : vector<1x32xf32> to vector<16x32xf32>
    %212 = arith.mulf %210, %211 : vector<16x32xf32>
    %213 = vector.broadcast %192 : vector<1x32xf32> to vector<16x32xf32>
    %214 = arith.addf %212, %213 : vector<16x32xf32>
    %c3_73 = arith.constant 3 : index
    %c0_74 = arith.constant 0 : index
    %c0_75 = arith.constant 0 : index
    %215 = vector.load %arg2[%c3_73, %c0_74, %c0_75] : memref<15x32x128xbf16, #tpu.memory_space<vmem>>, vector<1x32x96xbf16>
    %216 = vector.shape_cast %215 : vector<1x32x96xbf16> to vector<32x96xbf16>
    %217 = arith.truncf %214 : vector<16x32xf32> to vector<16x32xbf16>
    %cst_76 = arith.constant dense<0.000000e+00> : vector<16x96xf32>
    %218 = tpu.matmul %217, %216, %cst_76 {dimension_numbers = #tpu.dot_dimension_numbers<[1], [0], [0], [1], [0, 0, 1, 1], [], []>} : vector<16x32xbf16>, vector<32x96xbf16>, vector<16x96xf32> -> vector<16x96xf32>
    %c12 = arith.constant 12 : index
    %c0_77 = arith.constant 0 : index
    %219 = vector.load %arg5[%c12, %c0_77] : memref<47x128xf32, #tpu.memory_space<vmem>>, vector<1x96xf32>
    %220 = vector.broadcast %219 : vector<1x96xf32> to vector<16x96xf32>
    %221 = arith.addf %218, %220 : vector<16x96xf32>
    %222 = vector.extract_strided_slice %221 {offsets = [0, 0], sizes = [16, 32], strides = [1, 1]} : vector<16x96xf32> to vector<16x32xf32>
    %223 = vector.extract_strided_slice %221 {offsets = [0, 32], sizes = [16, 32], strides = [1, 1]} : vector<16x96xf32> to vector<16x32xf32>
    %224 = vector.extract_strided_slice %221 {offsets = [0, 64], sizes = [16, 32], strides = [1, 1]} : vector<16x96xf32> to vector<16x32xf32>
    %225 = vector.shape_cast %222 : vector<16x32xf32> to vector<2x8x32xf32>
    %226 = arith.truncf %225 : vector<2x8x32xf32> to vector<2x8x32xbf16>
    %227 = vector.shape_cast %223 : vector<16x32xf32> to vector<2x8x32xf32>
    %228 = arith.truncf %227 : vector<2x8x32xf32> to vector<2x8x32xbf16>
    %229 = vector.shape_cast %224 : vector<16x32xf32> to vector<2x8x32xf32>
    %230 = arith.truncf %229 : vector<2x8x32xf32> to vector<2x8x32xbf16>
    %c4 = arith.constant 4 : index
    %c0_78 = arith.constant 0 : index
    %c0_79 = arith.constant 0 : index
    %231 = vector.load %arg2[%c4, %c0_78, %c0_79] : memref<15x32x128xbf16, #tpu.memory_space<vmem>>, vector<1x32x32xbf16>
    %232 = vector.shape_cast %231 : vector<1x32x32xbf16> to vector<32x32xbf16>
    %233 = vector.extract_strided_slice %226 {offsets = [0, 0, 0], sizes = [2, 8, 8], strides = [1, 1, 1]} : vector<2x8x32xbf16> to vector<2x8x8xbf16>
    %234 = vector.extract_strided_slice %228 {offsets = [0, 0, 0], sizes = [2, 8, 8], strides = [1, 1, 1]} : vector<2x8x32xbf16> to vector<2x8x8xbf16>
    "tpu.trace_start"() <{level = 10 : i32, message = "bqd,bkd->bqk"}> : () -> ()
    %cst_80 = arith.constant dense<0.000000e+00> : vector<2x8x8xf32>
    %235 = tpu.matmul %233, %234, %cst_80 {dimension_numbers = #tpu.dot_dimension_numbers<[2], [2], [1], [1], [0, 0, 0, 1, 1, 1], [0], [0]>} : vector<2x8x8xbf16>, vector<2x8x8xbf16>, vector<2x8x8xf32> -> vector<2x8x8xf32>
    "tpu.trace_stop"() : () -> ()
    %cst_81 = arith.constant dense<0xFF800000> : vector<2x8xf32>
    %236 = vector.multi_reduction <maximumf>, %235, %cst_81 [2] : vector<2x8x8xf32> to vector<2x8xf32>
    %237 = vector.shape_cast %236 : vector<2x8xf32> to vector<2x8x1xf32>
    %238 = vector.broadcast %237 : vector<2x8x1xf32> to vector<2x8x8xf32>
    %239 = arith.subf %235, %238 : vector<2x8x8xf32>
    %240 = math.exp %239 : vector<2x8x8xf32>
    %cst_82 = arith.constant dense<0.000000e+00> : vector<2x8xf32>
    %241 = vector.multi_reduction <add>, %240, %cst_82 [2] : vector<2x8x8xf32> to vector<2x8xf32>
    %242 = vector.shape_cast %241 : vector<2x8xf32> to vector<2x8x1xf32>
    %243 = tpu.reciprocal %242 {approx = true} : vector<2x8x1xf32> -> vector<2x8x1xf32>
    %244 = vector.broadcast %243 : vector<2x8x1xf32> to vector<2x8x8xf32>
    %245 = arith.mulf %240, %244 : vector<2x8x8xf32>
    %246 = arith.truncf %245 : vector<2x8x8xf32> to vector<2x8x8xbf16>
    %247 = vector.extract_strided_slice %230 {offsets = [0, 0, 0], sizes = [2, 8, 8], strides = [1, 1, 1]} : vector<2x8x32xbf16> to vector<2x8x8xbf16>
    "tpu.trace_start"() <{level = 10 : i32, message = "bqk,bkd->bqd"}> : () -> ()
    %cst_83 = arith.constant dense<0.000000e+00> : vector<2x8x8xf32>
    %248 = tpu.matmul %246, %247, %cst_83 {dimension_numbers = #tpu.dot_dimension_numbers<[2], [1], [1], [2], [0, 0, 0, 1, 1, 2], [0], [0]>} : vector<2x8x8xbf16>, vector<2x8x8xbf16>, vector<2x8x8xf32> -> vector<2x8x8xf32>
    "tpu.trace_stop"() : () -> ()
    %249 = vector.shape_cast %248 : vector<2x8x8xf32> to vector<16x8xf32>
    %250 = vector.extract_strided_slice %232 {offsets = [0, 0], sizes = [8, 32], strides = [1, 1]} : vector<32x32xbf16> to vector<8x32xbf16>
    %251 = arith.truncf %249 : vector<16x8xf32> to vector<16x8xbf16>
    %cst_84 = arith.constant dense<0.000000e+00> : vector<16x32xf32>
    %252 = tpu.matmul %251, %250, %cst_84 {dimension_numbers = #tpu.dot_dimension_numbers<[1], [0], [0], [1], [0, 0, 1, 1], [], []>} : vector<16x8xbf16>, vector<8x32xbf16>, vector<16x32xf32> -> vector<16x32xf32>
    %253 = vector.extract_strided_slice %226 {offsets = [0, 0, 8], sizes = [2, 8, 8], strides = [1, 1, 1]} : vector<2x8x32xbf16> to vector<2x8x8xbf16>
    %254 = vector.extract_strided_slice %228 {offsets = [0, 0, 8], sizes = [2, 8, 8], strides = [1, 1, 1]} : vector<2x8x32xbf16> to vector<2x8x8xbf16>
    "tpu.trace_start"() <{level = 10 : i32, message = "bqd,bkd->bqk"}> : () -> ()
    %cst_85 = arith.constant dense<0.000000e+00> : vector<2x8x8xf32>
    %255 = tpu.matmul %253, %254, %cst_85 {dimension_numbers = #tpu.dot_dimension_numbers<[2], [2], [1], [1], [0, 0, 0, 1, 1, 1], [0], [0]>} : vector<2x8x8xbf16>, vector<2x8x8xbf16>, vector<2x8x8xf32> -> vector<2x8x8xf32>
    "tpu.trace_stop"() : () -> ()
    %cst_86 = arith.constant dense<0xFF800000> : vector<2x8xf32>
    %256 = vector.multi_reduction <maximumf>, %255, %cst_86 [2] : vector<2x8x8xf32> to vector<2x8xf32>
    %257 = vector.shape_cast %256 : vector<2x8xf32> to vector<2x8x1xf32>
    %258 = vector.broadcast %257 : vector<2x8x1xf32> to vector<2x8x8xf32>
    %259 = arith.subf %255, %258 : vector<2x8x8xf32>
    %260 = math.exp %259 : vector<2x8x8xf32>
    %cst_87 = arith.constant dense<0.000000e+00> : vector<2x8xf32>
    %261 = vector.multi_reduction <add>, %260, %cst_87 [2] : vector<2x8x8xf32> to vector<2x8xf32>
    %262 = vector.shape_cast %261 : vector<2x8xf32> to vector<2x8x1xf32>
    %263 = tpu.reciprocal %262 {approx = true} : vector<2x8x1xf32> -> vector<2x8x1xf32>
    %264 = vector.broadcast %263 : vector<2x8x1xf32> to vector<2x8x8xf32>
    %265 = arith.mulf %260, %264 : vector<2x8x8xf32>
    %266 = arith.truncf %265 : vector<2x8x8xf32> to vector<2x8x8xbf16>
    %267 = vector.extract_strided_slice %230 {offsets = [0, 0, 8], sizes = [2, 8, 8], strides = [1, 1, 1]} : vector<2x8x32xbf16> to vector<2x8x8xbf16>
    "tpu.trace_start"() <{level = 10 : i32, message = "bqk,bkd->bqd"}> : () -> ()
    %cst_88 = arith.constant dense<0.000000e+00> : vector<2x8x8xf32>
    %268 = tpu.matmul %266, %267, %cst_88 {dimension_numbers = #tpu.dot_dimension_numbers<[2], [1], [1], [2], [0, 0, 0, 1, 1, 2], [0], [0]>} : vector<2x8x8xbf16>, vector<2x8x8xbf16>, vector<2x8x8xf32> -> vector<2x8x8xf32>
    "tpu.trace_stop"() : () -> ()
    %269 = vector.shape_cast %268 : vector<2x8x8xf32> to vector<16x8xf32>
    %270 = vector.extract_strided_slice %232 {offsets = [8, 0], sizes = [8, 32], strides = [1, 1]} : vector<32x32xbf16> to vector<8x32xbf16>
    %271 = arith.truncf %269 : vector<16x8xf32> to vector<16x8xbf16>
    %cst_89 = arith.constant dense<0.000000e+00> : vector<16x32xf32>
    %272 = tpu.matmul %271, %270, %cst_89 {dimension_numbers = #tpu.dot_dimension_numbers<[1], [0], [0], [1], [0, 0, 1, 1], [], []>} : vector<16x8xbf16>, vector<8x32xbf16>, vector<16x32xf32> -> vector<16x32xf32>
    %273 = arith.addf %252, %272 : vector<16x32xf32>
    %274 = vector.extract_strided_slice %226 {offsets = [0, 0, 16], sizes = [2, 8, 8], strides = [1, 1, 1]} : vector<2x8x32xbf16> to vector<2x8x8xbf16>
    %275 = vector.extract_strided_slice %228 {offsets = [0, 0, 16], sizes = [2, 8, 8], strides = [1, 1, 1]} : vector<2x8x32xbf16> to vector<2x8x8xbf16>
    "tpu.trace_start"() <{level = 10 : i32, message = "bqd,bkd->bqk"}> : () -> ()
    %cst_90 = arith.constant dense<0.000000e+00> : vector<2x8x8xf32>
    %276 = tpu.matmul %274, %275, %cst_90 {dimension_numbers = #tpu.dot_dimension_numbers<[2], [2], [1], [1], [0, 0, 0, 1, 1, 1], [0], [0]>} : vector<2x8x8xbf16>, vector<2x8x8xbf16>, vector<2x8x8xf32> -> vector<2x8x8xf32>
    "tpu.trace_stop"() : () -> ()
    %cst_91 = arith.constant dense<0xFF800000> : vector<2x8xf32>
    %277 = vector.multi_reduction <maximumf>, %276, %cst_91 [2] : vector<2x8x8xf32> to vector<2x8xf32>
    %278 = vector.shape_cast %277 : vector<2x8xf32> to vector<2x8x1xf32>
    %279 = vector.broadcast %278 : vector<2x8x1xf32> to vector<2x8x8xf32>
    %280 = arith.subf %276, %279 : vector<2x8x8xf32>
    %281 = math.exp %280 : vector<2x8x8xf32>
    %cst_92 = arith.constant dense<0.000000e+00> : vector<2x8xf32>
    %282 = vector.multi_reduction <add>, %281, %cst_92 [2] : vector<2x8x8xf32> to vector<2x8xf32>
    %283 = vector.shape_cast %282 : vector<2x8xf32> to vector<2x8x1xf32>
    %284 = tpu.reciprocal %283 {approx = true} : vector<2x8x1xf32> -> vector<2x8x1xf32>
    %285 = vector.broadcast %284 : vector<2x8x1xf32> to vector<2x8x8xf32>
    %286 = arith.mulf %281, %285 : vector<2x8x8xf32>
    %287 = arith.truncf %286 : vector<2x8x8xf32> to vector<2x8x8xbf16>
    %288 = vector.extract_strided_slice %230 {offsets = [0, 0, 16], sizes = [2, 8, 8], strides = [1, 1, 1]} : vector<2x8x32xbf16> to vector<2x8x8xbf16>
    "tpu.trace_start"() <{level = 10 : i32, message = "bqk,bkd->bqd"}> : () -> ()
    %cst_93 = arith.constant dense<0.000000e+00> : vector<2x8x8xf32>
    %289 = tpu.matmul %287, %288, %cst_93 {dimension_numbers = #tpu.dot_dimension_numbers<[2], [1], [1], [2], [0, 0, 0, 1, 1, 2], [0], [0]>} : vector<2x8x8xbf16>, vector<2x8x8xbf16>, vector<2x8x8xf32> -> vector<2x8x8xf32>
    "tpu.trace_stop"() : () -> ()
    %290 = vector.shape_cast %289 : vector<2x8x8xf32> to vector<16x8xf32>
    %291 = vector.extract_strided_slice %232 {offsets = [16, 0], sizes = [8, 32], strides = [1, 1]} : vector<32x32xbf16> to vector<8x32xbf16>
    %292 = arith.truncf %290 : vector<16x8xf32> to vector<16x8xbf16>
    %cst_94 = arith.constant dense<0.000000e+00> : vector<16x32xf32>
    %293 = tpu.matmul %292, %291, %cst_94 {dimension_numbers = #tpu.dot_dimension_numbers<[1], [0], [0], [1], [0, 0, 1, 1], [], []>} : vector<16x8xbf16>, vector<8x32xbf16>, vector<16x32xf32> -> vector<16x32xf32>
    %294 = arith.addf %273, %293 : vector<16x32xf32>
    %295 = vector.extract_strided_slice %226 {offsets = [0, 0, 24], sizes = [2, 8, 8], strides = [1, 1, 1]} : vector<2x8x32xbf16> to vector<2x8x8xbf16>
    %296 = vector.extract_strided_slice %228 {offsets = [0, 0, 24], sizes = [2, 8, 8], strides = [1, 1, 1]} : vector<2x8x32xbf16> to vector<2x8x8xbf16>
    "tpu.trace_start"() <{level = 10 : i32, message = "bqd,bkd->bqk"}> : () -> ()
    %cst_95 = arith.constant dense<0.000000e+00> : vector<2x8x8xf32>
    %297 = tpu.matmul %295, %296, %cst_95 {dimension_numbers = #tpu.dot_dimension_numbers<[2], [2], [1], [1], [0, 0, 0, 1, 1, 1], [0], [0]>} : vector<2x8x8xbf16>, vector<2x8x8xbf16>, vector<2x8x8xf32> -> vector<2x8x8xf32>
    "tpu.trace_stop"() : () -> ()
    %cst_96 = arith.constant dense<0xFF800000> : vector<2x8xf32>
    %298 = vector.multi_reduction <maximumf>, %297, %cst_96 [2] : vector<2x8x8xf32> to vector<2x8xf32>
    %299 = vector.shape_cast %298 : vector<2x8xf32> to vector<2x8x1xf32>
    %300 = vector.broadcast %299 : vector<2x8x1xf32> to vector<2x8x8xf32>
    %301 = arith.subf %297, %300 : vector<2x8x8xf32>
    %302 = math.exp %301 : vector<2x8x8xf32>
    %cst_97 = arith.constant dense<0.000000e+00> : vector<2x8xf32>
    %303 = vector.multi_reduction <add>, %302, %cst_97 [2] : vector<2x8x8xf32> to vector<2x8xf32>
    %304 = vector.shape_cast %303 : vector<2x8xf32> to vector<2x8x1xf32>
    %305 = tpu.reciprocal %304 {approx = true} : vector<2x8x1xf32> -> vector<2x8x1xf32>
    %306 = vector.broadcast %305 : vector<2x8x1xf32> to vector<2x8x8xf32>
    %307 = arith.mulf %302, %306 : vector<2x8x8xf32>
    %308 = arith.truncf %307 : vector<2x8x8xf32> to vector<2x8x8xbf16>
    %309 = vector.extract_strided_slice %230 {offsets = [0, 0, 24], sizes = [2, 8, 8], strides = [1, 1, 1]} : vector<2x8x32xbf16> to vector<2x8x8xbf16>
    "tpu.trace_start"() <{level = 10 : i32, message = "bqk,bkd->bqd"}> : () -> ()
    %cst_98 = arith.constant dense<0.000000e+00> : vector<2x8x8xf32>
    %310 = tpu.matmul %308, %309, %cst_98 {dimension_numbers = #tpu.dot_dimension_numbers<[2], [1], [1], [2], [0, 0, 0, 1, 1, 2], [0], [0]>} : vector<2x8x8xbf16>, vector<2x8x8xbf16>, vector<2x8x8xf32> -> vector<2x8x8xf32>
    "tpu.trace_stop"() : () -> ()
    %311 = vector.shape_cast %310 : vector<2x8x8xf32> to vector<16x8xf32>
    %312 = vector.extract_strided_slice %232 {offsets = [24, 0], sizes = [8, 32], strides = [1, 1]} : vector<32x32xbf16> to vector<8x32xbf16>
    %313 = arith.truncf %311 : vector<16x8xf32> to vector<16x8xbf16>
    %cst_99 = arith.constant dense<0.000000e+00> : vector<16x32xf32>
    %314 = tpu.matmul %313, %312, %cst_99 {dimension_numbers = #tpu.dot_dimension_numbers<[1], [0], [0], [1], [0, 0, 1, 1], [], []>} : vector<16x8xbf16>, vector<8x32xbf16>, vector<16x32xf32> -> vector<16x32xf32>
    %315 = arith.addf %294, %314 : vector<16x32xf32>
    %c13 = arith.constant 13 : index
    %c0_100 = arith.constant 0 : index
    %316 = vector.load %arg5[%c13, %c0_100] : memref<47x128xf32, #tpu.memory_space<vmem>>, vector<1x32xf32>
    %317 = vector.broadcast %316 : vector<1x32xf32> to vector<16x32xf32>
    %318 = arith.addf %315, %317 : vector<16x32xf32>
    %319 = arith.addf %214, %318 : vector<16x32xf32>
    %c14 = arith.constant 14 : index
    %c0_101 = arith.constant 0 : index
    %320 = vector.load %arg5[%c14, %c0_101] : memref<47x128xf32, #tpu.memory_space<vmem>>, vector<1x32xf32>
    %c15 = arith.constant 15 : index
    %c0_102 = arith.constant 0 : index
    %321 = vector.load %arg5[%c15, %c0_102] : memref<47x128xf32, #tpu.memory_space<vmem>>, vector<1x32xf32>
    %cst_103 = arith.constant dense<0.000000e+00> : vector<16xf32>
    %322 = vector.multi_reduction <add>, %319, %cst_103 [1] : vector<16x32xf32> to vector<16xf32>
    %323 = vector.shape_cast %322 : vector<16xf32> to vector<16x1xf32>
    %cst_104 = arith.constant 3.200000e+01 : f32
    %324 = vector.broadcast %cst_104 : f32 to vector<16x1xf32>
    %325 = arith.divf %323, %324 : vector<16x1xf32>
    %326 = vector.broadcast %325 : vector<16x1xf32> to vector<16x32xf32>
    %327 = arith.subf %319, %326 : vector<16x32xf32>
    %328 = arith.mulf %327, %327 : vector<16x32xf32>
    %cst_105 = arith.constant dense<0.000000e+00> : vector<16xf32>
    %329 = vector.multi_reduction <add>, %328, %cst_105 [1] : vector<16x32xf32> to vector<16xf32>
    %330 = vector.shape_cast %329 : vector<16xf32> to vector<16x1xf32>
    %cst_106 = arith.constant 3.200000e+01 : f32
    %331 = vector.broadcast %cst_106 : f32 to vector<16x1xf32>
    %332 = arith.divf %330, %331 : vector<16x1xf32>
    %333 = vector.broadcast %325 : vector<16x1xf32> to vector<16x32xf32>
    %334 = arith.subf %319, %333 : vector<16x32xf32>
    %cst_107 = arith.constant 9.99999974E-6 : f32
    %335 = vector.broadcast %cst_107 : f32 to vector<16x1xf32>
    %336 = arith.addf %332, %335 : vector<16x1xf32>
    %337 = math.rsqrt %336 : vector<16x1xf32>
    %338 = vector.broadcast %337 : vector<16x1xf32> to vector<16x32xf32>
    %339 = arith.mulf %334, %338 : vector<16x32xf32>
    %340 = vector.broadcast %320 : vector<1x32xf32> to vector<16x32xf32>
    %341 = arith.mulf %339, %340 : vector<16x32xf32>
    %342 = vector.broadcast %321 : vector<1x32xf32> to vector<16x32xf32>
    %343 = arith.addf %341, %342 : vector<16x32xf32>
    %c1_108 = arith.constant 1 : index
    %c0_109 = arith.constant 0 : index
    %c0_110 = arith.constant 0 : index
    %344 = vector.load %arg3[%c1_108, %c0_109, %c0_110] : memref<4x32x2048xbf16, #tpu.memory_space<vmem>>, vector<1x32x2048xbf16>
    %345 = vector.shape_cast %344 : vector<1x32x2048xbf16> to vector<32x2048xbf16>
    %346 = arith.truncf %343 : vector<16x32xf32> to vector<16x32xbf16>
    %cst_111 = arith.constant dense<0.000000e+00> : vector<16x2048xf32>
    %347 = tpu.matmul %346, %345, %cst_111 {dimension_numbers = #tpu.dot_dimension_numbers<[1], [0], [0], [1], [0, 0, 1, 1], [], []>} : vector<16x32xbf16>, vector<32x2048xbf16>, vector<16x2048xf32> -> vector<16x2048xf32>
    %c1_112 = arith.constant 1 : index
    %c0_113 = arith.constant 0 : index
    %c0_114 = arith.constant 0 : index
    %348 = vector.load %arg6[%c1_112, %c0_113, %c0_114] : memref<4x1x2048xf32, #tpu.memory_space<vmem>>, vector<1x1x2048xf32>
    %349 = vector.shape_cast %348 : vector<1x1x2048xf32> to vector<1x2048xf32>
    %350 = vector.broadcast %349 : vector<1x2048xf32> to vector<16x2048xf32>
    %351 = arith.addf %347, %350 : vector<16x2048xf32>
    %cst_115 = arith.constant 0.000000e+00 : f32
    %352 = vector.broadcast %cst_115 : f32 to vector<16x2048xf32>
    %353 = arith.maximumf %351, %352 : vector<16x2048xf32>
    %354 = arith.truncf %353 : vector<16x2048xf32> to vector<16x2048xbf16>
    %c1_116 = arith.constant 1 : index
    %c0_117 = arith.constant 0 : index
    %c0_118 = arith.constant 0 : index
    %355 = vector.load %arg4[%c1_116, %c0_117, %c0_118] : memref<4x2048x32xbf16, #tpu.memory_space<vmem>>, vector<1x2048x32xbf16>
    %356 = vector.shape_cast %355 : vector<1x2048x32xbf16> to vector<2048x32xbf16>
    %cst_119 = arith.constant dense<0.000000e+00> : vector<16x32xf32>
    %357 = tpu.matmul %354, %356, %cst_119 {dimension_numbers = #tpu.dot_dimension_numbers<[1], [0], [0], [1], [0, 0, 1, 1], [], []>} : vector<16x2048xbf16>, vector<2048x32xbf16>, vector<16x32xf32> -> vector<16x32xf32>
    %c18 = arith.constant 18 : index
    %c0_120 = arith.constant 0 : index
    %358 = vector.load %arg5[%c18, %c0_120] : memref<47x128xf32, #tpu.memory_space<vmem>>, vector<1x32xf32>
    %359 = vector.broadcast %358 : vector<1x32xf32> to vector<16x32xf32>
    %360 = arith.addf %357, %359 : vector<16x32xf32>
    %361 = arith.addf %343, %360 : vector<16x32xf32>
    %c16 = arith.constant 16 : index
    %c0_121 = arith.constant 0 : index
    %362 = vector.load %arg5[%c16, %c0_121] : memref<47x128xf32, #tpu.memory_space<vmem>>, vector<1x32xf32>
    %c17 = arith.constant 17 : index
    %c0_122 = arith.constant 0 : index
    %363 = vector.load %arg5[%c17, %c0_122] : memref<47x128xf32, #tpu.memory_space<vmem>>, vector<1x32xf32>
    %cst_123 = arith.constant dense<0.000000e+00> : vector<16xf32>
    %364 = vector.multi_reduction <add>, %361, %cst_123 [1] : vector<16x32xf32> to vector<16xf32>
    %365 = vector.shape_cast %364 : vector<16xf32> to vector<16x1xf32>
    %cst_124 = arith.constant 3.200000e+01 : f32
    %366 = vector.broadcast %cst_124 : f32 to vector<16x1xf32>
    %367 = arith.divf %365, %366 : vector<16x1xf32>
    %368 = vector.broadcast %367 : vector<16x1xf32> to vector<16x32xf32>
    %369 = arith.subf %361, %368 : vector<16x32xf32>
    %370 = arith.mulf %369, %369 : vector<16x32xf32>
    %cst_125 = arith.constant dense<0.000000e+00> : vector<16xf32>
    %371 = vector.multi_reduction <add>, %370, %cst_125 [1] : vector<16x32xf32> to vector<16xf32>
    %372 = vector.shape_cast %371 : vector<16xf32> to vector<16x1xf32>
    %cst_126 = arith.constant 3.200000e+01 : f32
    %373 = vector.broadcast %cst_126 : f32 to vector<16x1xf32>
    %374 = arith.divf %372, %373 : vector<16x1xf32>
    %375 = vector.broadcast %367 : vector<16x1xf32> to vector<16x32xf32>
    %376 = arith.subf %361, %375 : vector<16x32xf32>
    %cst_127 = arith.constant 9.99999974E-6 : f32
    %377 = vector.broadcast %cst_127 : f32 to vector<16x1xf32>
    %378 = arith.addf %374, %377 : vector<16x1xf32>
    %379 = math.rsqrt %378 : vector<16x1xf32>
    %380 = vector.broadcast %379 : vector<16x1xf32> to vector<16x32xf32>
    %381 = arith.mulf %376, %380 : vector<16x32xf32>
    %382 = vector.broadcast %362 : vector<1x32xf32> to vector<16x32xf32>
    %383 = arith.mulf %381, %382 : vector<16x32xf32>
    %384 = vector.broadcast %363 : vector<1x32xf32> to vector<16x32xf32>
    %385 = arith.addf %383, %384 : vector<16x32xf32>
    %c43 = arith.constant 43 : index
    %c0_128 = arith.constant 0 : index
    %386 = vector.load %arg5[%c43, %c0_128] : memref<47x128xf32, #tpu.memory_space<vmem>>, vector<1x32xf32>
    %c44 = arith.constant 44 : index
    %c0_129 = arith.constant 0 : index
    %387 = vector.load %arg5[%c44, %c0_129] : memref<47x128xf32, #tpu.memory_space<vmem>>, vector<1x32xf32>
    %cst_130 = arith.constant dense<0.000000e+00> : vector<16xf32>
    %388 = vector.multi_reduction <add>, %385, %cst_130 [1] : vector<16x32xf32> to vector<16xf32>
    %389 = vector.shape_cast %388 : vector<16xf32> to vector<16x1xf32>
    %cst_131 = arith.constant 3.200000e+01 : f32
    %390 = vector.broadcast %cst_131 : f32 to vector<16x1xf32>
    %391 = arith.divf %389, %390 : vector<16x1xf32>
    %392 = vector.broadcast %391 : vector<16x1xf32> to vector<16x32xf32>
    %393 = arith.subf %385, %392 : vector<16x32xf32>
    %394 = arith.mulf %393, %393 : vector<16x32xf32>
    %cst_132 = arith.constant dense<0.000000e+00> : vector<16xf32>
    %395 = vector.multi_reduction <add>, %394, %cst_132 [1] : vector<16x32xf32> to vector<16xf32>
    %396 = vector.shape_cast %395 : vector<16xf32> to vector<16x1xf32>
    %cst_133 = arith.constant 3.200000e+01 : f32
    %397 = vector.broadcast %cst_133 : f32 to vector<16x1xf32>
    %398 = arith.divf %396, %397 : vector<16x1xf32>
    %399 = vector.broadcast %391 : vector<16x1xf32> to vector<16x32xf32>
    %400 = arith.subf %385, %399 : vector<16x32xf32>
    %cst_134 = arith.constant 9.99999974E-6 : f32
    %401 = vector.broadcast %cst_134 : f32 to vector<16x1xf32>
    %402 = arith.addf %398, %401 : vector<16x1xf32>
    %403 = math.rsqrt %402 : vector<16x1xf32>
    %404 = vector.broadcast %403 : vector<16x1xf32> to vector<16x32xf32>
    %405 = arith.mulf %400, %404 : vector<16x32xf32>
    %406 = vector.broadcast %386 : vector<1x32xf32> to vector<16x32xf32>
    %407 = arith.mulf %405, %406 : vector<16x32xf32>
    %408 = vector.broadcast %387 : vector<1x32xf32> to vector<16x32xf32>
    %409 = arith.addf %407, %408 : vector<16x32xf32>
    %c5_135 = arith.constant 5 : index
    %c0_136 = arith.constant 0 : index
    %c0_137 = arith.constant 0 : index
    %410 = vector.load %arg2[%c5_135, %c0_136, %c0_137] : memref<15x32x128xbf16, #tpu.memory_space<vmem>>, vector<1x32x96xbf16>
    %411 = vector.shape_cast %410 : vector<1x32x96xbf16> to vector<32x96xbf16>
    %412 = arith.truncf %43 : vector<16x32xf32> to vector<16x32xbf16>
    %cst_138 = arith.constant dense<0.000000e+00> : vector<16x96xf32>
    %413 = tpu.matmul %412, %411, %cst_138 {dimension_numbers = #tpu.dot_dimension_numbers<[1], [0], [0], [1], [0, 0, 1, 1], [], []>} : vector<16x32xbf16>, vector<32x96xbf16>, vector<16x96xf32> -> vector<16x96xf32>
    %c19 = arith.constant 19 : index
    %c0_139 = arith.constant 0 : index
    %414 = vector.load %arg5[%c19, %c0_139] : memref<47x128xf32, #tpu.memory_space<vmem>>, vector<1x96xf32>
    %415 = vector.broadcast %414 : vector<1x96xf32> to vector<16x96xf32>
    %416 = arith.addf %413, %415 : vector<16x96xf32>
    %417 = vector.extract_strided_slice %416 {offsets = [0, 0], sizes = [16, 32], strides = [1, 1]} : vector<16x96xf32> to vector<16x32xf32>
    %418 = vector.extract_strided_slice %416 {offsets = [0, 32], sizes = [16, 32], strides = [1, 1]} : vector<16x96xf32> to vector<16x32xf32>
    %419 = vector.extract_strided_slice %416 {offsets = [0, 64], sizes = [16, 32], strides = [1, 1]} : vector<16x96xf32> to vector<16x32xf32>
    %420 = vector.shape_cast %417 : vector<16x32xf32> to vector<2x8x32xf32>
    %421 = arith.truncf %420 : vector<2x8x32xf32> to vector<2x8x32xbf16>
    %422 = vector.shape_cast %418 : vector<16x32xf32> to vector<2x8x32xf32>
    %423 = arith.truncf %422 : vector<2x8x32xf32> to vector<2x8x32xbf16>
    %424 = vector.shape_cast %419 : vector<16x32xf32> to vector<2x8x32xf32>
    %425 = arith.truncf %424 : vector<2x8x32xf32> to vector<2x8x32xbf16>
    %c6_140 = arith.constant 6 : index
    %c0_141 = arith.constant 0 : index
    %c0_142 = arith.constant 0 : index
    %426 = vector.load %arg2[%c6_140, %c0_141, %c0_142] : memref<15x32x128xbf16, #tpu.memory_space<vmem>>, vector<1x32x32xbf16>
    %427 = vector.shape_cast %426 : vector<1x32x32xbf16> to vector<32x32xbf16>
    %428 = vector.extract_strided_slice %421 {offsets = [0, 0, 0], sizes = [2, 8, 8], strides = [1, 1, 1]} : vector<2x8x32xbf16> to vector<2x8x8xbf16>
    %429 = vector.extract_strided_slice %423 {offsets = [0, 0, 0], sizes = [2, 8, 8], strides = [1, 1, 1]} : vector<2x8x32xbf16> to vector<2x8x8xbf16>
    "tpu.trace_start"() <{level = 10 : i32, message = "bqd,bkd->bqk"}> : () -> ()
    %cst_143 = arith.constant dense<0.000000e+00> : vector<2x8x8xf32>
    %430 = tpu.matmul %428, %429, %cst_143 {dimension_numbers = #tpu.dot_dimension_numbers<[2], [2], [1], [1], [0, 0, 0, 1, 1, 1], [0], [0]>} : vector<2x8x8xbf16>, vector<2x8x8xbf16>, vector<2x8x8xf32> -> vector<2x8x8xf32>
    "tpu.trace_stop"() : () -> ()
    %cst_144 = arith.constant dense<0xFF800000> : vector<2x8xf32>
    %431 = vector.multi_reduction <maximumf>, %430, %cst_144 [2] : vector<2x8x8xf32> to vector<2x8xf32>
    %432 = vector.shape_cast %431 : vector<2x8xf32> to vector<2x8x1xf32>
    %433 = vector.broadcast %432 : vector<2x8x1xf32> to vector<2x8x8xf32>
    %434 = arith.subf %430, %433 : vector<2x8x8xf32>
    %435 = math.exp %434 : vector<2x8x8xf32>
    %cst_145 = arith.constant dense<0.000000e+00> : vector<2x8xf32>
    %436 = vector.multi_reduction <add>, %435, %cst_145 [2] : vector<2x8x8xf32> to vector<2x8xf32>
    %437 = vector.shape_cast %436 : vector<2x8xf32> to vector<2x8x1xf32>
    %438 = tpu.reciprocal %437 {approx = true} : vector<2x8x1xf32> -> vector<2x8x1xf32>
    %439 = vector.broadcast %438 : vector<2x8x1xf32> to vector<2x8x8xf32>
    %440 = arith.mulf %435, %439 : vector<2x8x8xf32>
    %441 = arith.truncf %440 : vector<2x8x8xf32> to vector<2x8x8xbf16>
    %442 = vector.extract_strided_slice %425 {offsets = [0, 0, 0], sizes = [2, 8, 8], strides = [1, 1, 1]} : vector<2x8x32xbf16> to vector<2x8x8xbf16>
    "tpu.trace_start"() <{level = 10 : i32, message = "bqk,bkd->bqd"}> : () -> ()
    %cst_146 = arith.constant dense<0.000000e+00> : vector<2x8x8xf32>
    %443 = tpu.matmul %441, %442, %cst_146 {dimension_numbers = #tpu.dot_dimension_numbers<[2], [1], [1], [2], [0, 0, 0, 1, 1, 2], [0], [0]>} : vector<2x8x8xbf16>, vector<2x8x8xbf16>, vector<2x8x8xf32> -> vector<2x8x8xf32>
    "tpu.trace_stop"() : () -> ()
    %444 = vector.shape_cast %443 : vector<2x8x8xf32> to vector<16x8xf32>
    %445 = vector.extract_strided_slice %427 {offsets = [0, 0], sizes = [8, 32], strides = [1, 1]} : vector<32x32xbf16> to vector<8x32xbf16>
    %446 = arith.truncf %444 : vector<16x8xf32> to vector<16x8xbf16>
    %cst_147 = arith.constant dense<0.000000e+00> : vector<16x32xf32>
    %447 = tpu.matmul %446, %445, %cst_147 {dimension_numbers = #tpu.dot_dimension_numbers<[1], [0], [0], [1], [0, 0, 1, 1], [], []>} : vector<16x8xbf16>, vector<8x32xbf16>, vector<16x32xf32> -> vector<16x32xf32>
    %448 = vector.extract_strided_slice %421 {offsets = [0, 0, 8], sizes = [2, 8, 8], strides = [1, 1, 1]} : vector<2x8x32xbf16> to vector<2x8x8xbf16>
    %449 = vector.extract_strided_slice %423 {offsets = [0, 0, 8], sizes = [2, 8, 8], strides = [1, 1, 1]} : vector<2x8x32xbf16> to vector<2x8x8xbf16>
    "tpu.trace_start"() <{level = 10 : i32, message = "bqd,bkd->bqk"}> : () -> ()
    %cst_148 = arith.constant dense<0.000000e+00> : vector<2x8x8xf32>
    %450 = tpu.matmul %448, %449, %cst_148 {dimension_numbers = #tpu.dot_dimension_numbers<[2], [2], [1], [1], [0, 0, 0, 1, 1, 1], [0], [0]>} : vector<2x8x8xbf16>, vector<2x8x8xbf16>, vector<2x8x8xf32> -> vector<2x8x8xf32>
    "tpu.trace_stop"() : () -> ()
    %cst_149 = arith.constant dense<0xFF800000> : vector<2x8xf32>
    %451 = vector.multi_reduction <maximumf>, %450, %cst_149 [2] : vector<2x8x8xf32> to vector<2x8xf32>
    %452 = vector.shape_cast %451 : vector<2x8xf32> to vector<2x8x1xf32>
    %453 = vector.broadcast %452 : vector<2x8x1xf32> to vector<2x8x8xf32>
    %454 = arith.subf %450, %453 : vector<2x8x8xf32>
    %455 = math.exp %454 : vector<2x8x8xf32>
    %cst_150 = arith.constant dense<0.000000e+00> : vector<2x8xf32>
    %456 = vector.multi_reduction <add>, %455, %cst_150 [2] : vector<2x8x8xf32> to vector<2x8xf32>
    %457 = vector.shape_cast %456 : vector<2x8xf32> to vector<2x8x1xf32>
    %458 = tpu.reciprocal %457 {approx = true} : vector<2x8x1xf32> -> vector<2x8x1xf32>
    %459 = vector.broadcast %458 : vector<2x8x1xf32> to vector<2x8x8xf32>
    %460 = arith.mulf %455, %459 : vector<2x8x8xf32>
    %461 = arith.truncf %460 : vector<2x8x8xf32> to vector<2x8x8xbf16>
    %462 = vector.extract_strided_slice %425 {offsets = [0, 0, 8], sizes = [2, 8, 8], strides = [1, 1, 1]} : vector<2x8x32xbf16> to vector<2x8x8xbf16>
    "tpu.trace_start"() <{level = 10 : i32, message = "bqk,bkd->bqd"}> : () -> ()
    %cst_151 = arith.constant dense<0.000000e+00> : vector<2x8x8xf32>
    %463 = tpu.matmul %461, %462, %cst_151 {dimension_numbers = #tpu.dot_dimension_numbers<[2], [1], [1], [2], [0, 0, 0, 1, 1, 2], [0], [0]>} : vector<2x8x8xbf16>, vector<2x8x8xbf16>, vector<2x8x8xf32> -> vector<2x8x8xf32>
    "tpu.trace_stop"() : () -> ()
    %464 = vector.shape_cast %463 : vector<2x8x8xf32> to vector<16x8xf32>
    %465 = vector.extract_strided_slice %427 {offsets = [8, 0], sizes = [8, 32], strides = [1, 1]} : vector<32x32xbf16> to vector<8x32xbf16>
    %466 = arith.truncf %464 : vector<16x8xf32> to vector<16x8xbf16>
    %cst_152 = arith.constant dense<0.000000e+00> : vector<16x32xf32>
    %467 = tpu.matmul %466, %465, %cst_152 {dimension_numbers = #tpu.dot_dimension_numbers<[1], [0], [0], [1], [0, 0, 1, 1], [], []>} : vector<16x8xbf16>, vector<8x32xbf16>, vector<16x32xf32> -> vector<16x32xf32>
    %468 = arith.addf %447, %467 : vector<16x32xf32>
    %469 = vector.extract_strided_slice %421 {offsets = [0, 0, 16], sizes = [2, 8, 8], strides = [1, 1, 1]} : vector<2x8x32xbf16> to vector<2x8x8xbf16>
    %470 = vector.extract_strided_slice %423 {offsets = [0, 0, 16], sizes = [2, 8, 8], strides = [1, 1, 1]} : vector<2x8x32xbf16> to vector<2x8x8xbf16>
    "tpu.trace_start"() <{level = 10 : i32, message = "bqd,bkd->bqk"}> : () -> ()
    %cst_153 = arith.constant dense<0.000000e+00> : vector<2x8x8xf32>
    %471 = tpu.matmul %469, %470, %cst_153 {dimension_numbers = #tpu.dot_dimension_numbers<[2], [2], [1], [1], [0, 0, 0, 1, 1, 1], [0], [0]>} : vector<2x8x8xbf16>, vector<2x8x8xbf16>, vector<2x8x8xf32> -> vector<2x8x8xf32>
    "tpu.trace_stop"() : () -> ()
    %cst_154 = arith.constant dense<0xFF800000> : vector<2x8xf32>
    %472 = vector.multi_reduction <maximumf>, %471, %cst_154 [2] : vector<2x8x8xf32> to vector<2x8xf32>
    %473 = vector.shape_cast %472 : vector<2x8xf32> to vector<2x8x1xf32>
    %474 = vector.broadcast %473 : vector<2x8x1xf32> to vector<2x8x8xf32>
    %475 = arith.subf %471, %474 : vector<2x8x8xf32>
    %476 = math.exp %475 : vector<2x8x8xf32>
    %cst_155 = arith.constant dense<0.000000e+00> : vector<2x8xf32>
    %477 = vector.multi_reduction <add>, %476, %cst_155 [2] : vector<2x8x8xf32> to vector<2x8xf32>
    %478 = vector.shape_cast %477 : vector<2x8xf32> to vector<2x8x1xf32>
    %479 = tpu.reciprocal %478 {approx = true} : vector<2x8x1xf32> -> vector<2x8x1xf32>
    %480 = vector.broadcast %479 : vector<2x8x1xf32> to vector<2x8x8xf32>
    %481 = arith.mulf %476, %480 : vector<2x8x8xf32>
    %482 = arith.truncf %481 : vector<2x8x8xf32> to vector<2x8x8xbf16>
    %483 = vector.extract_strided_slice %425 {offsets = [0, 0, 16], sizes = [2, 8, 8], strides = [1, 1, 1]} : vector<2x8x32xbf16> to vector<2x8x8xbf16>
    "tpu.trace_start"() <{level = 10 : i32, message = "bqk,bkd->bqd"}> : () -> ()
    %cst_156 = arith.constant dense<0.000000e+00> : vector<2x8x8xf32>
    %484 = tpu.matmul %482, %483, %cst_156 {dimension_numbers = #tpu.dot_dimension_numbers<[2], [1], [1], [2], [0, 0, 0, 1, 1, 2], [0], [0]>} : vector<2x8x8xbf16>, vector<2x8x8xbf16>, vector<2x8x8xf32> -> vector<2x8x8xf32>
    "tpu.trace_stop"() : () -> ()
    %485 = vector.shape_cast %484 : vector<2x8x8xf32> to vector<16x8xf32>
    %486 = vector.extract_strided_slice %427 {offsets = [16, 0], sizes = [8, 32], strides = [1, 1]} : vector<32x32xbf16> to vector<8x32xbf16>
    %487 = arith.truncf %485 : vector<16x8xf32> to vector<16x8xbf16>
    %cst_157 = arith.constant dense<0.000000e+00> : vector<16x32xf32>
    %488 = tpu.matmul %487, %486, %cst_157 {dimension_numbers = #tpu.dot_dimension_numbers<[1], [0], [0], [1], [0, 0, 1, 1], [], []>} : vector<16x8xbf16>, vector<8x32xbf16>, vector<16x32xf32> -> vector<16x32xf32>
    %489 = arith.addf %468, %488 : vector<16x32xf32>
    %490 = vector.extract_strided_slice %421 {offsets = [0, 0, 24], sizes = [2, 8, 8], strides = [1, 1, 1]} : vector<2x8x32xbf16> to vector<2x8x8xbf16>
    %491 = vector.extract_strided_slice %423 {offsets = [0, 0, 24], sizes = [2, 8, 8], strides = [1, 1, 1]} : vector<2x8x32xbf16> to vector<2x8x8xbf16>
    "tpu.trace_start"() <{level = 10 : i32, message = "bqd,bkd->bqk"}> : () -> ()
    %cst_158 = arith.constant dense<0.000000e+00> : vector<2x8x8xf32>
    %492 = tpu.matmul %490, %491, %cst_158 {dimension_numbers = #tpu.dot_dimension_numbers<[2], [2], [1], [1], [0, 0, 0, 1, 1, 1], [0], [0]>} : vector<2x8x8xbf16>, vector<2x8x8xbf16>, vector<2x8x8xf32> -> vector<2x8x8xf32>
    "tpu.trace_stop"() : () -> ()
    %cst_159 = arith.constant dense<0xFF800000> : vector<2x8xf32>
    %493 = vector.multi_reduction <maximumf>, %492, %cst_159 [2] : vector<2x8x8xf32> to vector<2x8xf32>
    %494 = vector.shape_cast %493 : vector<2x8xf32> to vector<2x8x1xf32>
    %495 = vector.broadcast %494 : vector<2x8x1xf32> to vector<2x8x8xf32>
    %496 = arith.subf %492, %495 : vector<2x8x8xf32>
    %497 = math.exp %496 : vector<2x8x8xf32>
    %cst_160 = arith.constant dense<0.000000e+00> : vector<2x8xf32>
    %498 = vector.multi_reduction <add>, %497, %cst_160 [2] : vector<2x8x8xf32> to vector<2x8xf32>
    %499 = vector.shape_cast %498 : vector<2x8xf32> to vector<2x8x1xf32>
    %500 = tpu.reciprocal %499 {approx = true} : vector<2x8x1xf32> -> vector<2x8x1xf32>
    %501 = vector.broadcast %500 : vector<2x8x1xf32> to vector<2x8x8xf32>
    %502 = arith.mulf %497, %501 : vector<2x8x8xf32>
    %503 = arith.truncf %502 : vector<2x8x8xf32> to vector<2x8x8xbf16>
    %504 = vector.extract_strided_slice %425 {offsets = [0, 0, 24], sizes = [2, 8, 8], strides = [1, 1, 1]} : vector<2x8x32xbf16> to vector<2x8x8xbf16>
    "tpu.trace_start"() <{level = 10 : i32, message = "bqk,bkd->bqd"}> : () -> ()
    %cst_161 = arith.constant dense<0.000000e+00> : vector<2x8x8xf32>
    %505 = tpu.matmul %503, %504, %cst_161 {dimension_numbers = #tpu.dot_dimension_numbers<[2], [1], [1], [2], [0, 0, 0, 1, 1, 2], [0], [0]>} : vector<2x8x8xbf16>, vector<2x8x8xbf16>, vector<2x8x8xf32> -> vector<2x8x8xf32>
    "tpu.trace_stop"() : () -> ()
    %506 = vector.shape_cast %505 : vector<2x8x8xf32> to vector<16x8xf32>
    %507 = vector.extract_strided_slice %427 {offsets = [24, 0], sizes = [8, 32], strides = [1, 1]} : vector<32x32xbf16> to vector<8x32xbf16>
    %508 = arith.truncf %506 : vector<16x8xf32> to vector<16x8xbf16>
    %cst_162 = arith.constant dense<0.000000e+00> : vector<16x32xf32>
    %509 = tpu.matmul %508, %507, %cst_162 {dimension_numbers = #tpu.dot_dimension_numbers<[1], [0], [0], [1], [0, 0, 1, 1], [], []>} : vector<16x8xbf16>, vector<8x32xbf16>, vector<16x32xf32> -> vector<16x32xf32>
    %510 = arith.addf %489, %509 : vector<16x32xf32>
    %c20 = arith.constant 20 : index
    %c0_163 = arith.constant 0 : index
    %511 = vector.load %arg5[%c20, %c0_163] : memref<47x128xf32, #tpu.memory_space<vmem>>, vector<1x32xf32>
    %512 = vector.broadcast %511 : vector<1x32xf32> to vector<16x32xf32>
    %513 = arith.addf %510, %512 : vector<16x32xf32>
    %514 = arith.addf %43, %513 : vector<16x32xf32>
    %c24 = arith.constant 24 : index
    %c0_164 = arith.constant 0 : index
    %515 = vector.load %arg5[%c24, %c0_164] : memref<47x128xf32, #tpu.memory_space<vmem>>, vector<1x32xf32>
    %c25 = arith.constant 25 : index
    %c0_165 = arith.constant 0 : index
    %516 = vector.load %arg5[%c25, %c0_165] : memref<47x128xf32, #tpu.memory_space<vmem>>, vector<1x32xf32>
    %cst_166 = arith.constant dense<0.000000e+00> : vector<16xf32>
    %517 = vector.multi_reduction <add>, %514, %cst_166 [1] : vector<16x32xf32> to vector<16xf32>
    %518 = vector.shape_cast %517 : vector<16xf32> to vector<16x1xf32>
    %cst_167 = arith.constant 3.200000e+01 : f32
    %519 = vector.broadcast %cst_167 : f32 to vector<16x1xf32>
    %520 = arith.divf %518, %519 : vector<16x1xf32>
    %521 = vector.broadcast %520 : vector<16x1xf32> to vector<16x32xf32>
    %522 = arith.subf %514, %521 : vector<16x32xf32>
    %523 = arith.mulf %522, %522 : vector<16x32xf32>
    %cst_168 = arith.constant dense<0.000000e+00> : vector<16xf32>
    %524 = vector.multi_reduction <add>, %523, %cst_168 [1] : vector<16x32xf32> to vector<16xf32>
    %525 = vector.shape_cast %524 : vector<16xf32> to vector<16x1xf32>
    %cst_169 = arith.constant 3.200000e+01 : f32
    %526 = vector.broadcast %cst_169 : f32 to vector<16x1xf32>
    %527 = arith.divf %525, %526 : vector<16x1xf32>
    %528 = vector.broadcast %520 : vector<16x1xf32> to vector<16x32xf32>
    %529 = arith.subf %514, %528 : vector<16x32xf32>
    %cst_170 = arith.constant 9.99999974E-6 : f32
    %530 = vector.broadcast %cst_170 : f32 to vector<16x1xf32>
    %531 = arith.addf %527, %530 : vector<16x1xf32>
    %532 = math.rsqrt %531 : vector<16x1xf32>
    %533 = vector.broadcast %532 : vector<16x1xf32> to vector<16x32xf32>
    %534 = arith.mulf %529, %533 : vector<16x32xf32>
    %535 = vector.broadcast %515 : vector<1x32xf32> to vector<16x32xf32>
    %536 = arith.mulf %534, %535 : vector<16x32xf32>
    %537 = vector.broadcast %516 : vector<1x32xf32> to vector<16x32xf32>
    %538 = arith.addf %536, %537 : vector<16x32xf32>
    %c7_171 = arith.constant 7 : index
    %c0_172 = arith.constant 0 : index
    %c0_173 = arith.constant 0 : index
    %539 = vector.load %arg2[%c7_171, %c0_172, %c0_173] : memref<15x32x128xbf16, #tpu.memory_space<vmem>>, vector<1x32x32xbf16>
    %540 = vector.shape_cast %539 : vector<1x32x32xbf16> to vector<32x32xbf16>
    %541 = arith.truncf %538 : vector<16x32xf32> to vector<16x32xbf16>
    %cst_174 = arith.constant dense<0.000000e+00> : vector<16x32xf32>
    %542 = tpu.matmul %541, %540, %cst_174 {dimension_numbers = #tpu.dot_dimension_numbers<[1], [0], [0], [1], [0, 0, 1, 1], [], []>} : vector<16x32xbf16>, vector<32x32xbf16>, vector<16x32xf32> -> vector<16x32xf32>
    %c21 = arith.constant 21 : index
    %c0_175 = arith.constant 0 : index
    %543 = vector.load %arg5[%c21, %c0_175] : memref<47x128xf32, #tpu.memory_space<vmem>>, vector<1x32xf32>
    %544 = vector.broadcast %543 : vector<1x32xf32> to vector<16x32xf32>
    %545 = arith.addf %542, %544 : vector<16x32xf32>
    %c8_176 = arith.constant 8 : index
    %c0_177 = arith.constant 0 : index
    %c0_178 = arith.constant 0 : index
    %546 = vector.load %arg2[%c8_176, %c0_177, %c0_178] : memref<15x32x128xbf16, #tpu.memory_space<vmem>>, vector<1x32x64xbf16>
    %547 = vector.shape_cast %546 : vector<1x32x64xbf16> to vector<32x64xbf16>
    %548 = arith.truncf %409 : vector<16x32xf32> to vector<16x32xbf16>
    %cst_179 = arith.constant dense<0.000000e+00> : vector<16x64xf32>
    %549 = tpu.matmul %548, %547, %cst_179 {dimension_numbers = #tpu.dot_dimension_numbers<[1], [0], [0], [1], [0, 0, 1, 1], [], []>} : vector<16x32xbf16>, vector<32x64xbf16>, vector<16x64xf32> -> vector<16x64xf32>
    %c22 = arith.constant 22 : index
    %c0_180 = arith.constant 0 : index
    %550 = vector.load %arg5[%c22, %c0_180] : memref<47x128xf32, #tpu.memory_space<vmem>>, vector<1x64xf32>
    %551 = vector.broadcast %550 : vector<1x64xf32> to vector<16x64xf32>
    %552 = arith.addf %549, %551 : vector<16x64xf32>
    %553 = vector.extract_strided_slice %552 {offsets = [0, 0], sizes = [16, 32], strides = [1, 1]} : vector<16x64xf32> to vector<16x32xf32>
    %554 = vector.extract_strided_slice %552 {offsets = [0, 32], sizes = [16, 32], strides = [1, 1]} : vector<16x64xf32> to vector<16x32xf32>
    %555 = vector.shape_cast %545 : vector<16x32xf32> to vector<2x8x32xf32>
    %556 = arith.truncf %555 : vector<2x8x32xf32> to vector<2x8x32xbf16>
    %557 = vector.shape_cast %553 : vector<16x32xf32> to vector<2x8x32xf32>
    %558 = arith.truncf %557 : vector<2x8x32xf32> to vector<2x8x32xbf16>
    %559 = vector.shape_cast %554 : vector<16x32xf32> to vector<2x8x32xf32>
    %560 = arith.truncf %559 : vector<2x8x32xf32> to vector<2x8x32xbf16>
    %c9_181 = arith.constant 9 : index
    %c0_182 = arith.constant 0 : index
    %c0_183 = arith.constant 0 : index
    %561 = vector.load %arg2[%c9_181, %c0_182, %c0_183] : memref<15x32x128xbf16, #tpu.memory_space<vmem>>, vector<1x32x32xbf16>
    %562 = vector.shape_cast %561 : vector<1x32x32xbf16> to vector<32x32xbf16>
    %563 = vector.extract_strided_slice %556 {offsets = [0, 0, 0], sizes = [2, 8, 8], strides = [1, 1, 1]} : vector<2x8x32xbf16> to vector<2x8x8xbf16>
    %564 = vector.extract_strided_slice %558 {offsets = [0, 0, 0], sizes = [2, 8, 8], strides = [1, 1, 1]} : vector<2x8x32xbf16> to vector<2x8x8xbf16>
    "tpu.trace_start"() <{level = 10 : i32, message = "bqd,bkd->bqk"}> : () -> ()
    %cst_184 = arith.constant dense<0.000000e+00> : vector<2x8x8xf32>
    %565 = tpu.matmul %563, %564, %cst_184 {dimension_numbers = #tpu.dot_dimension_numbers<[2], [2], [1], [1], [0, 0, 0, 1, 1, 1], [0], [0]>} : vector<2x8x8xbf16>, vector<2x8x8xbf16>, vector<2x8x8xf32> -> vector<2x8x8xf32>
    "tpu.trace_stop"() : () -> ()
    %cst_185 = arith.constant dense<0xFF800000> : vector<2x8xf32>
    %566 = vector.multi_reduction <maximumf>, %565, %cst_185 [2] : vector<2x8x8xf32> to vector<2x8xf32>
    %567 = vector.shape_cast %566 : vector<2x8xf32> to vector<2x8x1xf32>
    %568 = vector.broadcast %567 : vector<2x8x1xf32> to vector<2x8x8xf32>
    %569 = arith.subf %565, %568 : vector<2x8x8xf32>
    %570 = math.exp %569 : vector<2x8x8xf32>
    %cst_186 = arith.constant dense<0.000000e+00> : vector<2x8xf32>
    %571 = vector.multi_reduction <add>, %570, %cst_186 [2] : vector<2x8x8xf32> to vector<2x8xf32>
    %572 = vector.shape_cast %571 : vector<2x8xf32> to vector<2x8x1xf32>
    %573 = tpu.reciprocal %572 {approx = true} : vector<2x8x1xf32> -> vector<2x8x1xf32>
    %574 = vector.broadcast %573 : vector<2x8x1xf32> to vector<2x8x8xf32>
    %575 = arith.mulf %570, %574 : vector<2x8x8xf32>
    %576 = arith.truncf %575 : vector<2x8x8xf32> to vector<2x8x8xbf16>
    %577 = vector.extract_strided_slice %560 {offsets = [0, 0, 0], sizes = [2, 8, 8], strides = [1, 1, 1]} : vector<2x8x32xbf16> to vector<2x8x8xbf16>
    "tpu.trace_start"() <{level = 10 : i32, message = "bqk,bkd->bqd"}> : () -> ()
    %cst_187 = arith.constant dense<0.000000e+00> : vector<2x8x8xf32>
    %578 = tpu.matmul %576, %577, %cst_187 {dimension_numbers = #tpu.dot_dimension_numbers<[2], [1], [1], [2], [0, 0, 0, 1, 1, 2], [0], [0]>} : vector<2x8x8xbf16>, vector<2x8x8xbf16>, vector<2x8x8xf32> -> vector<2x8x8xf32>
    "tpu.trace_stop"() : () -> ()
    %579 = vector.shape_cast %578 : vector<2x8x8xf32> to vector<16x8xf32>
    %580 = vector.extract_strided_slice %562 {offsets = [0, 0], sizes = [8, 32], strides = [1, 1]} : vector<32x32xbf16> to vector<8x32xbf16>
    %581 = arith.truncf %579 : vector<16x8xf32> to vector<16x8xbf16>
    %cst_188 = arith.constant dense<0.000000e+00> : vector<16x32xf32>
    %582 = tpu.matmul %581, %580, %cst_188 {dimension_numbers = #tpu.dot_dimension_numbers<[1], [0], [0], [1], [0, 0, 1, 1], [], []>} : vector<16x8xbf16>, vector<8x32xbf16>, vector<16x32xf32> -> vector<16x32xf32>
    %583 = vector.extract_strided_slice %556 {offsets = [0, 0, 8], sizes = [2, 8, 8], strides = [1, 1, 1]} : vector<2x8x32xbf16> to vector<2x8x8xbf16>
    %584 = vector.extract_strided_slice %558 {offsets = [0, 0, 8], sizes = [2, 8, 8], strides = [1, 1, 1]} : vector<2x8x32xbf16> to vector<2x8x8xbf16>
    "tpu.trace_start"() <{level = 10 : i32, message = "bqd,bkd->bqk"}> : () -> ()
    %cst_189 = arith.constant dense<0.000000e+00> : vector<2x8x8xf32>
    %585 = tpu.matmul %583, %584, %cst_189 {dimension_numbers = #tpu.dot_dimension_numbers<[2], [2], [1], [1], [0, 0, 0, 1, 1, 1], [0], [0]>} : vector<2x8x8xbf16>, vector<2x8x8xbf16>, vector<2x8x8xf32> -> vector<2x8x8xf32>
    "tpu.trace_stop"() : () -> ()
    %cst_190 = arith.constant dense<0xFF800000> : vector<2x8xf32>
    %586 = vector.multi_reduction <maximumf>, %585, %cst_190 [2] : vector<2x8x8xf32> to vector<2x8xf32>
    %587 = vector.shape_cast %586 : vector<2x8xf32> to vector<2x8x1xf32>
    %588 = vector.broadcast %587 : vector<2x8x1xf32> to vector<2x8x8xf32>
    %589 = arith.subf %585, %588 : vector<2x8x8xf32>
    %590 = math.exp %589 : vector<2x8x8xf32>
    %cst_191 = arith.constant dense<0.000000e+00> : vector<2x8xf32>
    %591 = vector.multi_reduction <add>, %590, %cst_191 [2] : vector<2x8x8xf32> to vector<2x8xf32>
    %592 = vector.shape_cast %591 : vector<2x8xf32> to vector<2x8x1xf32>
    %593 = tpu.reciprocal %592 {approx = true} : vector<2x8x1xf32> -> vector<2x8x1xf32>
    %594 = vector.broadcast %593 : vector<2x8x1xf32> to vector<2x8x8xf32>
    %595 = arith.mulf %590, %594 : vector<2x8x8xf32>
    %596 = arith.truncf %595 : vector<2x8x8xf32> to vector<2x8x8xbf16>
    %597 = vector.extract_strided_slice %560 {offsets = [0, 0, 8], sizes = [2, 8, 8], strides = [1, 1, 1]} : vector<2x8x32xbf16> to vector<2x8x8xbf16>
    "tpu.trace_start"() <{level = 10 : i32, message = "bqk,bkd->bqd"}> : () -> ()
    %cst_192 = arith.constant dense<0.000000e+00> : vector<2x8x8xf32>
    %598 = tpu.matmul %596, %597, %cst_192 {dimension_numbers = #tpu.dot_dimension_numbers<[2], [1], [1], [2], [0, 0, 0, 1, 1, 2], [0], [0]>} : vector<2x8x8xbf16>, vector<2x8x8xbf16>, vector<2x8x8xf32> -> vector<2x8x8xf32>
    "tpu.trace_stop"() : () -> ()
    %599 = vector.shape_cast %598 : vector<2x8x8xf32> to vector<16x8xf32>
    %600 = vector.extract_strided_slice %562 {offsets = [8, 0], sizes = [8, 32], strides = [1, 1]} : vector<32x32xbf16> to vector<8x32xbf16>
    %601 = arith.truncf %599 : vector<16x8xf32> to vector<16x8xbf16>
    %cst_193 = arith.constant dense<0.000000e+00> : vector<16x32xf32>
    %602 = tpu.matmul %601, %600, %cst_193 {dimension_numbers = #tpu.dot_dimension_numbers<[1], [0], [0], [1], [0, 0, 1, 1], [], []>} : vector<16x8xbf16>, vector<8x32xbf16>, vector<16x32xf32> -> vector<16x32xf32>
    %603 = arith.addf %582, %602 : vector<16x32xf32>
    %604 = vector.extract_strided_slice %556 {offsets = [0, 0, 16], sizes = [2, 8, 8], strides = [1, 1, 1]} : vector<2x8x32xbf16> to vector<2x8x8xbf16>
    %605 = vector.extract_strided_slice %558 {offsets = [0, 0, 16], sizes = [2, 8, 8], strides = [1, 1, 1]} : vector<2x8x32xbf16> to vector<2x8x8xbf16>
    "tpu.trace_start"() <{level = 10 : i32, message = "bqd,bkd->bqk"}> : () -> ()
    %cst_194 = arith.constant dense<0.000000e+00> : vector<2x8x8xf32>
    %606 = tpu.matmul %604, %605, %cst_194 {dimension_numbers = #tpu.dot_dimension_numbers<[2], [2], [1], [1], [0, 0, 0, 1, 1, 1], [0], [0]>} : vector<2x8x8xbf16>, vector<2x8x8xbf16>, vector<2x8x8xf32> -> vector<2x8x8xf32>
    "tpu.trace_stop"() : () -> ()
    %cst_195 = arith.constant dense<0xFF800000> : vector<2x8xf32>
    %607 = vector.multi_reduction <maximumf>, %606, %cst_195 [2] : vector<2x8x8xf32> to vector<2x8xf32>
    %608 = vector.shape_cast %607 : vector<2x8xf32> to vector<2x8x1xf32>
    %609 = vector.broadcast %608 : vector<2x8x1xf32> to vector<2x8x8xf32>
    %610 = arith.subf %606, %609 : vector<2x8x8xf32>
    %611 = math.exp %610 : vector<2x8x8xf32>
    %cst_196 = arith.constant dense<0.000000e+00> : vector<2x8xf32>
    %612 = vector.multi_reduction <add>, %611, %cst_196 [2] : vector<2x8x8xf32> to vector<2x8xf32>
    %613 = vector.shape_cast %612 : vector<2x8xf32> to vector<2x8x1xf32>
    %614 = tpu.reciprocal %613 {approx = true} : vector<2x8x1xf32> -> vector<2x8x1xf32>
    %615 = vector.broadcast %614 : vector<2x8x1xf32> to vector<2x8x8xf32>
    %616 = arith.mulf %611, %615 : vector<2x8x8xf32>
    %617 = arith.truncf %616 : vector<2x8x8xf32> to vector<2x8x8xbf16>
    %618 = vector.extract_strided_slice %560 {offsets = [0, 0, 16], sizes = [2, 8, 8], strides = [1, 1, 1]} : vector<2x8x32xbf16> to vector<2x8x8xbf16>
    "tpu.trace_start"() <{level = 10 : i32, message = "bqk,bkd->bqd"}> : () -> ()
    %cst_197 = arith.constant dense<0.000000e+00> : vector<2x8x8xf32>
    %619 = tpu.matmul %617, %618, %cst_197 {dimension_numbers = #tpu.dot_dimension_numbers<[2], [1], [1], [2], [0, 0, 0, 1, 1, 2], [0], [0]>} : vector<2x8x8xbf16>, vector<2x8x8xbf16>, vector<2x8x8xf32> -> vector<2x8x8xf32>
    "tpu.trace_stop"() : () -> ()
    %620 = vector.shape_cast %619 : vector<2x8x8xf32> to vector<16x8xf32>
    %621 = vector.extract_strided_slice %562 {offsets = [16, 0], sizes = [8, 32], strides = [1, 1]} : vector<32x32xbf16> to vector<8x32xbf16>
    %622 = arith.truncf %620 : vector<16x8xf32> to vector<16x8xbf16>
    %cst_198 = arith.constant dense<0.000000e+00> : vector<16x32xf32>
    %623 = tpu.matmul %622, %621, %cst_198 {dimension_numbers = #tpu.dot_dimension_numbers<[1], [0], [0], [1], [0, 0, 1, 1], [], []>} : vector<16x8xbf16>, vector<8x32xbf16>, vector<16x32xf32> -> vector<16x32xf32>
    %624 = arith.addf %603, %623 : vector<16x32xf32>
    %625 = vector.extract_strided_slice %556 {offsets = [0, 0, 24], sizes = [2, 8, 8], strides = [1, 1, 1]} : vector<2x8x32xbf16> to vector<2x8x8xbf16>
    %626 = vector.extract_strided_slice %558 {offsets = [0, 0, 24], sizes = [2, 8, 8], strides = [1, 1, 1]} : vector<2x8x32xbf16> to vector<2x8x8xbf16>
    "tpu.trace_start"() <{level = 10 : i32, message = "bqd,bkd->bqk"}> : () -> ()
    %cst_199 = arith.constant dense<0.000000e+00> : vector<2x8x8xf32>
    %627 = tpu.matmul %625, %626, %cst_199 {dimension_numbers = #tpu.dot_dimension_numbers<[2], [2], [1], [1], [0, 0, 0, 1, 1, 1], [0], [0]>} : vector<2x8x8xbf16>, vector<2x8x8xbf16>, vector<2x8x8xf32> -> vector<2x8x8xf32>
    "tpu.trace_stop"() : () -> ()
    %cst_200 = arith.constant dense<0xFF800000> : vector<2x8xf32>
    %628 = vector.multi_reduction <maximumf>, %627, %cst_200 [2] : vector<2x8x8xf32> to vector<2x8xf32>
    %629 = vector.shape_cast %628 : vector<2x8xf32> to vector<2x8x1xf32>
    %630 = vector.broadcast %629 : vector<2x8x1xf32> to vector<2x8x8xf32>
    %631 = arith.subf %627, %630 : vector<2x8x8xf32>
    %632 = math.exp %631 : vector<2x8x8xf32>
    %cst_201 = arith.constant dense<0.000000e+00> : vector<2x8xf32>
    %633 = vector.multi_reduction <add>, %632, %cst_201 [2] : vector<2x8x8xf32> to vector<2x8xf32>
    %634 = vector.shape_cast %633 : vector<2x8xf32> to vector<2x8x1xf32>
    %635 = tpu.reciprocal %634 {approx = true} : vector<2x8x1xf32> -> vector<2x8x1xf32>
    %636 = vector.broadcast %635 : vector<2x8x1xf32> to vector<2x8x8xf32>
    %637 = arith.mulf %632, %636 : vector<2x8x8xf32>
    %638 = arith.truncf %637 : vector<2x8x8xf32> to vector<2x8x8xbf16>
    %639 = vector.extract_strided_slice %560 {offsets = [0, 0, 24], sizes = [2, 8, 8], strides = [1, 1, 1]} : vector<2x8x32xbf16> to vector<2x8x8xbf16>
    "tpu.trace_start"() <{level = 10 : i32, message = "bqk,bkd->bqd"}> : () -> ()
    %cst_202 = arith.constant dense<0.000000e+00> : vector<2x8x8xf32>
    %640 = tpu.matmul %638, %639, %cst_202 {dimension_numbers = #tpu.dot_dimension_numbers<[2], [1], [1], [2], [0, 0, 0, 1, 1, 2], [0], [0]>} : vector<2x8x8xbf16>, vector<2x8x8xbf16>, vector<2x8x8xf32> -> vector<2x8x8xf32>
    "tpu.trace_stop"() : () -> ()
    %641 = vector.shape_cast %640 : vector<2x8x8xf32> to vector<16x8xf32>
    %642 = vector.extract_strided_slice %562 {offsets = [24, 0], sizes = [8, 32], strides = [1, 1]} : vector<32x32xbf16> to vector<8x32xbf16>
    %643 = arith.truncf %641 : vector<16x8xf32> to vector<16x8xbf16>
    %cst_203 = arith.constant dense<0.000000e+00> : vector<16x32xf32>
    %644 = tpu.matmul %643, %642, %cst_203 {dimension_numbers = #tpu.dot_dimension_numbers<[1], [0], [0], [1], [0, 0, 1, 1], [], []>} : vector<16x8xbf16>, vector<8x32xbf16>, vector<16x32xf32> -> vector<16x32xf32>
    %645 = arith.addf %624, %644 : vector<16x32xf32>
    %c23 = arith.constant 23 : index
    %c0_204 = arith.constant 0 : index
    %646 = vector.load %arg5[%c23, %c0_204] : memref<47x128xf32, #tpu.memory_space<vmem>>, vector<1x32xf32>
    %647 = vector.broadcast %646 : vector<1x32xf32> to vector<16x32xf32>
    %648 = arith.addf %645, %647 : vector<16x32xf32>
    %649 = arith.addf %538, %648 : vector<16x32xf32>
    %c26 = arith.constant 26 : index
    %c0_205 = arith.constant 0 : index
    %650 = vector.load %arg5[%c26, %c0_205] : memref<47x128xf32, #tpu.memory_space<vmem>>, vector<1x32xf32>
    %c27 = arith.constant 27 : index
    %c0_206 = arith.constant 0 : index
    %651 = vector.load %arg5[%c27, %c0_206] : memref<47x128xf32, #tpu.memory_space<vmem>>, vector<1x32xf32>
    %cst_207 = arith.constant dense<0.000000e+00> : vector<16xf32>
    %652 = vector.multi_reduction <add>, %649, %cst_207 [1] : vector<16x32xf32> to vector<16xf32>
    %653 = vector.shape_cast %652 : vector<16xf32> to vector<16x1xf32>
    %cst_208 = arith.constant 3.200000e+01 : f32
    %654 = vector.broadcast %cst_208 : f32 to vector<16x1xf32>
    %655 = arith.divf %653, %654 : vector<16x1xf32>
    %656 = vector.broadcast %655 : vector<16x1xf32> to vector<16x32xf32>
    %657 = arith.subf %649, %656 : vector<16x32xf32>
    %658 = arith.mulf %657, %657 : vector<16x32xf32>
    %cst_209 = arith.constant dense<0.000000e+00> : vector<16xf32>
    %659 = vector.multi_reduction <add>, %658, %cst_209 [1] : vector<16x32xf32> to vector<16xf32>
    %660 = vector.shape_cast %659 : vector<16xf32> to vector<16x1xf32>
    %cst_210 = arith.constant 3.200000e+01 : f32
    %661 = vector.broadcast %cst_210 : f32 to vector<16x1xf32>
    %662 = arith.divf %660, %661 : vector<16x1xf32>
    %663 = vector.broadcast %655 : vector<16x1xf32> to vector<16x32xf32>
    %664 = arith.subf %649, %663 : vector<16x32xf32>
    %cst_211 = arith.constant 9.99999974E-6 : f32
    %665 = vector.broadcast %cst_211 : f32 to vector<16x1xf32>
    %666 = arith.addf %662, %665 : vector<16x1xf32>
    %667 = math.rsqrt %666 : vector<16x1xf32>
    %668 = vector.broadcast %667 : vector<16x1xf32> to vector<16x32xf32>
    %669 = arith.mulf %664, %668 : vector<16x32xf32>
    %670 = vector.broadcast %650 : vector<1x32xf32> to vector<16x32xf32>
    %671 = arith.mulf %669, %670 : vector<16x32xf32>
    %672 = vector.broadcast %651 : vector<1x32xf32> to vector<16x32xf32>
    %673 = arith.addf %671, %672 : vector<16x32xf32>
    %c2_212 = arith.constant 2 : index
    %c0_213 = arith.constant 0 : index
    %c0_214 = arith.constant 0 : index
    %674 = vector.load %arg3[%c2_212, %c0_213, %c0_214] : memref<4x32x2048xbf16, #tpu.memory_space<vmem>>, vector<1x32x2048xbf16>
    %675 = vector.shape_cast %674 : vector<1x32x2048xbf16> to vector<32x2048xbf16>
    %676 = arith.truncf %673 : vector<16x32xf32> to vector<16x32xbf16>
    %cst_215 = arith.constant dense<0.000000e+00> : vector<16x2048xf32>
    %677 = tpu.matmul %676, %675, %cst_215 {dimension_numbers = #tpu.dot_dimension_numbers<[1], [0], [0], [1], [0, 0, 1, 1], [], []>} : vector<16x32xbf16>, vector<32x2048xbf16>, vector<16x2048xf32> -> vector<16x2048xf32>
    %c2_216 = arith.constant 2 : index
    %c0_217 = arith.constant 0 : index
    %c0_218 = arith.constant 0 : index
    %678 = vector.load %arg6[%c2_216, %c0_217, %c0_218] : memref<4x1x2048xf32, #tpu.memory_space<vmem>>, vector<1x1x2048xf32>
    %679 = vector.shape_cast %678 : vector<1x1x2048xf32> to vector<1x2048xf32>
    %680 = vector.broadcast %679 : vector<1x2048xf32> to vector<16x2048xf32>
    %681 = arith.addf %677, %680 : vector<16x2048xf32>
    %cst_219 = arith.constant 0.000000e+00 : f32
    %682 = vector.broadcast %cst_219 : f32 to vector<16x2048xf32>
    %683 = arith.maximumf %681, %682 : vector<16x2048xf32>
    %684 = arith.truncf %683 : vector<16x2048xf32> to vector<16x2048xbf16>
    %c2_220 = arith.constant 2 : index
    %c0_221 = arith.constant 0 : index
    %c0_222 = arith.constant 0 : index
    %685 = vector.load %arg4[%c2_220, %c0_221, %c0_222] : memref<4x2048x32xbf16, #tpu.memory_space<vmem>>, vector<1x2048x32xbf16>
    %686 = vector.shape_cast %685 : vector<1x2048x32xbf16> to vector<2048x32xbf16>
    %cst_223 = arith.constant dense<0.000000e+00> : vector<16x32xf32>
    %687 = tpu.matmul %684, %686, %cst_223 {dimension_numbers = #tpu.dot_dimension_numbers<[1], [0], [0], [1], [0, 0, 1, 1], [], []>} : vector<16x2048xbf16>, vector<2048x32xbf16>, vector<16x32xf32> -> vector<16x32xf32>
    %c30 = arith.constant 30 : index
    %c0_224 = arith.constant 0 : index
    %688 = vector.load %arg5[%c30, %c0_224] : memref<47x128xf32, #tpu.memory_space<vmem>>, vector<1x32xf32>
    %689 = vector.broadcast %688 : vector<1x32xf32> to vector<16x32xf32>
    %690 = arith.addf %687, %689 : vector<16x32xf32>
    %691 = arith.addf %673, %690 : vector<16x32xf32>
    %c28 = arith.constant 28 : index
    %c0_225 = arith.constant 0 : index
    %692 = vector.load %arg5[%c28, %c0_225] : memref<47x128xf32, #tpu.memory_space<vmem>>, vector<1x32xf32>
    %c29 = arith.constant 29 : index
    %c0_226 = arith.constant 0 : index
    %693 = vector.load %arg5[%c29, %c0_226] : memref<47x128xf32, #tpu.memory_space<vmem>>, vector<1x32xf32>
    %cst_227 = arith.constant dense<0.000000e+00> : vector<16xf32>
    %694 = vector.multi_reduction <add>, %691, %cst_227 [1] : vector<16x32xf32> to vector<16xf32>
    %695 = vector.shape_cast %694 : vector<16xf32> to vector<16x1xf32>
    %cst_228 = arith.constant 3.200000e+01 : f32
    %696 = vector.broadcast %cst_228 : f32 to vector<16x1xf32>
    %697 = arith.divf %695, %696 : vector<16x1xf32>
    %698 = vector.broadcast %697 : vector<16x1xf32> to vector<16x32xf32>
    %699 = arith.subf %691, %698 : vector<16x32xf32>
    %700 = arith.mulf %699, %699 : vector<16x32xf32>
    %cst_229 = arith.constant dense<0.000000e+00> : vector<16xf32>
    %701 = vector.multi_reduction <add>, %700, %cst_229 [1] : vector<16x32xf32> to vector<16xf32>
    %702 = vector.shape_cast %701 : vector<16xf32> to vector<16x1xf32>
    %cst_230 = arith.constant 3.200000e+01 : f32
    %703 = vector.broadcast %cst_230 : f32 to vector<16x1xf32>
    %704 = arith.divf %702, %703 : vector<16x1xf32>
    %705 = vector.broadcast %697 : vector<16x1xf32> to vector<16x32xf32>
    %706 = arith.subf %691, %705 : vector<16x32xf32>
    %cst_231 = arith.constant 9.99999974E-6 : f32
    %707 = vector.broadcast %cst_231 : f32 to vector<16x1xf32>
    %708 = arith.addf %704, %707 : vector<16x1xf32>
    %709 = math.rsqrt %708 : vector<16x1xf32>
    %710 = vector.broadcast %709 : vector<16x1xf32> to vector<16x32xf32>
    %711 = arith.mulf %706, %710 : vector<16x32xf32>
    %712 = vector.broadcast %692 : vector<1x32xf32> to vector<16x32xf32>
    %713 = arith.mulf %711, %712 : vector<16x32xf32>
    %714 = vector.broadcast %693 : vector<1x32xf32> to vector<16x32xf32>
    %715 = arith.addf %713, %714 : vector<16x32xf32>
    %c10_232 = arith.constant 10 : index
    %c0_233 = arith.constant 0 : index
    %c0_234 = arith.constant 0 : index
    %716 = vector.load %arg2[%c10_232, %c0_233, %c0_234] : memref<15x32x128xbf16, #tpu.memory_space<vmem>>, vector<1x32x96xbf16>
    %717 = vector.shape_cast %716 : vector<1x32x96xbf16> to vector<32x96xbf16>
    %718 = arith.truncf %715 : vector<16x32xf32> to vector<16x32xbf16>
    %cst_235 = arith.constant dense<0.000000e+00> : vector<16x96xf32>
    %719 = tpu.matmul %718, %717, %cst_235 {dimension_numbers = #tpu.dot_dimension_numbers<[1], [0], [0], [1], [0, 0, 1, 1], [], []>} : vector<16x32xbf16>, vector<32x96xbf16>, vector<16x96xf32> -> vector<16x96xf32>
    %c31 = arith.constant 31 : index
    %c0_236 = arith.constant 0 : index
    %720 = vector.load %arg5[%c31, %c0_236] : memref<47x128xf32, #tpu.memory_space<vmem>>, vector<1x96xf32>
    %721 = vector.broadcast %720 : vector<1x96xf32> to vector<16x96xf32>
    %722 = arith.addf %719, %721 : vector<16x96xf32>
    %723 = vector.extract_strided_slice %722 {offsets = [0, 0], sizes = [16, 32], strides = [1, 1]} : vector<16x96xf32> to vector<16x32xf32>
    %724 = vector.extract_strided_slice %722 {offsets = [0, 32], sizes = [16, 32], strides = [1, 1]} : vector<16x96xf32> to vector<16x32xf32>
    %725 = vector.extract_strided_slice %722 {offsets = [0, 64], sizes = [16, 32], strides = [1, 1]} : vector<16x96xf32> to vector<16x32xf32>
    %726 = vector.shape_cast %723 : vector<16x32xf32> to vector<2x8x32xf32>
    %727 = arith.truncf %726 : vector<2x8x32xf32> to vector<2x8x32xbf16>
    %728 = vector.shape_cast %724 : vector<16x32xf32> to vector<2x8x32xf32>
    %729 = arith.truncf %728 : vector<2x8x32xf32> to vector<2x8x32xbf16>
    %730 = vector.shape_cast %725 : vector<16x32xf32> to vector<2x8x32xf32>
    %731 = arith.truncf %730 : vector<2x8x32xf32> to vector<2x8x32xbf16>
    %c11_237 = arith.constant 11 : index
    %c0_238 = arith.constant 0 : index
    %c0_239 = arith.constant 0 : index
    %732 = vector.load %arg2[%c11_237, %c0_238, %c0_239] : memref<15x32x128xbf16, #tpu.memory_space<vmem>>, vector<1x32x32xbf16>
    %733 = vector.shape_cast %732 : vector<1x32x32xbf16> to vector<32x32xbf16>
    %734 = vector.extract_strided_slice %727 {offsets = [0, 0, 0], sizes = [2, 8, 8], strides = [1, 1, 1]} : vector<2x8x32xbf16> to vector<2x8x8xbf16>
    %735 = vector.extract_strided_slice %729 {offsets = [0, 0, 0], sizes = [2, 8, 8], strides = [1, 1, 1]} : vector<2x8x32xbf16> to vector<2x8x8xbf16>
    "tpu.trace_start"() <{level = 10 : i32, message = "bqd,bkd->bqk"}> : () -> ()
    %cst_240 = arith.constant dense<0.000000e+00> : vector<2x8x8xf32>
    %736 = tpu.matmul %734, %735, %cst_240 {dimension_numbers = #tpu.dot_dimension_numbers<[2], [2], [1], [1], [0, 0, 0, 1, 1, 1], [0], [0]>} : vector<2x8x8xbf16>, vector<2x8x8xbf16>, vector<2x8x8xf32> -> vector<2x8x8xf32>
    "tpu.trace_stop"() : () -> ()
    %cst_241 = arith.constant dense<0xFF800000> : vector<2x8xf32>
    %737 = vector.multi_reduction <maximumf>, %736, %cst_241 [2] : vector<2x8x8xf32> to vector<2x8xf32>
    %738 = vector.shape_cast %737 : vector<2x8xf32> to vector<2x8x1xf32>
    %739 = vector.broadcast %738 : vector<2x8x1xf32> to vector<2x8x8xf32>
    %740 = arith.subf %736, %739 : vector<2x8x8xf32>
    %741 = math.exp %740 : vector<2x8x8xf32>
    %cst_242 = arith.constant dense<0.000000e+00> : vector<2x8xf32>
    %742 = vector.multi_reduction <add>, %741, %cst_242 [2] : vector<2x8x8xf32> to vector<2x8xf32>
    %743 = vector.shape_cast %742 : vector<2x8xf32> to vector<2x8x1xf32>
    %744 = tpu.reciprocal %743 {approx = true} : vector<2x8x1xf32> -> vector<2x8x1xf32>
    %745 = vector.broadcast %744 : vector<2x8x1xf32> to vector<2x8x8xf32>
    %746 = arith.mulf %741, %745 : vector<2x8x8xf32>
    %747 = arith.truncf %746 : vector<2x8x8xf32> to vector<2x8x8xbf16>
    %748 = vector.extract_strided_slice %731 {offsets = [0, 0, 0], sizes = [2, 8, 8], strides = [1, 1, 1]} : vector<2x8x32xbf16> to vector<2x8x8xbf16>
    "tpu.trace_start"() <{level = 10 : i32, message = "bqk,bkd->bqd"}> : () -> ()
    %cst_243 = arith.constant dense<0.000000e+00> : vector<2x8x8xf32>
    %749 = tpu.matmul %747, %748, %cst_243 {dimension_numbers = #tpu.dot_dimension_numbers<[2], [1], [1], [2], [0, 0, 0, 1, 1, 2], [0], [0]>} : vector<2x8x8xbf16>, vector<2x8x8xbf16>, vector<2x8x8xf32> -> vector<2x8x8xf32>
    "tpu.trace_stop"() : () -> ()
    %750 = vector.shape_cast %749 : vector<2x8x8xf32> to vector<16x8xf32>
    %751 = vector.extract_strided_slice %733 {offsets = [0, 0], sizes = [8, 32], strides = [1, 1]} : vector<32x32xbf16> to vector<8x32xbf16>
    %752 = arith.truncf %750 : vector<16x8xf32> to vector<16x8xbf16>
    %cst_244 = arith.constant dense<0.000000e+00> : vector<16x32xf32>
    %753 = tpu.matmul %752, %751, %cst_244 {dimension_numbers = #tpu.dot_dimension_numbers<[1], [0], [0], [1], [0, 0, 1, 1], [], []>} : vector<16x8xbf16>, vector<8x32xbf16>, vector<16x32xf32> -> vector<16x32xf32>
    %754 = vector.extract_strided_slice %727 {offsets = [0, 0, 8], sizes = [2, 8, 8], strides = [1, 1, 1]} : vector<2x8x32xbf16> to vector<2x8x8xbf16>
    %755 = vector.extract_strided_slice %729 {offsets = [0, 0, 8], sizes = [2, 8, 8], strides = [1, 1, 1]} : vector<2x8x32xbf16> to vector<2x8x8xbf16>
    "tpu.trace_start"() <{level = 10 : i32, message = "bqd,bkd->bqk"}> : () -> ()
    %cst_245 = arith.constant dense<0.000000e+00> : vector<2x8x8xf32>
    %756 = tpu.matmul %754, %755, %cst_245 {dimension_numbers = #tpu.dot_dimension_numbers<[2], [2], [1], [1], [0, 0, 0, 1, 1, 1], [0], [0]>} : vector<2x8x8xbf16>, vector<2x8x8xbf16>, vector<2x8x8xf32> -> vector<2x8x8xf32>
    "tpu.trace_stop"() : () -> ()
    %cst_246 = arith.constant dense<0xFF800000> : vector<2x8xf32>
    %757 = vector.multi_reduction <maximumf>, %756, %cst_246 [2] : vector<2x8x8xf32> to vector<2x8xf32>
    %758 = vector.shape_cast %757 : vector<2x8xf32> to vector<2x8x1xf32>
    %759 = vector.broadcast %758 : vector<2x8x1xf32> to vector<2x8x8xf32>
    %760 = arith.subf %756, %759 : vector<2x8x8xf32>
    %761 = math.exp %760 : vector<2x8x8xf32>
    %cst_247 = arith.constant dense<0.000000e+00> : vector<2x8xf32>
    %762 = vector.multi_reduction <add>, %761, %cst_247 [2] : vector<2x8x8xf32> to vector<2x8xf32>
    %763 = vector.shape_cast %762 : vector<2x8xf32> to vector<2x8x1xf32>
    %764 = tpu.reciprocal %763 {approx = true} : vector<2x8x1xf32> -> vector<2x8x1xf32>
    %765 = vector.broadcast %764 : vector<2x8x1xf32> to vector<2x8x8xf32>
    %766 = arith.mulf %761, %765 : vector<2x8x8xf32>
    %767 = arith.truncf %766 : vector<2x8x8xf32> to vector<2x8x8xbf16>
    %768 = vector.extract_strided_slice %731 {offsets = [0, 0, 8], sizes = [2, 8, 8], strides = [1, 1, 1]} : vector<2x8x32xbf16> to vector<2x8x8xbf16>
    "tpu.trace_start"() <{level = 10 : i32, message = "bqk,bkd->bqd"}> : () -> ()
    %cst_248 = arith.constant dense<0.000000e+00> : vector<2x8x8xf32>
    %769 = tpu.matmul %767, %768, %cst_248 {dimension_numbers = #tpu.dot_dimension_numbers<[2], [1], [1], [2], [0, 0, 0, 1, 1, 2], [0], [0]>} : vector<2x8x8xbf16>, vector<2x8x8xbf16>, vector<2x8x8xf32> -> vector<2x8x8xf32>
    "tpu.trace_stop"() : () -> ()
    %770 = vector.shape_cast %769 : vector<2x8x8xf32> to vector<16x8xf32>
    %771 = vector.extract_strided_slice %733 {offsets = [8, 0], sizes = [8, 32], strides = [1, 1]} : vector<32x32xbf16> to vector<8x32xbf16>
    %772 = arith.truncf %770 : vector<16x8xf32> to vector<16x8xbf16>
    %cst_249 = arith.constant dense<0.000000e+00> : vector<16x32xf32>
    %773 = tpu.matmul %772, %771, %cst_249 {dimension_numbers = #tpu.dot_dimension_numbers<[1], [0], [0], [1], [0, 0, 1, 1], [], []>} : vector<16x8xbf16>, vector<8x32xbf16>, vector<16x32xf32> -> vector<16x32xf32>
    %774 = arith.addf %753, %773 : vector<16x32xf32>
    %775 = vector.extract_strided_slice %727 {offsets = [0, 0, 16], sizes = [2, 8, 8], strides = [1, 1, 1]} : vector<2x8x32xbf16> to vector<2x8x8xbf16>
    %776 = vector.extract_strided_slice %729 {offsets = [0, 0, 16], sizes = [2, 8, 8], strides = [1, 1, 1]} : vector<2x8x32xbf16> to vector<2x8x8xbf16>
    "tpu.trace_start"() <{level = 10 : i32, message = "bqd,bkd->bqk"}> : () -> ()
    %cst_250 = arith.constant dense<0.000000e+00> : vector<2x8x8xf32>
    %777 = tpu.matmul %775, %776, %cst_250 {dimension_numbers = #tpu.dot_dimension_numbers<[2], [2], [1], [1], [0, 0, 0, 1, 1, 1], [0], [0]>} : vector<2x8x8xbf16>, vector<2x8x8xbf16>, vector<2x8x8xf32> -> vector<2x8x8xf32>
    "tpu.trace_stop"() : () -> ()
    %cst_251 = arith.constant dense<0xFF800000> : vector<2x8xf32>
    %778 = vector.multi_reduction <maximumf>, %777, %cst_251 [2] : vector<2x8x8xf32> to vector<2x8xf32>
    %779 = vector.shape_cast %778 : vector<2x8xf32> to vector<2x8x1xf32>
    %780 = vector.broadcast %779 : vector<2x8x1xf32> to vector<2x8x8xf32>
    %781 = arith.subf %777, %780 : vector<2x8x8xf32>
    %782 = math.exp %781 : vector<2x8x8xf32>
    %cst_252 = arith.constant dense<0.000000e+00> : vector<2x8xf32>
    %783 = vector.multi_reduction <add>, %782, %cst_252 [2] : vector<2x8x8xf32> to vector<2x8xf32>
    %784 = vector.shape_cast %783 : vector<2x8xf32> to vector<2x8x1xf32>
    %785 = tpu.reciprocal %784 {approx = true} : vector<2x8x1xf32> -> vector<2x8x1xf32>
    %786 = vector.broadcast %785 : vector<2x8x1xf32> to vector<2x8x8xf32>
    %787 = arith.mulf %782, %786 : vector<2x8x8xf32>
    %788 = arith.truncf %787 : vector<2x8x8xf32> to vector<2x8x8xbf16>
    %789 = vector.extract_strided_slice %731 {offsets = [0, 0, 16], sizes = [2, 8, 8], strides = [1, 1, 1]} : vector<2x8x32xbf16> to vector<2x8x8xbf16>
    "tpu.trace_start"() <{level = 10 : i32, message = "bqk,bkd->bqd"}> : () -> ()
    %cst_253 = arith.constant dense<0.000000e+00> : vector<2x8x8xf32>
    %790 = tpu.matmul %788, %789, %cst_253 {dimension_numbers = #tpu.dot_dimension_numbers<[2], [1], [1], [2], [0, 0, 0, 1, 1, 2], [0], [0]>} : vector<2x8x8xbf16>, vector<2x8x8xbf16>, vector<2x8x8xf32> -> vector<2x8x8xf32>
    "tpu.trace_stop"() : () -> ()
    %791 = vector.shape_cast %790 : vector<2x8x8xf32> to vector<16x8xf32>
    %792 = vector.extract_strided_slice %733 {offsets = [16, 0], sizes = [8, 32], strides = [1, 1]} : vector<32x32xbf16> to vector<8x32xbf16>
    %793 = arith.truncf %791 : vector<16x8xf32> to vector<16x8xbf16>
    %cst_254 = arith.constant dense<0.000000e+00> : vector<16x32xf32>
    %794 = tpu.matmul %793, %792, %cst_254 {dimension_numbers = #tpu.dot_dimension_numbers<[1], [0], [0], [1], [0, 0, 1, 1], [], []>} : vector<16x8xbf16>, vector<8x32xbf16>, vector<16x32xf32> -> vector<16x32xf32>
    %795 = arith.addf %774, %794 : vector<16x32xf32>
    %796 = vector.extract_strided_slice %727 {offsets = [0, 0, 24], sizes = [2, 8, 8], strides = [1, 1, 1]} : vector<2x8x32xbf16> to vector<2x8x8xbf16>
    %797 = vector.extract_strided_slice %729 {offsets = [0, 0, 24], sizes = [2, 8, 8], strides = [1, 1, 1]} : vector<2x8x32xbf16> to vector<2x8x8xbf16>
    "tpu.trace_start"() <{level = 10 : i32, message = "bqd,bkd->bqk"}> : () -> ()
    %cst_255 = arith.constant dense<0.000000e+00> : vector<2x8x8xf32>
    %798 = tpu.matmul %796, %797, %cst_255 {dimension_numbers = #tpu.dot_dimension_numbers<[2], [2], [1], [1], [0, 0, 0, 1, 1, 1], [0], [0]>} : vector<2x8x8xbf16>, vector<2x8x8xbf16>, vector<2x8x8xf32> -> vector<2x8x8xf32>
    "tpu.trace_stop"() : () -> ()
    %cst_256 = arith.constant dense<0xFF800000> : vector<2x8xf32>
    %799 = vector.multi_reduction <maximumf>, %798, %cst_256 [2] : vector<2x8x8xf32> to vector<2x8xf32>
    %800 = vector.shape_cast %799 : vector<2x8xf32> to vector<2x8x1xf32>
    %801 = vector.broadcast %800 : vector<2x8x1xf32> to vector<2x8x8xf32>
    %802 = arith.subf %798, %801 : vector<2x8x8xf32>
    %803 = math.exp %802 : vector<2x8x8xf32>
    %cst_257 = arith.constant dense<0.000000e+00> : vector<2x8xf32>
    %804 = vector.multi_reduction <add>, %803, %cst_257 [2] : vector<2x8x8xf32> to vector<2x8xf32>
    %805 = vector.shape_cast %804 : vector<2x8xf32> to vector<2x8x1xf32>
    %806 = tpu.reciprocal %805 {approx = true} : vector<2x8x1xf32> -> vector<2x8x1xf32>
    %807 = vector.broadcast %806 : vector<2x8x1xf32> to vector<2x8x8xf32>
    %808 = arith.mulf %803, %807 : vector<2x8x8xf32>
    %809 = arith.truncf %808 : vector<2x8x8xf32> to vector<2x8x8xbf16>
    %810 = vector.extract_strided_slice %731 {offsets = [0, 0, 24], sizes = [2, 8, 8], strides = [1, 1, 1]} : vector<2x8x32xbf16> to vector<2x8x8xbf16>
    "tpu.trace_start"() <{level = 10 : i32, message = "bqk,bkd->bqd"}> : () -> ()
    %cst_258 = arith.constant dense<0.000000e+00> : vector<2x8x8xf32>
    %811 = tpu.matmul %809, %810, %cst_258 {dimension_numbers = #tpu.dot_dimension_numbers<[2], [1], [1], [2], [0, 0, 0, 1, 1, 2], [0], [0]>} : vector<2x8x8xbf16>, vector<2x8x8xbf16>, vector<2x8x8xf32> -> vector<2x8x8xf32>
    "tpu.trace_stop"() : () -> ()
    %812 = vector.shape_cast %811 : vector<2x8x8xf32> to vector<16x8xf32>
    %813 = vector.extract_strided_slice %733 {offsets = [24, 0], sizes = [8, 32], strides = [1, 1]} : vector<32x32xbf16> to vector<8x32xbf16>
    %814 = arith.truncf %812 : vector<16x8xf32> to vector<16x8xbf16>
    %cst_259 = arith.constant dense<0.000000e+00> : vector<16x32xf32>
    %815 = tpu.matmul %814, %813, %cst_259 {dimension_numbers = #tpu.dot_dimension_numbers<[1], [0], [0], [1], [0, 0, 1, 1], [], []>} : vector<16x8xbf16>, vector<8x32xbf16>, vector<16x32xf32> -> vector<16x32xf32>
    %816 = arith.addf %795, %815 : vector<16x32xf32>
    %c32 = arith.constant 32 : index
    %c0_260 = arith.constant 0 : index
    %817 = vector.load %arg5[%c32, %c0_260] : memref<47x128xf32, #tpu.memory_space<vmem>>, vector<1x32xf32>
    %818 = vector.broadcast %817 : vector<1x32xf32> to vector<16x32xf32>
    %819 = arith.addf %816, %818 : vector<16x32xf32>
    %820 = arith.addf %715, %819 : vector<16x32xf32>
    %c36 = arith.constant 36 : index
    %c0_261 = arith.constant 0 : index
    %821 = vector.load %arg5[%c36, %c0_261] : memref<47x128xf32, #tpu.memory_space<vmem>>, vector<1x32xf32>
    %c37 = arith.constant 37 : index
    %c0_262 = arith.constant 0 : index
    %822 = vector.load %arg5[%c37, %c0_262] : memref<47x128xf32, #tpu.memory_space<vmem>>, vector<1x32xf32>
    %cst_263 = arith.constant dense<0.000000e+00> : vector<16xf32>
    %823 = vector.multi_reduction <add>, %820, %cst_263 [1] : vector<16x32xf32> to vector<16xf32>
    %824 = vector.shape_cast %823 : vector<16xf32> to vector<16x1xf32>
    %cst_264 = arith.constant 3.200000e+01 : f32
    %825 = vector.broadcast %cst_264 : f32 to vector<16x1xf32>
    %826 = arith.divf %824, %825 : vector<16x1xf32>
    %827 = vector.broadcast %826 : vector<16x1xf32> to vector<16x32xf32>
    %828 = arith.subf %820, %827 : vector<16x32xf32>
    %829 = arith.mulf %828, %828 : vector<16x32xf32>
    %cst_265 = arith.constant dense<0.000000e+00> : vector<16xf32>
    %830 = vector.multi_reduction <add>, %829, %cst_265 [1] : vector<16x32xf32> to vector<16xf32>
    %831 = vector.shape_cast %830 : vector<16xf32> to vector<16x1xf32>
    %cst_266 = arith.constant 3.200000e+01 : f32
    %832 = vector.broadcast %cst_266 : f32 to vector<16x1xf32>
    %833 = arith.divf %831, %832 : vector<16x1xf32>
    %834 = vector.broadcast %826 : vector<16x1xf32> to vector<16x32xf32>
    %835 = arith.subf %820, %834 : vector<16x32xf32>
    %cst_267 = arith.constant 9.99999974E-6 : f32
    %836 = vector.broadcast %cst_267 : f32 to vector<16x1xf32>
    %837 = arith.addf %833, %836 : vector<16x1xf32>
    %838 = math.rsqrt %837 : vector<16x1xf32>
    %839 = vector.broadcast %838 : vector<16x1xf32> to vector<16x32xf32>
    %840 = arith.mulf %835, %839 : vector<16x32xf32>
    %841 = vector.broadcast %821 : vector<1x32xf32> to vector<16x32xf32>
    %842 = arith.mulf %840, %841 : vector<16x32xf32>
    %843 = vector.broadcast %822 : vector<1x32xf32> to vector<16x32xf32>
    %844 = arith.addf %842, %843 : vector<16x32xf32>
    %c12_268 = arith.constant 12 : index
    %c0_269 = arith.constant 0 : index
    %c0_270 = arith.constant 0 : index
    %845 = vector.load %arg2[%c12_268, %c0_269, %c0_270] : memref<15x32x128xbf16, #tpu.memory_space<vmem>>, vector<1x32x32xbf16>
    %846 = vector.shape_cast %845 : vector<1x32x32xbf16> to vector<32x32xbf16>
    %847 = arith.truncf %844 : vector<16x32xf32> to vector<16x32xbf16>
    %cst_271 = arith.constant dense<0.000000e+00> : vector<16x32xf32>
    %848 = tpu.matmul %847, %846, %cst_271 {dimension_numbers = #tpu.dot_dimension_numbers<[1], [0], [0], [1], [0, 0, 1, 1], [], []>} : vector<16x32xbf16>, vector<32x32xbf16>, vector<16x32xf32> -> vector<16x32xf32>
    %c33 = arith.constant 33 : index
    %c0_272 = arith.constant 0 : index
    %849 = vector.load %arg5[%c33, %c0_272] : memref<47x128xf32, #tpu.memory_space<vmem>>, vector<1x32xf32>
    %850 = vector.broadcast %849 : vector<1x32xf32> to vector<16x32xf32>
    %851 = arith.addf %848, %850 : vector<16x32xf32>
    %c13_273 = arith.constant 13 : index
    %c0_274 = arith.constant 0 : index
    %c0_275 = arith.constant 0 : index
    %852 = vector.load %arg2[%c13_273, %c0_274, %c0_275] : memref<15x32x128xbf16, #tpu.memory_space<vmem>>, vector<1x32x64xbf16>
    %853 = vector.shape_cast %852 : vector<1x32x64xbf16> to vector<32x64xbf16>
    %854 = arith.truncf %409 : vector<16x32xf32> to vector<16x32xbf16>
    %cst_276 = arith.constant dense<0.000000e+00> : vector<16x64xf32>
    %855 = tpu.matmul %854, %853, %cst_276 {dimension_numbers = #tpu.dot_dimension_numbers<[1], [0], [0], [1], [0, 0, 1, 1], [], []>} : vector<16x32xbf16>, vector<32x64xbf16>, vector<16x64xf32> -> vector<16x64xf32>
    %c34 = arith.constant 34 : index
    %c0_277 = arith.constant 0 : index
    %856 = vector.load %arg5[%c34, %c0_277] : memref<47x128xf32, #tpu.memory_space<vmem>>, vector<1x64xf32>
    %857 = vector.broadcast %856 : vector<1x64xf32> to vector<16x64xf32>
    %858 = arith.addf %855, %857 : vector<16x64xf32>
    %859 = vector.extract_strided_slice %858 {offsets = [0, 0], sizes = [16, 32], strides = [1, 1]} : vector<16x64xf32> to vector<16x32xf32>
    %860 = vector.extract_strided_slice %858 {offsets = [0, 32], sizes = [16, 32], strides = [1, 1]} : vector<16x64xf32> to vector<16x32xf32>
    %861 = vector.shape_cast %851 : vector<16x32xf32> to vector<2x8x32xf32>
    %862 = arith.truncf %861 : vector<2x8x32xf32> to vector<2x8x32xbf16>
    %863 = vector.shape_cast %859 : vector<16x32xf32> to vector<2x8x32xf32>
    %864 = arith.truncf %863 : vector<2x8x32xf32> to vector<2x8x32xbf16>
    %865 = vector.shape_cast %860 : vector<16x32xf32> to vector<2x8x32xf32>
    %866 = arith.truncf %865 : vector<2x8x32xf32> to vector<2x8x32xbf16>
    %c14_278 = arith.constant 14 : index
    %c0_279 = arith.constant 0 : index
    %c0_280 = arith.constant 0 : index
    %867 = vector.load %arg2[%c14_278, %c0_279, %c0_280] : memref<15x32x128xbf16, #tpu.memory_space<vmem>>, vector<1x32x32xbf16>
    %868 = vector.shape_cast %867 : vector<1x32x32xbf16> to vector<32x32xbf16>
    %869 = vector.extract_strided_slice %862 {offsets = [0, 0, 0], sizes = [2, 8, 8], strides = [1, 1, 1]} : vector<2x8x32xbf16> to vector<2x8x8xbf16>
    %870 = vector.extract_strided_slice %864 {offsets = [0, 0, 0], sizes = [2, 8, 8], strides = [1, 1, 1]} : vector<2x8x32xbf16> to vector<2x8x8xbf16>
    "tpu.trace_start"() <{level = 10 : i32, message = "bqd,bkd->bqk"}> : () -> ()
    %cst_281 = arith.constant dense<0.000000e+00> : vector<2x8x8xf32>
    %871 = tpu.matmul %869, %870, %cst_281 {dimension_numbers = #tpu.dot_dimension_numbers<[2], [2], [1], [1], [0, 0, 0, 1, 1, 1], [0], [0]>} : vector<2x8x8xbf16>, vector<2x8x8xbf16>, vector<2x8x8xf32> -> vector<2x8x8xf32>
    "tpu.trace_stop"() : () -> ()
    %cst_282 = arith.constant dense<0xFF800000> : vector<2x8xf32>
    %872 = vector.multi_reduction <maximumf>, %871, %cst_282 [2] : vector<2x8x8xf32> to vector<2x8xf32>
    %873 = vector.shape_cast %872 : vector<2x8xf32> to vector<2x8x1xf32>
    %874 = vector.broadcast %873 : vector<2x8x1xf32> to vector<2x8x8xf32>
    %875 = arith.subf %871, %874 : vector<2x8x8xf32>
    %876 = math.exp %875 : vector<2x8x8xf32>
    %cst_283 = arith.constant dense<0.000000e+00> : vector<2x8xf32>
    %877 = vector.multi_reduction <add>, %876, %cst_283 [2] : vector<2x8x8xf32> to vector<2x8xf32>
    %878 = vector.shape_cast %877 : vector<2x8xf32> to vector<2x8x1xf32>
    %879 = tpu.reciprocal %878 {approx = true} : vector<2x8x1xf32> -> vector<2x8x1xf32>
    %880 = vector.broadcast %879 : vector<2x8x1xf32> to vector<2x8x8xf32>
    %881 = arith.mulf %876, %880 : vector<2x8x8xf32>
    %882 = arith.truncf %881 : vector<2x8x8xf32> to vector<2x8x8xbf16>
    %883 = vector.extract_strided_slice %866 {offsets = [0, 0, 0], sizes = [2, 8, 8], strides = [1, 1, 1]} : vector<2x8x32xbf16> to vector<2x8x8xbf16>
    "tpu.trace_start"() <{level = 10 : i32, message = "bqk,bkd->bqd"}> : () -> ()
    %cst_284 = arith.constant dense<0.000000e+00> : vector<2x8x8xf32>
    %884 = tpu.matmul %882, %883, %cst_284 {dimension_numbers = #tpu.dot_dimension_numbers<[2], [1], [1], [2], [0, 0, 0, 1, 1, 2], [0], [0]>} : vector<2x8x8xbf16>, vector<2x8x8xbf16>, vector<2x8x8xf32> -> vector<2x8x8xf32>
    "tpu.trace_stop"() : () -> ()
    %885 = vector.shape_cast %884 : vector<2x8x8xf32> to vector<16x8xf32>
    %886 = vector.extract_strided_slice %868 {offsets = [0, 0], sizes = [8, 32], strides = [1, 1]} : vector<32x32xbf16> to vector<8x32xbf16>
    %887 = arith.truncf %885 : vector<16x8xf32> to vector<16x8xbf16>
    %cst_285 = arith.constant dense<0.000000e+00> : vector<16x32xf32>
    %888 = tpu.matmul %887, %886, %cst_285 {dimension_numbers = #tpu.dot_dimension_numbers<[1], [0], [0], [1], [0, 0, 1, 1], [], []>} : vector<16x8xbf16>, vector<8x32xbf16>, vector<16x32xf32> -> vector<16x32xf32>
    %889 = vector.extract_strided_slice %862 {offsets = [0, 0, 8], sizes = [2, 8, 8], strides = [1, 1, 1]} : vector<2x8x32xbf16> to vector<2x8x8xbf16>
    %890 = vector.extract_strided_slice %864 {offsets = [0, 0, 8], sizes = [2, 8, 8], strides = [1, 1, 1]} : vector<2x8x32xbf16> to vector<2x8x8xbf16>
    "tpu.trace_start"() <{level = 10 : i32, message = "bqd,bkd->bqk"}> : () -> ()
    %cst_286 = arith.constant dense<0.000000e+00> : vector<2x8x8xf32>
    %891 = tpu.matmul %889, %890, %cst_286 {dimension_numbers = #tpu.dot_dimension_numbers<[2], [2], [1], [1], [0, 0, 0, 1, 1, 1], [0], [0]>} : vector<2x8x8xbf16>, vector<2x8x8xbf16>, vector<2x8x8xf32> -> vector<2x8x8xf32>
    "tpu.trace_stop"() : () -> ()
    %cst_287 = arith.constant dense<0xFF800000> : vector<2x8xf32>
    %892 = vector.multi_reduction <maximumf>, %891, %cst_287 [2] : vector<2x8x8xf32> to vector<2x8xf32>
    %893 = vector.shape_cast %892 : vector<2x8xf32> to vector<2x8x1xf32>
    %894 = vector.broadcast %893 : vector<2x8x1xf32> to vector<2x8x8xf32>
    %895 = arith.subf %891, %894 : vector<2x8x8xf32>
    %896 = math.exp %895 : vector<2x8x8xf32>
    %cst_288 = arith.constant dense<0.000000e+00> : vector<2x8xf32>
    %897 = vector.multi_reduction <add>, %896, %cst_288 [2] : vector<2x8x8xf32> to vector<2x8xf32>
    %898 = vector.shape_cast %897 : vector<2x8xf32> to vector<2x8x1xf32>
    %899 = tpu.reciprocal %898 {approx = true} : vector<2x8x1xf32> -> vector<2x8x1xf32>
    %900 = vector.broadcast %899 : vector<2x8x1xf32> to vector<2x8x8xf32>
    %901 = arith.mulf %896, %900 : vector<2x8x8xf32>
    %902 = arith.truncf %901 : vector<2x8x8xf32> to vector<2x8x8xbf16>
    %903 = vector.extract_strided_slice %866 {offsets = [0, 0, 8], sizes = [2, 8, 8], strides = [1, 1, 1]} : vector<2x8x32xbf16> to vector<2x8x8xbf16>
    "tpu.trace_start"() <{level = 10 : i32, message = "bqk,bkd->bqd"}> : () -> ()
    %cst_289 = arith.constant dense<0.000000e+00> : vector<2x8x8xf32>
    %904 = tpu.matmul %902, %903, %cst_289 {dimension_numbers = #tpu.dot_dimension_numbers<[2], [1], [1], [2], [0, 0, 0, 1, 1, 2], [0], [0]>} : vector<2x8x8xbf16>, vector<2x8x8xbf16>, vector<2x8x8xf32> -> vector<2x8x8xf32>
    "tpu.trace_stop"() : () -> ()
    %905 = vector.shape_cast %904 : vector<2x8x8xf32> to vector<16x8xf32>
    %906 = vector.extract_strided_slice %868 {offsets = [8, 0], sizes = [8, 32], strides = [1, 1]} : vector<32x32xbf16> to vector<8x32xbf16>
    %907 = arith.truncf %905 : vector<16x8xf32> to vector<16x8xbf16>
    %cst_290 = arith.constant dense<0.000000e+00> : vector<16x32xf32>
    %908 = tpu.matmul %907, %906, %cst_290 {dimension_numbers = #tpu.dot_dimension_numbers<[1], [0], [0], [1], [0, 0, 1, 1], [], []>} : vector<16x8xbf16>, vector<8x32xbf16>, vector<16x32xf32> -> vector<16x32xf32>
    %909 = arith.addf %888, %908 : vector<16x32xf32>
    %910 = vector.extract_strided_slice %862 {offsets = [0, 0, 16], sizes = [2, 8, 8], strides = [1, 1, 1]} : vector<2x8x32xbf16> to vector<2x8x8xbf16>
    %911 = vector.extract_strided_slice %864 {offsets = [0, 0, 16], sizes = [2, 8, 8], strides = [1, 1, 1]} : vector<2x8x32xbf16> to vector<2x8x8xbf16>
    "tpu.trace_start"() <{level = 10 : i32, message = "bqd,bkd->bqk"}> : () -> ()
    %cst_291 = arith.constant dense<0.000000e+00> : vector<2x8x8xf32>
    %912 = tpu.matmul %910, %911, %cst_291 {dimension_numbers = #tpu.dot_dimension_numbers<[2], [2], [1], [1], [0, 0, 0, 1, 1, 1], [0], [0]>} : vector<2x8x8xbf16>, vector<2x8x8xbf16>, vector<2x8x8xf32> -> vector<2x8x8xf32>
    "tpu.trace_stop"() : () -> ()
    %cst_292 = arith.constant dense<0xFF800000> : vector<2x8xf32>
    %913 = vector.multi_reduction <maximumf>, %912, %cst_292 [2] : vector<2x8x8xf32> to vector<2x8xf32>
    %914 = vector.shape_cast %913 : vector<2x8xf32> to vector<2x8x1xf32>
    %915 = vector.broadcast %914 : vector<2x8x1xf32> to vector<2x8x8xf32>
    %916 = arith.subf %912, %915 : vector<2x8x8xf32>
    %917 = math.exp %916 : vector<2x8x8xf32>
    %cst_293 = arith.constant dense<0.000000e+00> : vector<2x8xf32>
    %918 = vector.multi_reduction <add>, %917, %cst_293 [2] : vector<2x8x8xf32> to vector<2x8xf32>
    %919 = vector.shape_cast %918 : vector<2x8xf32> to vector<2x8x1xf32>
    %920 = tpu.reciprocal %919 {approx = true} : vector<2x8x1xf32> -> vector<2x8x1xf32>
    %921 = vector.broadcast %920 : vector<2x8x1xf32> to vector<2x8x8xf32>
    %922 = arith.mulf %917, %921 : vector<2x8x8xf32>
    %923 = arith.truncf %922 : vector<2x8x8xf32> to vector<2x8x8xbf16>
    %924 = vector.extract_strided_slice %866 {offsets = [0, 0, 16], sizes = [2, 8, 8], strides = [1, 1, 1]} : vector<2x8x32xbf16> to vector<2x8x8xbf16>
    "tpu.trace_start"() <{level = 10 : i32, message = "bqk,bkd->bqd"}> : () -> ()
    %cst_294 = arith.constant dense<0.000000e+00> : vector<2x8x8xf32>
    %925 = tpu.matmul %923, %924, %cst_294 {dimension_numbers = #tpu.dot_dimension_numbers<[2], [1], [1], [2], [0, 0, 0, 1, 1, 2], [0], [0]>} : vector<2x8x8xbf16>, vector<2x8x8xbf16>, vector<2x8x8xf32> -> vector<2x8x8xf32>
    "tpu.trace_stop"() : () -> ()
    %926 = vector.shape_cast %925 : vector<2x8x8xf32> to vector<16x8xf32>
    %927 = vector.extract_strided_slice %868 {offsets = [16, 0], sizes = [8, 32], strides = [1, 1]} : vector<32x32xbf16> to vector<8x32xbf16>
    %928 = arith.truncf %926 : vector<16x8xf32> to vector<16x8xbf16>
    %cst_295 = arith.constant dense<0.000000e+00> : vector<16x32xf32>
    %929 = tpu.matmul %928, %927, %cst_295 {dimension_numbers = #tpu.dot_dimension_numbers<[1], [0], [0], [1], [0, 0, 1, 1], [], []>} : vector<16x8xbf16>, vector<8x32xbf16>, vector<16x32xf32> -> vector<16x32xf32>
    %930 = arith.addf %909, %929 : vector<16x32xf32>
    %931 = vector.extract_strided_slice %862 {offsets = [0, 0, 24], sizes = [2, 8, 8], strides = [1, 1, 1]} : vector<2x8x32xbf16> to vector<2x8x8xbf16>
    %932 = vector.extract_strided_slice %864 {offsets = [0, 0, 24], sizes = [2, 8, 8], strides = [1, 1, 1]} : vector<2x8x32xbf16> to vector<2x8x8xbf16>
    "tpu.trace_start"() <{level = 10 : i32, message = "bqd,bkd->bqk"}> : () -> ()
    %cst_296 = arith.constant dense<0.000000e+00> : vector<2x8x8xf32>
    %933 = tpu.matmul %931, %932, %cst_296 {dimension_numbers = #tpu.dot_dimension_numbers<[2], [2], [1], [1], [0, 0, 0, 1, 1, 1], [0], [0]>} : vector<2x8x8xbf16>, vector<2x8x8xbf16>, vector<2x8x8xf32> -> vector<2x8x8xf32>
    "tpu.trace_stop"() : () -> ()
    %cst_297 = arith.constant dense<0xFF800000> : vector<2x8xf32>
    %934 = vector.multi_reduction <maximumf>, %933, %cst_297 [2] : vector<2x8x8xf32> to vector<2x8xf32>
    %935 = vector.shape_cast %934 : vector<2x8xf32> to vector<2x8x1xf32>
    %936 = vector.broadcast %935 : vector<2x8x1xf32> to vector<2x8x8xf32>
    %937 = arith.subf %933, %936 : vector<2x8x8xf32>
    %938 = math.exp %937 : vector<2x8x8xf32>
    %cst_298 = arith.constant dense<0.000000e+00> : vector<2x8xf32>
    %939 = vector.multi_reduction <add>, %938, %cst_298 [2] : vector<2x8x8xf32> to vector<2x8xf32>
    %940 = vector.shape_cast %939 : vector<2x8xf32> to vector<2x8x1xf32>
    %941 = tpu.reciprocal %940 {approx = true} : vector<2x8x1xf32> -> vector<2x8x1xf32>
    %942 = vector.broadcast %941 : vector<2x8x1xf32> to vector<2x8x8xf32>
    %943 = arith.mulf %938, %942 : vector<2x8x8xf32>
    %944 = arith.truncf %943 : vector<2x8x8xf32> to vector<2x8x8xbf16>
    %945 = vector.extract_strided_slice %866 {offsets = [0, 0, 24], sizes = [2, 8, 8], strides = [1, 1, 1]} : vector<2x8x32xbf16> to vector<2x8x8xbf16>
    "tpu.trace_start"() <{level = 10 : i32, message = "bqk,bkd->bqd"}> : () -> ()
    %cst_299 = arith.constant dense<0.000000e+00> : vector<2x8x8xf32>
    %946 = tpu.matmul %944, %945, %cst_299 {dimension_numbers = #tpu.dot_dimension_numbers<[2], [1], [1], [2], [0, 0, 0, 1, 1, 2], [0], [0]>} : vector<2x8x8xbf16>, vector<2x8x8xbf16>, vector<2x8x8xf32> -> vector<2x8x8xf32>
    "tpu.trace_stop"() : () -> ()
    %947 = vector.shape_cast %946 : vector<2x8x8xf32> to vector<16x8xf32>
    %948 = vector.extract_strided_slice %868 {offsets = [24, 0], sizes = [8, 32], strides = [1, 1]} : vector<32x32xbf16> to vector<8x32xbf16>
    %949 = arith.truncf %947 : vector<16x8xf32> to vector<16x8xbf16>
    %cst_300 = arith.constant dense<0.000000e+00> : vector<16x32xf32>
    %950 = tpu.matmul %949, %948, %cst_300 {dimension_numbers = #tpu.dot_dimension_numbers<[1], [0], [0], [1], [0, 0, 1, 1], [], []>} : vector<16x8xbf16>, vector<8x32xbf16>, vector<16x32xf32> -> vector<16x32xf32>
    %951 = arith.addf %930, %950 : vector<16x32xf32>
    %c35 = arith.constant 35 : index
    %c0_301 = arith.constant 0 : index
    %952 = vector.load %arg5[%c35, %c0_301] : memref<47x128xf32, #tpu.memory_space<vmem>>, vector<1x32xf32>
    %953 = vector.broadcast %952 : vector<1x32xf32> to vector<16x32xf32>
    %954 = arith.addf %951, %953 : vector<16x32xf32>
    %955 = arith.addf %844, %954 : vector<16x32xf32>
    %c38 = arith.constant 38 : index
    %c0_302 = arith.constant 0 : index
    %956 = vector.load %arg5[%c38, %c0_302] : memref<47x128xf32, #tpu.memory_space<vmem>>, vector<1x32xf32>
    %c39 = arith.constant 39 : index
    %c0_303 = arith.constant 0 : index
    %957 = vector.load %arg5[%c39, %c0_303] : memref<47x128xf32, #tpu.memory_space<vmem>>, vector<1x32xf32>
    %cst_304 = arith.constant dense<0.000000e+00> : vector<16xf32>
    %958 = vector.multi_reduction <add>, %955, %cst_304 [1] : vector<16x32xf32> to vector<16xf32>
    %959 = vector.shape_cast %958 : vector<16xf32> to vector<16x1xf32>
    %cst_305 = arith.constant 3.200000e+01 : f32
    %960 = vector.broadcast %cst_305 : f32 to vector<16x1xf32>
    %961 = arith.divf %959, %960 : vector<16x1xf32>
    %962 = vector.broadcast %961 : vector<16x1xf32> to vector<16x32xf32>
    %963 = arith.subf %955, %962 : vector<16x32xf32>
    %964 = arith.mulf %963, %963 : vector<16x32xf32>
    %cst_306 = arith.constant dense<0.000000e+00> : vector<16xf32>
    %965 = vector.multi_reduction <add>, %964, %cst_306 [1] : vector<16x32xf32> to vector<16xf32>
    %966 = vector.shape_cast %965 : vector<16xf32> to vector<16x1xf32>
    %cst_307 = arith.constant 3.200000e+01 : f32
    %967 = vector.broadcast %cst_307 : f32 to vector<16x1xf32>
    %968 = arith.divf %966, %967 : vector<16x1xf32>
    %969 = vector.broadcast %961 : vector<16x1xf32> to vector<16x32xf32>
    %970 = arith.subf %955, %969 : vector<16x32xf32>
    %cst_308 = arith.constant 9.99999974E-6 : f32
    %971 = vector.broadcast %cst_308 : f32 to vector<16x1xf32>
    %972 = arith.addf %968, %971 : vector<16x1xf32>
    %973 = math.rsqrt %972 : vector<16x1xf32>
    %974 = vector.broadcast %973 : vector<16x1xf32> to vector<16x32xf32>
    %975 = arith.mulf %970, %974 : vector<16x32xf32>
    %976 = vector.broadcast %956 : vector<1x32xf32> to vector<16x32xf32>
    %977 = arith.mulf %975, %976 : vector<16x32xf32>
    %978 = vector.broadcast %957 : vector<1x32xf32> to vector<16x32xf32>
    %979 = arith.addf %977, %978 : vector<16x32xf32>
    %c3_309 = arith.constant 3 : index
    %c0_310 = arith.constant 0 : index
    %c0_311 = arith.constant 0 : index
    %980 = vector.load %arg3[%c3_309, %c0_310, %c0_311] : memref<4x32x2048xbf16, #tpu.memory_space<vmem>>, vector<1x32x2048xbf16>
    %981 = vector.shape_cast %980 : vector<1x32x2048xbf16> to vector<32x2048xbf16>
    %982 = arith.truncf %979 : vector<16x32xf32> to vector<16x32xbf16>
    %cst_312 = arith.constant dense<0.000000e+00> : vector<16x2048xf32>
    %983 = tpu.matmul %982, %981, %cst_312 {dimension_numbers = #tpu.dot_dimension_numbers<[1], [0], [0], [1], [0, 0, 1, 1], [], []>} : vector<16x32xbf16>, vector<32x2048xbf16>, vector<16x2048xf32> -> vector<16x2048xf32>
    %c3_313 = arith.constant 3 : index
    %c0_314 = arith.constant 0 : index
    %c0_315 = arith.constant 0 : index
    %984 = vector.load %arg6[%c3_313, %c0_314, %c0_315] : memref<4x1x2048xf32, #tpu.memory_space<vmem>>, vector<1x1x2048xf32>
    %985 = vector.shape_cast %984 : vector<1x1x2048xf32> to vector<1x2048xf32>
    %986 = vector.broadcast %985 : vector<1x2048xf32> to vector<16x2048xf32>
    %987 = arith.addf %983, %986 : vector<16x2048xf32>
    %cst_316 = arith.constant 0.000000e+00 : f32
    %988 = vector.broadcast %cst_316 : f32 to vector<16x2048xf32>
    %989 = arith.maximumf %987, %988 : vector<16x2048xf32>
    %990 = arith.truncf %989 : vector<16x2048xf32> to vector<16x2048xbf16>
    %c3_317 = arith.constant 3 : index
    %c0_318 = arith.constant 0 : index
    %c0_319 = arith.constant 0 : index
    %991 = vector.load %arg4[%c3_317, %c0_318, %c0_319] : memref<4x2048x32xbf16, #tpu.memory_space<vmem>>, vector<1x2048x32xbf16>
    %992 = vector.shape_cast %991 : vector<1x2048x32xbf16> to vector<2048x32xbf16>
    %cst_320 = arith.constant dense<0.000000e+00> : vector<16x32xf32>
    %993 = tpu.matmul %990, %992, %cst_320 {dimension_numbers = #tpu.dot_dimension_numbers<[1], [0], [0], [1], [0, 0, 1, 1], [], []>} : vector<16x2048xbf16>, vector<2048x32xbf16>, vector<16x32xf32> -> vector<16x32xf32>
    %c42 = arith.constant 42 : index
    %c0_321 = arith.constant 0 : index
    %994 = vector.load %arg5[%c42, %c0_321] : memref<47x128xf32, #tpu.memory_space<vmem>>, vector<1x32xf32>
    %995 = vector.broadcast %994 : vector<1x32xf32> to vector<16x32xf32>
    %996 = arith.addf %993, %995 : vector<16x32xf32>
    %997 = arith.addf %979, %996 : vector<16x32xf32>
    %c40 = arith.constant 40 : index
    %c0_322 = arith.constant 0 : index
    %998 = vector.load %arg5[%c40, %c0_322] : memref<47x128xf32, #tpu.memory_space<vmem>>, vector<1x32xf32>
    %c41 = arith.constant 41 : index
    %c0_323 = arith.constant 0 : index
    %999 = vector.load %arg5[%c41, %c0_323] : memref<47x128xf32, #tpu.memory_space<vmem>>, vector<1x32xf32>
    %cst_324 = arith.constant dense<0.000000e+00> : vector<16xf32>
    %1000 = vector.multi_reduction <add>, %997, %cst_324 [1] : vector<16x32xf32> to vector<16xf32>
    %1001 = vector.shape_cast %1000 : vector<16xf32> to vector<16x1xf32>
    %cst_325 = arith.constant 3.200000e+01 : f32
    %1002 = vector.broadcast %cst_325 : f32 to vector<16x1xf32>
    %1003 = arith.divf %1001, %1002 : vector<16x1xf32>
    %1004 = vector.broadcast %1003 : vector<16x1xf32> to vector<16x32xf32>
    %1005 = arith.subf %997, %1004 : vector<16x32xf32>
    %1006 = arith.mulf %1005, %1005 : vector<16x32xf32>
    %cst_326 = arith.constant dense<0.000000e+00> : vector<16xf32>
    %1007 = vector.multi_reduction <add>, %1006, %cst_326 [1] : vector<16x32xf32> to vector<16xf32>
    %1008 = vector.shape_cast %1007 : vector<16xf32> to vector<16x1xf32>
    %cst_327 = arith.constant 3.200000e+01 : f32
    %1009 = vector.broadcast %cst_327 : f32 to vector<16x1xf32>
    %1010 = arith.divf %1008, %1009 : vector<16x1xf32>
    %1011 = vector.broadcast %1003 : vector<16x1xf32> to vector<16x32xf32>
    %1012 = arith.subf %997, %1011 : vector<16x32xf32>
    %cst_328 = arith.constant 9.99999974E-6 : f32
    %1013 = vector.broadcast %cst_328 : f32 to vector<16x1xf32>
    %1014 = arith.addf %1010, %1013 : vector<16x1xf32>
    %1015 = math.rsqrt %1014 : vector<16x1xf32>
    %1016 = vector.broadcast %1015 : vector<16x1xf32> to vector<16x32xf32>
    %1017 = arith.mulf %1012, %1016 : vector<16x32xf32>
    %1018 = vector.broadcast %998 : vector<1x32xf32> to vector<16x32xf32>
    %1019 = arith.mulf %1017, %1018 : vector<16x32xf32>
    %1020 = vector.broadcast %999 : vector<1x32xf32> to vector<16x32xf32>
    %1021 = arith.addf %1019, %1020 : vector<16x32xf32>
    %c45 = arith.constant 45 : index
    %c0_329 = arith.constant 0 : index
    %1022 = vector.load %arg5[%c45, %c0_329] : memref<47x128xf32, #tpu.memory_space<vmem>>, vector<1x32xf32>
    %c46 = arith.constant 46 : index
    %c0_330 = arith.constant 0 : index
    %1023 = vector.load %arg5[%c46, %c0_330] : memref<47x128xf32, #tpu.memory_space<vmem>>, vector<1x32xf32>
    %cst_331 = arith.constant dense<0.000000e+00> : vector<16xf32>
    %1024 = vector.multi_reduction <add>, %1021, %cst_331 [1] : vector<16x32xf32> to vector<16xf32>
    %1025 = vector.shape_cast %1024 : vector<16xf32> to vector<16x1xf32>
    %cst_332 = arith.constant 3.200000e+01 : f32
    %1026 = vector.broadcast %cst_332 : f32 to vector<16x1xf32>
    %1027 = arith.divf %1025, %1026 : vector<16x1xf32>
    %1028 = vector.broadcast %1027 : vector<16x1xf32> to vector<16x32xf32>
    %1029 = arith.subf %1021, %1028 : vector<16x32xf32>
    %1030 = arith.mulf %1029, %1029 : vector<16x32xf32>
    %cst_333 = arith.constant dense<0.000000e+00> : vector<16xf32>
    %1031 = vector.multi_reduction <add>, %1030, %cst_333 [1] : vector<16x32xf32> to vector<16xf32>
    %1032 = vector.shape_cast %1031 : vector<16xf32> to vector<16x1xf32>
    %cst_334 = arith.constant 3.200000e+01 : f32
    %1033 = vector.broadcast %cst_334 : f32 to vector<16x1xf32>
    %1034 = arith.divf %1032, %1033 : vector<16x1xf32>
    %1035 = vector.broadcast %1027 : vector<16x1xf32> to vector<16x32xf32>
    %1036 = arith.subf %1021, %1035 : vector<16x32xf32>
    %cst_335 = arith.constant 9.99999974E-6 : f32
    %1037 = vector.broadcast %cst_335 : f32 to vector<16x1xf32>
    %1038 = arith.addf %1034, %1037 : vector<16x1xf32>
    %1039 = math.rsqrt %1038 : vector<16x1xf32>
    %1040 = vector.broadcast %1039 : vector<16x1xf32> to vector<16x32xf32>
    %1041 = arith.mulf %1036, %1040 : vector<16x32xf32>
    %1042 = vector.broadcast %1022 : vector<1x32xf32> to vector<16x32xf32>
    %1043 = arith.mulf %1041, %1042 : vector<16x32xf32>
    %1044 = vector.broadcast %1023 : vector<1x32xf32> to vector<16x32xf32>
    %1045 = arith.addf %1043, %1044 : vector<16x32xf32>
    %c0_336 = arith.constant 0 : index
    %c0_337 = arith.constant 0 : index
    %c0_338 = arith.constant 0 : index
    %1046 = vector.load %arg2[%c0_336, %c0_337, %c0_338] : memref<15x32x128xbf16, #tpu.memory_space<vmem>>, vector<1x32x128xbf16>
    %1047 = vector.shape_cast %1046 : vector<1x32x128xbf16> to vector<32x128xbf16>
    %1048 = arith.truncf %1045 : vector<16x32xf32> to vector<16x32xbf16>
    %cst_339 = arith.constant dense<0.000000e+00> : vector<16x128xf32>
    %1049 = tpu.matmul %1048, %1047, %cst_339 {dimension_numbers = #tpu.dot_dimension_numbers<[1], [0], [0], [1], [0, 0, 1, 1], [], []>} : vector<16x32xbf16>, vector<32x128xbf16>, vector<16x128xf32> -> vector<16x128xf32>
    %c4_340 = arith.constant 4 : index
    %c0_341 = arith.constant 0 : index
    %1050 = vector.load %arg5[%c4_340, %c0_341] : memref<47x128xf32, #tpu.memory_space<vmem>>, vector<1x128xf32>
    %1051 = vector.broadcast %1050 : vector<1x128xf32> to vector<16x128xf32>
    %1052 = arith.addf %1049, %1051 : vector<16x128xf32>
    %1053 = vector.extract_strided_slice %1052 {offsets = [0, 0], sizes = [16, 3], strides = [1, 1]} : vector<16x128xf32> to vector<16x3xf32>
    %1054 = vector.shape_cast %1053 : vector<16x3xf32> to vector<2x8x3xf32>
    %c0_342 = arith.constant 0 : index
    %c0_343 = arith.constant 0 : index
    %c0_344 = arith.constant 0 : index
    %1055 = vector.load %arg7[%c0_342, %c0_343, %c0_344] : memref<2x8x3xf32, #tpu.memory_space<vmem>>, vector<2x8x3xf32>
    tpu.vector_store %arg7[%c0_342, %c0_343, %c0_344], %1054 {strides = array<i32>} : memref<2x8x3xf32, #tpu.memory_space<vmem>>, vector<2x8x3xf32>,
    return
  }
}

</mosaic_0001>

<bundles_post_ra>
// kernel: transformer_predictor.1
= control target key start
LH: loop header
LB: loop body
LE: loop exit
PB: predicated region body
PF: predicated region fallthrough
CT: control target
= control target key end

     0   :  { %v20243_v0 = vmov 1   ;;  %v20244_v1 = vmov 0   ;;  %v20245_v5 = vmov 0.0   ;;  %v20246_v6 = vmov 2   ;;  %s20248_s18 = smov 96   ;;  %s20249_s19 = smov 64   ;;  %s24188_s0 = inlined_call_operand.vmem [shape: f32[2,8,3], index: 0, kind: input, shape index: {}]   ;;  %s24189_s2 = inlined_call_operand.vmem [shape: bf16[15,32,128], index: 2, kind: input, shape index: {}]   ;;  %s24190_s5 = inlined_call_operand.vmem [shape: f32[47,128], index: 5, kind: input, shape index: {}]   ;;  %s24191_s3 = inlined_call_operand.vmem [shape: bf16[4,32,2048], index: 3, kind: input, shape index: {}]   ;;  %s24192_s4 = inlined_call_operand.vmem [shape: bf16[4,2048,32], index: 4, kind: input, shape index: {}]   ;;  %s24193_s6 = inlined_call_operand.vmem [shape: f32[4,1,2048], index: 6, kind: input, shape index: {}]   ;;  %s24194_s1 = inlined_call_operand.vmem [shape: f32[2,8,3], index: 1, kind: input, shape index: {}]   ;;  %s24195_s7 = inlined_call_operand.vmem [shape: f32[2,8,3], index: 7, kind: output, shape index: {}]  }
   0x1   :  { %19461 = vset.pattern.permute.xlu1 %v20243_v0  ;;  %19460 = vset.pattern.permute.xlu0 %v20244_v1  ;;  %v27_v2 = vld [vmem:[%s24188_s0] sm:$0xff]  ;;  %v28_v3 = vld [vmem:[%s24188_s0 + $0x8] sm:$0xff]  ;;  %v19469_v4 = vld [vmem:[%s24189_s2 + $0x10] sm:$0xff]   ;;  %vm20247_vm0 = vmmov 0   ;;  %vm150_vm1 = vcmask 261120   ;;  %vm205_vm2 = vcmask 64512  }
   0x2   :  { %55 = vperm.xlu1 %19461, %v27_v2   ;;  %33 = vperm.xlu0 %19460, %v27_v2   ;;  %v19470_v7 = vld [vmem:[%s24189_s2 + $0x18] sm:$0xff]   ;;  %v15889_v8 = vld [vmem:[%s24190_s5] ss:$0 sm:$0xff]  ;;  %v15890_v12 = vld [vmem:[%s24190_s5 + $0x3] ss:$0 sm:$0xff]  ;;  %vm330_vm3 = vcmask 1043456  }
   0x3   :  { %18652 = vmatprep.subr.bf16.mxu0 %v20245_v5  ;;  %18660 = vmatprep.subr.bf16.mxu1 %v20245_v5  ;;  %v15891_v15 = vld [vmem:[%s24190_s5 + $0x1] ss:$0 sm:$0xff]  ;;  %v15892_v20 = vld [vmem:[%s24190_s5 + $0x2] ss:$0 sm:$0xff]  ;;  %v15897_v31 = vld [vmem:[%s24190_s5 + $0x5] ss:$0 sm:$0xff] }
   0x4   :  { %18653 = vmatpush3.bf16.msra.mxu0 %v19469_v4  ;;  %18656 = vmatprep.mubr.msk.bf16.mxu0 %vm20247_vm0, %v20245_v5  ;;  %s20250_s20 = smov 88   ;;  %s20251_s21 = smov 120   ;;  %vm15882_vm4 = vcmask 23552  }
   0x5   :  { %18654 = vmatprep.subr.bf16.mxu0 %v20245_v5  ;;  %18662 = vmatprep.mubr.msk.bf16.mxu1 %vm20247_vm0, %v20245_v5  ;;  %s20252_s22 = smov 56   ;;  %s20253_s23 = smov 80  }
   0x6   :  { %59 = vperm.xlu1 %19461, %v28_v3   ;;  %38 = vperm.xlu0 %19460, %v28_v3   ;;  %s20254_s24 = smov 112   ;;  %s20255_s29 = smov 48  }
   0x7   :  { %s20256_s0 = smov 72   ;;  %s20257_s30 = smov 104  }
   0x8   :  { %18655 = vmatpush3.bf16.msra.mxu0 %v19470_v7  ;;  %s20258_s10 = smov 40  }
   0x9   :  { %18666 = vmatprep.subr.bf16.mxu0 %v20245_v5 }
   0xa   :  { %19463 = vset.pattern.permute.xlu1 %v20246_v6  ;;  %19462 = vset.pattern.permute.xlu0 %v20246_v6 }
   0xb   :  { %76 = vperm.xlu1 %19463, %v28_v3   ;;  %72 = vperm.xlu0 %19462, %v27_v2  }
   0xf   :  { %19465 = vset.pattern.permute.xlu1 %v20244_v1  ;;  %19464 = vset.pattern.permute.xlu0 %v20244_v1 }
  0x81   :  { %v56_v9 = vpop.permute.xlu1 %55  ;;  %v34_v10 = vpop.permute.xlu0 %33 }
  0x82   :  { %v45_v11 = vmul.f32 %v15889_v8, %v34_v10  ;;  %v66_v21 = vmul.f32 %v15891_v15, %v56_v9 }
  0x84   :  { %v51_v17 = vadd.f32 %v15890_v12, %v45_v11 }
  0x85   :  { %v60_v13 = vpop.permute.xlu1 %59  ;;  %v39_v14 = vpop.permute.xlu0 %38 }
  0x86   :  { %v46_v16 = vmul.f32 %v15889_v8, %v39_v14  ;;  %v67_v18 = vmul.f32 %v15891_v15, %v60_v13  ;;  %v68_v26 = vadd.f32 %v66_v21, %v51_v17 }
  0x88   :  { %v52_v19 = vadd.f32 %v15890_v12, %v46_v16 }
  0x8a   :  { %v77_v22 = vpop.permute.xlu1 %76  ;;  %v69_v23 = vadd.f32 %v67_v18, %v52_v19  ;;  %v73_v24 = vpop.permute.xlu0 %72 }
  0x8b   :  { %v84_v25 = vmul.f32 %v15892_v20, %v77_v22  ;;  %v83_v27 = vmul.f32 %v15892_v20, %v73_v24 }
  0x8d   :  { %v20337_v28 = vadd.f32 %v84_v25, %v69_v23  ;;  %v20339_v29 = vadd.f32 %v83_v27, %v68_v26 }
  0x8f   :  { %v132_v30 = vpack.c.bf16 %v20337_v28, %v20339_v29 }
  0x91   :  { %18657 = vmatmul.mubr.msk.bf16.vlgmr.msra.gmra.mrb[0].mxu0 %vm150_vm1, %v132_v30 }
  0x92   :  { %18668 = vmatprep.mubr.msk.bf16.mxu0 %vm20247_vm0, %v20245_v5 }
 0x164   :  { %v188_v32 = vpop.f32.mrb[0].mxu0 }
 0x165   :  { %v189_v33 = vadd.f32 %v15897_v31, %v188_v32  ;;  %v18658_v34 = vpop.f32.mrb[1].mxu0 }
 0x166   :  { %v191_v35 = vpop.f32.mrb[2].mxu0 }
 0x167   :  { %v20349_v36 = vpack.c.bf16 %v189_v33, %v189_v33  ;;  %v192_v37 = vadd.f32 %v15897_v31, %v191_v35  ;;  %v18659_v38 = vpop.f32.mrb[3].mxu0 }
 0x169   :  { %v20351_v39 = vpack.c.bf16 %v192_v37, %v192_v37  ;;  %203 = vrot.lane.b32.xlu1 %v20349_v36, %s20248_s18 }
 0x16b   :  { %253 = vrot.lane.b32.xlu0 %v20351_v39, %s20248_s18 }
 0x1db   :  { %v204_v40 = vpop.permute.xlu1 %203 }
 0x1dc   :  { %v210_v41 = vsel %vm205_vm2, %v204_v40, 0 }
 0x1dd   :  { %18661 = vmatpush3.bf16.xpose.msra.mxu1 %v210_v41  ;;  %v254_v42 = vpop.permute.xlu0 %253 }
 0x1de   :  { %v259_v43 = vsel %vm205_vm2, %v254_v42, 0  ;;  %18672 = vmatprep.subr.bf16.mxu1 %v20245_v5 }
 0x1df   :  { %18667 = vmatpush3.bf16.xpose.msra.mxu0 %v259_v43 }
 0x1e0   :  { %18678 = vmatprep.subr.bf16.mxu0 %v20245_v5 }
 0x1e4   :  { %18663 = vmatmul.mubr.msk.bf16.vlgmr.msra.gmra.mrb[0].mxu1 %vm205_vm2, %v20349_v36 }
 0x1e5   :  { %18674 = vmatprep.mubr.msk.bf16.mxu1 %vm20247_vm0, %v20245_v5 }
 0x1e6   :  { %18669 = vmatmul.mubr.msk.bf16.vlgmr.msra.gmra.mrb[4].mxu0 %vm205_vm2, %v20351_v39 }
 0x1e7   :  { %18680 = vmatprep.mubr.msk.bf16.mxu0 %vm20247_vm0, %v20245_v5 }
 0x2b7   :  { %v246_v44 = vpop.f32.mrb[0].mxu1 }
 0x2b8   :  { %v18664_v45 = vpop.f32.mrb[1].mxu1  ;;  %v301_v46 = vsel %vm205_vm2, %v246_v44, -inf }
 0x2b9   :  { %302 = vmax.xlane.f32.xlu1 %v301_v46  ;;  %v249_v47 = vpop.f32.mrb[2].mxu1  ;;  %v295_v48 = vpop.f32.mrb[4].mxu0 }
 0x2ba   :  { %v18665_v49 = vpop.f32.mrb[3].mxu1  ;;  %v18670_v50 = vpop.f32.mrb[5].mxu0  ;;  %v304_v51 = vsel %vm205_vm2, %v295_v48, -inf }
 0x2bb   :  { %305 = vmax.xlane.f32.xlu0 %v304_v51  ;;  %v298_v52 = vpop.f32.mrb[6].mxu0 }
 0x2bc   :  { %v18671_v53 = vpop.f32.mrb[7].mxu0 }
 0x2ca   :  { %374 = vrot.lane.b32.xlu1 %v20351_v39, %s20249_s19 }
 0x2d1   :  { %325 = vrot.lane.b32.xlu0 %v20349_v36, %s20249_s19 }
 0x346   :  { %v303_v54 = vpop.xlane.xlu1 %302 }
 0x347   :  { %v307_v55 = vsub.f32 %v246_v44, %v303_v54 }
 0x348   :  { %v306_v56 = vpop.xlane.xlu0 %305 }
 0x349   :  { %v309_v57 = vmul.f32 1.442695, %v307_v55  ;;  %v308_v58 = vsub.f32 %v295_v48, %v306_v56 }
 0x34a   :  { %v375_v59 = vpop.permute.xlu1 %374 }
 0x34b   :  { %19999 = vpow2.f32 %v309_v57  ;;  %v311_v60 = vmul.f32 1.442695, %v308_v58  ;;  %v380_v61 = vsel %vm330_vm3, %v375_v59, 0 }
 0x34c   :  { %18679 = vmatpush3.bf16.msra.mxu0 %v380_v61  ;;  %v326_v62 = vpop.permute.xlu0 %325 }
 0x34d   :  { %20001 = vpow2.f32 %v311_v60  ;;  %v332_v63 = vsel %vm330_vm3, %v326_v62, 0  ;;  %18690 = vmatprep.subr.bf16.mxu0 %v20245_v5  ;;  %v15902_v62 = vld [vmem:[%s24189_s2 + $0x24] sm:$0xf] }
 0x34e   :  { %18673 = vmatpush3.bf16.msra.mxu1 %v332_v63 }
 0x34f   :  { %18684 = vmatprep.subr.bf16.mxu1 %v20245_v5 }
 0x355   :  { %v20000_v2 = vpop.eup %19999 }
 0x356   :  { %v313_v3 = vsel %vm205_vm2, %v20000_v2, 0.0 }
 0x357   :  { %v20002_v4 = vpop.eup %20001  ;;  %314 = vadd.xlane.f32.xlu0 %v313_v3  ;;  %v15901_v3 = vld [vmem:[%s24189_s2 + $0x20] sm:$0xf] }
 0x358   :  { %v316_v7 = vsel %vm205_vm2, %v20002_v4, 0.0 }
 0x359   :  { %317 = vadd.xlane.f32.xlu1 %v316_v7 }
 0x36a   :  { %425 = vrot.lane.b32.xlu1 %v20349_v36, %s20250_s20 }
 0x36d   :  { %475 = vrot.lane.b32.xlu0 %v20351_v39, %s20250_s20 }
 0x36e   :  { %423 = vrot.lane.b32.xlu1 %v20349_v36, %s20251_s21 }
 0x371   :  { %473 = vrot.lane.b32.xlu0 %v20351_v39, %s20251_s21 }
 0x3e4   :  { %v315_v8 = vpop.xlane.xlu0 %314 }
 0x3e5   :  { %20003 = vrcp.f32 %v315_v8  ;;  %v648_v8 = vsel %vm330_vm3, %v15902_v62, 0 }
 0x3e6   :  { %v318_v9 = vpop.xlane.xlu1 %317 }
 0x3e7   :  { %20005 = vrcp.f32 %v318_v9 }
 0x3e8   :  { %v476_v16 = vpop.permute.xlu0 %475 }
 0x3e9   :  { %v481_v19 = vsel %vm205_vm2, %v476_v16, 0 }
 0x3ea   :  { %v426_v13 = vpop.permute.xlu1 %425 }
 0x3eb   :  { %v431_v17 = vsel %vm205_vm2, %v426_v13, 0 }
 0x3ec   :  { %v474_v21 = vpop.permute.xlu0 %473 }
 0x3ee   :  { %v424_v20 = vpop.permute.xlu1 %423 }
 0x3ef   :  { %v20004_v10 = vpop.eup %20003 }
 0x3f0   :  { %v321_v11 = vmul.f32 %v20004_v10, %v20000_v2  ;;  %v695_v10 = vsel %vm330_vm3, %v15901_v3, 0 }
 0x3f1   :  { %v20006_v12 = vpop.eup %20005 }
 0x3f2   :  { %v323_v14 = vpack.c.bf16 %v321_v11, %v321_v11  ;;  %v322_v15 = vmul.f32 %v20006_v12, %v20002_v4 }
 0x3f4   :  { %18675 = vmatmul.mubr.msk.bf16.vlgmr.msra.gmra.mrb[4].mxu1 %vm205_vm2, %v323_v14  ;;  %v324_v18 = vpack.c.bf16 %v322_v15, %v322_v15 }
 0x3f5   :  { %18685 = vmatpush3.bf16.xpose.msra.mxu1 %v431_v17  ;;  %18686 = vmatprep.mubr.msk.bf16.mxu1 %vm20247_vm0, %v20245_v5 }
 0x3f6   :  { %18681 = vmatmul.mubr.msk.bf16.vlgmr.msra.gmra.mrb[8].mxu0 %vm205_vm2, %v324_v18  ;;  %18696 = vmatprep.subr.bf16.mxu1 %v20245_v5 }
 0x3f7   :  { %18691 = vmatpush3.bf16.xpose.msra.mxu0 %v481_v19  ;;  %18692 = vmatprep.mubr.msk.bf16.mxu0 %vm20247_vm0, %v20245_v5 }
 0x3f8   :  { %18702 = vmatprep.subr.bf16.mxu0 %v20245_v5 }
 0x3fc   :  { %18687 = vmatmul.mubr.msk.bf16.vlgmr.msra.gmra.mrb[8].mxu1 %vm205_vm2, %v424_v20 }
 0x3fd   :  { %18698 = vmatprep.mubr.msk.bf16.mxu1 %vm20247_vm0, %v20245_v5 }
 0x3fe   :  { %18693 = vmatmul.mubr.msk.bf16.vlgmr.msra.gmra.mrb[12].mxu0 %vm205_vm2, %v474_v21 }
 0x3ff   :  { %18704 = vmatprep.mubr.msk.bf16.mxu0 %vm20247_vm0, %v20245_v5 }
 0x4c7   :  { %v20405_v22 = vpop.f32.mrb[4].mxu1 }
 0x4c8   :  { %v18676_v23 = vpop.f32.mrb[5].mxu1 }
 0x4c9   :  { %v371_v24 = vpop.f32.mrb[6].mxu1  ;;  %v20407_v25 = vpop.f32.mrb[8].mxu0 }
 0x4ca   :  { %v422_v26 = vpack.c.bf16 %v20407_v25, %v20405_v22  ;;  %v18677_v27 = vpop.f32.mrb[7].mxu1  ;;  %v18682_v30 = vpop.f32.mrb[9].mxu0 }
 0x4cb   :  { %v419_v31 = vpop.f32.mrb[10].mxu0 }
 0x4cc   :  { %v18683_v32 = vpop.f32.mrb[11].mxu0 }
 0x4cf   :  { %v467_v33 = vpop.f32.mrb[8].mxu1 }
 0x4d0   :  { %v18688_v34 = vpop.f32.mrb[9].mxu1  ;;  %v523_v35 = vsel %vm205_vm2, %v467_v33, -inf }
 0x4d1   :  { %524 = vmax.xlane.f32.xlu1 %v523_v35  ;;  %v470_v37 = vpop.f32.mrb[10].mxu1  ;;  %v517_v38 = vpop.f32.mrb[12].mxu0 }
 0x4d2   :  { %v18689_v40 = vpop.f32.mrb[11].mxu1  ;;  %v18694_v41 = vpop.f32.mrb[13].mxu0  ;;  %v526_v42 = vsel %vm205_vm2, %v517_v38, -inf }
 0x4d3   :  { %527 = vmax.xlane.f32.xlu0 %v526_v42  ;;  %v520_v43 = vpop.f32.mrb[14].mxu0 }
 0x4d4   :  { %v18695_v44 = vpop.f32.mrb[15].mxu0 }
 0x55e   :  { %v525_v45 = vpop.xlane.xlu1 %524 }
 0x55f   :  { %v529_v46 = vsub.f32 %v467_v33, %v525_v45 }
 0x560   :  { %v528_v47 = vpop.xlane.xlu0 %527 }
 0x561   :  { %v531_v48 = vmul.f32 1.442695, %v529_v46  ;;  %v530_v49 = vsub.f32 %v517_v38, %v528_v47 }
 0x563   :  { %20007 = vpow2.f32 %v531_v48  ;;  %v533_v50 = vmul.f32 1.442695, %v530_v49 }
 0x565   :  { %20009 = vpow2.f32 %v533_v50 }
 0x56d   :  { %v20008_v51 = vpop.eup %20007 }
 0x56e   :  { %v535_v52 = vsel %vm205_vm2, %v20008_v51, 0.0 }
 0x56f   :  { %v20010_v53 = vpop.eup %20009  ;;  %536 = vadd.xlane.f32.xlu0 %v535_v52 }
 0x570   :  { %v538_v54 = vsel %vm205_vm2, %v20010_v53, 0.0 }
 0x571   :  { %539 = vadd.xlane.f32.xlu1 %v538_v54 }
 0x582   :  { %595 = vrot.lane.b32.xlu1 %v20351_v39, %s20252_s22 }
 0x585   :  { %547 = vrot.lane.b32.xlu0 %v20349_v36, %s20252_s22 }
 0x586   :  { %740 = vrot.lane.b32.xlu1 %v20349_v36, %s20253_s23 }
 0x589   :  { %790 = vrot.lane.b32.xlu0 %v20351_v39, %s20253_s23 }
 0x58a   :  { %738 = vrot.lane.b32.xlu1 %v20349_v36, %s20254_s24 }
 0x58d   :  { %788 = vrot.lane.b32.xlu0 %v20351_v39, %s20254_s24 }
 0x5fc   :  { %v537_v55 = vpop.xlane.xlu0 %536 }
 0x5fd   :  { %20011 = vrcp.f32 %v537_v55 }
 0x5fe   :  { %v540_v56 = vpop.xlane.xlu1 %539 }
 0x5ff   :  { %20013 = vrcp.f32 %v540_v56 }
 0x600   :  { %v548_v57 = vpop.permute.xlu0 %547 }
 0x601   :  { %v553_v58 = vsel %vm330_vm3, %v548_v57, 0 }
 0x602   :  { %v596_v59 = vpop.permute.xlu1 %595  ;;  %18697 = vmatpush3.bf16.msra.mxu1 %v553_v58 }
 0x603   :  { %v601_v60 = vsel %vm330_vm3, %v596_v59, 0  ;;  %18708 = vmatprep.subr.bf16.mxu1 %v20245_v5 }
 0x604   :  { %18703 = vmatpush3.bf16.msra.mxu0 %v601_v60  ;;  %v791_v11 = vpop.permute.xlu0 %790 }
 0x605   :  { %18714 = vmatprep.subr.bf16.mxu0 %v20245_v5  ;;  %v796_v12 = vsel %vm205_vm2, %v791_v11, 0 }
 0x606   :  { %v741_v15 = vpop.permute.xlu1 %740 }
 0x607   :  { %v20012_v61 = vpop.eup %20011  ;;  %v746_v23 = vsel %vm205_vm2, %v741_v15, 0 }
 0x608   :  { %v543_v63 = vmul.f32 %v20012_v61, %v20008_v51  ;;  %v789_v13 = vpop.permute.xlu0 %788 }
 0x609   :  { %v20014_v2 = vpop.eup %20013 }
 0x60a   :  { %v545_v4 = vpack.c.bf16 %v543_v63, %v543_v63  ;;  %v544_v7 = vmul.f32 %v20014_v2, %v20010_v53  ;;  %v739_v27 = vpop.permute.xlu1 %738 }
 0x60c   :  { %18699 = vmatmul.mubr.msk.bf16.vlgmr.msra.gmra.mrb[12].mxu1 %vm205_vm2, %v545_v4  ;;  %v546_v9 = vpack.c.bf16 %v544_v7, %v544_v7 }
 0x60d   :  { %18709 = vmatpush3.bf16.msra.mxu1 %v648_v8  ;;  %18710 = vmatprep.mubr.msk.bf16.mxu1 %vm20247_vm0, %v20245_v5 }
 0x60e   :  { %18705 = vmatmul.mubr.msk.bf16.vlgmr.msra.gmra.mrb[16].mxu0 %vm205_vm2, %v546_v9  ;;  %18720 = vmatprep.subr.bf16.mxu1 %v20245_v5 }
 0x60f   :  { %18715 = vmatpush3.bf16.msra.mxu0 %v695_v10  ;;  %18716 = vmatprep.mubr.msk.bf16.mxu0 %vm20247_vm0, %v20245_v5 }
 0x610   :  { %18726 = vmatprep.subr.bf16.mxu0 %v20245_v5 }
 0x616   :  { %18717 = vmatmul.mubr.msk.bf16.vlgmr.msra.gmra.mrb[20].mxu0 %vm205_vm2, %v422_v26 }
 0x617   :  { %18728 = vmatprep.mubr.msk.bf16.mxu0 %vm20247_vm0, %v20245_v5 }
 0x618   :  { %18727 = vmatpush3.bf16.xpose.msra.mxu0 %v796_v12 }
 0x619   :  { %18738 = vmatprep.subr.bf16.mxu0 %v20245_v5 }
 0x61f   :  { %18729 = vmatmul.mubr.msk.bf16.vlgmr.msra.gmra.mrb[24].mxu0 %vm205_vm2, %v789_v13  ;;  %v15903_v13 = vld [vmem:[%s24189_s2 + $0x28] sm:$0xf] }
 0x620   :  { %18740 = vmatprep.mubr.msk.bf16.mxu0 %vm20247_vm0, %v20245_v5 }
 0x6df   :  { %v589_v14 = vpop.f32.mrb[12].mxu1 }
 0x6e0   :  { %v18700_v16 = vpop.f32.mrb[13].mxu1 }
 0x6e1   :  { %v592_v17 = vpop.f32.mrb[14].mxu1  ;;  %v637_v18 = vpop.f32.mrb[16].mxu0  ;;  %v963_v16 = vsel %vm330_vm3, %v15903_v13, 0 }
 0x6e2   :  { %v643_v19 = vpack.c.bf16 %v637_v18, %v589_v14  ;;  %v18701_v20 = vpop.f32.mrb[15].mxu1  ;;  %v18706_v21 = vpop.f32.mrb[17].mxu0 }
 0x6e3   :  { %v640_v22 = vpop.f32.mrb[18].mxu0 }
 0x6e4   :  { %v18707_v24 = vpop.f32.mrb[19].mxu0  ;;  %18711 = vmatmul.mubr.msk.bf16.vlgmr.msra.gmra.mrb[16].mxu1 %vm205_vm2, %v643_v19 }
 0x6e5   :  { %18721 = vmatpush3.bf16.xpose.msra.mxu1 %v746_v23  ;;  %18722 = vmatprep.mubr.msk.bf16.mxu1 %vm20247_vm0, %v20245_v5 }
 0x6e6   :  { %18732 = vmatprep.subr.bf16.mxu1 %v20245_v5 }
 0x6e9   :  { %v731_v25 = vpop.f32.mrb[20].mxu0 }
 0x6ea   :  { %v18718_v26 = vpop.f32.mrb[21].mxu0 }
 0x6eb   :  { %v734_v30 = vpop.f32.mrb[22].mxu0 }
 0x6ec   :  { %v18719_v31 = vpop.f32.mrb[23].mxu0  ;;  %18723 = vmatmul.mubr.msk.bf16.vlgmr.msra.gmra.mrb[20].mxu1 %vm205_vm2, %v739_v27 }
 0x6ed   :  { %18734 = vmatprep.mubr.msk.bf16.mxu1 %vm20247_vm0, %v20245_v5 }
 0x6f2   :  { %v832_v32 = vpop.f32.mrb[24].mxu0 }
 0x6f3   :  { %v18730_v33 = vpop.f32.mrb[25].mxu0  ;;  %v841_v34 = vsel %vm205_vm2, %v832_v32, -inf }
 0x6f4   :  { %842 = vmax.xlane.f32.xlu0 %v841_v34  ;;  %v835_v35 = vpop.f32.mrb[26].mxu0 }
 0x6f5   :  { %v18731_v37 = vpop.f32.mrb[27].mxu0 }
 0x781   :  { %v843_v38 = vpop.xlane.xlu0 %842 }
 0x782   :  { %v845_v40 = vsub.f32 %v832_v32, %v843_v38 }
 0x784   :  { %v848_v41 = vmul.f32 1.442695, %v845_v40 }
 0x786   :  { %20015 = vpow2.f32 %v848_v41 }
 0x790   :  { %v20016_v51 = vpop.eup %20015 }
 0x791   :  { %v853_v54 = vsel %vm205_vm2, %v20016_v51, 0.0 }
 0x7b7   :  { %v684_v42 = vpop.f32.mrb[16].mxu1 }
 0x7b8   :  { %v20467_v43 = vadd.f32 %v731_v25, %v684_v42  ;;  %v18712_v44 = vpop.f32.mrb[17].mxu1 }
 0x7b9   :  { %v687_v45 = vpop.f32.mrb[18].mxu1 }
 0x7ba   :  { %v20469_v46 = vadd.f32 %v734_v30, %v687_v45  ;;  %v18713_v47 = vpop.f32.mrb[19].mxu1 }
 0x7bf   :  { %v782_v48 = vpop.f32.mrb[20].mxu1 }
 0x7c0   :  { %v18724_v49 = vpop.f32.mrb[21].mxu1  ;;  %v838_v50 = vsel %vm205_vm2, %v782_v48, -inf }
 0x7c1   :  { %839 = vmax.xlane.f32.xlu1 %v838_v50  ;;  %v785_v52 = vpop.f32.mrb[22].mxu1 }
 0x7c2   :  { %v18725_v53 = vpop.f32.mrb[23].mxu1 }
 0x7c5   :  { %854 = vadd.xlane.f32.xlu1 %v853_v54 }
 0x7d6   :  { %910 = vrot.lane.b32.xlu1 %v20351_v39, %s20255_s29 }
 0x7da   :  { %1010 = vrot.lane.b32.xlu1 %v20349_v36, %s20256_s0 }
 0x7de   :  { %1008 = vrot.lane.b32.xlu1 %v20349_v36, %s20257_s30 }
 0x84e   :  { %v840_v55 = vpop.xlane.xlu1 %839 }
 0x84f   :  { %v844_v56 = vsub.f32 %v782_v48, %v840_v55 }
 0x851   :  { %v846_v57 = vmul.f32 1.442695, %v844_v56 }
 0x852   :  { %v855_v58 = vpop.xlane.xlu1 %854 }
 0x853   :  { %20017 = vpow2.f32 %v846_v57 }
 0x854   :  { %20019 = vrcp.f32 %v855_v58 }
 0x856   :  { %v911_v59 = vpop.permute.xlu1 %910 }
 0x857   :  { %v916_v60 = vsel %vm330_vm3, %v911_v59, 0 }
 0x858   :  { %18739 = vmatpush3.bf16.msra.mxu0 %v916_v60 }
 0x859   :  { %18750 = vmatprep.subr.bf16.mxu0 %v20245_v5 }
 0x85a   :  { %v1011_v3 = vpop.permute.xlu1 %1010 }
 0x85b   :  { %v1016_v7 = vsel %vm205_vm2, %v1011_v3, 0 }
 0x85d   :  { %v20018_v61 = vpop.eup %20017 }
 0x85e   :  { %v20020_v62 = vpop.eup %20019  ;;  %v850_v63 = vsel %vm205_vm2, %v20018_v61, 0.0  ;;  %v1009_v8 = vpop.permute.xlu1 %1008 }
 0x85f   :  { %851 = vadd.xlane.f32.xlu0 %v850_v63  ;;  %v859_v2 = vmul.f32 %v20020_v62, %v20016_v51 }
 0x861   :  { %v861_v4 = vpack.c.bf16 %v859_v2, %v859_v2 }
 0x863   :  { %18741 = vmatmul.mubr.msk.bf16.vlgmr.msra.gmra.mrb[28].mxu0 %vm205_vm2, %v861_v4 }
 0x864   :  { %18751 = vmatpush3.bf16.xpose.msra.mxu0 %v1016_v7  ;;  %18752 = vmatprep.mubr.msk.bf16.mxu0 %vm20247_vm0, %v20245_v5 }
 0x865   :  { %18762 = vmatprep.subr.bf16.mxu0 %v20245_v5 }
 0x86b   :  { %18753 = vmatmul.mubr.msk.bf16.vlgmr.msra.gmra.mrb[32].mxu0 %vm205_vm2, %v1009_v8 }
 0x86c   :  { %18764 = vmatprep.mubr.msk.bf16.mxu0 %vm20247_vm0, %v20245_v5 }
 0x875   :  { %862 = vrot.lane.b32.xlu0 %v20349_v36, %s20255_s29 }
 0x879   :  { %1060 = vrot.lane.b32.xlu0 %v20351_v39, %s20256_s0 }
 0x87d   :  { %1058 = vrot.lane.b32.xlu0 %v20351_v39, %s20257_s30 }
 0x8ec   :  { %v852_v9 = vpop.xlane.xlu0 %851 }
 0x8ed   :  { %20021 = vrcp.f32 %v852_v9 }
 0x8f0   :  { %v863_v10 = vpop.permute.xlu0 %862 }
 0x8f1   :  { %v868_v11 = vsel %vm330_vm3, %v863_v10, 0 }
 0x8f2   :  { %18733 = vmatpush3.bf16.msra.mxu1 %v868_v11 }
 0x8f3   :  { %18744 = vmatprep.subr.bf16.mxu1 %v20245_v5 }
 0x8f4   :  { %v1061_v26 = vpop.permute.xlu0 %1060 }
 0x8f5   :  { %v1066_v33 = vsel %vm205_vm2, %v1061_v26, 0 }
 0x8f7   :  { %v20022_v12 = vpop.eup %20021 }
 0x8f8   :  { %v858_v14 = vmul.f32 %v20022_v12, %v20018_v61  ;;  %v1059_v35 = vpop.permute.xlu0 %1058 }
 0x8fa   :  { %v860_v15 = vpack.c.bf16 %v858_v14, %v858_v14 }
 0x8fc   :  { %18735 = vmatmul.mubr.msk.bf16.vlgmr.msra.gmra.mrb[24].mxu1 %vm205_vm2, %v860_v15 }
 0x8fd   :  { %18745 = vmatpush3.bf16.msra.mxu1 %v963_v16  ;;  %18746 = vmatprep.mubr.msk.bf16.mxu1 %vm20247_vm0, %v20245_v5 }
 0x8fe   :  { %18756 = vmatprep.subr.bf16.mxu1 %v20245_v5 }
 0x936   :  { %v952_v17 = vpop.f32.mrb[28].mxu0 }
 0x937   :  { %v18742_v18 = vpop.f32.mrb[29].mxu0 }
 0x938   :  { %v955_v19 = vpop.f32.mrb[30].mxu0 }
 0x939   :  { %v18743_v20 = vpop.f32.mrb[31].mxu0 }
 0x93e   :  { %v1052_v21 = vpop.f32.mrb[32].mxu0 }
 0x93f   :  { %v18754_v22 = vpop.f32.mrb[33].mxu0  ;;  %v1108_v23 = vsel %vm205_vm2, %v1052_v21, -inf }
 0x940   :  { %1109 = vmax.xlane.f32.xlu1 %v1108_v23  ;;  %v1055_v24 = vpop.f32.mrb[34].mxu0 }
 0x941   :  { %v18755_v25 = vpop.f32.mrb[35].mxu0 }
 0x9cd   :  { %v1110_v37 = vpop.xlane.xlu1 %1109 }
 0x9ce   :  { %v1114_v38 = vsub.f32 %v1052_v21, %v1110_v37  ;;  %v15925_v21 = vld [vmem:[%s24190_s5 + $0x6] ss:$0 sm:$0xff] }
 0x9cf   :  { %v904_v27 = vpop.f32.mrb[24].mxu1 }
 0x9d0   :  { %v958_v30 = vpack.c.bf16 %v952_v17, %v904_v27  ;;  %v18736_v31 = vpop.f32.mrb[25].mxu1  ;;  %v1116_v40 = vmul.f32 1.442695, %v1114_v38 }
 0x9d1   :  { %v907_v32 = vpop.f32.mrb[26].mxu1 }
 0x9d2   :  { %v18737_v34 = vpop.f32.mrb[27].mxu1  ;;  %18747 = vmatmul.mubr.msk.bf16.vlgmr.msra.gmra.mrb[28].mxu1 %vm205_vm2, %v958_v30  ;;  %20023 = vpow2.f32 %v1116_v40 }
 0x9d3   :  { %18757 = vmatpush3.bf16.xpose.msra.mxu1 %v1066_v33  ;;  %18758 = vmatprep.mubr.msk.bf16.mxu1 %vm20247_vm0, %v20245_v5 }
 0x9d4   :  { %18768 = vmatprep.subr.bf16.mxu1 %v20245_v5 }
 0x9da   :  { %18759 = vmatmul.mubr.msk.bf16.vlgmr.msra.gmra.mrb[32].mxu1 %vm205_vm2, %v1059_v35 }
 0x9db   :  { %18770 = vmatprep.mubr.msk.bf16.mxu1 %vm20247_vm0, %v20245_v5 }
 0x9dc   :  { %v20024_v52 = vpop.eup %20023 }
 0x9dd   :  { %v1120_v55 = vsel %vm205_vm2, %v20024_v52, 0.0 }
 0xaa5   :  { %v999_v41 = vpop.f32.mrb[28].mxu1 }
 0xaa6   :  { %v1006_v42 = vadd.f32 %v999_v41, %v20467_v43  ;;  %v18748_v44 = vpop.f32.mrb[29].mxu1 }
 0xaa7   :  { %v1002_v45 = vpop.f32.mrb[30].mxu1 }
 0xaa8   :  { %v1007_v47 = vadd.f32 %v1002_v45, %v20469_v46  ;;  %v18749_v48 = vpop.f32.mrb[31].mxu1 }
 0xaa9   :  { %v1336_v48 = vld [vmem:[%s24191_s3 + $0x40] sm:$0xff] }
 0xaad   :  { %v1102_v49 = vpop.f32.mrb[32].mxu1 }
 0xaae   :  { %v18760_v50 = vpop.f32.mrb[33].mxu1  ;;  %v1111_v51 = vsel %vm205_vm2, %v1102_v49, -inf }
 0xaaf   :  { %1112 = vmax.xlane.f32.xlu0 %v1111_v51  ;;  %v1105_v53 = vpop.f32.mrb[34].mxu1  ;;  %v1337_v51 = vld [vmem:[%s24191_s3 + $0x48] sm:$0xff] }
 0xab0   :  { %v18761_v54 = vpop.f32.mrb[35].mxu1 }
 0xab3   :  { %1121 = vadd.xlane.f32.xlu0 %v1120_v55  ;;  %v1344_v55 = vld [vmem:[%s24191_s3 + $0x80] sm:$0xff] }
 0xac9   :  { %1132 = vrot.lane.b32.xlu0 %v20349_v36, %s20258_s10  ;;  %v15904_v36 = vld [vmem:[%s24189_s2 + $0x2c] sm:$0xf] }
 0xaca   :  { %v1233_v3 = vsel %vm330_vm3, %v15904_v36, 0 }
 0xb3c   :  { %v1113_v43 = vpop.xlane.xlu0 %1112 }
 0xb3d   :  { %v1115_v56 = vsub.f32 %v1102_v49, %v1113_v43  ;;  %v1329_v49 = vld [vmem:[%s24191_s3 + $0x8] sm:$0xff]  ;;  %v1352_v43 = vld [vmem:[%s24191_s3 + $0xc0] sm:$0xff] }
 0xb3e   :  { %v15930_v53 = vcombine.low %v1329_v49, %v1337_v51  ;;  %v15931_v54 = vcombine.high %v1329_v49, %v1337_v51  ;;  %v1342_v49 = vld [vmem:[%s24191_s3 + $0x70] sm:$0xff]  ;;  %v1343_v51 = vld [vmem:[%s24191_s3 + $0x78] sm:$0xff] }
 0xb3f   :  { %v1118_v57 = vmul.f32 1.442695, %v1115_v56  ;;  %v1345_v56 = vld [vmem:[%s24191_s3 + $0x88] sm:$0xff] }
 0xb40   :  { %v1122_v46 = vpop.xlane.xlu0 %1121 }
 0xb41   :  { %20025 = vpow2.f32 %v1118_v57  ;;  %v15945_v57 = vcombine.high %v1344_v55, %v1352_v43 }
 0xb42   :  { %20027 = vrcp.f32 %v1122_v46  ;;  %v1353_v46 = vld [vmem:[%s24191_s3 + $0xc8] sm:$0xff] }
 0xb44   :  { %v1133_v58 = vpop.permute.xlu0 %1132 }
 0xb45   :  { %v1138_v59 = vsel %vm330_vm3, %v1133_v58, 0  ;;  %v15944_v58 = vcombine.low %v1344_v55, %v1352_v43  ;;  %v1350_v43 = vld [vmem:[%s24191_s3 + $0xb0] sm:$0xff] }
 0xb46   :  { %18763 = vmatpush3.bf16.msra.mxu0 %v1138_v59  ;;  %v15946_v59 = vcombine.low %v1345_v56, %v1353_v46 }
 0xb47   :  { %18774 = vmatprep.subr.bf16.mxu0 %v20245_v5 }
 0xb4b   :  { %v20026_v60 = vpop.eup %20025 }
 0xb4c   :  { %v20028_v61 = vpop.eup %20027  ;;  %v1123_v62 = vsel %vm205_vm2, %v20026_v60, 0.0 }
 0xb4d   :  { %1124 = vadd.xlane.f32.xlu1 %v1123_v62  ;;  %v1128_v63 = vmul.f32 %v20028_v61, %v20024_v52  ;;  %v1330_v61 = vld [vmem:[%s24191_s3 + $0x10] sm:$0xff] }
 0xb4e   :  { %v1338_v62 = vld [vmem:[%s24191_s3 + $0x50] sm:$0xff] }
 0xb4f   :  { %v1130_v2 = vpack.c.bf16 %v1128_v63, %v1128_v63  ;;  %v1331_v63 = vld [vmem:[%s24191_s3 + $0x18] sm:$0xff]  ;;  %v15933_v36 = vcombine.high %v1330_v61, %v1338_v62 }
 0xb51   :  { %18765 = vmatmul.mubr.msk.bf16.vlgmr.msra.gmra.mrb[36].mxu0 %vm205_vm2, %v1130_v2  ;;  %v15932_v2 = vcombine.low %v1330_v61, %v1338_v62 }
 0xb52   :  { %18776 = vmatprep.mubr.msk.bf16.mxu0 %vm20247_vm0, %v20245_v5  ;;  %18775 = vmatpush3.bf16.msra.mxu0 %v1233_v3  ;;  %v1339_v3 = vld [vmem:[%s24191_s3 + $0x58] sm:$0xff] }
 0xb53   :  { %1651 = vmatprep.subr.bf16.mxu0 %v15931_v54 }
 0xb5e   :  { %1180 = vrot.lane.b32.xlu1 %v20351_v39, %s20258_s10 }
 0xbda   :  { %v1125_v4 = vpop.xlane.xlu1 %1124 }
 0xbdb   :  { %20029 = vrcp.f32 %v1125_v4  ;;  %v15934_v4 = vcombine.low %v1331_v63, %v1339_v3 }
 0xbde   :  { %v1181_v7 = vpop.permute.xlu1 %1180 }
 0xbdf   :  { %v1186_v8 = vsel %vm330_vm3, %v1181_v7, 0  ;;  %v15935_v7 = vcombine.high %v1331_v63, %v1339_v3 }
 0xbe0   :  { %18769 = vmatpush3.bf16.msra.mxu1 %v1186_v8 }
 0xbe5   :  { %v20030_v9 = vpop.eup %20029 }
 0xbe6   :  { %v1129_v10 = vmul.f32 %v20030_v9, %v20026_v60  ;;  %v15947_v60 = vcombine.high %v1345_v56, %v1353_v46  ;;  %v1358_v56 = vld [vmem:[%s24191_s3 + $0xf0] sm:$0xff]  ;;  %v1359_v46 = vld [vmem:[%s24191_s3 + $0xf8] sm:$0xff] }
 0xbe7   :  { %v15957_v62 = vcombine.high %v1350_v43, %v1358_v56  ;;  %v15956_v3 = vcombine.low %v1350_v43, %v1358_v56 }
 0xbe8   :  { %v1131_v11 = vpack.c.bf16 %v1129_v10, %v1129_v10 }
 0xbea   :  { %18771 = vmatmul.mubr.msk.bf16.vlgmr.msra.gmra.mrb[36].mxu1 %vm205_vm2, %v1131_v11 }
 0xbeb   :  { %1640 = vmatprep.mubr.bf16.mxu1 %v20244_v1 }
 0xc24   :  { %v1174_v39 = vpop.f32.mrb[36].mxu0 }
 0xc25   :  { %v18766_v12 = vpop.f32.mrb[37].mxu0 }
 0xc26   :  { %v1177_v13 = vpop.f32.mrb[38].mxu0 }
 0xc27   :  { %v18767_v14 = vpop.f32.mrb[39].mxu0  ;;  %v15926_v13 = vld [vmem:[%s24190_s5 + $0x7] ss:$0 sm:$0xff] }
 0xcbd   :  { %v1222_v15 = vpop.f32.mrb[36].mxu1 }
 0xcbe   :  { %v1228_v16 = vpack.c.bf16 %v1222_v15, %v1174_v39  ;;  %v18772_v17 = vpop.f32.mrb[37].mxu1 }
 0xcbf   :  { %v1225_v18 = vpop.f32.mrb[38].mxu1  ;;  %v15927_v17 = vld [vmem:[%s24190_s5 + $0x8] ss:$0 sm:$0xff] }
 0xcc0   :  { %v18773_v19 = vpop.f32.mrb[39].mxu1  ;;  %18777 = vmatmul.mubr.msk.bf16.vlgmr.msra.gmra.mrb[40].mxu0 %vm205_vm2, %v1228_v16 }
 0xcc1   :  { %1683 = vmatprep.mubr.bf16.mxu0 %v20244_v1  ;;  %1652 = vmatpush1.bf16.msra.mxu0 %v15930_v53 }
 0xcc2   :  { %1653 = vmatprep.subr.bf16.mxu0 %v15947_v60 }
 0xcc5   :  { %1654 = vmatpush1.bf16.msra.mxu0 %v15946_v59 }
 0xcc6   :  { %1737 = vmatprep.subr.bf16.mxu0 %v15935_v7  ;;  %v19473_v7 = vld [vmem:[%s24192_s4] sm:$0xff]  }
 0xd93   :  { %v1269_v20 = vpop.f32.mrb[40].mxu0 }
 0xd94   :  { %v1276_v22 = vadd.f32 %v1269_v20, %v1006_v42  ;;  %v18778_v23 = vpop.f32.mrb[41].mxu0  ;;  %v1346_v20 = vld [vmem:[%s24191_s3 + $0x90] sm:$0xff] }
 0xd95   :  { %v1272_v24 = vpop.f32.mrb[42].mxu0  ;;  %v1355_v23 = vld [vmem:[%s24191_s3 + $0xd8] sm:$0xff] }
 0xd96   :  { %v1277_v25 = vadd.f32 %v1272_v24, %v1007_v47  ;;  %v18779_v26 = vpop.f32.mrb[43].mxu0  ;;  %v1283_v27 = vadd.f32 %v15925_v21, %v1276_v22  ;;  %v1347_v22 = vld [vmem:[%s24191_s3 + $0x98] sm:$0xff] }
 0xd98   :  { %v1285_v30 = vadd.f32 %v1283_v27, %v20339_v29  ;;  %v1284_v31 = vadd.f32 %v15925_v21, %v1277_v25  ;;  %v1354_v21 = vld [vmem:[%s24191_s3 + $0xd0] sm:$0xff]  ;;  %v1332_v27 = vld [vmem:[%s24191_s3 + $0x20] sm:$0xff] }
 0xd9a   :  { %v1289_v32 = vsel %vm150_vm1, %v1285_v30, 0.0  ;;  %v1286_v33 = vadd.f32 %v1284_v31, %v20337_v28  ;;  %v1328_v28 = vld [vmem:[%s24191_s3] sm:$0xff]  ;;  %v1333_v31 = vld [vmem:[%s24191_s3 + $0x28] sm:$0xff] }
 0xd9b   :  { %1290 = vadd.xlane.f32.xlu1 %v1289_v32  ;;  %v15929_v50 = vcombine.high %v1328_v28, %v1336_v48  ;;  %v15928_v52 = vcombine.low %v1328_v28, %v1336_v48  ;;  %v1341_v32 = vld [vmem:[%s24191_s3 + $0x68] sm:$0xff]  ;;  %v1334_v48 = vld [vmem:[%s24191_s3 + $0x30] sm:$0xff] }
 0xd9c   :  { %v1292_v34 = vsel %vm150_vm1, %v1286_v33, 0.0  ;;  %v15938_v28 = vcombine.low %v1333_v31, %v1341_v32  ;;  %v15940_v60 = vcombine.low %v1334_v48, %v1342_v49 }
 0xd9d   :  { %1293 = vadd.xlane.f32.xlu0 %v1292_v34  ;;  %1608 = vmatprep.subr.bf16.mxu1 %v15929_v50  ;;  %v15949_v34 = vcombine.high %v1346_v20, %v1354_v21  ;;  %v1335_v50 = vld [vmem:[%s24191_s3 + $0x38] sm:$0xff] }
 0xd9e   :  { %1609 = vmatpush1.bf16.msra.mxu1 %v15928_v52  ;;  %v15943_v59 = vcombine.high %v1335_v50, %v1343_v51  ;;  %v15942_v61 = vcombine.low %v1335_v50, %v1343_v51 }
 0xd9f   :  { %1610 = vmatprep.subr.bf16.mxu1 %v15945_v57  ;;  %v1351_v57 = vld [vmem:[%s24191_s3 + $0xb8] sm:$0xff] }
 0xda0   :  { %v15959_v63 = vcombine.high %v1351_v57, %v1359_v46 }
 0xda2   :  { %1611 = vmatpush1.bf16.msra.mxu1 %v15944_v58  ;;  %v15941_v58 = vcombine.high %v1334_v48, %v1342_v49 }
 0xda3   :  { %1694 = vmatprep.subr.bf16.mxu1 %v15933_v36  ;;  %v19472_v36 = vld [vmem:[%s24192_s4 + $0xc0] sm:$0xff]  }
 0xe28   :  { %v1291_v35 = vpop.xlane.xlu1 %1290 }
 0xe29   :  { %v1296_v37 = vmul.f32 0.03125, %v1291_v35  ;;  %v15951_v35 = vcombine.high %v1347_v22, %v1355_v23 }
 0xe2a   :  { %v1294_v38 = vpop.xlane.xlu0 %1293 }
 0xe2b   :  { %v1298_v40 = vsub.f32 %v1285_v30, %v1296_v37  ;;  %v1297_v41 = vmul.f32 0.03125, %v1294_v38  ;;  %v1340_v30 = vld [vmem:[%s24191_s3 + $0x60] sm:$0xff]  ;;  %v15948_v37 = vcombine.low %v1346_v20, %v1354_v21  ;;  %v15950_v38 = vcombine.low %v1347_v22, %v1355_v23 }
 0xe2c   :  { %v19487_v20 = vld [vmem:[%s24192_s4 + $0x60] sm:$0xff]  }
 0xe2d   :  { %v1299_v42 = vsub.f32 %v1286_v33, %v1297_v41  ;;  %v1300_v44 = vmul.f32 %v1298_v40, %v1298_v40  ;;  %v1356_v41 = vld [vmem:[%s24191_s3 + $0xe0] sm:$0xff] }
 0xe2e   :  { %v19488_v21 = vld [vmem:[%s24192_s4 + $0xe0] sm:$0xff]  }
 0xe2f   :  { %v1302_v45 = vsel %vm150_vm1, %v1300_v44, 0.0  ;;  %v1301_v47 = vmul.f32 %v1299_v42, %v1299_v42  ;;  %v1357_v44 = vld [vmem:[%s24191_s3 + $0xe8] sm:$0xff]  ;;  %v19489_v22 = vld [vmem:[%s24192_s4 + $0x20] sm:$0xff]  }
 0xe30   :  { %1303 = vadd.xlane.f32.xlu0 %v1302_v45  ;;  %v15937_v45 = vcombine.high %v1332_v27, %v1340_v30  ;;  %v19490_v23 = vld [vmem:[%s24192_s4 + $0xa0] sm:$0xff]  }
 0xe31   :  { %v1305_v29 = vsel %vm150_vm1, %v1301_v47, 0.0  ;;  %v15939_v47 = vcombine.high %v1333_v31, %v1341_v32  ;;  %v19494_v31 = vld [vmem:[%s24192_s4 + $0xa8] sm:$0xff]   ;;  %v19495_v32 = vld [vmem:[%s24192_s4 + $0x70] sm:$0xff]  }
 0xe32   :  { %1306 = vadd.xlane.f32.xlu1 %v1305_v29  ;;  %v15936_v29 = vcombine.low %v1332_v27, %v1340_v30  ;;  %v19492_v27 = vld [vmem:[%s24192_s4 + $0xe8] sm:$0xff]  }
 0xe33   :  { %v19493_v30 = vld [vmem:[%s24192_s4 + $0x28] sm:$0xff]  }
 0xebd   :  { %v1304_v8 = vpop.xlane.xlu0 %1303 }
 0xebe   :  { %v1308_v9 = vmul.f32 0.03125, %v1304_v8  ;;  %v19474_v8 = vld [vmem:[%s24192_s4 + $0x80] sm:$0xff]  }
 0xebf   :  { %v1307_v10 = vpop.xlane.xlu1 %1306 }
 0xec0   :  { %v1310_v11 = vadd.f32 1e-05, %v1308_v9  ;;  %v1309_v39 = vmul.f32 0.03125, %v1307_v10  ;;  %v19475_v9 = vld [vmem:[%s24192_s4 + $0x48] sm:$0xff]  }
 0xec1   :  { %v19476_v10 = vld [vmem:[%s24192_s4 + $0xc8] sm:$0xff]  }
 0xec2   :  { %20031 = vrsqrt.f32 %v1310_v11  ;;  %v1311_v12 = vadd.f32 1e-05, %v1309_v39  ;;  %v19477_v11 = vld [vmem:[%s24192_s4 + $0x8] sm:$0xff]  }
 0xec3   :  { %v19478_v39 = vld [vmem:[%s24192_s4 + $0x88] sm:$0xff]  }
 0xec4   :  { %20033 = vrsqrt.f32 %v1311_v12  ;;  %v19479_v12 = vld [vmem:[%s24192_s4 + $0x50] sm:$0xff]  }
 0xecc   :  { %v20032_v14 = vpop.eup %20031 }
 0xecd   :  { %v1314_v15 = vmul.f32 %v20032_v14, %v1298_v40  ;;  %v1348_v40 = vld [vmem:[%s24191_s3 + $0xa0] sm:$0xff]  ;;  %v19481_v14 = vld [vmem:[%s24192_s4 + $0x10] sm:$0xff]  }
 0xece   :  { %v20034_v16 = vpop.eup %20033  ;;  %v15953_v52 = vcombine.high %v1348_v40, %v1356_v41  ;;  %v15952_v54 = vcombine.low %v1348_v40, %v1356_v41  ;;  %v19501_v40 = vld [vmem:[%s24192_s4 + $0x38] sm:$0xff]  }
 0xecf   :  { %v1320_v18 = vmul.f32 %v15926_v13, %v1314_v15  ;;  %v1315_v19 = vmul.f32 %v20034_v16, %v1299_v42  ;;  %v1349_v42 = vld [vmem:[%s24191_s3 + $0xa8] sm:$0xff]  ;;  %v19482_v15 = vld [vmem:[%s24192_s4 + $0x90] sm:$0xff]   ;;  %v19483_v16 = vld [vmem:[%s24192_s4 + $0x58] sm:$0xff]  }
 0xed0   :  { %v15955_v53 = vcombine.high %v1349_v42, %v1357_v44  ;;  %v15954_v55 = vcombine.low %v1349_v42, %v1357_v44  ;;  %v19502_v41 = vld [vmem:[%s24192_s4 + $0xb8] sm:$0xff]   ;;  %v19503_v42 = vld [vmem:[%s24192_s4 + $0x140] sm:$0xff]  }
 0xed1   :  { %v1321_v24 = vmul.f32 %v15926_v13, %v1315_v19  ;;  %v20601_v25 = vadd.f32 %v15927_v17, %v1320_v18  ;;  %v19480_v13 = vld [vmem:[%s24192_s4 + $0xd0] sm:$0xff]   ;;  %v19485_v18 = vld [vmem:[%s24192_s4 + $0x18] sm:$0xff]   ;;  %v19504_v44 = vld [vmem:[%s24192_s4 + $0x1c0] sm:$0xff]  }
 0xed2   :  { %v19486_v19 = vld [vmem:[%s24192_s4 + $0x98] sm:$0xff]  }
 0xed3   :  { %v20603_v26 = vadd.f32 %v15927_v17, %v1321_v24  ;;  %v19484_v17 = vld [vmem:[%s24192_s4 + $0xd8] sm:$0xff]   ;;  %v19491_v24 = vld [vmem:[%s24192_s4 + $0x68] sm:$0xff]  }
 0xed5   :  { %v20619_v33 = vpack.c.bf16 %v20603_v26, %v20601_v25 }
 0xed7   :  { %15960 = vmatmul.mubr.msk.bf16.vlgmr.msra.gmra.mrb[40].mxu1 %vm150_vm1, %v20619_v33  ;;  %15961 = vmatmul.mubr.msk.bf16.vlgmr.msra.gmra.mrb[44].mxu0 %vm150_vm1, %v20619_v33 }
 0xed8   :  { %1695 = vmatpush1.bf16.msra.mxu1 %v15932_v2  ;;  %1738 = vmatpush1.bf16.msra.mxu0 %v15934_v4  ;;  %v19471_v2 = vld [vmem:[%s24192_s4 + $0x40] sm:$0xff]   ;;  %v15958_v4 = vcombine.low %v1351_v57, %v1359_v46 }
 0xed9   :  { %1696 = vmatprep.subr.bf16.mxu1 %v15949_v34  ;;  %1739 = vmatprep.subr.bf16.mxu0 %v15951_v35  ;;  %v19497_v34 = vld [vmem:[%s24192_s4 + $0x30] sm:$0xff]  }
 0xeda   :  { %1726 = vmatprep.mubr.bf16.mxu1 %v20244_v1  ;;  %1769 = vmatprep.mubr.bf16.mxu0 %v20244_v1  ;;  %v19498_v35 = vld [vmem:[%s24192_s4 + $0xb0] sm:$0xff]  }
 0xedc   :  { %1697 = vmatpush1.bf16.msra.mxu1 %v15948_v37  ;;  %1740 = vmatpush1.bf16.msra.mxu0 %v15950_v38  ;;  %v19499_v37 = vld [vmem:[%s24192_s4 + $0x78] sm:$0xff]  }
 0xedd   :  { %1780 = vmatprep.subr.bf16.mxu1 %v15937_v45  ;;  %1823 = vmatprep.subr.bf16.mxu0 %v15939_v47  ;;  %v19500_v38 = vld [vmem:[%s24192_s4 + $0xf8] sm:$0xff]   ;;  %v1365_v45 = vlaneseq }
 0xedf   :  { %15962 = vmatmul.mubr.msk.bf16.vlgmr.msra.gmra.mrb[44].mxu1 %vm150_vm1, %v20619_v33  ;;  %15963 = vmatmul.mubr.msk.bf16.vlgmr.msra.gmra.mrb[48].mxu0 %vm150_vm1, %v20619_v33  ;;  %v1366_v47 = vshrl.u32 %v1365_v45, 7 }
 0xee0   :  { %1781 = vmatpush1.bf16.msra.mxu1 %v15936_v29  ;;  %1824 = vmatpush1.bf16.msra.mxu0 %v15938_v28 }
 0xee1   :  { %1782 = vmatprep.subr.bf16.mxu1 %v15953_v52  ;;  %1825 = vmatprep.subr.bf16.mxu0 %v15955_v53  ;;  %v20781_v29 = vsub.s32 0, %v1366_v47  ;;  %v20783_v28 = vsub.s32 2, %v1366_v47  ;;  %v20785_v48 = vsub.s32 1, %v1366_v47  ;;  %v20787_v49 = vsub.s32 3, %v1366_v47 }
 0xee2   :  { %1812 = vmatprep.mubr.bf16.mxu1 %v20244_v1  ;;  %1855 = vmatprep.mubr.bf16.mxu0 %v20244_v1  ;;  %v20789_v50 = vsub.s32 4, %v1366_v47  ;;  %v20791_v51 = vsub.s32 6, %v1366_v47  ;;  %v20793_v52 = vsub.s32 5, %v1366_v47  ;;  %v20795_v53 = vsub.s32 7, %v1366_v47 }
 0xee4   :  { %1783 = vmatpush1.bf16.msra.mxu1 %v15952_v54  ;;  %1826 = vmatpush1.bf16.msra.mxu0 %v15954_v55  ;;  %v1361_v54 = vld [vmem:[%s24193_s6] sm:$0xff] }
 0xee5   :  { %1866 = vmatprep.subr.bf16.mxu1 %v15941_v58  ;;  %1909 = vmatprep.subr.bf16.mxu0 %v15943_v59  ;;  %v1368_v55 = vrot.slane %v1361_v54, %v20781_v29  ;;  %v1376_v43 = vrot.slane %v1361_v54, %v20783_v28  ;;  %v1372_v56 = vrot.slane %v1361_v54, %v20785_v48 }
 0xee6   :  { %v1380_v57 = vrot.slane %v1361_v54, %v20787_v49 }
 0xee7   :  { %15964 = vmatmul.mubr.msk.bf16.vlgmr.msra.gmra.mrb[48].mxu1 %vm150_vm1, %v20619_v33  ;;  %15965 = vmatmul.mubr.msk.bf16.vlgmr.msra.gmra.mrb[52].mxu0 %vm150_vm1, %v20619_v33 }
 0xee8   :  { %1867 = vmatpush1.bf16.msra.mxu1 %v15940_v60  ;;  %1910 = vmatpush1.bf16.msra.mxu0 %v15942_v61 }
 0xee9   :  { %1868 = vmatprep.subr.bf16.mxu1 %v15957_v62  ;;  %1911 = vmatprep.subr.bf16.mxu0 %v15959_v63 }
 0xeea   :  { %1898 = vmatprep.mubr.bf16.mxu1 %v20244_v1  ;;  %1941 = vmatprep.mubr.bf16.mxu0 %v20244_v1 }
 0xeec   :  { %1869 = vmatpush1.bf16.msra.mxu1 %v15956_v3  ;;  %1912 = vmatpush1.bf16.msra.mxu0 %v15958_v4 }
 0xeed   :  { %17724 = vmatprep.subr.bf16.mxu1 %v19471_v2  ;;  %17746 = vmatprep.subr.bf16.mxu0 %v19472_v36 }
 0xeef   :  { %15966 = vmatmul.mubr.msk.bf16.vlgmr.msra.gmra.mrb[52].mxu1 %vm150_vm1, %v20619_v33  ;;  %15967 = vmatmul.mubr.msk.bf16.vlgmr.msra.gmra.mrb[56].mxu0 %vm150_vm1, %v20619_v33  ;;  %v19496_v33 = vld [vmem:[%s24192_s4 + $0xf0] sm:$0xff]  }
 0xef0   :  { %17725 = vmatpush3.bf16.msra.mxu1 %v19473_v7  ;;  %17747 = vmatpush3.bf16.msra.mxu0 %v19474_v8 }
 0xef1   :  { %17726 = vmatprep.subr.bf16.mxu1 %v19475_v9  ;;  %17748 = vmatprep.subr.bf16.mxu0 %v19476_v10 }
 0xef4   :  { %17727 = vmatpush3.bf16.msra.mxu1 %v19477_v11  ;;  %17749 = vmatpush3.bf16.msra.mxu0 %v19478_v39 }
 0xef5   :  { %17728 = vmatprep.subr.bf16.mxu1 %v19479_v12  ;;  %17750 = vmatprep.subr.bf16.mxu0 %v19480_v13 }
 0xef8   :  { %17729 = vmatpush3.bf16.msra.mxu1 %v19481_v14  ;;  %17751 = vmatpush3.bf16.msra.mxu0 %v19482_v15 }
 0xef9   :  { %17730 = vmatprep.subr.bf16.mxu1 %v19483_v16  ;;  %17752 = vmatprep.subr.bf16.mxu0 %v19484_v17  ;;  %v1384_v17 = vrot.slane %v1361_v54, %v20789_v50 }
 0xefc   :  { %17731 = vmatpush3.bf16.msra.mxu1 %v19485_v18  ;;  %17753 = vmatpush3.bf16.msra.mxu0 %v19486_v19  ;;  %v1392_v18 = vrot.slane %v1361_v54, %v20791_v51 }
 0xefd   :  { %17732 = vmatprep.subr.bf16.mxu1 %v19487_v20  ;;  %17754 = vmatprep.subr.bf16.mxu0 %v19488_v21  ;;  %v1388_v21 = vrot.slane %v1361_v54, %v20793_v52 }
 0xf00   :  { %17733 = vmatpush3.bf16.msra.mxu1 %v19489_v22  ;;  %17755 = vmatpush3.bf16.msra.mxu0 %v19490_v23  ;;  %v1396_v22 = vrot.slane %v1361_v54, %v20795_v53  ;;  %v19505_v23 = vld [vmem:[%s24192_s4 + $0x100] sm:$0xff]  }
 0xf01   :  { %17734 = vmatprep.subr.bf16.mxu1 %v19491_v24  ;;  %17756 = vmatprep.subr.bf16.mxu0 %v19492_v27  ;;  %v19506_v24 = vld [vmem:[%s24192_s4 + $0x180] sm:$0xff]  }
 0xf04   :  { %17735 = vmatpush3.bf16.msra.mxu1 %v19493_v30  ;;  %17757 = vmatpush3.bf16.msra.mxu0 %v19494_v31  ;;  %v19507_v31 = vld [vmem:[%s24192_s4 + $0x148] sm:$0xff]  }
 0xf05   :  { %17736 = vmatprep.subr.bf16.mxu1 %v19495_v32  ;;  %17758 = vmatprep.subr.bf16.mxu0 %v19496_v33  ;;  %v19508_v32 = vld [vmem:[%s24192_s4 + $0x1c8] sm:$0xff]  }
 0xf08   :  { %17737 = vmatpush3.bf16.msra.mxu1 %v19497_v34  ;;  %17759 = vmatpush3.bf16.msra.mxu0 %v19498_v35 }
 0xf09   :  { %17738 = vmatprep.subr.bf16.mxu1 %v19499_v37  ;;  %17760 = vmatprep.subr.bf16.mxu0 %v19500_v38  ;;  %v20823_v38 = vld [vmem:[%s24193_s6 + $0x8] sm:$0xff] }
 0xf0c   :  { %17739 = vmatpush3.bf16.msra.mxu1 %v19501_v40  ;;  %17761 = vmatpush3.bf16.msra.mxu0 %v19502_v41 }
 0xf0d   :  { %17768 = vmatprep.subr.bf16.mxu1 %v19503_v42  ;;  %17790 = vmatprep.subr.bf16.mxu0 %v19504_v44 }
 0xfaa   :  { %v1642_v46 = vpop.f32.mrb[40].mxu1  ;;  %v1685_v58 = vpop.f32.mrb[44].mxu0 }
 0xfab   :  { %v1643_v59 = vadd.f32 %v1642_v46, %v1368_v55  ;;  %v1686_v60 = vadd.f32 %v1685_v58, %v1376_v43  ;;  %v1644_v61 = vpop.f32.mrb[41].mxu1  ;;  %v1687_v62 = vpop.f32.mrb[45].mxu0 }
 0xfac   :  { %v1645_v63 = vadd.f32 %v1644_v61, %v1372_v56  ;;  %v1688_v2 = vadd.f32 %v1687_v62, %v1380_v57  ;;  %v1646_v36 = vpop.f32.mrb[42].mxu1  ;;  %v1689_v3 = vpop.f32.mrb[46].mxu0  ;;  %v19511_v62 = vld [vmem:[%s24192_s4 + $0x150] sm:$0xff]  }
 0xfad   :  { %v1952_v4 = vmax.f32 %v1643_v59, 0.0  ;;  %v1954_v7 = vmax.f32 %v1686_v60, 0.0  ;;  %v1647_v8 = vadd.f32 %v1646_v36, %v1368_v55  ;;  %v1690_v9 = vadd.f32 %v1689_v3, %v1376_v43  ;;  %v1648_v10 = vpop.f32.mrb[43].mxu1  ;;  %v1691_v11 = vpop.f32.mrb[47].mxu0  ;;  %v19509_v43 = vld [vmem:[%s24192_s4 + $0x108] sm:$0xff]  }
 0xfae   :  { %v1953_v39 = vmax.f32 %v1645_v63, 0.0  ;;  %v1955_v12 = vmax.f32 %v1688_v2, 0.0  ;;  %v1649_v13 = vadd.f32 %v1648_v10, %v1372_v56  ;;  %v1692_v14 = vadd.f32 %v1691_v11, %v1380_v57  ;;  %v19510_v56 = vld [vmem:[%s24192_s4 + $0x188] sm:$0xff]   ;;  %v19512_v63 = vld [vmem:[%s24192_s4 + $0x1d0] sm:$0xff]  }
 0xfaf   :  { %v1968_v15 = vmax.f32 %v1647_v8, 0.0  ;;  %v1970_v16 = vmax.f32 %v1690_v9, 0.0  ;;  %v1400_v9 = vrot.slane %v20823_v38, %v20781_v29  ;;  %v1408_v10 = vrot.slane %v20823_v38, %v20783_v28 }
 0xfb0   :  { %v1969_v19 = vmax.f32 %v1649_v13, 0.0  ;;  %v1971_v20 = vmax.f32 %v1692_v14, 0.0  ;;  %v1412_v13 = vrot.slane %v20823_v38, %v20787_v49  ;;  %v19513_v14 = vld [vmem:[%s24192_s4 + $0x110] sm:$0xff]  }
 0xfb1   :  { %v1984_v27 = vpack.c.bf16 %v1968_v15, %v1952_v4  ;;  %v1986_v30 = vpack.c.bf16 %v1970_v16, %v1954_v7  ;;  %v19514_v15 = vld [vmem:[%s24192_s4 + $0x190] sm:$0xff]  }
 0xfb2   :  { %v1728_v33 = vpop.f32.mrb[44].mxu1  ;;  %v1771_v34 = vpop.f32.mrb[48].mxu0  ;;  %v1985_v35 = vpack.c.bf16 %v1969_v19, %v1953_v39  ;;  %v1987_v37 = vpack.c.bf16 %v1971_v20, %v1955_v12  ;;  %v1404_v12 = vrot.slane %v20823_v38, %v20785_v48  ;;  %v19516_v19 = vld [vmem:[%s24192_s4 + $0x1d8] sm:$0xff]  }
 0xfb3   :  { %v1729_v40 = vadd.f32 %v1728_v33, %v1384_v17  ;;  %v1772_v41 = vadd.f32 %v1771_v34, %v1392_v18  ;;  %v1730_v42 = vpop.f32.mrb[45].mxu1  ;;  %v1773_v44 = vpop.f32.mrb[49].mxu0 }
 0xfb4   :  { %v1731_v45 = vadd.f32 %v1730_v42, %v1388_v21  ;;  %v1774_v47 = vadd.f32 %v1773_v44, %v1396_v22  ;;  %v1732_v54 = vpop.f32.mrb[46].mxu1  ;;  %v1775_v55 = vpop.f32.mrb[50].mxu0  ;;  %3061 = vmatprep.mubr.bf16.mxu1 %v1985_v35  ;;  %3102 = vmatprep.mubr.bf16.mxu0 %v1987_v37  ;;  %v19517_v37 = vld [vmem:[%s24192_s4 + $0x118] sm:$0xff]  }
 0xfb5   :  { %v1956_v57 = vmax.f32 %v1729_v40, 0.0  ;;  %v1958_v46 = vmax.f32 %v1772_v41, 0.0  ;;  %v1733_v58 = vadd.f32 %v1732_v54, %v1384_v17  ;;  %v1776_v59 = vadd.f32 %v1775_v55, %v1392_v18  ;;  %v1734_v60 = vpop.f32.mrb[47].mxu1  ;;  %v1777_v61 = vpop.f32.mrb[51].mxu0  ;;  %3062 = vmatmul.mubr.bf16.vlgmr.msra.gmra.mrb[56].mxu1 %v1984_v27  ;;  %3103 = vmatmul.mubr.bf16.vlgmr.msra.gmra.mrb[60].mxu0 %v1986_v30  ;;  %v19515_v18 = vld [vmem:[%s24192_s4 + $0x158] sm:$0xff]   ;;  %v19519_v55 = vld [vmem:[%s24192_s4 + $0x160] sm:$0xff]  }
 0xfb6   :  { %v1957_v2 = vmax.f32 %v1731_v45, 0.0  ;;  %v1959_v36 = vmax.f32 %v1774_v47, 0.0  ;;  %v1735_v3 = vadd.f32 %v1734_v60, %v1388_v21  ;;  %v1778_v4 = vadd.f32 %v1777_v61, %v1396_v22  ;;  %17769 = vmatpush3.bf16.msra.mxu1 %v19505_v23  ;;  %17791 = vmatpush3.bf16.msra.mxu0 %v19506_v24  ;;  %v19518_v40 = vld [vmem:[%s24192_s4 + $0x198] sm:$0xff]  }
 0xfb7   :  { %v1972_v7 = vmax.f32 %v1733_v58, 0.0  ;;  %v1974_v8 = vmax.f32 %v1776_v59, 0.0  ;;  %17770 = vmatprep.subr.bf16.mxu1 %v19507_v31  ;;  %17792 = vmatprep.subr.bf16.mxu0 %v19508_v32  ;;  %v1416_v61 = vrot.slane %v20823_v38, %v20789_v50 }
 0xfb8   :  { %v1973_v11 = vmax.f32 %v1735_v3, 0.0  ;;  %v1975_v39 = vmax.f32 %v1778_v4, 0.0  ;;  %v1428_v3 = vrot.slane %v20823_v38, %v20795_v53  ;;  %v19521_v4 = vld [vmem:[%s24192_s4 + $0x120] sm:$0xff]  }
 0xfb9   :  { %v20851_v16 = vpack.c.bf16 %v1972_v7, %v1956_v57  ;;  %v20853_v17 = vpack.c.bf16 %v1974_v8, %v1958_v46  ;;  %v19522_v7 = vld [vmem:[%s24192_s4 + $0x1a0] sm:$0xff]  }
 0xfba   :  { %17771 = vmatpush3.bf16.msra.mxu1 %v19509_v43  ;;  %17793 = vmatpush3.bf16.msra.mxu0 %v19510_v56  ;;  %v1814_v20 = vpop.f32.mrb[48].mxu1  ;;  %v1857_v21 = vpop.f32.mrb[52].mxu0  ;;  %v1989_v22 = vpack.c.bf16 %v1973_v11, %v1957_v2  ;;  %v1991_v23 = vpack.c.bf16 %v1975_v39, %v1959_v36  ;;  %v19520_v43 = vld [vmem:[%s24192_s4 + $0x1e0] sm:$0xff]   ;;  %v1420_v36 = vrot.slane %v20823_v38, %v20793_v52 }
 0xfbb   :  { %v1815_v24 = vadd.f32 %v1814_v20, %v1400_v9  ;;  %v1858_v27 = vadd.f32 %v1857_v21, %v1408_v10  ;;  %v1816_v30 = vpop.f32.mrb[49].mxu1  ;;  %v1859_v31 = vpop.f32.mrb[53].mxu0  ;;  %17772 = vmatprep.subr.bf16.mxu1 %v19511_v62  ;;  %17794 = vmatprep.subr.bf16.mxu0 %v19512_v63  ;;  %v1424_v62 = vrot.slane %v20823_v38, %v20791_v51  ;;  %v19524_v38 = vld [vmem:[%s24192_s4 + $0x1e8] sm:$0xff]  }
 0xfbc   :  { %v1817_v32 = vadd.f32 %v1816_v30, %v1404_v12  ;;  %v1860_v33 = vadd.f32 %v1859_v31, %v1412_v13  ;;  %v1818_v34 = vpop.f32.mrb[50].mxu1  ;;  %v1861_v35 = vpop.f32.mrb[54].mxu0  ;;  %3143 = vmatprep.mubr.bf16.mxu1 %v1989_v22  ;;  %3184 = vmatprep.mubr.bf16.mxu0 %v1991_v23 }
 0xfbd   :  { %v1960_v41 = vmax.f32 %v1815_v24, 0.0  ;;  %v1962_v42 = vmax.f32 %v1858_v27, 0.0  ;;  %v1819_v44 = vadd.f32 %v1818_v34, %v1400_v9  ;;  %v1862_v45 = vadd.f32 %v1861_v35, %v1408_v10  ;;  %v1820_v47 = vpop.f32.mrb[51].mxu1  ;;  %v1863_v54 = vpop.f32.mrb[55].mxu0  ;;  %v19523_v10 = vld [vmem:[%s24192_s4 + $0x168] sm:$0xff]  }
 0xfbe   :  { %v1961_v56 = vmax.f32 %v1817_v32, 0.0  ;;  %v1963_v57 = vmax.f32 %v1860_v33, 0.0  ;;  %v1821_v46 = vadd.f32 %v1820_v47, %v1404_v12  ;;  %v1864_v58 = vadd.f32 %v1863_v54, %v1412_v13  ;;  %17773 = vmatpush3.bf16.msra.mxu1 %v19513_v14  ;;  %17795 = vmatpush3.bf16.msra.mxu0 %v19514_v15  ;;  %v19525_v24 = vld [vmem:[%s24192_s4 + $0x128] sm:$0xff]  }
 0xfbf   :  { %v1976_v59 = vmax.f32 %v1819_v44, 0.0  ;;  %v1978_v60 = vmax.f32 %v1862_v45, 0.0  ;;  %17774 = vmatprep.subr.bf16.mxu1 %v19515_v18  ;;  %17796 = vmatprep.subr.bf16.mxu0 %v19516_v19  ;;  %v19526_v27 = vld [vmem:[%s24192_s4 + $0x1a8] sm:$0xff]  }
 0xfc0   :  { %v1977_v63 = vmax.f32 %v1821_v46, 0.0  ;;  %v1979_v2 = vmax.f32 %v1864_v58, 0.0 }
 0xfc1   :  { %v20887_v8 = vpack.c.bf16 %v1976_v59, %v1960_v41  ;;  %v20889_v9 = vpack.c.bf16 %v1978_v60, %v1962_v42  ;;  %v19531_v59 = vld [vmem:[%s24192_s4 + $0x178] sm:$0xff]  }
 0xfc2   :  { %17775 = vmatpush3.bf16.msra.mxu1 %v19517_v37  ;;  %17797 = vmatpush3.bf16.msra.mxu0 %v19518_v40  ;;  %v1900_v11 = vpop.f32.mrb[52].mxu1  ;;  %v1943_v39 = vpop.f32.mrb[56].mxu0  ;;  %v20897_v12 = vpack.c.bf16 %v1977_v63, %v1961_v56  ;;  %v20899_v13 = vpack.c.bf16 %v1979_v2, %v1963_v57  ;;  %v19527_v37 = vld [vmem:[%s24192_s4 + $0x170] sm:$0xff]   ;;  %v19532_v60 = vld [vmem:[%s24192_s4 + $0x1f8] sm:$0xff]  }
 0xfc3   :  { %v1901_v14 = vadd.f32 %v1900_v11, %v1416_v61  ;;  %v1944_v15 = vadd.f32 %v1943_v39, %v1424_v62  ;;  %v1902_v18 = vpop.f32.mrb[53].mxu1  ;;  %v1945_v19 = vpop.f32.mrb[57].mxu0  ;;  %17776 = vmatprep.subr.bf16.mxu1 %v19519_v55  ;;  %17798 = vmatprep.subr.bf16.mxu0 %v19520_v43  ;;  %v19528_v40 = vld [vmem:[%s24192_s4 + $0x1f0] sm:$0xff]   ;;  %v19533_v63 = vld [vmem:[%s24192_s4 + $0x138] sm:$0xff]   ;;  %v19541_v11 = vld [vmem:[%s24192_s4 + $0x208] sm:$0xff]  }
 0xfc4   :  { %v1903_v20 = vadd.f32 %v1902_v18, %v1420_v36  ;;  %v1946_v21 = vadd.f32 %v1945_v19, %v1428_v3  ;;  %v1904_v22 = vpop.f32.mrb[54].mxu1  ;;  %v1947_v23 = vpop.f32.mrb[58].mxu0  ;;  %v19529_v56 = vld [vmem:[%s24192_s4 + $0x130] sm:$0xff]   ;;  %v19534_v2 = vld [vmem:[%s24192_s4 + $0x1b8] sm:$0xff]   ;;  %v19542_v39 = vld [vmem:[%s24192_s4 + $0x288] sm:$0xff]  }
 0xfc5   :  { %v1964_v30 = vmax.f32 %v1901_v14, 0.0  ;;  %v1966_v31 = vmax.f32 %v1944_v15, 0.0  ;;  %v1905_v32 = vadd.f32 %v1904_v22, %v1416_v61  ;;  %v1948_v33 = vadd.f32 %v1947_v23, %v1424_v62  ;;  %v1906_v34 = vpop.f32.mrb[55].mxu1  ;;  %v1949_v35 = vpop.f32.mrb[59].mxu0  ;;  %v19530_v57 = vld [vmem:[%s24192_s4 + $0x1b0] sm:$0xff]   ;;  %v19548_v18 = vld [vmem:[%s24192_s4 + $0x2d8] sm:$0xff]  }
 0xfc6   :  { %v1965_v41 = vmax.f32 %v1903_v20, 0.0  ;;  %v1967_v42 = vmax.f32 %v1946_v21, 0.0  ;;  %v1907_v44 = vadd.f32 %v1906_v34, %v1420_v36  ;;  %v1950_v45 = vadd.f32 %v1949_v35, %v1428_v3  ;;  %17777 = vmatpush3.bf16.msra.mxu1 %v19521_v4  ;;  %17799 = vmatpush3.bf16.msra.mxu0 %v19522_v7  ;;  %v19535_v36 = vld [vmem:[%s24192_s4 + $0x240] sm:$0xff]   ;;  %v19543_v14 = vld [vmem:[%s24192_s4 + $0x250] sm:$0xff]   ;;  %v19550_v19 = vld [vmem:[%s24192_s4 + $0x298] sm:$0xff]  }
 0xfc7   :  { %v1980_v47 = vmax.f32 %v1905_v32, 0.0  ;;  %v1982_v54 = vmax.f32 %v1948_v33, 0.0  ;;  %17778 = vmatprep.subr.bf16.mxu1 %v19523_v10  ;;  %17800 = vmatprep.subr.bf16.mxu0 %v19524_v38  ;;  %v19536_v3 = vld [vmem:[%s24192_s4 + $0x2c0] sm:$0xff]   ;;  %v19539_v10 = vld [vmem:[%s24192_s4 + $0x248] sm:$0xff]   ;;  %v19544_v15 = vld [vmem:[%s24192_s4 + $0x2d0] sm:$0xff]  }
 0xfc8   :  { %v1981_v55 = vmax.f32 %v1907_v44, 0.0  ;;  %v1983_v43 = vmax.f32 %v1950_v45, 0.0  ;;  %v19537_v4 = vld [vmem:[%s24192_s4 + $0x200] sm:$0xff]   ;;  %v19540_v38 = vld [vmem:[%s24192_s4 + $0x2c8] sm:$0xff]   ;;  %v19559_v32 = vld [vmem:[%s24192_s4 + $0x270] sm:$0xff]  }
 0xfc9   :  { %v20919_v46 = vpack.c.bf16 %v1980_v47, %v1964_v30  ;;  %v20921_v58 = vpack.c.bf16 %v1982_v54, %v1966_v31  ;;  %v19538_v7 = vld [vmem:[%s24192_s4 + $0x280] sm:$0xff]   ;;  %v19557_v30 = vld [vmem:[%s24192_s4 + $0x228] sm:$0xff]   ;;  %v19560_v33 = vld [vmem:[%s24192_s4 + $0x2f0] sm:$0xff]  }
 0xfca   :  { %17779 = vmatpush3.bf16.msra.mxu1 %v19525_v24  ;;  %17801 = vmatpush3.bf16.msra.mxu0 %v19526_v27  ;;  %v20929_v61 = vpack.c.bf16 %v1981_v55, %v1965_v41  ;;  %v20931_v62 = vpack.c.bf16 %v1983_v43, %v1967_v42  ;;  %v19551_v20 = vld [vmem:[%s24192_s4 + $0x260] sm:$0xff]   ;;  %v19555_v24 = vld [vmem:[%s24192_s4 + $0x268] sm:$0xff]   ;;  %v19561_v34 = vld [vmem:[%s24192_s4 + $0x230] sm:$0xff]  }
 0xfcb   :  { %17780 = vmatprep.subr.bf16.mxu1 %v19527_v37  ;;  %17802 = vmatprep.subr.bf16.mxu0 %v19528_v40  ;;  %v19552_v21 = vld [vmem:[%s24192_s4 + $0x2e0] sm:$0xff]   ;;  %v19556_v27 = vld [vmem:[%s24192_s4 + $0x2e8] sm:$0xff]   ;;  %v19562_v35 = vld [vmem:[%s24192_s4 + $0x2b0] sm:$0xff]  }
 0xfcc   :  { %v19553_v22 = vld [vmem:[%s24192_s4 + $0x220] sm:$0xff]   ;;  %v19558_v31 = vld [vmem:[%s24192_s4 + $0x2a8] sm:$0xff]   ;;  %v19563_v37 = vld [vmem:[%s24192_s4 + $0x278] sm:$0xff]  }
 0xfcd   :  { %v19554_v23 = vld [vmem:[%s24192_s4 + $0x2a0] sm:$0xff]   ;;  %v19564_v40 = vld [vmem:[%s24192_s4 + $0x2f8] sm:$0xff]   ;;  %v19571_v55 = vld [vmem:[%s24192_s4 + $0x348] sm:$0xff]  }
 0xfce   :  { %17781 = vmatpush3.bf16.msra.mxu1 %v19529_v56  ;;  %17803 = vmatpush3.bf16.msra.mxu0 %v19530_v57  ;;  %v19565_v41 = vld [vmem:[%s24192_s4 + $0x238] sm:$0xff]   ;;  %v19567_v44 = vld [vmem:[%s24192_s4 + $0x340] sm:$0xff]   ;;  %v19572_v43 = vld [vmem:[%s24192_s4 + $0x3c8] sm:$0xff]  }
 0xfcf   :  { %17782 = vmatprep.subr.bf16.mxu1 %v19531_v59  ;;  %17804 = vmatprep.subr.bf16.mxu0 %v19532_v60  ;;  %v19566_v42 = vld [vmem:[%s24192_s4 + $0x2b8] sm:$0xff]   ;;  %v19568_v45 = vld [vmem:[%s24192_s4 + $0x3c0] sm:$0xff]   ;;  %v19573_v56 = vld [vmem:[%s24192_s4 + $0x308] sm:$0xff]  }
 0xfd0   :  { %v19569_v47 = vld [vmem:[%s24192_s4 + $0x300] sm:$0xff]   ;;  %v19574_v57 = vld [vmem:[%s24192_s4 + $0x388] sm:$0xff]   ;;  %v19575_v59 = vld [vmem:[%s24192_s4 + $0x350] sm:$0xff]  }
 0xfd1   :  { %v19570_v54 = vld [vmem:[%s24192_s4 + $0x380] sm:$0xff]   ;;  %v19576_v60 = vld [vmem:[%s24192_s4 + $0x3d0] sm:$0xff]  }
 0xfd2   :  { %17783 = vmatpush3.bf16.msra.mxu1 %v19533_v63  ;;  %17805 = vmatpush3.bf16.msra.mxu0 %v19534_v2  ;;  %v19579_v63 = vld [vmem:[%s24192_s4 + $0x358] sm:$0xff]  }
 0xfd3   :  { %17812 = vmatprep.subr.bf16.mxu1 %v19535_v36  ;;  %17834 = vmatprep.subr.bf16.mxu0 %v19536_v3  ;;  %v19582_v2 = vld [vmem:[%s24192_s4 + $0x398] sm:$0xff]   ;;  %v19583_v36 = vld [vmem:[%s24192_s4 + $0x360] sm:$0xff]  }
 0xfd4   :  { %v19584_v3 = vld [vmem:[%s24192_s4 + $0x3e0] sm:$0xff]  }
 0xfd5   :  { %3144 = vmatmul.mubr.bf16.vlgmr.msra.gmra.mrb[60].mxu1 %v20851_v16  ;;  %3185 = vmatmul.mubr.bf16.vlgmr.msra.gmra.mrb[64].mxu0 %v20853_v17  ;;  %v19545_v16 = vld [vmem:[%s24192_s4 + $0x210] sm:$0xff]  }
 0xfd6   :  { %17813 = vmatpush3.bf16.msra.mxu1 %v19537_v4  ;;  %3225 = vmatprep.mubr.bf16.mxu1 %v20897_v12  ;;  %v19546_v17 = vld [vmem:[%s24192_s4 + $0x290] sm:$0xff]   ;;  %v19547_v12 = vld [vmem:[%s24192_s4 + $0x258] sm:$0xff]   ;;  %v19585_v4 = vld [vmem:[%s24192_s4 + $0x320] sm:$0xff]  }
 0xfd7   :  { %17835 = vmatpush3.bf16.msra.mxu0 %v19538_v7  ;;  %3266 = vmatprep.mubr.bf16.mxu0 %v20899_v13  ;;  %v19549_v13 = vld [vmem:[%s24192_s4 + $0x218] sm:$0xff]   ;;  %v19586_v7 = vld [vmem:[%s24192_s4 + $0x3a0] sm:$0xff]  }
 0xfd8   :  { %17814 = vmatprep.subr.bf16.mxu1 %v19539_v10  ;;  %17836 = vmatprep.subr.bf16.mxu0 %v19540_v38  ;;  %v19587_v10 = vld [vmem:[%s24192_s4 + $0x368] sm:$0xff]  }
 0xfd9   :  { %v19588_v38 = vld [vmem:[%s24192_s4 + $0x3e8] sm:$0xff]  }
 0xfda   :  { %17815 = vmatpush3.bf16.msra.mxu1 %v19541_v11  ;;  %v19589_v11 = vld [vmem:[%s24192_s4 + $0x328] sm:$0xff]  }
 0xfdb   :  { %17837 = vmatpush3.bf16.msra.mxu0 %v19542_v39  ;;  %17816 = vmatprep.subr.bf16.mxu1 %v19543_v14  ;;  %v19590_v39 = vld [vmem:[%s24192_s4 + $0x3a8] sm:$0xff]   ;;  %v19591_v14 = vld [vmem:[%s24192_s4 + $0x370] sm:$0xff]  }
 0xfdc   :  { %17838 = vmatprep.subr.bf16.mxu0 %v19544_v15  ;;  %v19592_v15 = vld [vmem:[%s24192_s4 + $0x3f0] sm:$0xff]  }
 0xfde   :  { %17817 = vmatpush3.bf16.msra.mxu1 %v19545_v16  ;;  %v19593_v16 = vld [vmem:[%s24192_s4 + $0x330] sm:$0xff]  }
 0xfdf   :  { %17839 = vmatpush3.bf16.msra.mxu0 %v19546_v17  ;;  %17818 = vmatprep.subr.bf16.mxu1 %v19547_v12  ;;  %v19594_v17 = vld [vmem:[%s24192_s4 + $0x3b0] sm:$0xff]   ;;  %v19595_v12 = vld [vmem:[%s24192_s4 + $0x378] sm:$0xff]  }
 0xfe0   :  { %17840 = vmatprep.subr.bf16.mxu0 %v19548_v18  ;;  %v19596_v18 = vld [vmem:[%s24192_s4 + $0x3f8] sm:$0xff]  }
 0xfe2   :  { %17819 = vmatpush3.bf16.msra.mxu1 %v19549_v13  ;;  %v19597_v13 = vld [vmem:[%s24192_s4 + $0x338] sm:$0xff]  }
 0xfe3   :  { %17841 = vmatpush3.bf16.msra.mxu0 %v19550_v19  ;;  %17820 = vmatprep.subr.bf16.mxu1 %v19551_v20  ;;  %v19598_v19 = vld [vmem:[%s24192_s4 + $0x3b8] sm:$0xff]  }
 0xfe4   :  { %17842 = vmatprep.subr.bf16.mxu0 %v19552_v21 }
 0xfe6   :  { %17821 = vmatpush3.bf16.msra.mxu1 %v19553_v22  ;;  %v15968_v22 = vld [vmem:[%s24190_s5 + $0xb] ss:$0 sm:$0xff] }
 0xfe7   :  { %17843 = vmatpush3.bf16.msra.mxu0 %v19554_v23  ;;  %17822 = vmatprep.subr.bf16.mxu1 %v19555_v24 }
 0xfe8   :  { %17844 = vmatprep.subr.bf16.mxu0 %v19556_v27 }
 0xfea   :  { %17823 = vmatpush3.bf16.msra.mxu1 %v19557_v30 }
 0xfeb   :  { %17845 = vmatpush3.bf16.msra.mxu0 %v19558_v31  ;;  %17824 = vmatprep.subr.bf16.mxu1 %v19559_v32 }
 0xfec   :  { %17846 = vmatprep.subr.bf16.mxu0 %v19560_v33 }
 0xfee   :  { %17825 = vmatpush3.bf16.msra.mxu1 %v19561_v34 }
 0xfef   :  { %17847 = vmatpush3.bf16.msra.mxu0 %v19562_v35  ;;  %17826 = vmatprep.subr.bf16.mxu1 %v19563_v37 }
 0xff0   :  { %17848 = vmatprep.subr.bf16.mxu0 %v19564_v40 }
 0xff2   :  { %17827 = vmatpush3.bf16.msra.mxu1 %v19565_v41 }
 0xff3   :  { %17849 = vmatpush3.bf16.msra.mxu0 %v19566_v42  ;;  %17856 = vmatprep.subr.bf16.mxu1 %v19567_v44 }
 0xff4   :  { %17878 = vmatprep.subr.bf16.mxu0 %v19568_v45 }
 0xff5   :  { %3226 = vmatmul.mubr.bf16.vlgmr.msra.gmra.mrb[64].mxu1 %v20887_v8  ;;  %v19577_v8 = vld [vmem:[%s24192_s4 + $0x310] sm:$0xff]  }
 0xff6   :  { %3267 = vmatmul.mubr.bf16.vlgmr.msra.gmra.mrb[68].mxu0 %v20889_v9  ;;  %17857 = vmatpush3.bf16.msra.mxu1 %v19569_v47  ;;  %v19578_v9 = vld [vmem:[%s24192_s4 + $0x390] sm:$0xff]  }
 0xff7   :  { %3307 = vmatprep.mubr.bf16.mxu1 %v20929_v61  ;;  %17879 = vmatpush3.bf16.msra.mxu0 %v19570_v54  ;;  %v19580_v61 = vld [vmem:[%s24192_s4 + $0x3d8] sm:$0xff]  }
 0xff8   :  { %3348 = vmatprep.mubr.bf16.mxu0 %v20931_v62  ;;  %17858 = vmatprep.subr.bf16.mxu1 %v19571_v55  ;;  %v19581_v62 = vld [vmem:[%s24192_s4 + $0x318] sm:$0xff]  }
 0xff9   :  { %17880 = vmatprep.subr.bf16.mxu0 %v19572_v43 }
 0xffa   :  { %17859 = vmatpush3.bf16.msra.mxu1 %v19573_v56 }
 0xffb   :  { %17881 = vmatpush3.bf16.msra.mxu0 %v19574_v57  ;;  %17860 = vmatprep.subr.bf16.mxu1 %v19575_v59 }
 0xffc   :  { %17882 = vmatprep.subr.bf16.mxu0 %v19576_v60 }
 0xffe   :  { %17861 = vmatpush3.bf16.msra.mxu1 %v19577_v8 }
 0xfff   :  { %17883 = vmatpush3.bf16.msra.mxu0 %v19578_v9  ;;  %17862 = vmatprep.subr.bf16.mxu1 %v19579_v63 }
0x1000   :  { %17884 = vmatprep.subr.bf16.mxu0 %v19580_v61 }
0x1002   :  { %17863 = vmatpush3.bf16.msra.mxu1 %v19581_v62 }
0x1003   :  { %17885 = vmatpush3.bf16.msra.mxu0 %v19582_v2  ;;  %17864 = vmatprep.subr.bf16.mxu1 %v19583_v36 }
0x1004   :  { %17886 = vmatprep.subr.bf16.mxu0 %v19584_v3 }
0x1006   :  { %17865 = vmatpush3.bf16.msra.mxu1 %v19585_v4 }
0x1007   :  { %17887 = vmatpush3.bf16.msra.mxu0 %v19586_v7  ;;  %17866 = vmatprep.subr.bf16.mxu1 %v19587_v10 }
0x1008   :  { %17888 = vmatprep.subr.bf16.mxu0 %v19588_v38 }
0x100a   :  { %17867 = vmatpush3.bf16.msra.mxu1 %v19589_v11 }
0x100b   :  { %17889 = vmatpush3.bf16.msra.mxu0 %v19590_v39  ;;  %17868 = vmatprep.subr.bf16.mxu1 %v19591_v14 }
0x100c   :  { %17890 = vmatprep.subr.bf16.mxu0 %v19592_v15 }
0x100e   :  { %17869 = vmatpush3.bf16.msra.mxu1 %v19593_v16 }
0x100f   :  { %17891 = vmatpush3.bf16.msra.mxu0 %v19594_v17  ;;  %17870 = vmatprep.subr.bf16.mxu1 %v19595_v12 }
0x1010   :  { %17892 = vmatprep.subr.bf16.mxu0 %v19596_v18 }
0x1012   :  { %17871 = vmatpush3.bf16.msra.mxu1 %v19597_v13 }
0x1013   :  { %17893 = vmatpush3.bf16.msra.mxu0 %v19598_v19  ;;  %18780 = vmatprep.subr.bf16.mxu1 %v20245_v5 }
0x1014   :  { %18788 = vmatprep.subr.bf16.mxu0 %v20245_v5 }
0x1015   :  { %3308 = vmatmul.mubr.bf16.vlgmr.msra.gmra.mrb[68].mxu1 %v20919_v46 }
0x1016   :  { %3349 = vmatmul.mubr.bf16.vlgmr.msra.gmra.mrb[72].mxu0 %v20921_v58  ;;  %18784 = vmatprep.mubr.msk.bf16.mxu1 %vm20247_vm0, %v20245_v5 }
0x1017   :  { %18790 = vmatprep.mubr.msk.bf16.mxu0 %vm20247_vm0, %v20245_v5 }
0x1088   :  { %v17740_v20 = vpop.f32.mrb[56].mxu1  ;;  %v17762_v21 = vpop.f32.mrb[60].mxu0 }
0x1089   :  { %v17741_v23 = vpop.f32.mrb[57].mxu1  ;;  %v17763_v24 = vpop.f32.mrb[61].mxu0 }
0x108a   :  { %v17742_v27 = vadd.f32 %v17741_v23, %v17740_v20  ;;  %v17764_v30 = vadd.f32 %v17763_v24, %v17762_v21  ;;  %v17743_v31 = vpop.f32.mrb[58].mxu1  ;;  %v17765_v46 = vpop.f32.mrb[62].mxu0 }
0x108b   :  { %v17744_v32 = vpop.f32.mrb[59].mxu1  ;;  %v17766_v58 = vpop.f32.mrb[63].mxu0 }
0x108c   :  { %v3064_v33 = vadd.f32 %v17742_v27, %v15968_v22  ;;  %v17745_v34 = vadd.f32 %v17744_v32, %v17743_v31  ;;  %v17767_v35 = vadd.f32 %v17766_v58, %v17765_v46 }
0x108e   :  { %v3105_v37 = vadd.f32 %v17764_v30, %v3064_v33  ;;  %v3067_v40 = vadd.f32 %v17745_v34, %v15968_v22 }
0x1090   :  { %v3108_v41 = vadd.f32 %v17767_v35, %v3067_v40 }
0x10a8   :  { %v17784_v42 = vpop.f32.mrb[60].mxu1  ;;  %v17806_v44 = vpop.f32.mrb[64].mxu0 }
0x10a9   :  { %v17785_v45 = vpop.f32.mrb[61].mxu1  ;;  %v17807_v47 = vpop.f32.mrb[65].mxu0 }
0x10aa   :  { %v17786_v54 = vadd.f32 %v17785_v45, %v17784_v42  ;;  %v17808_v55 = vadd.f32 %v17807_v47, %v17806_v44  ;;  %v17787_v43 = vpop.f32.mrb[62].mxu1  ;;  %v17809_v56 = vpop.f32.mrb[66].mxu0 }
0x10ab   :  { %v17788_v57 = vpop.f32.mrb[63].mxu1  ;;  %v17810_v59 = vpop.f32.mrb[67].mxu0 }
0x10ac   :  { %v3146_v60 = vadd.f32 %v17786_v54, %v3105_v37  ;;  %v17789_v8 = vadd.f32 %v17788_v57, %v17787_v43  ;;  %v17811_v9 = vadd.f32 %v17810_v59, %v17809_v56 }
0x10ae   :  { %v3187_v63 = vadd.f32 %v17808_v55, %v3146_v60  ;;  %v3149_v61 = vadd.f32 %v17789_v8, %v3108_v41  ;;  %v19600_v8 = vld [vmem:[%s24189_s2 + $0x38] sm:$0xff]  }
0x10b0   :  { %v3190_v62 = vadd.f32 %v17811_v9, %v3149_v61 }
0x10c8   :  { %v17828_v2 = vpop.f32.mrb[64].mxu1 }
0x10c9   :  { %v17850_v36 = vpop.f32.mrb[68].mxu0  ;;  %v17829_v3 = vpop.f32.mrb[65].mxu1 }
0x10ca   :  { %v17830_v4 = vadd.f32 %v17829_v3, %v17828_v2  ;;  %v17851_v7 = vpop.f32.mrb[69].mxu0  ;;  %v17831_v10 = vpop.f32.mrb[66].mxu1 }
0x10cb   :  { %v17852_v38 = vadd.f32 %v17851_v7, %v17850_v36  ;;  %v17853_v11 = vpop.f32.mrb[70].mxu0  ;;  %v17832_v39 = vpop.f32.mrb[67].mxu1 }
0x10cc   :  { %v3228_v14 = vadd.f32 %v17830_v4, %v3187_v63  ;;  %v17833_v15 = vadd.f32 %v17832_v39, %v17831_v10  ;;  %v17854_v16 = vpop.f32.mrb[71].mxu0  ;;  %v16097_v4 = vld [vmem:[%s24190_s5 + $0x9] ss:$0 sm:$0xff]  ;;  %v16098_v39 = vld [vmem:[%s24190_s5 + $0xa] ss:$0 sm:$0xff] }
0x10cd   :  { %v17855_v17 = vadd.f32 %v17854_v16, %v17853_v11 }
0x10ce   :  { %v3269_v12 = vadd.f32 %v17852_v38, %v3228_v14  ;;  %v3231_v18 = vadd.f32 %v17833_v15, %v3190_v62 }
0x10d0   :  { %v3272_v13 = vadd.f32 %v17855_v17, %v3231_v18 }
0x10e8   :  { %v17872_v19 = vpop.f32.mrb[68].mxu1 }
0x10e9   :  { %v17894_v20 = vpop.f32.mrb[72].mxu0  ;;  %v17873_v21 = vpop.f32.mrb[69].mxu1 }
0x10ea   :  { %v17874_v22 = vadd.f32 %v17873_v21, %v17872_v19  ;;  %v17895_v23 = vpop.f32.mrb[73].mxu0  ;;  %v17875_v24 = vpop.f32.mrb[70].mxu1 }
0x10eb   :  { %v17896_v27 = vadd.f32 %v17895_v23, %v17894_v20  ;;  %v17897_v30 = vpop.f32.mrb[74].mxu0  ;;  %v17876_v31 = vpop.f32.mrb[71].mxu1 }
0x10ec   :  { %v3310_v46 = vadd.f32 %v17874_v22, %v3269_v12  ;;  %v17877_v32 = vadd.f32 %v17876_v31, %v17875_v24  ;;  %v17898_v58 = vpop.f32.mrb[75].mxu0  ;;  %v16103_v12 = vld [vmem:[%s24190_s5 + $0xc] ss:$0 sm:$0xff] }
0x10ed   :  { %v17899_v33 = vadd.f32 %v17898_v58, %v17897_v30 }
0x10ee   :  { %v3313_v34 = vadd.f32 %v17877_v32, %v3272_v13  ;;  %v3351_v35 = vadd.f32 %v17896_v27, %v3310_v46 }
0x10f0   :  { %v3357_v37 = vadd.f32 %v3351_v35, %v20601_v25  ;;  %v3354_v40 = vadd.f32 %v17899_v33, %v3313_v34 }
0x10f2   :  { %v3361_v41 = vsel %vm150_vm1, %v3357_v37, 0.0  ;;  %v3358_v42 = vadd.f32 %v3354_v40, %v20603_v26  ;;  %v19599_v26 = vld [vmem:[%s24189_s2 + $0x30] sm:$0xff]  }
0x10f3   :  { %3362 = vadd.xlane.f32.xlu0 %v3361_v41  ;;  %18781 = vmatpush3.bf16.msra.mxu1 %v19599_v26 }
0x10f4   :  { %v3364_v44 = vsel %vm150_vm1, %v3358_v42, 0.0  ;;  %18782 = vmatprep.subr.bf16.mxu1 %v20245_v5 }
0x10f5   :  { %3365 = vadd.xlane.f32.xlu1 %v3364_v44 }
0x10f7   :  { %18783 = vmatpush3.bf16.msra.mxu1 %v19600_v8 }
0x10f8   :  { %18794 = vmatprep.subr.bf16.mxu1 %v20245_v5 }
0x1180   :  { %v3363_v45 = vpop.xlane.xlu0 %3362 }
0x1181   :  { %v3367_v47 = vmul.f32 0.03125, %v3363_v45 }
0x1182   :  { %v3366_v54 = vpop.xlane.xlu1 %3365 }
0x1183   :  { %v3369_v55 = vsub.f32 %v3357_v37, %v3367_v47  ;;  %v3368_v43 = vmul.f32 0.03125, %v3366_v54 }
0x1185   :  { %v3370_v56 = vsub.f32 %v3358_v42, %v3368_v43  ;;  %v3371_v57 = vmul.f32 %v3369_v55, %v3369_v55 }
0x1187   :  { %v3373_v59 = vsel %vm150_vm1, %v3371_v57, 0.0  ;;  %v3372_v60 = vmul.f32 %v3370_v56, %v3370_v56 }
0x1188   :  { %3374 = vadd.xlane.f32.xlu0 %v3373_v59 }
0x1189   :  { %v3376_v25 = vsel %vm150_vm1, %v3372_v60, 0.0 }
0x118a   :  { %3377 = vadd.xlane.f32.xlu1 %v3376_v25 }
0x1215   :  { %v3375_v9 = vpop.xlane.xlu0 %3374 }
0x1216   :  { %v3379_v63 = vmul.f32 0.03125, %v3375_v9 }
0x1217   :  { %v3378_v61 = vpop.xlane.xlu1 %3377 }
0x1218   :  { %v3381_v62 = vadd.f32 1e-05, %v3379_v63  ;;  %v3380_v2 = vmul.f32 0.03125, %v3378_v61 }
0x121a   :  { %20035 = vrsqrt.f32 %v3381_v62  ;;  %v3382_v36 = vadd.f32 1e-05, %v3380_v2 }
0x121c   :  { %20037 = vrsqrt.f32 %v3382_v36 }
0x1224   :  { %v20036_v3 = vpop.eup %20035 }
0x1225   :  { %v3385_v7 = vmul.f32 %v20036_v3, %v3369_v55 }
0x1226   :  { %v20038_v10 = vpop.eup %20037 }
0x1227   :  { %v3391_v38 = vmul.f32 %v16097_v4, %v3385_v7  ;;  %v3386_v11 = vmul.f32 %v20038_v10, %v3370_v56 }
0x1229   :  { %v3392_v14 = vmul.f32 %v16097_v4, %v3386_v11  ;;  %v21170_v15 = vadd.f32 %v16098_v39, %v3391_v38 }
0x122b   :  { %v21172_v16 = vadd.f32 %v16098_v39, %v3392_v14 }
0x122d   :  { %v3404_v17 = vpack.c.bf16 %v21172_v16, %v21170_v15 }
0x122f   :  { %18785 = vmatmul.mubr.msk.bf16.vlgmr.msra.gmra.mrb[72].mxu1 %vm150_vm1, %v3404_v17 }
0x1230   :  { %18796 = vmatprep.mubr.msk.bf16.mxu1 %vm20247_vm0, %v20245_v5 }
0x1302   :  { %v3459_v18 = vpop.f32.mrb[72].mxu1 }
0x1303   :  { %v3460_v13 = vadd.f32 %v16103_v12, %v3459_v18  ;;  %v18786_v19 = vpop.f32.mrb[73].mxu1 }
0x1304   :  { %v3462_v20 = vpop.f32.mrb[74].mxu1 }
0x1305   :  { %v21182_v21 = vpack.c.bf16 %v3460_v13, %v3460_v13  ;;  %v3463_v22 = vadd.f32 %v16103_v12, %v3462_v20  ;;  %v18787_v23 = vpop.f32.mrb[75].mxu1 }
0x1307   :  { %v21184_v24 = vpack.c.bf16 %v3463_v22, %v3463_v22  ;;  %3474 = vrot.lane.b32.xlu0 %v21182_v21, %s20248_s18 }
0x1309   :  { %3523 = vrot.lane.b32.xlu1 %v21184_v24, %s20248_s18 }
0x1379   :  { %v3475_v27 = vpop.permute.xlu0 %3474 }
0x137a   :  { %v3480_v30 = vsel %vm205_vm2, %v3475_v27, 0 }
0x137b   :  { %18789 = vmatpush3.bf16.xpose.msra.mxu0 %v3480_v30  ;;  %v3524_v31 = vpop.permute.xlu1 %3523 }
0x137c   :  { %v3529_v46 = vsel %vm205_vm2, %v3524_v31, 0  ;;  %18800 = vmatprep.subr.bf16.mxu0 %v20245_v5 }
0x137d   :  { %18795 = vmatpush3.bf16.xpose.msra.mxu1 %v3529_v46 }
0x137e   :  { %18806 = vmatprep.subr.bf16.mxu1 %v20245_v5 }
0x1382   :  { %18791 = vmatmul.mubr.msk.bf16.vlgmr.msra.gmra.mrb[76].mxu0 %vm205_vm2, %v21182_v21 }
0x1383   :  { %18802 = vmatprep.mubr.msk.bf16.mxu0 %vm20247_vm0, %v20245_v5 }
0x1384   :  { %18797 = vmatmul.mubr.msk.bf16.vlgmr.msra.gmra.mrb[76].mxu1 %vm205_vm2, %v21184_v24 }
0x1385   :  { %18808 = vmatprep.mubr.msk.bf16.mxu1 %vm20247_vm0, %v20245_v5 }
0x1455   :  { %v3516_v32 = vpop.f32.mrb[76].mxu0 }
0x1456   :  { %v18792_v58 = vpop.f32.mrb[77].mxu0  ;;  %v3571_v33 = vsel %vm205_vm2, %v3516_v32, -inf }
0x1457   :  { %v3519_v34 = vpop.f32.mrb[78].mxu0  ;;  %3572 = vmax.xlane.f32.xlu1 %v3571_v33  ;;  %v3565_v35 = vpop.f32.mrb[76].mxu1 }
0x1458   :  { %v18793_v37 = vpop.f32.mrb[79].mxu0  ;;  %v18798_v40 = vpop.f32.mrb[77].mxu1  ;;  %v3574_v41 = vsel %vm205_vm2, %v3565_v35, -inf }
0x1459   :  { %3575 = vmax.xlane.f32.xlu0 %v3574_v41  ;;  %v3568_v42 = vpop.f32.mrb[78].mxu1 }
0x145a   :  { %v18799_v44 = vpop.f32.mrb[79].mxu1 }
0x1468   :  { %3643 = vrot.lane.b32.xlu1 %v21184_v24, %s20249_s19 }
0x146f   :  { %3595 = vrot.lane.b32.xlu0 %v21182_v21, %s20249_s19 }
0x14e4   :  { %v3573_v45 = vpop.xlane.xlu1 %3572 }
0x14e5   :  { %v3577_v47 = vsub.f32 %v3516_v32, %v3573_v45 }
0x14e6   :  { %v3576_v54 = vpop.xlane.xlu0 %3575 }
0x14e7   :  { %v3579_v55 = vmul.f32 1.442695, %v3577_v47  ;;  %v3578_v43 = vsub.f32 %v3565_v35, %v3576_v54 }
0x14e8   :  { %v3644_v56 = vpop.permute.xlu1 %3643 }
0x14e9   :  { %20039 = vpow2.f32 %v3579_v55  ;;  %v3581_v57 = vmul.f32 1.442695, %v3578_v43  ;;  %v3649_v59 = vsel %vm330_vm3, %v3644_v56, 0 }
0x14ea   :  { %18807 = vmatpush3.bf16.msra.mxu1 %v3649_v59  ;;  %v3596_v60 = vpop.permute.xlu0 %3595 }
0x14eb   :  { %20041 = vpow2.f32 %v3581_v57  ;;  %v3601_v25 = vsel %vm330_vm3, %v3596_v60, 0  ;;  %18818 = vmatprep.subr.bf16.mxu1 %v20245_v5 }
0x14ec   :  { %18801 = vmatpush3.bf16.msra.mxu0 %v3601_v25 }
0x14ed   :  { %18812 = vmatprep.subr.bf16.mxu0 %v20245_v5 }
0x14f3   :  { %v20040_v26 = vpop.eup %20039 }
0x14f4   :  { %v3583_v8 = vsel %vm205_vm2, %v20040_v26, 0.0 }
0x14f5   :  { %v20042_v9 = vpop.eup %20041  ;;  %3584 = vadd.xlane.f32.xlu0 %v3583_v8 }
0x14f6   :  { %v3586_v63 = vsel %vm205_vm2, %v20042_v9, 0.0 }
0x14f7   :  { %3587 = vadd.xlane.f32.xlu1 %v3586_v63 }
0x1508   :  { %3694 = vrot.lane.b32.xlu1 %v21182_v21, %s20250_s20 }
0x150b   :  { %3744 = vrot.lane.b32.xlu0 %v21184_v24, %s20250_s20 }
0x150c   :  { %3692 = vrot.lane.b32.xlu1 %v21182_v21, %s20251_s21 }
0x150f   :  { %3742 = vrot.lane.b32.xlu0 %v21184_v24, %s20251_s21 }
0x1582   :  { %v3585_v61 = vpop.xlane.xlu0 %3584 }
0x1583   :  { %20043 = vrcp.f32 %v3585_v61 }
0x1584   :  { %v3588_v62 = vpop.xlane.xlu1 %3587 }
0x1585   :  { %20045 = vrcp.f32 %v3588_v62 }
0x1586   :  { %v3745_v38 = vpop.permute.xlu0 %3744 }
0x1587   :  { %v3750_v14 = vsel %vm205_vm2, %v3745_v38, 0 }
0x1588   :  { %v3695_v4 = vpop.permute.xlu1 %3694 }
0x1589   :  { %v3700_v11 = vsel %vm205_vm2, %v3695_v4, 0  ;;  %v16107_v4 = vld [vmem:[%s24189_s2 + $0x40] sm:$0xf] }
0x158a   :  { %v3743_v12 = vpop.permute.xlu0 %3742 }
0x158c   :  { %v3693_v17 = vpop.permute.xlu1 %3692 }
0x158d   :  { %v20044_v2 = vpop.eup %20043 }
0x158e   :  { %v3591_v36 = vmul.f32 %v20044_v2, %v20040_v26  ;;  %v16108_v2 = vld [vmem:[%s24189_s2 + $0x44] sm:$0xf] }
0x158f   :  { %v20046_v3 = vpop.eup %20045  ;;  %v3917_v38 = vsel %vm330_vm3, %v16108_v2, 0 }
0x1590   :  { %v3593_v7 = vpack.c.bf16 %v3591_v36, %v3591_v36  ;;  %v3592_v10 = vmul.f32 %v20046_v3, %v20042_v9 }
0x1592   :  { %18803 = vmatmul.mubr.msk.bf16.vlgmr.msra.gmra.mrb[80].mxu0 %vm205_vm2, %v3593_v7  ;;  %v3594_v39 = vpack.c.bf16 %v3592_v10, %v3592_v10 }
0x1593   :  { %18813 = vmatpush3.bf16.xpose.msra.mxu0 %v3700_v11  ;;  %18814 = vmatprep.mubr.msk.bf16.mxu0 %vm20247_vm0, %v20245_v5 }
0x1594   :  { %18809 = vmatmul.mubr.msk.bf16.vlgmr.msra.gmra.mrb[80].mxu1 %vm205_vm2, %v3594_v39  ;;  %18824 = vmatprep.subr.bf16.mxu0 %v20245_v5  ;;  %v3964_v39 = vsel %vm330_vm3, %v16107_v4, 0 }
0x1595   :  { %18819 = vmatpush3.bf16.xpose.msra.mxu1 %v3750_v14  ;;  %18820 = vmatprep.mubr.msk.bf16.mxu1 %vm20247_vm0, %v20245_v5 }
0x1596   :  { %18830 = vmatprep.subr.bf16.mxu1 %v20245_v5 }
0x159a   :  { %18815 = vmatmul.mubr.msk.bf16.vlgmr.msra.gmra.mrb[84].mxu0 %vm205_vm2, %v3693_v17 }
0x159b   :  { %18826 = vmatprep.mubr.msk.bf16.mxu0 %vm20247_vm0, %v20245_v5 }
0x159c   :  { %18821 = vmatmul.mubr.msk.bf16.vlgmr.msra.gmra.mrb[84].mxu1 %vm205_vm2, %v3743_v12 }
0x159d   :  { %18832 = vmatprep.mubr.msk.bf16.mxu1 %vm20247_vm0, %v20245_v5 }
0x1665   :  { %v21238_v18 = vpop.f32.mrb[80].mxu0 }
0x1666   :  { %v18804_v13 = vpop.f32.mrb[81].mxu0 }
0x1667   :  { %v3640_v19 = vpop.f32.mrb[82].mxu0  ;;  %v21240_v20 = vpop.f32.mrb[80].mxu1 }
0x1668   :  { %v3691_v22 = vpack.c.bf16 %v21240_v20, %v21238_v18  ;;  %v18805_v23 = vpop.f32.mrb[83].mxu0  ;;  %v18810_v27 = vpop.f32.mrb[81].mxu1 }
0x1669   :  { %v3688_v30 = vpop.f32.mrb[82].mxu1 }
0x166a   :  { %v18811_v31 = vpop.f32.mrb[83].mxu1 }
0x166d   :  { %v3736_v46 = vpop.f32.mrb[84].mxu0 }
0x166e   :  { %v18816_v32 = vpop.f32.mrb[85].mxu0  ;;  %v3792_v58 = vsel %vm205_vm2, %v3736_v46, -inf }
0x166f   :  { %3793 = vmax.xlane.f32.xlu1 %v3792_v58  ;;  %v3739_v33 = vpop.f32.mrb[86].mxu0  ;;  %v3786_v34 = vpop.f32.mrb[84].mxu1 }
0x1670   :  { %v18817_v35 = vpop.f32.mrb[87].mxu0  ;;  %v18822_v37 = vpop.f32.mrb[85].mxu1  ;;  %v3795_v40 = vsel %vm205_vm2, %v3786_v34, -inf }
0x1671   :  { %3796 = vmax.xlane.f32.xlu0 %v3795_v40  ;;  %v3789_v41 = vpop.f32.mrb[86].mxu1 }
0x1672   :  { %v18823_v42 = vpop.f32.mrb[87].mxu1 }
0x16fc   :  { %v3794_v44 = vpop.xlane.xlu1 %3793 }
0x16fd   :  { %v3798_v45 = vsub.f32 %v3736_v46, %v3794_v44 }
0x16fe   :  { %v3797_v47 = vpop.xlane.xlu0 %3796 }
0x16ff   :  { %v3800_v54 = vmul.f32 1.442695, %v3798_v45  ;;  %v3799_v55 = vsub.f32 %v3786_v34, %v3797_v47 }
0x1701   :  { %20047 = vpow2.f32 %v3800_v54  ;;  %v3802_v43 = vmul.f32 1.442695, %v3799_v55 }
0x1703   :  { %20049 = vpow2.f32 %v3802_v43 }
0x170b   :  { %v20048_v56 = vpop.eup %20047 }
0x170c   :  { %v3804_v57 = vsel %vm205_vm2, %v20048_v56, 0.0 }
0x170d   :  { %v20050_v59 = vpop.eup %20049  ;;  %3805 = vadd.xlane.f32.xlu0 %v3804_v57 }
0x170e   :  { %v3807_v60 = vsel %vm205_vm2, %v20050_v59, 0.0 }
0x170f   :  { %3808 = vadd.xlane.f32.xlu1 %v3807_v60 }
0x1720   :  { %3864 = vrot.lane.b32.xlu1 %v21184_v24, %s20252_s22 }
0x1723   :  { %3816 = vrot.lane.b32.xlu0 %v21182_v21, %s20252_s22 }
0x1724   :  { %4009 = vrot.lane.b32.xlu1 %v21182_v21, %s20253_s23 }
0x1727   :  { %4059 = vrot.lane.b32.xlu0 %v21184_v24, %s20253_s23 }
0x1728   :  { %4007 = vrot.lane.b32.xlu1 %v21182_v21, %s20254_s24 }
0x172b   :  { %4057 = vrot.lane.b32.xlu0 %v21184_v24, %s20254_s24 }
0x179a   :  { %v3806_v25 = vpop.xlane.xlu0 %3805 }
0x179b   :  { %20051 = vrcp.f32 %v3806_v25 }
0x179c   :  { %v3809_v26 = vpop.xlane.xlu1 %3808 }
0x179d   :  { %20053 = vrcp.f32 %v3809_v26 }
0x179e   :  { %v3817_v8 = vpop.permute.xlu0 %3816 }
0x179f   :  { %v3822_v9 = vsel %vm330_vm3, %v3817_v8, 0 }
0x17a0   :  { %v3865_v63 = vpop.permute.xlu1 %3864  ;;  %18825 = vmatpush3.bf16.msra.mxu0 %v3822_v9 }
0x17a1   :  { %v3870_v61 = vsel %vm330_vm3, %v3865_v63, 0  ;;  %18836 = vmatprep.subr.bf16.mxu0 %v20245_v5 }
0x17a2   :  { %18831 = vmatpush3.bf16.msra.mxu1 %v3870_v61  ;;  %v4060_v14 = vpop.permute.xlu0 %4059 }
0x17a3   :  { %18842 = vmatprep.subr.bf16.mxu1 %v20245_v5  ;;  %v4065_v17 = vsel %vm205_vm2, %v4060_v14, 0 }
0x17a4   :  { %v4010_v19 = vpop.permute.xlu1 %4009 }
0x17a5   :  { %v20052_v62 = vpop.eup %20051  ;;  %v4015_v46 = vsel %vm205_vm2, %v4010_v19, 0 }
0x17a6   :  { %v3812_v36 = vmul.f32 %v20052_v62, %v20048_v56  ;;  %v4058_v12 = vpop.permute.xlu0 %4057 }
0x17a7   :  { %v20054_v3 = vpop.eup %20053 }
0x17a8   :  { %v3814_v7 = vpack.c.bf16 %v3812_v36, %v3812_v36  ;;  %v3813_v10 = vmul.f32 %v20054_v3, %v20050_v59  ;;  %v4008_v34 = vpop.permute.xlu1 %4007 }
0x17aa   :  { %18827 = vmatmul.mubr.msk.bf16.vlgmr.msra.gmra.mrb[88].mxu0 %vm205_vm2, %v3814_v7  ;;  %v3815_v11 = vpack.c.bf16 %v3813_v10, %v3813_v10 }
0x17ab   :  { %18837 = vmatpush3.bf16.msra.mxu0 %v3917_v38  ;;  %18838 = vmatprep.mubr.msk.bf16.mxu0 %vm20247_vm0, %v20245_v5 }
0x17ac   :  { %18833 = vmatmul.mubr.msk.bf16.vlgmr.msra.gmra.mrb[88].mxu1 %vm205_vm2, %v3815_v11  ;;  %18848 = vmatprep.subr.bf16.mxu0 %v20245_v5 }
0x17ad   :  { %18843 = vmatpush3.bf16.msra.mxu1 %v3964_v39  ;;  %18844 = vmatprep.mubr.msk.bf16.mxu1 %vm20247_vm0, %v20245_v5 }
0x17ae   :  { %18854 = vmatprep.subr.bf16.mxu1 %v20245_v5 }
0x17b4   :  { %18845 = vmatmul.mubr.msk.bf16.vlgmr.msra.gmra.mrb[92].mxu1 %vm205_vm2, %v3691_v22 }
0x17b5   :  { %18856 = vmatprep.mubr.msk.bf16.mxu1 %vm20247_vm0, %v20245_v5 }
0x17b6   :  { %18855 = vmatpush3.bf16.xpose.msra.mxu1 %v4065_v17 }
0x17b7   :  { %18866 = vmatprep.subr.bf16.mxu1 %v20245_v5 }
0x17bd   :  { %18857 = vmatmul.mubr.msk.bf16.vlgmr.msra.gmra.mrb[96].mxu1 %vm205_vm2, %v4058_v12 }
0x17be   :  { %18868 = vmatprep.mubr.msk.bf16.mxu1 %vm20247_vm0, %v20245_v5 }
0x187d   :  { %v3858_v13 = vpop.f32.mrb[88].mxu0 }
0x187e   :  { %v18828_v23 = vpop.f32.mrb[89].mxu0 }
0x187f   :  { %v3861_v18 = vpop.f32.mrb[90].mxu0  ;;  %v3906_v20 = vpop.f32.mrb[88].mxu1 }
0x1880   :  { %v3912_v22 = vpack.c.bf16 %v3906_v20, %v3858_v13  ;;  %v18829_v27 = vpop.f32.mrb[91].mxu0  ;;  %v18834_v30 = vpop.f32.mrb[89].mxu1 }
0x1881   :  { %v3909_v31 = vpop.f32.mrb[90].mxu1  ;;  %v16109_v30 = vld [vmem:[%s24189_s2 + $0x48] sm:$0xf] }
0x1882   :  { %v18835_v32 = vpop.f32.mrb[91].mxu1  ;;  %18839 = vmatmul.mubr.msk.bf16.vlgmr.msra.gmra.mrb[92].mxu0 %vm205_vm2, %v3912_v22 }
0x1883   :  { %18849 = vmatpush3.bf16.xpose.msra.mxu0 %v4015_v46  ;;  %18850 = vmatprep.mubr.msk.bf16.mxu0 %vm20247_vm0, %v20245_v5  ;;  %v4232_v32 = vsel %vm330_vm3, %v16109_v30, 0 }
0x1884   :  { %18860 = vmatprep.subr.bf16.mxu0 %v20245_v5 }
0x1887   :  { %v4000_v58 = vpop.f32.mrb[92].mxu1 }
0x1888   :  { %v18846_v33 = vpop.f32.mrb[93].mxu1 }
0x1889   :  { %v4003_v35 = vpop.f32.mrb[94].mxu1 }
0x188a   :  { %v18847_v37 = vpop.f32.mrb[95].mxu1  ;;  %18851 = vmatmul.mubr.msk.bf16.vlgmr.msra.gmra.mrb[96].mxu0 %vm205_vm2, %v4008_v34 }
0x188b   :  { %18862 = vmatprep.mubr.msk.bf16.mxu0 %vm20247_vm0, %v20245_v5 }
0x1890   :  { %v4101_v40 = vpop.f32.mrb[96].mxu1 }
0x1891   :  { %v18858_v41 = vpop.f32.mrb[97].mxu1  ;;  %v4110_v42 = vsel %vm205_vm2, %v4101_v40, -inf }
0x1892   :  { %4111 = vmax.xlane.f32.xlu0 %v4110_v42  ;;  %v4104_v44 = vpop.f32.mrb[98].mxu1 }
0x1893   :  { %v18859_v45 = vpop.f32.mrb[99].mxu1 }
0x191f   :  { %v4112_v47 = vpop.xlane.xlu0 %4111 }
0x1920   :  { %v4114_v54 = vsub.f32 %v4101_v40, %v4112_v47 }
0x1922   :  { %v4117_v55 = vmul.f32 1.442695, %v4114_v54 }
0x1924   :  { %20055 = vpow2.f32 %v4117_v55 }
0x192e   :  { %v20056_v63 = vpop.eup %20055 }
0x192f   :  { %v4122_v2 = vsel %vm205_vm2, %v20056_v63, 0.0 }
0x1955   :  { %v3953_v43 = vpop.f32.mrb[92].mxu0 }
0x1956   :  { %v21300_v56 = vadd.f32 %v4000_v58, %v3953_v43  ;;  %v18840_v57 = vpop.f32.mrb[93].mxu0 }
0x1957   :  { %v3956_v59 = vpop.f32.mrb[94].mxu0 }
0x1958   :  { %v21302_v60 = vadd.f32 %v4003_v35, %v3956_v59  ;;  %v18841_v25 = vpop.f32.mrb[95].mxu0 }
0x195d   :  { %v4051_v26 = vpop.f32.mrb[96].mxu0 }
0x195e   :  { %v18852_v8 = vpop.f32.mrb[97].mxu0  ;;  %v4107_v9 = vsel %vm205_vm2, %v4051_v26, -inf }
0x195f   :  { %4108 = vmax.xlane.f32.xlu1 %v4107_v9  ;;  %v4054_v61 = vpop.f32.mrb[98].mxu0 }
0x1960   :  { %v18853_v62 = vpop.f32.mrb[99].mxu0 }
0x1963   :  { %4123 = vadd.xlane.f32.xlu1 %v4122_v2 }
0x1974   :  { %4179 = vrot.lane.b32.xlu1 %v21184_v24, %s20255_s29 }
0x1978   :  { %4279 = vrot.lane.b32.xlu1 %v21182_v21, %s20256_s0 }
0x197c   :  { %4277 = vrot.lane.b32.xlu1 %v21182_v21, %s20257_s30 }
0x19ec   :  { %v4109_v36 = vpop.xlane.xlu1 %4108 }
0x19ed   :  { %v4113_v3 = vsub.f32 %v4051_v26, %v4109_v36 }
0x19ef   :  { %v4115_v4 = vmul.f32 1.442695, %v4113_v3 }
0x19f0   :  { %v4124_v7 = vpop.xlane.xlu1 %4123 }
0x19f1   :  { %20057 = vpow2.f32 %v4115_v4 }
0x19f2   :  { %20059 = vrcp.f32 %v4124_v7 }
0x19f4   :  { %v4180_v10 = vpop.permute.xlu1 %4179 }
0x19f5   :  { %v4185_v38 = vsel %vm330_vm3, %v4180_v10, 0 }
0x19f6   :  { %18867 = vmatpush3.bf16.msra.mxu1 %v4185_v38 }
0x19f7   :  { %18878 = vmatprep.subr.bf16.mxu1 %v20245_v5 }
0x19f8   :  { %v4280_v12 = vpop.permute.xlu1 %4279 }
0x19f9   :  { %v4285_v19 = vsel %vm205_vm2, %v4280_v12, 0 }
0x19fb   :  { %v20058_v11 = vpop.eup %20057 }
0x19fc   :  { %v20060_v39 = vpop.eup %20059  ;;  %v4119_v14 = vsel %vm205_vm2, %v20058_v11, 0.0  ;;  %v4278_v23 = vpop.permute.xlu1 %4277 }
0x19fd   :  { %4120 = vadd.xlane.f32.xlu0 %v4119_v14  ;;  %v4128_v17 = vmul.f32 %v20060_v39, %v20056_v63 }
0x19ff   :  { %v4130_v13 = vpack.c.bf16 %v4128_v17, %v4128_v17 }
0x1a01   :  { %18869 = vmatmul.mubr.msk.bf16.vlgmr.msra.gmra.mrb[100].mxu1 %vm205_vm2, %v4130_v13 }
0x1a02   :  { %18879 = vmatpush3.bf16.xpose.msra.mxu1 %v4285_v19  ;;  %18880 = vmatprep.mubr.msk.bf16.mxu1 %vm20247_vm0, %v20245_v5 }
0x1a03   :  { %18890 = vmatprep.subr.bf16.mxu1 %v20245_v5 }
0x1a09   :  { %18881 = vmatmul.mubr.msk.bf16.vlgmr.msra.gmra.mrb[104].mxu1 %vm205_vm2, %v4278_v23 }
0x1a0a   :  { %18892 = vmatprep.mubr.msk.bf16.mxu1 %vm20247_vm0, %v20245_v5 }
0x1a13   :  { %4131 = vrot.lane.b32.xlu0 %v21182_v21, %s20255_s29 }
0x1a17   :  { %4329 = vrot.lane.b32.xlu0 %v21184_v24, %s20256_s0 }
0x1a1b   :  { %4327 = vrot.lane.b32.xlu0 %v21184_v24, %s20257_s30 }
0x1a8a   :  { %v4121_v18 = vpop.xlane.xlu0 %4120 }
0x1a8b   :  { %20061 = vrcp.f32 %v4121_v18 }
0x1a8e   :  { %v4132_v20 = vpop.permute.xlu0 %4131 }
0x1a8f   :  { %v4137_v22 = vsel %vm330_vm3, %v4132_v20, 0 }
0x1a90   :  { %18861 = vmatpush3.bf16.msra.mxu0 %v4137_v22 }
0x1a91   :  { %18872 = vmatprep.subr.bf16.mxu0 %v20245_v5 }
0x1a92   :  { %v4330_v45 = vpop.permute.xlu0 %4329 }
0x1a93   :  { %v4335_v57 = vsel %vm205_vm2, %v4330_v45, 0 }
0x1a95   :  { %v20062_v27 = vpop.eup %20061 }
0x1a96   :  { %v4127_v31 = vmul.f32 %v20062_v27, %v20058_v11  ;;  %v4328_v25 = vpop.permute.xlu0 %4327 }
0x1a98   :  { %v4129_v46 = vpack.c.bf16 %v4127_v31, %v4127_v31 }
0x1a9a   :  { %18863 = vmatmul.mubr.msk.bf16.vlgmr.msra.gmra.mrb[100].mxu0 %vm205_vm2, %v4129_v46 }
0x1a9b   :  { %18873 = vmatpush3.bf16.msra.mxu0 %v4232_v32  ;;  %18874 = vmatprep.mubr.msk.bf16.mxu0 %vm20247_vm0, %v20245_v5 }
0x1a9c   :  { %18884 = vmatprep.subr.bf16.mxu0 %v20245_v5 }
0x1ad4   :  { %v4221_v58 = vpop.f32.mrb[100].mxu1 }
0x1ad5   :  { %v18870_v33 = vpop.f32.mrb[101].mxu1 }
0x1ad6   :  { %v4224_v34 = vpop.f32.mrb[102].mxu1 }
0x1ad7   :  { %v18871_v35 = vpop.f32.mrb[103].mxu1 }
0x1adc   :  { %v4321_v37 = vpop.f32.mrb[104].mxu1 }
0x1add   :  { %v18882_v40 = vpop.f32.mrb[105].mxu1  ;;  %v4377_v41 = vsel %vm205_vm2, %v4321_v37, -inf }
0x1ade   :  { %4378 = vmax.xlane.f32.xlu1 %v4377_v41  ;;  %v4324_v42 = vpop.f32.mrb[106].mxu1 }
0x1adf   :  { %v18883_v44 = vpop.f32.mrb[107].mxu1 }
0x1b6b   :  { %v4379_v26 = vpop.xlane.xlu1 %4378 }
0x1b6c   :  { %v4383_v8 = vsub.f32 %v4321_v37, %v4379_v26 }
0x1b6d   :  { %v4173_v47 = vpop.f32.mrb[100].mxu0 }
0x1b6e   :  { %v4227_v54 = vpack.c.bf16 %v4221_v58, %v4173_v47  ;;  %v18864_v55 = vpop.f32.mrb[101].mxu0  ;;  %v4385_v9 = vmul.f32 1.442695, %v4383_v8 }
0x1b6f   :  { %v4176_v43 = vpop.f32.mrb[102].mxu0  ;;  %v16131_v55 = vld [vmem:[%s24190_s5 + $0xd] ss:$0 sm:$0xff] }
0x1b70   :  { %v18865_v59 = vpop.f32.mrb[103].mxu0  ;;  %18875 = vmatmul.mubr.msk.bf16.vlgmr.msra.gmra.mrb[104].mxu0 %vm205_vm2, %v4227_v54  ;;  %20063 = vpow2.f32 %v4385_v9 }
0x1b71   :  { %18885 = vmatpush3.bf16.xpose.msra.mxu0 %v4335_v57  ;;  %18886 = vmatprep.mubr.msk.bf16.mxu0 %vm20247_vm0, %v20245_v5 }
0x1b72   :  { %18896 = vmatprep.subr.bf16.mxu0 %v20245_v5 }
0x1b78   :  { %18887 = vmatmul.mubr.msk.bf16.vlgmr.msra.gmra.mrb[108].mxu0 %vm205_vm2, %v4328_v25 }
0x1b79   :  { %18898 = vmatprep.mubr.msk.bf16.mxu0 %vm20247_vm0, %v20245_v5 }
0x1b7a   :  { %v20064_v38 = vpop.eup %20063 }
0x1b7b   :  { %v4389_v14 = vsel %vm205_vm2, %v20064_v38, 0.0 }
0x1c43   :  { %v4268_v63 = vpop.f32.mrb[104].mxu0 }
0x1c44   :  { %v4275_v61 = vadd.f32 %v4268_v63, %v21300_v56  ;;  %v18876_v62 = vpop.f32.mrb[105].mxu0 }
0x1c45   :  { %v4271_v2 = vpop.f32.mrb[106].mxu0 }
0x1c46   :  { %v4276_v36 = vadd.f32 %v4271_v2, %v21302_v60  ;;  %v18877_v3 = vpop.f32.mrb[107].mxu0 }
0x1c4b   :  { %v4371_v4 = vpop.f32.mrb[108].mxu0 }
0x1c4c   :  { %v18888_v7 = vpop.f32.mrb[109].mxu0  ;;  %v4380_v10 = vsel %vm205_vm2, %v4371_v4, -inf }
0x1c4d   :  { %4381 = vmax.xlane.f32.xlu0 %v4380_v10  ;;  %v4374_v11 = vpop.f32.mrb[110].mxu0 }
0x1c4e   :  { %v18889_v39 = vpop.f32.mrb[111].mxu0 }
0x1c51   :  { %4390 = vadd.xlane.f32.xlu0 %v4389_v14  ;;  %v16134_v14 = vld [vmem:[%s24191_s3 + $0x100] sm:$0xff] }
0x1c67   :  { %4401 = vrot.lane.b32.xlu0 %v21182_v21, %s20258_s10  ;;  %v16110_v21 = vld [vmem:[%s24189_s2 + $0x4c] sm:$0xf] }
0x1c68   :  { %v4502_v30 = vsel %vm330_vm3, %v16110_v21, 0  ;;  %v16159_v21 = vld [vmem:[%s24191_s3 + $0x1c8] sm:$0xff] }
0x1cda   :  { %v4382_v56 = vpop.xlane.xlu0 %4381 }
0x1cdb   :  { %v4384_v17 = vsub.f32 %v4371_v4, %v4382_v56  ;;  %v16142_v56 = vld [vmem:[%s24191_s3 + $0x140] sm:$0xff] }
0x1cdd   :  { %v4387_v12 = vmul.f32 1.442695, %v4384_v17  ;;  %v16135_v17 = vld [vmem:[%s24191_s3 + $0x108] sm:$0xff] }
0x1cde   :  { %v4391_v13 = vpop.xlane.xlu0 %4390 }
0x1cdf   :  { %20065 = vpow2.f32 %v4387_v12  ;;  %v16169_v12 = vcombine.high %v16134_v14, %v16142_v56 }
0x1ce0   :  { %20067 = vrcp.f32 %v4391_v13  ;;  %v16143_v13 = vld [vmem:[%s24191_s3 + $0x148] sm:$0xff] }
0x1ce2   :  { %v4402_v60 = vpop.permute.xlu0 %4401 }
0x1ce3   :  { %v4407_v19 = vsel %vm330_vm3, %v4402_v60, 0  ;;  %v16168_v60 = vcombine.low %v16134_v14, %v16142_v56 }
0x1ce4   :  { %18891 = vmatpush3.bf16.msra.mxu1 %v4407_v19  ;;  %v16170_v19 = vcombine.low %v16135_v17, %v16143_v13 }
0x1ce5   :  { %18902 = vmatprep.subr.bf16.mxu1 %v20245_v5 }
0x1ce9   :  { %v20066_v23 = vpop.eup %20065 }
0x1cea   :  { %v20068_v18 = vpop.eup %20067  ;;  %v4392_v20 = vsel %vm205_vm2, %v20066_v23, 0.0 }
0x1ceb   :  { %4393 = vadd.xlane.f32.xlu1 %v4392_v20  ;;  %v4397_v22 = vmul.f32 %v20068_v18, %v20064_v38  ;;  %v16150_v18 = vld [vmem:[%s24191_s3 + $0x180] sm:$0xff] }
0x1cec   :  { %v16158_v20 = vld [vmem:[%s24191_s3 + $0x1c0] sm:$0xff] }
0x1ced   :  { %v4399_v27 = vpack.c.bf16 %v4397_v22, %v4397_v22  ;;  %v16151_v22 = vld [vmem:[%s24191_s3 + $0x188] sm:$0xff] }
0x1cef   :  { %18893 = vmatmul.mubr.msk.bf16.vlgmr.msra.gmra.mrb[108].mxu1 %vm205_vm2, %v4399_v27  ;;  %v16185_v27 = vcombine.high %v16150_v18, %v16158_v20 }
0x1cf0   :  { %18904 = vmatprep.mubr.msk.bf16.mxu1 %vm20247_vm0, %v20245_v5  ;;  %18903 = vmatpush3.bf16.msra.mxu1 %v4502_v30  ;;  %v16184_v30 = vcombine.low %v16150_v18, %v16158_v20 }
0x1cfc   :  { %4449 = vrot.lane.b32.xlu1 %v21184_v24, %s20258_s10 }
0x1d78   :  { %v4394_v31 = vpop.xlane.xlu1 %4393 }
0x1d79   :  { %20069 = vrcp.f32 %v4394_v31  ;;  %v16186_v31 = vcombine.low %v16151_v22, %v16159_v21 }
0x1d7c   :  { %v4450_v46 = vpop.permute.xlu1 %4449 }
0x1d7d   :  { %v4455_v32 = vsel %vm330_vm3, %v4450_v46, 0  ;;  %v16187_v46 = vcombine.high %v16151_v22, %v16159_v21  ;;  %v16148_v21 = vld [vmem:[%s24191_s3 + $0x170] sm:$0xff] }
0x1d7e   :  { %18897 = vmatpush3.bf16.msra.mxu0 %v4455_v32  ;;  %v16136_v32 = vld [vmem:[%s24191_s3 + $0x110] sm:$0xff] }
0x1d7f   :  { %4878 = vmatprep.subr.bf16.mxu0 %v16169_v12  ;;  %v16154_v12 = vld [vmem:[%s24191_s3 + $0x1a0] sm:$0xff] }
0x1d83   :  { %v20070_v58 = vpop.eup %20069 }
0x1d84   :  { %v4398_v33 = vmul.f32 %v20070_v58, %v20066_v23  ;;  %v16171_v23 = vcombine.high %v16135_v17, %v16143_v13  ;;  %v16144_v58 = vld [vmem:[%s24191_s3 + $0x150] sm:$0xff]  ;;  %v16162_v13 = vld [vmem:[%s24191_s3 + $0x1e0] sm:$0xff] }
0x1d85   :  { %v16193_v20 = vcombine.high %v16154_v12, %v16162_v13 }
0x1d86   :  { %v4400_v34 = vpack.c.bf16 %v4398_v33, %v4398_v33  ;;  %4921 = vmatprep.subr.bf16.mxu1 %v16171_v23  ;;  %v16137_v33 = vld [vmem:[%s24191_s3 + $0x118] sm:$0xff] }
0x1d88   :  { %18899 = vmatmul.mubr.msk.bf16.vlgmr.msra.gmra.mrb[112].mxu0 %vm205_vm2, %v4400_v34  ;;  %v16172_v34 = vcombine.low %v16136_v32, %v16144_v58 }
0x1d89   :  { %4910 = vmatprep.mubr.bf16.mxu0 %v20244_v1  ;;  %4879 = vmatpush1.bf16.msra.mxu0 %v16168_v60  ;;  %v16155_v60 = vld [vmem:[%s24191_s3 + $0x1a8] sm:$0xff] }
0x1d8a   :  { %4880 = vmatprep.subr.bf16.mxu0 %v16185_v27  ;;  %v16140_v27 = vld [vmem:[%s24191_s3 + $0x130] sm:$0xff] }
0x1d8d   :  { %4881 = vmatpush1.bf16.msra.mxu0 %v16184_v30  ;;  %v16141_v30 = vld [vmem:[%s24191_s3 + $0x138] sm:$0xff] }
0x1dc2   :  { %v4443_v24 = vpop.f32.mrb[108].mxu1 }
0x1dc3   :  { %v18894_v35 = vpop.f32.mrb[109].mxu1 }
0x1dc4   :  { %v4446_v37 = vpop.f32.mrb[110].mxu1  ;;  %v16145_v35 = vld [vmem:[%s24191_s3 + $0x158] sm:$0xff] }
0x1dc5   :  { %v18895_v40 = vpop.f32.mrb[111].mxu1  ;;  %v16174_v37 = vcombine.low %v16137_v33, %v16145_v35 }
0x1dc6   :  { %v16175_v40 = vcombine.high %v16137_v33, %v16145_v35  ;;  %v16157_v35 = vld [vmem:[%s24191_s3 + $0x1b8] sm:$0xff] }
0x1e5b   :  { %v4491_v41 = vpop.f32.mrb[112].mxu0 }
0x1e5c   :  { %v4497_v42 = vpack.c.bf16 %v4491_v41, %v4443_v24  ;;  %v18900_v44 = vpop.f32.mrb[113].mxu0  ;;  %v16173_v24 = vcombine.high %v16136_v32, %v16144_v58  ;;  %v88_v41 = vld [vmem:[%s24194_s1 + $0x8] sm:$0xff]  ;;  %v16181_v58 = vcombine.high %v16140_v27, %v16148_v21 }
0x1e5d   :  { %v4494_v45 = vpop.f32.mrb[114].mxu0 }
0x1e5e   :  { %v18901_v47 = vpop.f32.mrb[115].mxu0  ;;  %18905 = vmatmul.mubr.msk.bf16.vlgmr.msra.gmra.mrb[112].mxu1 %vm205_vm2, %v4497_v42  ;;  %4964 = vmatprep.subr.bf16.mxu0 %v16173_v24  ;;  %v87_v42 = vld [vmem:[%s24194_s1] sm:$0xff]  ;;  %v16164_v24 = vld [vmem:[%s24191_s3 + $0x1f0] sm:$0xff] }
0x1e5f   :  { %4953 = vmatprep.mubr.bf16.mxu1 %v20244_v1  ;;  %4922 = vmatpush1.bf16.msra.mxu1 %v16170_v19  ;;  %v16163_v19 = vld [vmem:[%s24191_s3 + $0x1e8] sm:$0xff] }
0x1e60   :  { %4923 = vmatprep.subr.bf16.mxu1 %v16187_v46  ;;  %v16195_v22 = vcombine.high %v16155_v60, %v16163_v19  ;;  %v16192_v46 = vcombine.low %v16154_v12, %v16162_v13  ;;  %v16194_v32 = vcombine.low %v16155_v60, %v16163_v19  ;;  %v19627_v12 = vld [vmem:[%s24192_s4 + $0x430] sm:$0xff]   ;;  %v19629_v60 = vld [vmem:[%s24192_s4 + $0x478] sm:$0xff]  }
0x1e61   :  { %v19628_v13 = vld [vmem:[%s24192_s4 + $0x4b0] sm:$0xff]   ;;  %v19630_v19 = vld [vmem:[%s24192_s4 + $0x4f8] sm:$0xff]  }
0x1e63   :  { %4924 = vmatpush1.bf16.msra.mxu1 %v16186_v31  ;;  %v16149_v31 = vld [vmem:[%s24191_s3 + $0x178] sm:$0xff] }
0x1e64   :  { %5007 = vmatprep.subr.bf16.mxu1 %v16175_v40  ;;  %v16183_v33 = vcombine.high %v16141_v30, %v16149_v31  ;;  %v16180_v40 = vcombine.low %v16140_v27, %v16148_v21  ;;  %v16166_v27 = vld [vmem:[%s24193_s6 + $0x10] sm:$0xff] }
0x1e65   :  { %v4638_v21 = vrot.slane %v16166_v27, %v20781_v29 }
0x1f31   :  { %v4538_v54 = vpop.f32.mrb[112].mxu1 }
0x1f32   :  { %v4545_v43 = vadd.f32 %v4538_v54, %v4275_v61  ;;  %v18906_v57 = vpop.f32.mrb[113].mxu1 }
0x1f33   :  { %v4541_v59 = vpop.f32.mrb[114].mxu1 }
0x1f34   :  { %v4546_v25 = vadd.f32 %v4541_v59, %v4276_v36  ;;  %v18907_v26 = vpop.f32.mrb[115].mxu1  ;;  %v4552_v8 = vadd.f32 %v16131_v55, %v4545_v43 }
0x1f36   :  { %v4554_v9 = vadd.f32 %v4552_v8, %v21170_v15  ;;  %v4553_v63 = vadd.f32 %v16131_v55, %v4546_v25  ;;  %v16133_v8 = vld [vmem:[%s24190_s5 + $0xf] ss:$0 sm:$0xff] }
0x1f38   :  { %v4558_v62 = vsel %vm150_vm1, %v4554_v9, 0.0  ;;  %v4555_v2 = vadd.f32 %v4553_v63, %v21172_v16  ;;  %v16152_v63 = vld [vmem:[%s24191_s3 + $0x190] sm:$0xff] }
0x1f39   :  { %4559 = vadd.xlane.f32.xlu1 %v4558_v62  ;;  %v16160_v62 = vld [vmem:[%s24191_s3 + $0x1d0] sm:$0xff] }
0x1f3a   :  { %v4561_v3 = vsel %vm150_vm1, %v4555_v2, 0.0 }
0x1f3b   :  { %4562 = vadd.xlane.f32.xlu0 %v4561_v3  ;;  %v16161_v3 = vld [vmem:[%s24191_s3 + $0x1d8] sm:$0xff] }
0x1fc6   :  { %v4560_v4 = vpop.xlane.xlu1 %4559 }
0x1fc7   :  { %v4564_v7 = vmul.f32 0.03125, %v4560_v4 }
0x1fc8   :  { %v4563_v10 = vpop.xlane.xlu0 %4562 }
0x1fc9   :  { %v21378_v61 = vsub.f32 %v4554_v9, %v4564_v7  ;;  %v4565_v38 = vmul.f32 0.03125, %v4563_v10 }
0x1fcb   :  { %v21380_v36 = vsub.f32 %v4555_v2, %v4565_v38  ;;  %v4568_v15 = vmul.f32 %v21378_v61, %v21378_v61  ;;  %v16153_v2 = vld [vmem:[%s24191_s3 + $0x198] sm:$0xff] }
0x1fcc   :  { %v16191_v38 = vcombine.high %v16153_v2, %v16161_v3  ;;  %v16190_v14 = vcombine.low %v16153_v2, %v16161_v3  ;;  %v19614_v2 = vld [vmem:[%s24192_s4 + $0x4d8] sm:$0xff]  }
0x1fcd   :  { %v4570_v11 = vsel %vm150_vm1, %v4568_v15, 0.0  ;;  %v4569_v16 = vmul.f32 %v21380_v36, %v21380_v36  ;;  %v16146_v15 = vld [vmem:[%s24191_s3 + $0x160] sm:$0xff]  ;;  %v19615_v3 = vld [vmem:[%s24192_s4 + $0x418] sm:$0xff]  }
0x1fce   :  { %4571 = vadd.xlane.f32.xlu0 %v4570_v11  ;;  %v16139_v11 = vld [vmem:[%s24191_s3 + $0x128] sm:$0xff] }
0x1fcf   :  { %v4573_v39 = vsel %vm150_vm1, %v4569_v16, 0.0  ;;  %v16147_v16 = vld [vmem:[%s24191_s3 + $0x168] sm:$0xff] }
0x1fd0   :  { %4574 = vadd.xlane.f32.xlu1 %v4573_v39  ;;  %v16188_v39 = vcombine.low %v16152_v63, %v16160_v62  ;;  %v16179_v17 = vcombine.high %v16139_v11, %v16147_v16  ;;  %v16178_v18 = vcombine.low %v16139_v11, %v16147_v16  ;;  %v19621_v11 = vld [vmem:[%s24192_s4 + $0x468] sm:$0xff]  }
0x1fd1   :  { %v19622_v16 = vld [vmem:[%s24192_s4 + $0x4e8] sm:$0xff]  }
0x1fe1   :  { %96 = vperm.xlu1 %19465, %v88_v41  }
0x1fe4   :  { %91 = vperm.xlu0 %19464, %v87_v42  }
0x1fe5   :  { %19466 = vset.pattern.permute.xlu1 %v20243_v0  ;;  %v16132_v0 = vld [vmem:[%s24190_s5 + $0xe] ss:$0 sm:$0xff] }
0x1fe6   :  { %104 = vperm.xlu1 %19466, %v87_v42  }
0x1fe8   :  { %19468 = vset.pattern.permute.xlu0 %v20246_v6 }
0x1fea   :  { %108 = vperm.xlu1 %19466, %v88_v41  }
0x1fee   :  { %19467 = vset.pattern.permute.xlu1 %v20246_v6 }
0x1fef   :  { %116 = vperm.xlu1 %19467, %v87_v42  }
0x1ff3   :  { %120 = vperm.xlu1 %19467, %v88_v41   ;;  %v16182_v41 = vcombine.low %v16141_v30, %v16149_v31  ;;  %v4646_v30 = vrot.slane %v16166_v27, %v20783_v28  ;;  %v4642_v31 = vrot.slane %v16166_v27, %v20785_v48 }
0x205b   :  { %v4572_v44 = vpop.xlane.xlu0 %4571 }
0x205c   :  { %v4576_v45 = vmul.f32 0.03125, %v4572_v44 }
0x205d   :  { %v4575_v47 = vpop.xlane.xlu1 %4574 }
0x205e   :  { %v4578_v54 = vadd.f32 1e-05, %v4576_v45  ;;  %v4577_v55 = vmul.f32 0.03125, %v4575_v47 }
0x2060   :  { %20071 = vrsqrt.f32 %v4578_v54  ;;  %v4579_v43 = vadd.f32 1e-05, %v4577_v55  ;;  %v19601_v54 = vld [vmem:[%s24192_s4 + $0x440] sm:$0xff]  }
0x2061   :  { %v19602_v55 = vld [vmem:[%s24192_s4 + $0x4c0] sm:$0xff]  }
0x2062   :  { %20073 = vrsqrt.f32 %v4579_v43  ;;  %v19603_v43 = vld [vmem:[%s24192_s4 + $0x400] sm:$0xff]  }
0x206a   :  { %v20072_v57 = vpop.eup %20071 }
0x206b   :  { %v4582_v59 = vmul.f32 %v20072_v57, %v21378_v61  ;;  %v16189_v61 = vcombine.high %v16152_v63, %v16160_v62  ;;  %v19604_v57 = vld [vmem:[%s24192_s4 + $0x480] sm:$0xff]   ;;  %v19612_v63 = vld [vmem:[%s24192_s4 + $0x490] sm:$0xff]   ;;  %v19613_v62 = vld [vmem:[%s24192_s4 + $0x458] sm:$0xff]  }
0x206c   :  { %v20074_v25 = vpop.eup %20073 }
0x206d   :  { %v4588_v26 = vmul.f32 %v16132_v0, %v4582_v59  ;;  %v4583_v6 = vmul.f32 %v20074_v25, %v21380_v36  ;;  %v16138_v36 = vld [vmem:[%s24191_s3 + $0x120] sm:$0xff]  ;;  %v19606_v59 = vld [vmem:[%s24192_s4 + $0x4c8] sm:$0xff]  }
0x206e   :  { %v16177_v56 = vcombine.high %v16138_v36, %v16146_v15  ;;  %v16176_v23 = vcombine.low %v16138_v36, %v16146_v15  ;;  %v19607_v25 = vld [vmem:[%s24192_s4 + $0x408] sm:$0xff]   ;;  %v19619_v36 = vld [vmem:[%s24192_s4 + $0x420] sm:$0xff]  }
0x206f   :  { %v4589_v9 = vmul.f32 %v16132_v0, %v4583_v6  ;;  %v21453_v4 = vadd.f32 %v16133_v8, %v4588_v26  ;;  %v19605_v0 = vld [vmem:[%s24192_s4 + $0x448] sm:$0xff]   ;;  %v19609_v6 = vld [vmem:[%s24192_s4 + $0x450] sm:$0xff]   ;;  %v19620_v15 = vld [vmem:[%s24192_s4 + $0x4a0] sm:$0xff]  }
0x2070   :  { %v19608_v26 = vld [vmem:[%s24192_s4 + $0x488] sm:$0xff]  }
0x2071   :  { %v21455_v7 = vadd.f32 %v16133_v8, %v4589_v9  ;;  %v19610_v8 = vld [vmem:[%s24192_s4 + $0x4d0] sm:$0xff]  }
0x2072   :  { %v19611_v9 = vld [vmem:[%s24192_s4 + $0x410] sm:$0xff]  }
0x2073   :  { %v21459_v10 = vpack.c.bf16 %v21455_v7, %v21453_v4 }
0x2075   :  { %16200 = vmatmul.mubr.msk.bf16.vlgmr.msra.gmra.mrb[116].mxu0 %vm150_vm1, %v21459_v10  ;;  %16201 = vmatmul.mubr.msk.bf16.vlgmr.msra.gmra.mrb[116].mxu1 %vm150_vm1, %v21459_v10 }
0x2076   :  { %4965 = vmatpush1.bf16.msra.mxu0 %v16172_v34  ;;  %5008 = vmatpush1.bf16.msra.mxu1 %v16174_v37  ;;  %v16156_v34 = vld [vmem:[%s24191_s3 + $0x1b0] sm:$0xff]  ;;  %v16165_v37 = vld [vmem:[%s24191_s3 + $0x1f8] sm:$0xff] }
0x2077   :  { %4966 = vmatprep.subr.bf16.mxu0 %v16189_v61  ;;  %5009 = vmatprep.subr.bf16.mxu1 %v16191_v38  ;;  %v16197_v42 = vcombine.high %v16156_v34, %v16164_v24  ;;  %v16199_v44 = vcombine.high %v16157_v35, %v16165_v37  ;;  %v16196_v45 = vcombine.low %v16156_v34, %v16164_v24  ;;  %v19617_v61 = vld [vmem:[%s24192_s4 + $0x460] sm:$0xff]  }
0x2078   :  { %4996 = vmatprep.mubr.bf16.mxu0 %v20244_v1  ;;  %5039 = vmatprep.mubr.bf16.mxu1 %v20244_v1  ;;  %v16198_v47 = vcombine.low %v16157_v35, %v16165_v37  ;;  %v19618_v38 = vld [vmem:[%s24192_s4 + $0x4e0] sm:$0xff]  }
0x207a   :  { %4967 = vmatpush1.bf16.msra.mxu0 %v16188_v39  ;;  %5010 = vmatpush1.bf16.msra.mxu1 %v16190_v14  ;;  %v19623_v39 = vld [vmem:[%s24192_s4 + $0x428] sm:$0xff]  }
0x207b   :  { %5050 = vmatprep.subr.bf16.mxu0 %v16177_v56  ;;  %5093 = vmatprep.subr.bf16.mxu1 %v16179_v17  ;;  %v19624_v14 = vld [vmem:[%s24192_s4 + $0x4a8] sm:$0xff]   ;;  %v19625_v56 = vld [vmem:[%s24192_s4 + $0x470] sm:$0xff]  }
0x207c   :  { %v19626_v17 = vld [vmem:[%s24192_s4 + $0x4f0] sm:$0xff]  }
0x207d   :  { %16202 = vmatmul.mubr.msk.bf16.vlgmr.msra.gmra.mrb[120].mxu0 %vm150_vm1, %v21459_v10  ;;  %16203 = vmatmul.mubr.msk.bf16.vlgmr.msra.gmra.mrb[120].mxu1 %vm150_vm1, %v21459_v10 }
0x207e   :  { %5051 = vmatpush1.bf16.msra.mxu0 %v16176_v23  ;;  %5094 = vmatpush1.bf16.msra.mxu1 %v16178_v18  ;;  %v19631_v23 = vld [vmem:[%s24192_s4 + $0x438] sm:$0xff]  }
0x207f   :  { %5052 = vmatprep.subr.bf16.mxu0 %v16193_v20  ;;  %5095 = vmatprep.subr.bf16.mxu1 %v16195_v22  ;;  %v19632_v18 = vld [vmem:[%s24192_s4 + $0x4b8] sm:$0xff]   ;;  %v19633_v20 = vld [vmem:[%s24192_s4 + $0x540] sm:$0xff]  }
0x2080   :  { %5082 = vmatprep.mubr.bf16.mxu0 %v20244_v1  ;;  %5125 = vmatprep.mubr.bf16.mxu1 %v20244_v1  ;;  %v19634_v22 = vld [vmem:[%s24192_s4 + $0x5c0] sm:$0xff]  }
0x2082   :  { %5053 = vmatpush1.bf16.msra.mxu0 %v16192_v46  ;;  %5096 = vmatpush1.bf16.msra.mxu1 %v16194_v32  ;;  %v4650_v46 = vrot.slane %v16166_v27, %v20787_v49 }
0x2083   :  { %5136 = vmatprep.subr.bf16.mxu0 %v16181_v58  ;;  %5179 = vmatprep.subr.bf16.mxu1 %v16183_v33 }
0x2085   :  { %16204 = vmatmul.mubr.msk.bf16.vlgmr.msra.gmra.mrb[124].mxu0 %vm150_vm1, %v21459_v10  ;;  %16205 = vmatmul.mubr.msk.bf16.vlgmr.msra.gmra.mrb[124].mxu1 %vm150_vm1, %v21459_v10 }
0x2086   :  { %5137 = vmatpush1.bf16.msra.mxu0 %v16180_v40  ;;  %5180 = vmatpush1.bf16.msra.mxu1 %v16182_v41 }
0x2087   :  { %5138 = vmatprep.subr.bf16.mxu0 %v16197_v42  ;;  %5181 = vmatprep.subr.bf16.mxu1 %v16199_v44 }
0x2088   :  { %5168 = vmatprep.mubr.bf16.mxu0 %v20244_v1  ;;  %5211 = vmatprep.mubr.bf16.mxu1 %v20244_v1 }
0x208a   :  { %5139 = vmatpush1.bf16.msra.mxu0 %v16196_v45  ;;  %5182 = vmatpush1.bf16.msra.mxu1 %v16198_v47 }
0x208b   :  { %17943 = vmatprep.subr.bf16.mxu0 %v19601_v54  ;;  %17965 = vmatprep.subr.bf16.mxu1 %v19602_v55  ;;  %v4654_v55 = vrot.slane %v16166_v27, %v20789_v50 }
0x208d   :  { %16206 = vmatmul.mubr.msk.bf16.vlgmr.msra.gmra.mrb[128].mxu0 %vm150_vm1, %v21459_v10  ;;  %16207 = vmatmul.mubr.msk.bf16.vlgmr.msra.gmra.mrb[128].mxu1 %vm150_vm1, %v21459_v10  ;;  %v19616_v10 = vld [vmem:[%s24192_s4 + $0x498] sm:$0xff]  }
0x208e   :  { %17944 = vmatpush3.bf16.msra.mxu0 %v19603_v43  ;;  %17966 = vmatpush3.bf16.msra.mxu1 %v19604_v57  ;;  %v4662_v43 = vrot.slane %v16166_v27, %v20791_v51 }
0x208f   :  { %17945 = vmatprep.subr.bf16.mxu0 %v19605_v0  ;;  %17967 = vmatprep.subr.bf16.mxu1 %v19606_v59  ;;  %v4658_v59 = vrot.slane %v16166_v27, %v20793_v52 }
0x2092   :  { %17946 = vmatpush3.bf16.msra.mxu0 %v19607_v25  ;;  %17968 = vmatpush3.bf16.msra.mxu1 %v19608_v26  ;;  %v4666_v25 = vrot.slane %v16166_v27, %v20795_v53 }
0x2093   :  { %17947 = vmatprep.subr.bf16.mxu0 %v19609_v6  ;;  %17969 = vmatprep.subr.bf16.mxu1 %v19610_v8 }
0x2096   :  { %17948 = vmatpush3.bf16.msra.mxu0 %v19611_v9  ;;  %17970 = vmatpush3.bf16.msra.mxu1 %v19612_v63 }
0x2097   :  { %17949 = vmatprep.subr.bf16.mxu0 %v19613_v62  ;;  %17971 = vmatprep.subr.bf16.mxu1 %v19614_v2 }
0x209a   :  { %17950 = vmatpush3.bf16.msra.mxu0 %v19615_v3  ;;  %17972 = vmatpush3.bf16.msra.mxu1 %v19616_v10  ;;  %v21647_v10 = vld [vmem:[%s24193_s6 + $0x18] sm:$0xff] }
0x209b   :  { %17951 = vmatprep.subr.bf16.mxu0 %v19617_v61  ;;  %17973 = vmatprep.subr.bf16.mxu1 %v19618_v38 }
0x209e   :  { %17952 = vmatpush3.bf16.msra.mxu0 %v19619_v36  ;;  %17974 = vmatpush3.bf16.msra.mxu1 %v19620_v15 }
0x209f   :  { %17953 = vmatprep.subr.bf16.mxu0 %v19621_v11  ;;  %17975 = vmatprep.subr.bf16.mxu1 %v19622_v16 }
0x20a2   :  { %17954 = vmatpush3.bf16.msra.mxu0 %v19623_v39  ;;  %17976 = vmatpush3.bf16.msra.mxu1 %v19624_v14  ;;  %v19635_v39 = vld [vmem:[%s24192_s4 + $0x500] sm:$0xff]  }
0x20a3   :  { %17955 = vmatprep.subr.bf16.mxu0 %v19625_v56  ;;  %17977 = vmatprep.subr.bf16.mxu1 %v19626_v17  ;;  %v19636_v14 = vld [vmem:[%s24192_s4 + $0x580] sm:$0xff]  }
0x20a6   :  { %17956 = vmatpush3.bf16.msra.mxu0 %v19627_v12  ;;  %17978 = vmatpush3.bf16.msra.mxu1 %v19628_v13 }
0x20a7   :  { %17957 = vmatprep.subr.bf16.mxu0 %v19629_v60  ;;  %17979 = vmatprep.subr.bf16.mxu1 %v19630_v19  ;;  %v19637_v60 = vld [vmem:[%s24192_s4 + $0x548] sm:$0xff]  }
0x20a8   :  { %v19638_v19 = vld [vmem:[%s24192_s4 + $0x5c8] sm:$0xff]  }
0x20aa   :  { %17958 = vmatpush3.bf16.msra.mxu0 %v19631_v23  ;;  %17980 = vmatpush3.bf16.msra.mxu1 %v19632_v18  ;;  %v4670_v23 = vrot.slane %v21647_v10, %v20781_v29 }
0x20ab   :  { %17987 = vmatprep.subr.bf16.mxu0 %v19633_v20  ;;  %18009 = vmatprep.subr.bf16.mxu1 %v19634_v22 }
0x2148   :  { %v4912_v32 = vpop.f32.mrb[116].mxu0  ;;  %v4955_v58 = vpop.f32.mrb[116].mxu1 }
0x2149   :  { %v4913_v33 = vadd.f32 %v4912_v32, %v4638_v21  ;;  %v4956_v34 = vadd.f32 %v4955_v58, %v4646_v30  ;;  %v4914_v24 = vpop.f32.mrb[117].mxu0  ;;  %v4957_v35 = vpop.f32.mrb[117].mxu1  ;;  %v4674_v58 = vrot.slane %v21647_v10, %v20785_v48 }
0x214a   :  { %v4915_v37 = vadd.f32 %v4914_v24, %v4642_v31  ;;  %v4958_v40 = vadd.f32 %v4957_v35, %v4650_v46  ;;  %v4916_v41 = vpop.f32.mrb[118].mxu0  ;;  %v4959_v42 = vpop.f32.mrb[118].mxu1  ;;  %v19639_v24 = vld [vmem:[%s24192_s4 + $0x508] sm:$0xff]  }
0x214b   :  { %v4917_v44 = vadd.f32 %v4916_v41, %v4638_v21  ;;  %v4960_v45 = vadd.f32 %v4959_v42, %v4646_v30  ;;  %v4918_v47 = vpop.f32.mrb[119].mxu0  ;;  %v4961_v54 = vpop.f32.mrb[119].mxu1  ;;  %v5222_v26 = vmax.f32 %v4913_v33, 0.0  ;;  %v5224_v6 = vmax.f32 %v4956_v34, 0.0  ;;  %v19640_v35 = vld [vmem:[%s24192_s4 + $0x588] sm:$0xff]  }
0x214c   :  { %v4919_v57 = vadd.f32 %v4918_v47, %v4642_v31  ;;  %v4962_v0 = vadd.f32 %v4961_v54, %v4650_v46  ;;  %v5223_v63 = vmax.f32 %v4915_v37, 0.0  ;;  %v5225_v62 = vmax.f32 %v4958_v40, 0.0  ;;  %v19642_v47 = vld [vmem:[%s24192_s4 + $0x5d0] sm:$0xff]  }
0x214d   :  { %v5238_v8 = vmax.f32 %v4917_v44, 0.0  ;;  %v5240_v9 = vmax.f32 %v4960_v45, 0.0  ;;  %v4678_v21 = vrot.slane %v21647_v10, %v20783_v28  ;;  %v4682_v37 = vrot.slane %v21647_v10, %v20787_v49  ;;  %v19641_v45 = vld [vmem:[%s24192_s4 + $0x550] sm:$0xff]  }
0x214e   :  { %v5239_v2 = vmax.f32 %v4919_v57, 0.0  ;;  %v5241_v3 = vmax.f32 %v4962_v0, 0.0 }
0x214f   :  { %v5254_v61 = vpack.c.bf16 %v5238_v8, %v5222_v26  ;;  %v5256_v38 = vpack.c.bf16 %v5240_v9, %v5224_v6  ;;  %v19643_v9 = vld [vmem:[%s24192_s4 + $0x510] sm:$0xff]  }
0x2150   :  { %v4998_v36 = vpop.f32.mrb[120].mxu0  ;;  %v5041_v15 = vpop.f32.mrb[120].mxu1  ;;  %v5255_v11 = vpack.c.bf16 %v5239_v2, %v5223_v63  ;;  %v5257_v16 = vpack.c.bf16 %v5241_v3, %v5225_v62  ;;  %v19644_v63 = vld [vmem:[%s24192_s4 + $0x590] sm:$0xff]  }
0x2151   :  { %v4999_v56 = vadd.f32 %v4998_v36, %v4654_v55  ;;  %v5042_v17 = vadd.f32 %v5041_v15, %v4662_v43  ;;  %v5000_v12 = vpop.f32.mrb[121].mxu0  ;;  %v5043_v13 = vpop.f32.mrb[121].mxu1  ;;  %v19646_v36 = vld [vmem:[%s24192_s4 + $0x5d8] sm:$0xff]  }
0x2152   :  { %v5001_v18 = vadd.f32 %v5000_v12, %v4658_v59  ;;  %v5044_v20 = vadd.f32 %v5043_v13, %v4666_v25  ;;  %v5002_v22 = vpop.f32.mrb[122].mxu0  ;;  %v5045_v27 = vpop.f32.mrb[122].mxu1  ;;  %6332 = vmatprep.mubr.bf16.mxu0 %v5255_v11  ;;  %6373 = vmatprep.mubr.bf16.mxu1 %v5257_v16 }
0x2153   :  { %v5003_v30 = vadd.f32 %v5002_v22, %v4654_v55  ;;  %v5046_v31 = vadd.f32 %v5045_v27, %v4662_v43  ;;  %v5004_v46 = vpop.f32.mrb[123].mxu0  ;;  %v5047_v32 = vpop.f32.mrb[123].mxu1  ;;  %6333 = vmatmul.mubr.bf16.vlgmr.msra.gmra.mrb[132].mxu0 %v5254_v61  ;;  %6374 = vmatmul.mubr.bf16.vlgmr.msra.gmra.mrb[132].mxu1 %v5256_v38  ;;  %v5226_v40 = vmax.f32 %v4999_v56, 0.0  ;;  %v5228_v41 = vmax.f32 %v5042_v17, 0.0  ;;  %v19645_v38 = vld [vmem:[%s24192_s4 + $0x558] sm:$0xff]  }
0x2154   :  { %v5005_v33 = vadd.f32 %v5004_v46, %v4658_v59  ;;  %v5048_v34 = vadd.f32 %v5047_v32, %v4666_v25  ;;  %17988 = vmatpush3.bf16.msra.mxu0 %v19635_v39  ;;  %18010 = vmatpush3.bf16.msra.mxu1 %v19636_v14  ;;  %v5227_v54 = vmax.f32 %v5001_v18, 0.0  ;;  %v5229_v55 = vmax.f32 %v5044_v20, 0.0  ;;  %v19647_v22 = vld [vmem:[%s24192_s4 + $0x518] sm:$0xff]   ;;  %v19649_v32 = vld [vmem:[%s24192_s4 + $0x560] sm:$0xff]  }
0x2155   :  { %v5242_v42 = vmax.f32 %v5003_v30, 0.0  ;;  %v5244_v44 = vmax.f32 %v5046_v31, 0.0  ;;  %17989 = vmatprep.subr.bf16.mxu0 %v19637_v60  ;;  %18011 = vmatprep.subr.bf16.mxu1 %v19638_v19  ;;  %v4686_v14 = vrot.slane %v21647_v10, %v20789_v50  ;;  %v4694_v60 = vrot.slane %v21647_v10, %v20791_v51 }
0x2156   :  { %v5243_v43 = vmax.f32 %v5005_v33, 0.0  ;;  %v5245_v57 = vmax.f32 %v5048_v34, 0.0  ;;  %v4690_v19 = vrot.slane %v21647_v10, %v20793_v52  ;;  %v4698_v27 = vrot.slane %v21647_v10, %v20795_v53 }
0x2157   :  { %v21681_v0 = vpack.c.bf16 %v5242_v42, %v5226_v40  ;;  %v21683_v59 = vpack.c.bf16 %v5244_v44, %v5228_v41  ;;  %v19651_v42 = vld [vmem:[%s24192_s4 + $0x520] sm:$0xff]  }
0x2158   :  { %17990 = vmatpush3.bf16.msra.mxu0 %v19639_v24  ;;  %18012 = vmatpush3.bf16.msra.mxu1 %v19640_v35  ;;  %v5084_v25 = vpop.f32.mrb[124].mxu0  ;;  %v5127_v26 = vpop.f32.mrb[124].mxu1  ;;  %v5259_v6 = vpack.c.bf16 %v5243_v43, %v5227_v54  ;;  %v5261_v8 = vpack.c.bf16 %v5245_v57, %v5229_v55  ;;  %v19652_v44 = vld [vmem:[%s24192_s4 + $0x5a0] sm:$0xff]  }
0x2159   :  { %v5085_v62 = vadd.f32 %v5084_v25, %v4670_v23  ;;  %v5128_v2 = vadd.f32 %v5127_v26, %v4678_v21  ;;  %v5086_v3 = vpop.f32.mrb[125].mxu0  ;;  %v5129_v61 = vpop.f32.mrb[125].mxu1  ;;  %17991 = vmatprep.subr.bf16.mxu0 %v19641_v45  ;;  %18013 = vmatprep.subr.bf16.mxu1 %v19642_v47  ;;  %v19653_v25 = vld [vmem:[%s24192_s4 + $0x568] sm:$0xff]  }
0x215a   :  { %v5087_v15 = vadd.f32 %v5086_v3, %v4674_v58  ;;  %v5130_v11 = vadd.f32 %v5129_v61, %v4682_v37  ;;  %v5088_v16 = vpop.f32.mrb[126].mxu0  ;;  %v5131_v39 = vpop.f32.mrb[126].mxu1  ;;  %6414 = vmatprep.mubr.bf16.mxu0 %v5259_v6  ;;  %6455 = vmatprep.mubr.bf16.mxu1 %v5261_v8  ;;  %v19654_v26 = vld [vmem:[%s24192_s4 + $0x5e8] sm:$0xff]  }
0x215b   :  { %v5089_v56 = vadd.f32 %v5088_v16, %v4670_v23  ;;  %v5132_v17 = vadd.f32 %v5131_v39, %v4678_v21  ;;  %v5090_v12 = vpop.f32.mrb[127].mxu0  ;;  %v5133_v13 = vpop.f32.mrb[127].mxu1  ;;  %v19648_v23 = vld [vmem:[%s24192_s4 + $0x598] sm:$0xff]   ;;  %v5230_v21 = vmax.f32 %v5085_v62, 0.0  ;;  %v5232_v30 = vmax.f32 %v5128_v2, 0.0 }
0x215c   :  { %v5091_v18 = vadd.f32 %v5090_v12, %v4674_v58  ;;  %v5134_v20 = vadd.f32 %v5133_v13, %v4682_v37  ;;  %17992 = vmatpush3.bf16.msra.mxu0 %v19643_v9  ;;  %18014 = vmatpush3.bf16.msra.mxu1 %v19644_v63  ;;  %v19650_v58 = vld [vmem:[%s24192_s4 + $0x5e0] sm:$0xff]   ;;  %v5231_v33 = vmax.f32 %v5087_v15, 0.0  ;;  %v5233_v34 = vmax.f32 %v5130_v11, 0.0  ;;  %v19655_v15 = vld [vmem:[%s24192_s4 + $0x528] sm:$0xff]   ;;  %v19658_v12 = vld [vmem:[%s24192_s4 + $0x5f0] sm:$0xff]  }
0x215d   :  { %v5246_v31 = vmax.f32 %v5089_v56, 0.0  ;;  %v5248_v46 = vmax.f32 %v5132_v17, 0.0  ;;  %17993 = vmatprep.subr.bf16.mxu0 %v19645_v38  ;;  %18015 = vmatprep.subr.bf16.mxu1 %v19646_v36  ;;  %v19656_v11 = vld [vmem:[%s24192_s4 + $0x5a8] sm:$0xff]  }
0x215e   :  { %v5247_v24 = vmax.f32 %v5091_v18, 0.0  ;;  %v5249_v35 = vmax.f32 %v5134_v20, 0.0 }
0x215f   :  { %v21717_v37 = vpack.c.bf16 %v5246_v31, %v5230_v21  ;;  %v21719_v10 = vpack.c.bf16 %v5248_v46, %v5232_v30  ;;  %v19660_v21 = vld [vmem:[%s24192_s4 + $0x5b0] sm:$0xff]   ;;  %v19661_v31 = vld [vmem:[%s24192_s4 + $0x578] sm:$0xff]  }
0x2160   :  { %17994 = vmatpush3.bf16.msra.mxu0 %v19647_v22  ;;  %18016 = vmatpush3.bf16.msra.mxu1 %v19648_v23  ;;  %v5170_v40 = vpop.f32.mrb[128].mxu0  ;;  %v5213_v41 = vpop.f32.mrb[128].mxu1  ;;  %v21727_v45 = vpack.c.bf16 %v5247_v24, %v5231_v33  ;;  %v21729_v47 = vpack.c.bf16 %v5249_v35, %v5233_v34  ;;  %v19662_v46 = vld [vmem:[%s24192_s4 + $0x5f8] sm:$0xff]   ;;  %v19665_v33 = vld [vmem:[%s24192_s4 + $0x640] sm:$0xff]  }
0x2161   :  { %v5171_v54 = vadd.f32 %v5170_v40, %v4686_v14  ;;  %v5214_v55 = vadd.f32 %v5213_v41, %v4694_v60  ;;  %v5172_v43 = vpop.f32.mrb[129].mxu0  ;;  %v5215_v57 = vpop.f32.mrb[129].mxu1  ;;  %17995 = vmatprep.subr.bf16.mxu0 %v19649_v32  ;;  %18017 = vmatprep.subr.bf16.mxu1 %v19650_v58  ;;  %v19663_v32 = vld [vmem:[%s24192_s4 + $0x538] sm:$0xff]   ;;  %v19666_v34 = vld [vmem:[%s24192_s4 + $0x6c0] sm:$0xff]   ;;  %v19669_v40 = vld [vmem:[%s24192_s4 + $0x648] sm:$0xff]  }
0x2162   :  { %v5173_v6 = vadd.f32 %v5172_v43, %v4690_v19  ;;  %v5216_v8 = vadd.f32 %v5215_v57, %v4698_v27  ;;  %v5174_v9 = vpop.f32.mrb[130].mxu0  ;;  %v5217_v63 = vpop.f32.mrb[130].mxu1  ;;  %v19664_v58 = vld [vmem:[%s24192_s4 + $0x5b8] sm:$0xff]   ;;  %v19667_v24 = vld [vmem:[%s24192_s4 + $0x600] sm:$0xff]   ;;  %v19670_v41 = vld [vmem:[%s24192_s4 + $0x6c8] sm:$0xff]  }
0x2163   :  { %v5175_v62 = vadd.f32 %v5174_v9, %v4686_v14  ;;  %v5218_v2 = vadd.f32 %v5217_v63, %v4694_v60  ;;  %v5176_v3 = vpop.f32.mrb[131].mxu0  ;;  %v5219_v61 = vpop.f32.mrb[131].mxu1  ;;  %v5234_v16 = vmax.f32 %v5171_v54, 0.0  ;;  %v5236_v39 = vmax.f32 %v5214_v55, 0.0  ;;  %v19657_v14 = vld [vmem:[%s24192_s4 + $0x570] sm:$0xff]   ;;  %v19668_v35 = vld [vmem:[%s24192_s4 + $0x680] sm:$0xff]  }
0x2164   :  { %v5177_v38 = vadd.f32 %v5176_v3, %v4690_v19  ;;  %v5220_v36 = vadd.f32 %v5219_v61, %v4698_v27  ;;  %17996 = vmatpush3.bf16.msra.mxu0 %v19651_v42  ;;  %18018 = vmatpush3.bf16.msra.mxu1 %v19652_v44  ;;  %v5235_v13 = vmax.f32 %v5173_v6, 0.0  ;;  %v5237_v60 = vmax.f32 %v5216_v8, 0.0  ;;  %v19659_v27 = vld [vmem:[%s24192_s4 + $0x530] sm:$0xff]   ;;  %v19671_v42 = vld [vmem:[%s24192_s4 + $0x608] sm:$0xff]   ;;  %v19677_v54 = vld [vmem:[%s24192_s4 + $0x658] sm:$0xff]  }
0x2165   :  { %v5250_v56 = vmax.f32 %v5175_v62, 0.0  ;;  %v5252_v17 = vmax.f32 %v5218_v2, 0.0  ;;  %17997 = vmatprep.subr.bf16.mxu0 %v19653_v25  ;;  %18019 = vmatprep.subr.bf16.mxu1 %v19654_v26  ;;  %v19672_v44 = vld [vmem:[%s24192_s4 + $0x688] sm:$0xff]   ;;  %v19678_v55 = vld [vmem:[%s24192_s4 + $0x6d8] sm:$0xff]   ;;  %v19681_v25 = vld [vmem:[%s24192_s4 + $0x660] sm:$0xff]  }
0x2166   :  { %v5251_v19 = vmax.f32 %v5177_v38, 0.0  ;;  %v5253_v18 = vmax.f32 %v5220_v36, 0.0  ;;  %v19679_v43 = vld [vmem:[%s24192_s4 + $0x618] sm:$0xff]   ;;  %v19682_v26 = vld [vmem:[%s24192_s4 + $0x6e0] sm:$0xff]   ;;  %v19685_v9 = vld [vmem:[%s24192_s4 + $0x668] sm:$0xff]  }
0x2167   :  { %v21749_v20 = vpack.c.bf16 %v5250_v56, %v5234_v16  ;;  %v21751_v22 = vpack.c.bf16 %v5252_v17, %v5236_v39  ;;  %v19680_v57 = vld [vmem:[%s24192_s4 + $0x698] sm:$0xff]   ;;  %v19683_v6 = vld [vmem:[%s24192_s4 + $0x620] sm:$0xff]   ;;  %v19686_v63 = vld [vmem:[%s24192_s4 + $0x6e8] sm:$0xff]  }
0x2168   :  { %v21753_v23 = vpack.c.bf16 %v5253_v18, %v5237_v60  ;;  %17998 = vmatpush3.bf16.msra.mxu0 %v19655_v15  ;;  %18020 = vmatpush3.bf16.msra.mxu1 %v19656_v11  ;;  %v21761_v30 = vpack.c.bf16 %v5251_v19, %v5235_v13  ;;  %v19684_v8 = vld [vmem:[%s24192_s4 + $0x6a0] sm:$0xff]   ;;  %v19687_v62 = vld [vmem:[%s24192_s4 + $0x628] sm:$0xff]   ;;  %v19689_v3 = vld [vmem:[%s24192_s4 + $0x670] sm:$0xff]  }
0x2169   :  { %17999 = vmatprep.subr.bf16.mxu0 %v19657_v14  ;;  %18021 = vmatprep.subr.bf16.mxu1 %v19658_v12  ;;  %v19688_v2 = vld [vmem:[%s24192_s4 + $0x6a8] sm:$0xff]   ;;  %v19690_v61 = vld [vmem:[%s24192_s4 + $0x6f0] sm:$0xff]   ;;  %v19693_v15 = vld [vmem:[%s24192_s4 + $0x678] sm:$0xff]  }
0x216a   :  { %v19691_v38 = vld [vmem:[%s24192_s4 + $0x630] sm:$0xff]   ;;  %v19694_v11 = vld [vmem:[%s24192_s4 + $0x6f8] sm:$0xff]   ;;  %v19697_v56 = vld [vmem:[%s24192_s4 + $0x740] sm:$0xff]  }
0x216b   :  { %v19692_v36 = vld [vmem:[%s24192_s4 + $0x6b0] sm:$0xff]   ;;  %v19695_v16 = vld [vmem:[%s24192_s4 + $0x638] sm:$0xff]   ;;  %v19698_v17 = vld [vmem:[%s24192_s4 + $0x7c0] sm:$0xff]  }
0x216c   :  { %18000 = vmatpush3.bf16.msra.mxu0 %v19659_v27  ;;  %18022 = vmatpush3.bf16.msra.mxu1 %v19660_v21  ;;  %v19696_v39 = vld [vmem:[%s24192_s4 + $0x6b8] sm:$0xff]   ;;  %v19699_v14 = vld [vmem:[%s24192_s4 + $0x700] sm:$0xff]   ;;  %v19701_v13 = vld [vmem:[%s24192_s4 + $0x748] sm:$0xff]   ;;  %v97_v27 = vpop.permute.xlu1 %96 }
0x216d   :  { %18001 = vmatprep.subr.bf16.mxu0 %v19661_v31  ;;  %18023 = vmatprep.subr.bf16.mxu1 %v19662_v46  ;;  %v19700_v12 = vld [vmem:[%s24192_s4 + $0x780] sm:$0xff]   ;;  %v19702_v60 = vld [vmem:[%s24192_s4 + $0x7c8] sm:$0xff]   ;;  %v19707_v21 = vld [vmem:[%s24192_s4 + $0x710] sm:$0xff]  }
0x216e   :  { %v19703_v19 = vld [vmem:[%s24192_s4 + $0x708] sm:$0xff]   ;;  %v19710_v31 = vld [vmem:[%s24192_s4 + $0x7d8] sm:$0xff]  }
0x216f   :  { %v19704_v18 = vld [vmem:[%s24192_s4 + $0x788] sm:$0xff]  }
0x2170   :  { %18002 = vmatpush3.bf16.msra.mxu0 %v19663_v32  ;;  %18024 = vmatpush3.bf16.msra.mxu1 %v19664_v58  ;;  %v105_v46 = vpop.permute.xlu1 %104  ;;  %v19711_v32 = vld [vmem:[%s24192_s4 + $0x718] sm:$0xff]  }
0x2171   :  { %18031 = vmatprep.subr.bf16.mxu0 %v19665_v33  ;;  %18053 = vmatprep.subr.bf16.mxu1 %v19666_v34  ;;  %v19712_v58 = vld [vmem:[%s24192_s4 + $0x798] sm:$0xff]   ;;  %v19713_v33 = vld [vmem:[%s24192_s4 + $0x760] sm:$0xff]  }
0x2172   :  { %v19714_v34 = vld [vmem:[%s24192_s4 + $0x7e0] sm:$0xff]  }
0x2173   :  { %6415 = vmatmul.mubr.bf16.vlgmr.msra.gmra.mrb[136].mxu0 %v21681_v0  ;;  %6456 = vmatmul.mubr.bf16.vlgmr.msra.gmra.mrb[136].mxu1 %v21683_v59  ;;  %v19673_v0 = vld [vmem:[%s24192_s4 + $0x650] sm:$0xff]  }
0x2174   :  { %18032 = vmatpush3.bf16.msra.mxu0 %v19667_v24  ;;  %6496 = vmatprep.mubr.bf16.mxu0 %v21727_v45  ;;  %v19674_v59 = vld [vmem:[%s24192_s4 + $0x6d0] sm:$0xff]   ;;  %v19715_v24 = vld [vmem:[%s24192_s4 + $0x720] sm:$0xff]  }
0x2175   :  { %18054 = vmatpush3.bf16.msra.mxu1 %v19668_v35  ;;  %6537 = vmatprep.mubr.bf16.mxu1 %v21729_v47  ;;  %v19675_v45 = vld [vmem:[%s24192_s4 + $0x610] sm:$0xff]   ;;  %v19716_v35 = vld [vmem:[%s24192_s4 + $0x7a0] sm:$0xff]  }
0x2176   :  { %18033 = vmatprep.subr.bf16.mxu0 %v19669_v40  ;;  %18055 = vmatprep.subr.bf16.mxu1 %v19670_v41  ;;  %v19676_v47 = vld [vmem:[%s24192_s4 + $0x690] sm:$0xff]   ;;  %v19717_v40 = vld [vmem:[%s24192_s4 + $0x768] sm:$0xff]   ;;  %v109_v41 = vpop.permute.xlu1 %108 }
0x2178   :  { %18034 = vmatpush3.bf16.msra.mxu0 %v19671_v42  ;;  %v19718_v42 = vld [vmem:[%s24192_s4 + $0x7e8] sm:$0xff]  }
0x2179   :  { %18056 = vmatpush3.bf16.msra.mxu1 %v19672_v44  ;;  %18035 = vmatprep.subr.bf16.mxu0 %v19673_v0  ;;  %v19719_v44 = vld [vmem:[%s24192_s4 + $0x728] sm:$0xff]  }
0x217a   :  { %18057 = vmatprep.subr.bf16.mxu1 %v19674_v59  ;;  %v19720_v0 = vld [vmem:[%s24192_s4 + $0x7a8] sm:$0xff]   ;;  %v19721_v59 = vld [vmem:[%s24192_s4 + $0x770] sm:$0xff]  }
0x217c   :  { %18036 = vmatpush3.bf16.msra.mxu0 %v19675_v45  ;;  %v92_v45 = vpop.permute.xlu0 %91 }
0x217d   :  { %18058 = vmatpush3.bf16.msra.mxu1 %v19676_v47  ;;  %18037 = vmatprep.subr.bf16.mxu0 %v19677_v54  ;;  %v19722_v47 = vld [vmem:[%s24192_s4 + $0x7f0] sm:$0xff]   ;;  %v20239_v54 = vld [vmem:[%s24190_s5] ss:$0 sm:$0xff] }
0x217e   :  { %18059 = vmatprep.subr.bf16.mxu1 %v19678_v55  ;;  %v100_v55 = vmul.f32 %v20239_v54, %v97_v27 }
0x2180   :  { %18038 = vmatpush3.bf16.msra.mxu0 %v19679_v43  ;;  %v117_v43 = vpop.permute.xlu1 %116 }
0x2181   :  { %18060 = vmatpush3.bf16.msra.mxu1 %v19680_v57  ;;  %18039 = vmatprep.subr.bf16.mxu0 %v19681_v25  ;;  %v19723_v57 = vld [vmem:[%s24192_s4 + $0x730] sm:$0xff]   ;;  %v99_v25 = vmul.f32 %v20239_v54, %v92_v45 }
0x2182   :  { %18061 = vmatprep.subr.bf16.mxu1 %v19682_v26  ;;  %v19724_v26 = vld [vmem:[%s24192_s4 + $0x7b0] sm:$0xff]  }
0x2184   :  { %18040 = vmatpush3.bf16.msra.mxu0 %v19683_v6  ;;  %v19725_v6 = vld [vmem:[%s24192_s4 + $0x778] sm:$0xff]  }
0x2185   :  { %18062 = vmatpush3.bf16.msra.mxu1 %v19684_v8  ;;  %18041 = vmatprep.subr.bf16.mxu0 %v19685_v9  ;;  %v19726_v8 = vld [vmem:[%s24192_s4 + $0x7f8] sm:$0xff]   ;;  %v20240_v9 = vld [vmem:[%s24190_s5 + $0x3] ss:$0 sm:$0xff] }
0x2186   :  { %18063 = vmatprep.subr.bf16.mxu1 %v19686_v63  ;;  %v102_v63 = vadd.f32 %v20240_v9, %v100_v55 }
0x2188   :  { %18042 = vmatpush3.bf16.msra.mxu0 %v19687_v62  ;;  %v20241_v62 = vld [vmem:[%s24190_s5 + $0x1] ss:$0 sm:$0xff] }
0x2189   :  { %18064 = vmatpush3.bf16.msra.mxu1 %v19688_v2  ;;  %18043 = vmatprep.subr.bf16.mxu0 %v19689_v3  ;;  %v112_v2 = vmul.f32 %v20241_v62, %v109_v41  ;;  %v19727_v3 = vld [vmem:[%s24192_s4 + $0x738] sm:$0xff]  }
0x218a   :  { %18065 = vmatprep.subr.bf16.mxu1 %v19690_v61  ;;  %v111_v61 = vmul.f32 %v20241_v62, %v105_v46 }
0x218c   :  { %18044 = vmatpush3.bf16.msra.mxu0 %v19691_v38  ;;  %v101_v38 = vadd.f32 %v20240_v9, %v99_v25 }
0x218d   :  { %18066 = vmatpush3.bf16.msra.mxu1 %v19692_v36  ;;  %18045 = vmatprep.subr.bf16.mxu0 %v19693_v15  ;;  %v19728_v36 = vld [vmem:[%s24192_s4 + $0x7b8] sm:$0xff]   ;;  %v121_v15 = vpop.permute.xlu1 %120 }
0x218e   :  { %18067 = vmatprep.subr.bf16.mxu1 %v19694_v11  ;;  %v114_v11 = vadd.f32 %v112_v2, %v102_v63 }
0x2190   :  { %18046 = vmatpush3.bf16.msra.mxu0 %v19695_v16  ;;  %v19729_v16 = vld [vmem:[%s24189_s2 + $0x50] sm:$0xff]  }
0x2191   :  { %18068 = vmatpush3.bf16.msra.mxu1 %v19696_v39  ;;  %18075 = vmatprep.subr.bf16.mxu0 %v19697_v56  ;;  %v20242_v39 = vld [vmem:[%s24190_s5 + $0x2] ss:$0 sm:$0xff] }
0x2192   :  { %18097 = vmatprep.subr.bf16.mxu1 %v19698_v17  ;;  %v123_v56 = vmul.f32 %v20242_v39, %v117_v43  ;;  %v113_v17 = vadd.f32 %v111_v61, %v101_v38 }
0x2193   :  { %6497 = vmatmul.mubr.bf16.vlgmr.msra.gmra.mrb[140].mxu0 %v21717_v37  ;;  %v19705_v37 = vld [vmem:[%s24192_s4 + $0x750] sm:$0xff]  }
0x2194   :  { %6538 = vmatmul.mubr.bf16.vlgmr.msra.gmra.mrb[140].mxu1 %v21719_v10  ;;  %18076 = vmatpush3.bf16.msra.mxu0 %v19699_v14  ;;  %v19706_v10 = vld [vmem:[%s24192_s4 + $0x7d0] sm:$0xff]   ;;  %v124_v14 = vmul.f32 %v20242_v39, %v121_v15 }
0x2195   :  { %6578 = vmatprep.mubr.bf16.mxu0 %v21761_v30  ;;  %18098 = vmatpush3.bf16.msra.mxu1 %v19700_v12  ;;  %v19708_v30 = vld [vmem:[%s24192_s4 + $0x790] sm:$0xff]   ;;  %v19730_v12 = vld [vmem:[%s24189_s2 + $0x58] sm:$0xff]  }
0x2196   :  { %6619 = vmatprep.mubr.bf16.mxu1 %v21753_v23  ;;  %18077 = vmatprep.subr.bf16.mxu0 %v19701_v13  ;;  %v19709_v23 = vld [vmem:[%s24192_s4 + $0x758] sm:$0xff]   ;;  %v21997_v13 = vadd.f32 %v123_v56, %v113_v17 }
0x2197   :  { %18099 = vmatprep.subr.bf16.mxu1 %v19702_v60  ;;  %v21999_v60 = vadd.f32 %v124_v14, %v114_v11 }
0x2198   :  { %18078 = vmatpush3.bf16.msra.mxu0 %v19703_v19 }
0x2199   :  { %18100 = vmatpush3.bf16.msra.mxu1 %v19704_v18  ;;  %18079 = vmatprep.subr.bf16.mxu0 %v19705_v37  ;;  %v16464_v18 = vld [vmem:[%s24190_s5 + $0x12] ss:$0 sm:$0xff] }
0x219a   :  { %18101 = vmatprep.subr.bf16.mxu1 %v19706_v10 }
0x219c   :  { %18080 = vmatpush3.bf16.msra.mxu0 %v19707_v21 }
0x219d   :  { %18102 = vmatpush3.bf16.msra.mxu1 %v19708_v30  ;;  %18081 = vmatprep.subr.bf16.mxu0 %v19709_v23 }
0x219e   :  { %18103 = vmatprep.subr.bf16.mxu1 %v19710_v31 }
0x21a0   :  { %18082 = vmatpush3.bf16.msra.mxu0 %v19711_v32 }
0x21a1   :  { %18104 = vmatpush3.bf16.msra.mxu1 %v19712_v58  ;;  %18083 = vmatprep.subr.bf16.mxu0 %v19713_v33 }
0x21a2   :  { %18105 = vmatprep.subr.bf16.mxu1 %v19714_v34 }
0x21a4   :  { %18084 = vmatpush3.bf16.msra.mxu0 %v19715_v24 }
0x21a5   :  { %18106 = vmatpush3.bf16.msra.mxu1 %v19716_v35  ;;  %18085 = vmatprep.subr.bf16.mxu0 %v19717_v40 }
0x21a6   :  { %18107 = vmatprep.subr.bf16.mxu1 %v19718_v42 }
0x21a8   :  { %18086 = vmatpush3.bf16.msra.mxu0 %v19719_v44 }
0x21a9   :  { %18108 = vmatpush3.bf16.msra.mxu1 %v19720_v0  ;;  %18087 = vmatprep.subr.bf16.mxu0 %v19721_v59 }
0x21aa   :  { %18109 = vmatprep.subr.bf16.mxu1 %v19722_v47 }
0x21ac   :  { %18088 = vmatpush3.bf16.msra.mxu0 %v19723_v57 }
0x21ad   :  { %18110 = vmatpush3.bf16.msra.mxu1 %v19724_v26  ;;  %18089 = vmatprep.subr.bf16.mxu0 %v19725_v6 }
0x21ae   :  { %18111 = vmatprep.subr.bf16.mxu1 %v19726_v8 }
0x21b0   :  { %18090 = vmatpush3.bf16.msra.mxu0 %v19727_v3 }
0x21b1   :  { %18112 = vmatpush3.bf16.msra.mxu1 %v19728_v36  ;;  %18908 = vmatprep.subr.bf16.mxu0 %v20245_v5 }
0x21b2   :  { %18916 = vmatprep.subr.bf16.mxu1 %v20245_v5 }
0x21b3   :  { %6579 = vmatmul.mubr.bf16.vlgmr.msra.gmra.mrb[144].mxu0 %v21749_v20  ;;  %v6715_v20 = vpack.c.bf16 %v21999_v60, %v21997_v13 }
0x21b4   :  { %6620 = vmatmul.mubr.bf16.vlgmr.msra.gmra.mrb[144].mxu1 %v21751_v22  ;;  %18909 = vmatpush3.bf16.msra.mxu0 %v19729_v16 }
0x21b5   :  { %18910 = vmatprep.subr.bf16.mxu0 %v20245_v5  ;;  %18912 = vmatprep.mubr.msk.bf16.mxu0 %vm20247_vm0, %v20245_v5 }
0x21b6   :  { %18918 = vmatprep.mubr.msk.bf16.mxu1 %vm20247_vm0, %v20245_v5 }
0x21b8   :  { %18911 = vmatpush3.bf16.msra.mxu0 %v19730_v12 }
0x21b9   :  { %18922 = vmatprep.subr.bf16.mxu0 %v20245_v5 }
0x21bb   :  { %18913 = vmatmul.mubr.msk.bf16.vlgmr.msra.gmra.mrb[148].mxu0 %vm150_vm1, %v6715_v20 }
0x21bc   :  { %18924 = vmatprep.mubr.msk.bf16.mxu0 %vm20247_vm0, %v20245_v5 }
0x2226   :  { %v17959_v22 = vpop.f32.mrb[132].mxu0  ;;  %v17981_v19 = vpop.f32.mrb[132].mxu1 }
0x2227   :  { %v17960_v37 = vpop.f32.mrb[133].mxu0  ;;  %v17982_v27 = vpop.f32.mrb[133].mxu1 }
0x2228   :  { %v17961_v10 = vadd.f32 %v17960_v37, %v17959_v22  ;;  %v17983_v21 = vadd.f32 %v17982_v27, %v17981_v19  ;;  %v17962_v30 = vpop.f32.mrb[134].mxu0  ;;  %v17984_v23 = vpop.f32.mrb[134].mxu1 }
0x2229   :  { %v17963_v31 = vpop.f32.mrb[135].mxu0  ;;  %v17985_v46 = vpop.f32.mrb[135].mxu1 }
0x222a   :  { %v6335_v32 = vadd.f32 %v17961_v10, %v16464_v18  ;;  %v17964_v58 = vadd.f32 %v17963_v31, %v17962_v30  ;;  %v17986_v33 = vadd.f32 %v17985_v46, %v17984_v23 }
0x222c   :  { %v6376_v34 = vadd.f32 %v17983_v21, %v6335_v32  ;;  %v6338_v24 = vadd.f32 %v17964_v58, %v16464_v18 }
0x222e   :  { %v6379_v35 = vadd.f32 %v17986_v33, %v6338_v24 }
0x2246   :  { %v18003_v40 = vpop.f32.mrb[136].mxu0  ;;  %v18025_v41 = vpop.f32.mrb[136].mxu1 }
0x2247   :  { %v18004_v42 = vpop.f32.mrb[137].mxu0  ;;  %v18026_v44 = vpop.f32.mrb[137].mxu1 }
0x2248   :  { %v18005_v0 = vadd.f32 %v18004_v42, %v18003_v40  ;;  %v18027_v59 = vadd.f32 %v18026_v44, %v18025_v41  ;;  %v18006_v45 = vpop.f32.mrb[138].mxu0  ;;  %v18028_v47 = vpop.f32.mrb[138].mxu1 }
0x2249   :  { %v18007_v54 = vpop.f32.mrb[139].mxu0  ;;  %v18029_v55 = vpop.f32.mrb[139].mxu1 }
0x224a   :  { %v6417_v43 = vadd.f32 %v18005_v0, %v6376_v34  ;;  %v18008_v57 = vadd.f32 %v18007_v54, %v18006_v45  ;;  %v18030_v25 = vadd.f32 %v18029_v55, %v18028_v47  ;;  %v16601_v34 = vld [vmem:[%s24190_s5 + $0x13] ss:$0 sm:$0xff] }
0x224c   :  { %v6458_v26 = vadd.f32 %v18027_v59, %v6417_v43  ;;  %v6420_v6 = vadd.f32 %v18008_v57, %v6379_v35 }
0x224e   :  { %v6461_v8 = vadd.f32 %v18030_v25, %v6420_v6 }
0x2266   :  { %v18047_v9 = vpop.f32.mrb[140].mxu0 }
0x2267   :  { %v18069_v63 = vpop.f32.mrb[140].mxu1  ;;  %v18048_v62 = vpop.f32.mrb[141].mxu0 }
0x2268   :  { %v18049_v2 = vadd.f32 %v18048_v62, %v18047_v9  ;;  %v18070_v3 = vpop.f32.mrb[141].mxu1  ;;  %v18050_v61 = vpop.f32.mrb[142].mxu0 }
0x2269   :  { %v18071_v38 = vadd.f32 %v18070_v3, %v18069_v63  ;;  %v18072_v36 = vpop.f32.mrb[142].mxu1  ;;  %v18051_v15 = vpop.f32.mrb[143].mxu0 }
0x226a   :  { %v6499_v11 = vadd.f32 %v18049_v2, %v6458_v26  ;;  %v18052_v16 = vadd.f32 %v18051_v15, %v18050_v61  ;;  %v18073_v39 = vpop.f32.mrb[143].mxu1 }
0x226b   :  { %v18074_v56 = vadd.f32 %v18073_v39, %v18072_v36 }
0x226c   :  { %v6540_v17 = vadd.f32 %v18071_v38, %v6499_v11  ;;  %v6502_v14 = vadd.f32 %v18052_v16, %v6461_v8 }
0x226e   :  { %v6543_v12 = vadd.f32 %v18074_v56, %v6502_v14 }
0x2286   :  { %v18091_v20 = vpop.f32.mrb[144].mxu0 }
0x2287   :  { %v18113_v22 = vpop.f32.mrb[144].mxu1  ;;  %v18092_v19 = vpop.f32.mrb[145].mxu0 }
0x2288   :  { %v18093_v18 = vadd.f32 %v18092_v19, %v18091_v20  ;;  %v18114_v37 = vpop.f32.mrb[145].mxu1  ;;  %v18094_v27 = vpop.f32.mrb[146].mxu0 }
0x2289   :  { %v18115_v10 = vadd.f32 %v18114_v37, %v18113_v22  ;;  %v18116_v21 = vpop.f32.mrb[146].mxu1  ;;  %v18095_v30 = vpop.f32.mrb[147].mxu0 }
0x228a   :  { %v6581_v23 = vadd.f32 %v18093_v18, %v6540_v17  ;;  %v18096_v31 = vadd.f32 %v18095_v30, %v18094_v27  ;;  %v18117_v46 = vpop.f32.mrb[147].mxu1 }
0x228b   :  { %v18118_v32 = vadd.f32 %v18117_v46, %v18116_v21 }
0x228c   :  { %v22015_v58 = vadd.f32 %v18115_v10, %v6581_v23  ;;  %v6584_v33 = vadd.f32 %v18096_v31, %v6543_v12 }
0x228e   :  { %v22020_v24 = vadd.f32 %v18118_v32, %v6584_v33  ;;  %v6770_v35 = vpop.f32.mrb[148].mxu0 }
0x228f   :  { %v6771_v40 = vadd.f32 %v16601_v34, %v6770_v35  ;;  %v18914_v41 = vpop.f32.mrb[149].mxu0 }
0x2290   :  { %v6773_v42 = vpop.f32.mrb[150].mxu0 }
0x2291   :  { %v22022_v44 = vpack.c.bf16 %v6771_v40, %v6771_v40  ;;  %v6774_v0 = vadd.f32 %v16601_v34, %v6773_v42  ;;  %v18915_v59 = vpop.f32.mrb[151].mxu0 }
0x2293   :  { %6785 = vrot.lane.b32.xlu1 %v22022_v44, %s20248_s18  ;;  %v22026_v45 = vpack.c.bf16 %v6774_v0, %v6774_v0 }
0x2297   :  { %6834 = vrot.lane.b32.xlu1 %v22026_v45, %s20248_s18 }
0x2305   :  { %v6786_v47 = vpop.permute.xlu1 %6785 }
0x2306   :  { %v6791_v54 = vsel %vm205_vm2, %v6786_v47, 0 }
0x2307   :  { %18917 = vmatpush3.bf16.xpose.msra.mxu1 %v6791_v54 }
0x2308   :  { %18928 = vmatprep.subr.bf16.mxu1 %v20245_v5 }
0x2309   :  { %v6835_v55 = vpop.permute.xlu1 %6834 }
0x230a   :  { %v6840_v43 = vsel %vm205_vm2, %v6835_v55, 0 }
0x230b   :  { %18923 = vmatpush3.bf16.xpose.msra.mxu0 %v6840_v43 }
0x230c   :  { %18934 = vmatprep.subr.bf16.mxu0 %v20245_v5 }
0x230e   :  { %18919 = vmatmul.mubr.msk.bf16.vlgmr.msra.gmra.mrb[148].mxu1 %vm205_vm2, %v22022_v44 }
0x230f   :  { %18930 = vmatprep.mubr.msk.bf16.mxu1 %vm20247_vm0, %v20245_v5 }
0x2312   :  { %18925 = vmatmul.mubr.msk.bf16.vlgmr.msra.gmra.mrb[152].mxu0 %vm205_vm2, %v22026_v45 }
0x2313   :  { %18936 = vmatprep.mubr.msk.bf16.mxu0 %vm20247_vm0, %v20245_v5 }
0x23e1   :  { %v6827_v57 = vpop.f32.mrb[148].mxu1 }
0x23e2   :  { %v18920_v25 = vpop.f32.mrb[149].mxu1  ;;  %v6882_v26 = vsel %vm205_vm2, %v6827_v57, -inf }
0x23e3   :  { %6883 = vmax.xlane.f32.xlu1 %v6882_v26  ;;  %v6830_v6 = vpop.f32.mrb[150].mxu1 }
0x23e4   :  { %v18921_v8 = vpop.f32.mrb[151].mxu1 }
0x23e5   :  { %v6876_v9 = vpop.f32.mrb[152].mxu0 }
0x23e6   :  { %v18926_v63 = vpop.f32.mrb[153].mxu0  ;;  %v6885_v62 = vsel %vm205_vm2, %v6876_v9, -inf }
0x23e7   :  { %6886 = vmax.xlane.f32.xlu0 %v6885_v62  ;;  %v6879_v2 = vpop.f32.mrb[154].mxu0 }
0x23e8   :  { %v18927_v3 = vpop.f32.mrb[155].mxu0 }
0x23f4   :  { %6954 = vrot.lane.b32.xlu1 %v22026_v45, %s20249_s19 }
0x23fd   :  { %6906 = vrot.lane.b32.xlu0 %v22022_v44, %s20249_s19 }
0x2470   :  { %v6884_v61 = vpop.xlane.xlu1 %6883 }
0x2471   :  { %v6888_v38 = vsub.f32 %v6827_v57, %v6884_v61 }
0x2473   :  { %v6890_v36 = vmul.f32 1.442695, %v6888_v38 }
0x2474   :  { %v6887_v15 = vpop.xlane.xlu0 %6886  ;;  %v6955_v11 = vpop.permute.xlu1 %6954 }
0x2475   :  { %20075 = vpow2.f32 %v6890_v36  ;;  %v6889_v16 = vsub.f32 %v6876_v9, %v6887_v15  ;;  %v6960_v39 = vsel %vm330_vm3, %v6955_v11, 0 }
0x2476   :  { %18935 = vmatpush3.bf16.msra.mxu0 %v6960_v39 }
0x2477   :  { %v6892_v56 = vmul.f32 1.442695, %v6889_v16  ;;  %18946 = vmatprep.subr.bf16.mxu0 %v20245_v5 }
0x2478   :  { %v6907_v17 = vpop.permute.xlu0 %6906 }
0x2479   :  { %20077 = vpow2.f32 %v6892_v56  ;;  %v6912_v14 = vsel %vm330_vm3, %v6907_v17, 0 }
0x247a   :  { %18929 = vmatpush3.bf16.msra.mxu1 %v6912_v14 }
0x247b   :  { %18940 = vmatprep.subr.bf16.mxu1 %v20245_v5 }
0x247f   :  { %v20076_v12 = vpop.eup %20075 }
0x2480   :  { %v6894_v20 = vsel %vm205_vm2, %v20076_v12, 0.0 }
0x2481   :  { %6895 = vadd.xlane.f32.xlu0 %v6894_v20 }
0x2483   :  { %v20078_v22 = vpop.eup %20077 }
0x2484   :  { %v6897_v19 = vsel %vm205_vm2, %v20078_v22, 0.0 }
0x2485   :  { %6898 = vadd.xlane.f32.xlu1 %v6897_v19 }
0x2496   :  { %7005 = vrot.lane.b32.xlu1 %v22022_v44, %s20250_s20 }
0x2497   :  { %7055 = vrot.lane.b32.xlu0 %v22026_v45, %s20250_s20 }
0x249a   :  { %7003 = vrot.lane.b32.xlu1 %v22022_v44, %s20251_s21 }
0x249b   :  { %7053 = vrot.lane.b32.xlu0 %v22026_v45, %s20251_s21 }
0x250e   :  { %v6896_v18 = vpop.xlane.xlu0 %6895 }
0x250f   :  { %20079 = vrcp.f32 %v6896_v18 }
0x2512   :  { %v6899_v37 = vpop.xlane.xlu1 %6898  ;;  %v7056_v32 = vpop.permute.xlu0 %7055 }
0x2513   :  { %20081 = vrcp.f32 %v6899_v37  ;;  %v7061_v34 = vsel %vm205_vm2, %v7056_v32, 0  ;;  %v16605_v32 = vld [vmem:[%s24189_s2 + $0x60] sm:$0xf] }
0x2516   :  { %v7006_v21 = vpop.permute.xlu1 %7005  ;;  %v7054_v40 = vpop.permute.xlu0 %7053 }
0x2517   :  { %v7011_v31 = vsel %vm205_vm2, %v7006_v21, 0  ;;  %v16606_v21 = vld [vmem:[%s24189_s2 + $0x64] sm:$0xf] }
0x2519   :  { %v20080_v27 = vpop.eup %20079 }
0x251a   :  { %v6902_v10 = vmul.f32 %v20080_v27, %v20076_v12  ;;  %v7004_v35 = vpop.permute.xlu1 %7003 }
0x251c   :  { %v6904_v30 = vpack.c.bf16 %v6902_v10, %v6902_v10 }
0x251d   :  { %v20082_v23 = vpop.eup %20081 }
0x251e   :  { %18931 = vmatmul.mubr.msk.bf16.vlgmr.msra.gmra.mrb[152].mxu1 %vm205_vm2, %v6904_v30  ;;  %v6903_v46 = vmul.f32 %v20082_v23, %v20078_v22 }
0x251f   :  { %18941 = vmatpush3.bf16.xpose.msra.mxu1 %v7011_v31  ;;  %18942 = vmatprep.mubr.msk.bf16.mxu1 %vm20247_vm0, %v20245_v5  ;;  %v7228_v31 = vsel %vm330_vm3, %v16606_v21, 0 }
0x2520   :  { %v6905_v33 = vpack.c.bf16 %v6903_v46, %v6903_v46  ;;  %18952 = vmatprep.subr.bf16.mxu1 %v20245_v5 }
0x2522   :  { %18937 = vmatmul.mubr.msk.bf16.vlgmr.msra.gmra.mrb[156].mxu0 %vm205_vm2, %v6905_v33 }
0x2523   :  { %18947 = vmatpush3.bf16.xpose.msra.mxu0 %v7061_v34  ;;  %18948 = vmatprep.mubr.msk.bf16.mxu0 %vm20247_vm0, %v20245_v5 }
0x2524   :  { %18958 = vmatprep.subr.bf16.mxu0 %v20245_v5 }
0x2526   :  { %18943 = vmatmul.mubr.msk.bf16.vlgmr.msra.gmra.mrb[156].mxu1 %vm205_vm2, %v7004_v35  ;;  %v7275_v35 = vsel %vm330_vm3, %v16605_v32, 0 }
0x2527   :  { %18954 = vmatprep.mubr.msk.bf16.mxu1 %vm20247_vm0, %v20245_v5 }
0x252a   :  { %18949 = vmatmul.mubr.msk.bf16.vlgmr.msra.gmra.mrb[160].mxu0 %vm205_vm2, %v7054_v40 }
0x252b   :  { %18960 = vmatprep.mubr.msk.bf16.mxu0 %vm20247_vm0, %v20245_v5 }
0x25f1   :  { %v22078_v41 = vpop.f32.mrb[152].mxu1 }
0x25f2   :  { %v18932_v42 = vpop.f32.mrb[153].mxu1 }
0x25f3   :  { %v6951_v0 = vpop.f32.mrb[154].mxu1 }
0x25f4   :  { %v18933_v59 = vpop.f32.mrb[155].mxu1 }
0x25f5   :  { %v22080_v47 = vpop.f32.mrb[156].mxu0 }
0x25f6   :  { %v7002_v54 = vpack.c.bf16 %v22080_v47, %v22078_v41  ;;  %v18938_v55 = vpop.f32.mrb[157].mxu0 }
0x25f7   :  { %v6999_v43 = vpop.f32.mrb[158].mxu0 }
0x25f8   :  { %v18939_v57 = vpop.f32.mrb[159].mxu0 }
0x25f9   :  { %v7047_v25 = vpop.f32.mrb[156].mxu1 }
0x25fa   :  { %v18944_v26 = vpop.f32.mrb[157].mxu1  ;;  %v7103_v6 = vsel %vm205_vm2, %v7047_v25, -inf }
0x25fb   :  { %7104 = vmax.xlane.f32.xlu1 %v7103_v6  ;;  %v7050_v8 = vpop.f32.mrb[158].mxu1 }
0x25fc   :  { %v18945_v9 = vpop.f32.mrb[159].mxu1 }
0x25fd   :  { %v7097_v63 = vpop.f32.mrb[160].mxu0 }
0x25fe   :  { %v18950_v62 = vpop.f32.mrb[161].mxu0  ;;  %v7106_v2 = vsel %vm205_vm2, %v7097_v63, -inf }
0x25ff   :  { %7107 = vmax.xlane.f32.xlu0 %v7106_v2  ;;  %v7100_v3 = vpop.f32.mrb[162].mxu0 }
0x2600   :  { %v18951_v61 = vpop.f32.mrb[163].mxu0 }
0x2688   :  { %v7105_v38 = vpop.xlane.xlu1 %7104 }
0x2689   :  { %v7109_v36 = vsub.f32 %v7047_v25, %v7105_v38 }
0x268b   :  { %v7111_v15 = vmul.f32 1.442695, %v7109_v36 }
0x268c   :  { %v7108_v11 = vpop.xlane.xlu0 %7107 }
0x268d   :  { %20083 = vpow2.f32 %v7111_v15  ;;  %v7110_v16 = vsub.f32 %v7097_v63, %v7108_v11 }
0x268f   :  { %v7113_v39 = vmul.f32 1.442695, %v7110_v16 }
0x2691   :  { %20085 = vpow2.f32 %v7113_v39 }
0x2697   :  { %v20084_v56 = vpop.eup %20083 }
0x2698   :  { %v7115_v17 = vsel %vm205_vm2, %v20084_v56, 0.0 }
0x2699   :  { %7116 = vadd.xlane.f32.xlu0 %v7115_v17 }
0x269b   :  { %v20086_v14 = vpop.eup %20085 }
0x269c   :  { %v7118_v12 = vsel %vm205_vm2, %v20086_v14, 0.0 }
0x269d   :  { %7119 = vadd.xlane.f32.xlu1 %v7118_v12 }
0x26ae   :  { %7175 = vrot.lane.b32.xlu1 %v22026_v45, %s20252_s22 }
0x26af   :  { %7127 = vrot.lane.b32.xlu0 %v22022_v44, %s20252_s22 }
0x26b2   :  { %7320 = vrot.lane.b32.xlu1 %v22022_v44, %s20253_s23 }
0x26b3   :  { %7370 = vrot.lane.b32.xlu0 %v22026_v45, %s20253_s23 }
0x26b6   :  { %7318 = vrot.lane.b32.xlu1 %v22022_v44, %s20254_s24 }
0x26b7   :  { %7368 = vrot.lane.b32.xlu0 %v22026_v45, %s20254_s24 }
0x2726   :  { %v7117_v20 = vpop.xlane.xlu0 %7116 }
0x2727   :  { %20087 = vrcp.f32 %v7117_v20 }
0x272a   :  { %v7128_v22 = vpop.permute.xlu0 %7127  ;;  %v7120_v19 = vpop.xlane.xlu1 %7119 }
0x272b   :  { %v7133_v18 = vsel %vm330_vm3, %v7128_v22, 0  ;;  %20089 = vrcp.f32 %v7120_v19 }
0x272c   :  { %18953 = vmatpush3.bf16.msra.mxu1 %v7133_v18 }
0x272d   :  { %18964 = vmatprep.subr.bf16.mxu1 %v20245_v5 }
0x272e   :  { %v7176_v37 = vpop.permute.xlu1 %7175  ;;  %v7371_v40 = vpop.permute.xlu0 %7370 }
0x272f   :  { %v7181_v27 = vsel %vm330_vm3, %v7176_v37, 0  ;;  %v7376_v42 = vsel %vm205_vm2, %v7371_v40, 0 }
0x2730   :  { %18959 = vmatpush3.bf16.msra.mxu0 %v7181_v27 }
0x2731   :  { %v20088_v10 = vpop.eup %20087  ;;  %18970 = vmatprep.subr.bf16.mxu0 %v20245_v5 }
0x2732   :  { %v7123_v30 = vmul.f32 %v20088_v10, %v20084_v56  ;;  %v7369_v0 = vpop.permute.xlu0 %7368  ;;  %v7321_v47 = vpop.permute.xlu1 %7320 }
0x2733   :  { %v7326_v6 = vsel %vm205_vm2, %v7321_v47, 0 }
0x2734   :  { %v7125_v23 = vpack.c.bf16 %v7123_v30, %v7123_v30 }
0x2735   :  { %v20090_v46 = vpop.eup %20089 }
0x2736   :  { %18955 = vmatmul.mubr.msk.bf16.vlgmr.msra.gmra.mrb[160].mxu1 %vm205_vm2, %v7125_v23  ;;  %v7124_v33 = vmul.f32 %v20090_v46, %v20086_v14  ;;  %v7319_v62 = vpop.permute.xlu1 %7318 }
0x2737   :  { %18965 = vmatpush3.bf16.msra.mxu1 %v7228_v31  ;;  %18966 = vmatprep.mubr.msk.bf16.mxu1 %vm20247_vm0, %v20245_v5 }
0x2738   :  { %v7126_v34 = vpack.c.bf16 %v7124_v33, %v7124_v33  ;;  %18976 = vmatprep.subr.bf16.mxu1 %v20245_v5 }
0x273a   :  { %18961 = vmatmul.mubr.msk.bf16.vlgmr.msra.gmra.mrb[164].mxu0 %vm205_vm2, %v7126_v34 }
0x273b   :  { %18971 = vmatpush3.bf16.msra.mxu0 %v7275_v35  ;;  %18972 = vmatprep.mubr.msk.bf16.mxu0 %vm20247_vm0, %v20245_v5 }
0x273c   :  { %18982 = vmatprep.subr.bf16.mxu0 %v20245_v5 }
0x2742   :  { %18973 = vmatmul.mubr.msk.bf16.vlgmr.msra.gmra.mrb[168].mxu0 %vm205_vm2, %v7002_v54 }
0x2743   :  { %18984 = vmatprep.mubr.msk.bf16.mxu0 %vm20247_vm0, %v20245_v5 }
0x2744   :  { %18983 = vmatpush3.bf16.xpose.msra.mxu0 %v7376_v42 }
0x2745   :  { %18994 = vmatprep.subr.bf16.mxu0 %v20245_v5 }
0x274b   :  { %18985 = vmatmul.mubr.msk.bf16.vlgmr.msra.gmra.mrb[172].mxu0 %vm205_vm2, %v7369_v0 }
0x274c   :  { %18996 = vmatprep.mubr.msk.bf16.mxu0 %vm20247_vm0, %v20245_v5 }
0x2809   :  { %v7169_v59 = vpop.f32.mrb[160].mxu1 }
0x280a   :  { %v18956_v55 = vpop.f32.mrb[161].mxu1 }
0x280b   :  { %v7172_v43 = vpop.f32.mrb[162].mxu1 }
0x280c   :  { %v18957_v41 = vpop.f32.mrb[163].mxu1 }
0x280d   :  { %v7217_v54 = vpop.f32.mrb[164].mxu0 }
0x280e   :  { %v7223_v57 = vpack.c.bf16 %v7217_v54, %v7169_v59  ;;  %v18962_v25 = vpop.f32.mrb[165].mxu0 }
0x280f   :  { %v7220_v26 = vpop.f32.mrb[166].mxu0 }
0x2810   :  { %v18963_v8 = vpop.f32.mrb[167].mxu0  ;;  %18967 = vmatmul.mubr.msk.bf16.vlgmr.msra.gmra.mrb[164].mxu1 %vm205_vm2, %v7223_v57 }
0x2811   :  { %18977 = vmatpush3.bf16.xpose.msra.mxu1 %v7326_v6  ;;  %18978 = vmatprep.mubr.msk.bf16.mxu1 %vm20247_vm0, %v20245_v5  ;;  %v16607_v6 = vld [vmem:[%s24189_s2 + $0x68] sm:$0xf] }
0x2812   :  { %18988 = vmatprep.subr.bf16.mxu1 %v20245_v5 }
0x2815   :  { %v7311_v9 = vpop.f32.mrb[168].mxu0 }
0x2816   :  { %v18974_v63 = vpop.f32.mrb[169].mxu0 }
0x2817   :  { %v7314_v2 = vpop.f32.mrb[170].mxu0  ;;  %v7543_v63 = vsel %vm330_vm3, %v16607_v6, 0 }
0x2818   :  { %v18975_v3 = vpop.f32.mrb[171].mxu0  ;;  %18979 = vmatmul.mubr.msk.bf16.vlgmr.msra.gmra.mrb[168].mxu1 %vm205_vm2, %v7319_v62 }
0x2819   :  { %18990 = vmatprep.mubr.msk.bf16.mxu1 %vm20247_vm0, %v20245_v5 }
0x281e   :  { %v7412_v61 = vpop.f32.mrb[172].mxu0 }
0x281f   :  { %v18986_v38 = vpop.f32.mrb[173].mxu0  ;;  %v7421_v36 = vsel %vm205_vm2, %v7412_v61, -inf }
0x2820   :  { %7422 = vmax.xlane.f32.xlu0 %v7421_v36  ;;  %v7415_v15 = vpop.f32.mrb[174].mxu0 }
0x2821   :  { %v18987_v11 = vpop.f32.mrb[175].mxu0 }
0x28ad   :  { %v7423_v16 = vpop.xlane.xlu0 %7422 }
0x28ae   :  { %v7425_v39 = vsub.f32 %v7412_v61, %v7423_v16 }
0x28b0   :  { %v7428_v56 = vmul.f32 1.442695, %v7425_v39 }
0x28b2   :  { %20091 = vpow2.f32 %v7428_v56 }
0x28bc   :  { %v20092_v10 = vpop.eup %20091 }
0x28bd   :  { %v7433_v23 = vsel %vm205_vm2, %v20092_v10, 0.0 }
0x28e3   :  { %v7264_v17 = vpop.f32.mrb[164].mxu1 }
0x28e4   :  { %v22140_v14 = vadd.f32 %v7311_v9, %v7264_v17  ;;  %v18968_v12 = vpop.f32.mrb[165].mxu1 }
0x28e5   :  { %v7267_v20 = vpop.f32.mrb[166].mxu1 }
0x28e6   :  { %v22142_v22 = vadd.f32 %v7314_v2, %v7267_v20  ;;  %v18969_v19 = vpop.f32.mrb[167].mxu1 }
0x28eb   :  { %v7362_v18 = vpop.f32.mrb[168].mxu1 }
0x28ec   :  { %v18980_v37 = vpop.f32.mrb[169].mxu1  ;;  %v7418_v27 = vsel %vm205_vm2, %v7362_v18, -inf }
0x28ed   :  { %7419 = vmax.xlane.f32.xlu1 %v7418_v27  ;;  %v7365_v21 = vpop.f32.mrb[170].mxu1 }
0x28ee   :  { %v18981_v30 = vpop.f32.mrb[171].mxu1 }
0x28f1   :  { %7434 = vadd.xlane.f32.xlu1 %v7433_v23 }
0x2902   :  { %7490 = vrot.lane.b32.xlu1 %v22026_v45, %s20255_s29 }
0x2906   :  { %7590 = vrot.lane.b32.xlu1 %v22022_v44, %s20256_s0 }
0x290a   :  { %7588 = vrot.lane.b32.xlu1 %v22022_v44, %s20257_s30 }
0x297a   :  { %v7420_v31 = vpop.xlane.xlu1 %7419 }
0x297b   :  { %v7424_v46 = vsub.f32 %v7362_v18, %v7420_v31 }
0x297d   :  { %v7426_v32 = vmul.f32 1.442695, %v7424_v46 }
0x297e   :  { %v7435_v33 = vpop.xlane.xlu1 %7434 }
0x297f   :  { %20093 = vpow2.f32 %v7426_v32 }
0x2980   :  { %20095 = vrcp.f32 %v7435_v33 }
0x2982   :  { %v7491_v34 = vpop.permute.xlu1 %7490 }
0x2983   :  { %v7496_v35 = vsel %vm330_vm3, %v7491_v34, 0 }
0x2984   :  { %18995 = vmatpush3.bf16.msra.mxu0 %v7496_v35 }
0x2985   :  { %19006 = vmatprep.subr.bf16.mxu0 %v20245_v5 }
0x2986   :  { %v7591_v55 = vpop.permute.xlu1 %7590 }
0x2987   :  { %v7596_v41 = vsel %vm205_vm2, %v7591_v55, 0 }
0x2989   :  { %v20094_v40 = vpop.eup %20093 }
0x298a   :  { %v20096_v42 = vpop.eup %20095  ;;  %v7430_v0 = vsel %vm205_vm2, %v20094_v40, 0.0  ;;  %v7589_v47 = vpop.permute.xlu1 %7588 }
0x298b   :  { %7431 = vadd.xlane.f32.xlu0 %v7430_v0  ;;  %v7439_v59 = vmul.f32 %v20096_v42, %v20092_v10 }
0x298d   :  { %v7441_v43 = vpack.c.bf16 %v7439_v59, %v7439_v59 }
0x298f   :  { %18997 = vmatmul.mubr.msk.bf16.vlgmr.msra.gmra.mrb[176].mxu0 %vm205_vm2, %v7441_v43 }
0x2990   :  { %19007 = vmatpush3.bf16.xpose.msra.mxu0 %v7596_v41  ;;  %19008 = vmatprep.mubr.msk.bf16.mxu0 %vm20247_vm0, %v20245_v5 }
0x2991   :  { %19018 = vmatprep.subr.bf16.mxu0 %v20245_v5 }
0x2997   :  { %19009 = vmatmul.mubr.msk.bf16.vlgmr.msra.gmra.mrb[180].mxu0 %vm205_vm2, %v7589_v47 }
0x2998   :  { %19020 = vmatprep.mubr.msk.bf16.mxu0 %vm20247_vm0, %v20245_v5 }
0x29a1   :  { %7442 = vrot.lane.b32.xlu0 %v22022_v44, %s20255_s29 }
0x29a5   :  { %7640 = vrot.lane.b32.xlu0 %v22026_v45, %s20256_s0 }
0x29a9   :  { %7638 = vrot.lane.b32.xlu0 %v22026_v45, %s20257_s30 }
0x2a18   :  { %v7432_v54 = vpop.xlane.xlu0 %7431 }
0x2a19   :  { %20097 = vrcp.f32 %v7432_v54 }
0x2a1c   :  { %v7443_v57 = vpop.permute.xlu0 %7442 }
0x2a1d   :  { %v7448_v25 = vsel %vm330_vm3, %v7443_v57, 0 }
0x2a1e   :  { %18989 = vmatpush3.bf16.msra.mxu1 %v7448_v25 }
0x2a1f   :  { %19000 = vmatprep.subr.bf16.mxu1 %v20245_v5 }
0x2a20   :  { %v7641_v39 = vpop.permute.xlu0 %7640 }
0x2a21   :  { %v7646_v19 = vsel %vm205_vm2, %v7641_v39, 0 }
0x2a23   :  { %v20098_v26 = vpop.eup %20097 }
0x2a24   :  { %v7438_v8 = vmul.f32 %v20098_v26, %v20094_v40  ;;  %v7639_v37 = vpop.permute.xlu0 %7638 }
0x2a26   :  { %v7440_v9 = vpack.c.bf16 %v7438_v8, %v7438_v8 }
0x2a28   :  { %18991 = vmatmul.mubr.msk.bf16.vlgmr.msra.gmra.mrb[172].mxu1 %vm205_vm2, %v7440_v9 }
0x2a29   :  { %19001 = vmatpush3.bf16.msra.mxu1 %v7543_v63  ;;  %19002 = vmatprep.mubr.msk.bf16.mxu1 %vm20247_vm0, %v20245_v5 }
0x2a2a   :  { %19012 = vmatprep.subr.bf16.mxu1 %v20245_v5 }
0x2a62   :  { %v7532_v62 = vpop.f32.mrb[176].mxu0 }
0x2a63   :  { %v18998_v2 = vpop.f32.mrb[177].mxu0 }
0x2a64   :  { %v7535_v3 = vpop.f32.mrb[178].mxu0 }
0x2a65   :  { %v18999_v61 = vpop.f32.mrb[179].mxu0 }
0x2a6a   :  { %v7632_v38 = vpop.f32.mrb[180].mxu0 }
0x2a6b   :  { %v19010_v36 = vpop.f32.mrb[181].mxu0  ;;  %v7688_v15 = vsel %vm205_vm2, %v7632_v38, -inf }
0x2a6c   :  { %7689 = vmax.xlane.f32.xlu1 %v7688_v15  ;;  %v7635_v11 = vpop.f32.mrb[182].mxu0 }
0x2a6d   :  { %v19011_v16 = vpop.f32.mrb[183].mxu0 }
0x2af9   :  { %v7690_v27 = vpop.xlane.xlu1 %7689 }
0x2afa   :  { %v7694_v10 = vsub.f32 %v7632_v38, %v7690_v27 }
0x2afb   :  { %v7484_v56 = vpop.f32.mrb[172].mxu1 }
0x2afc   :  { %v7538_v17 = vpack.c.bf16 %v7532_v62, %v7484_v56  ;;  %v18992_v12 = vpop.f32.mrb[173].mxu1  ;;  %v7696_v21 = vmul.f32 1.442695, %v7694_v10  ;;  %v6628_v62 = vadd.f32 %v22015_v58, %v21453_v4 }
0x2afd   :  { %v7487_v20 = vpop.f32.mrb[174].mxu1 }
0x2afe   :  { %v18993_v18 = vpop.f32.mrb[175].mxu1  ;;  %19003 = vmatmul.mubr.msk.bf16.vlgmr.msra.gmra.mrb[176].mxu1 %vm205_vm2, %v7538_v17  ;;  %20099 = vpow2.f32 %v7696_v21  ;;  %v6632_v2 = vsel %vm150_vm1, %v6628_v62, 0.0  ;;  %v16594_v21 = vld [vmem:[%s24190_s5 + $0x11] ss:$0 sm:$0xff] }
0x2aff   :  { %19013 = vmatpush3.bf16.xpose.msra.mxu1 %v7646_v19  ;;  %19014 = vmatprep.mubr.msk.bf16.mxu1 %vm20247_vm0, %v20245_v5 }
0x2b00   :  { %19024 = vmatprep.subr.bf16.mxu1 %v20245_v5 }
0x2b06   :  { %19015 = vmatmul.mubr.msk.bf16.vlgmr.msra.gmra.mrb[180].mxu1 %vm205_vm2, %v7639_v37  ;;  %v16593_v37 = vld [vmem:[%s24190_s5 + $0x10] ss:$0 sm:$0xff] }
0x2b07   :  { %19026 = vmatprep.mubr.msk.bf16.mxu1 %vm20247_vm0, %v20245_v5 }
0x2b08   :  { %v20100_v42 = vpop.eup %20099 }
0x2b09   :  { %v7700_v55 = vsel %vm205_vm2, %v20100_v42, 0.0 }
0x2bd1   :  { %v7579_v30 = vpop.f32.mrb[176].mxu1 }
0x2bd2   :  { %v22189_v23 = vadd.f32 %v7579_v30, %v22140_v14  ;;  %v19004_v31 = vpop.f32.mrb[177].mxu1  ;;  %v6629_v14 = vadd.f32 %v22020_v24, %v21455_v7 }
0x2bd3   :  { %v7582_v46 = vpop.f32.mrb[178].mxu1 }
0x2bd4   :  { %v22192_v32 = vadd.f32 %v7582_v46, %v22142_v22  ;;  %v19005_v33 = vpop.f32.mrb[179].mxu1  ;;  %v6635_v22 = vsel %vm150_vm1, %v6629_v14, 0.0 }
0x2bd9   :  { %v7682_v34 = vpop.f32.mrb[180].mxu1 }
0x2bda   :  { %v19016_v35 = vpop.f32.mrb[181].mxu1  ;;  %v7691_v40 = vsel %vm205_vm2, %v7682_v34, -inf }
0x2bdb   :  { %7692 = vmax.xlane.f32.xlu0 %v7691_v40  ;;  %v7685_v0 = vpop.f32.mrb[182].mxu1  ;;  %v16608_v40 = vld [vmem:[%s24189_s2 + $0x6c] sm:$0xf] }
0x2bdc   :  { %v19017_v59 = vpop.f32.mrb[183].mxu1 }
0x2bdf   :  { %7701 = vadd.xlane.f32.xlu0 %v7700_v55 }
0x2bf5   :  { %7712 = vrot.lane.b32.xlu0 %v22022_v44, %s20258_s10 }
0x2c14   :  { %6636 = vadd.xlane.f32.xlu0 %v6635_v22 }
0x2c68   :  { %v7693_v43 = vpop.xlane.xlu0 %7692 }
0x2c69   :  { %v7695_v41 = vsub.f32 %v7682_v34, %v7693_v43 }
0x2c6b   :  { %v7698_v47 = vmul.f32 1.442695, %v7695_v41 }
0x2c6c   :  { %v7702_v54 = vpop.xlane.xlu0 %7701 }
0x2c6d   :  { %20101 = vpow2.f32 %v7698_v47 }
0x2c6e   :  { %20103 = vrcp.f32 %v7702_v54 }
0x2c70   :  { %v7713_v57 = vpop.permute.xlu0 %7712 }
0x2c71   :  { %v7718_v25 = vsel %vm330_vm3, %v7713_v57, 0 }
0x2c72   :  { %19019 = vmatpush3.bf16.msra.mxu0 %v7718_v25 }
0x2c73   :  { %19030 = vmatprep.subr.bf16.mxu0 %v20245_v5 }
0x2c77   :  { %v20102_v26 = vpop.eup %20101 }
0x2c78   :  { %v20104_v44 = vpop.eup %20103  ;;  %v7703_v6 = vsel %vm205_vm2, %v20102_v26, 0.0 }
0x2c79   :  { %7704 = vadd.xlane.f32.xlu1 %v7703_v6  ;;  %v7708_v7 = vmul.f32 %v20104_v44, %v20100_v42  ;;  %v7813_v42 = vsel %vm330_vm3, %v16608_v40, 0 }
0x2c7b   :  { %v7710_v24 = vpack.c.bf16 %v7708_v7, %v7708_v7 }
0x2c7d   :  { %19021 = vmatmul.mubr.msk.bf16.vlgmr.msra.gmra.mrb[184].mxu0 %vm205_vm2, %v7710_v24 }
0x2c7e   :  { %19032 = vmatprep.mubr.msk.bf16.mxu0 %vm20247_vm0, %v20245_v5  ;;  %19031 = vmatpush3.bf16.msra.mxu0 %v7813_v42 }
0x2c7f   :  { %19044 = vmatprep.subr.bf16.mxu0 %v20245_v5 }
0x2c8a   :  { %7760 = vrot.lane.b32.xlu1 %v22026_v45, %s20258_s10 }
0x2ca1   :  { %v6637_v8 = vpop.xlane.xlu0 %6636 }
0x2ca2   :  { %v6639_v9 = vmul.f32 0.03125, %v6637_v8 }
0x2ca4   :  { %v6641_v63 = vsub.f32 %v6629_v14, %v6639_v9  ;;  %v16629_v9 = vld [vmem:[%s24190_s5 + $0x14] ss:$0 sm:$0xff] }
0x2ca6   :  { %v6643_v3 = vmul.f32 %v6641_v63, %v6641_v63 }
0x2ca8   :  { %v6647_v61 = vsel %vm150_vm1, %v6643_v3, 0.0 }
0x2cae   :  { %6633 = vadd.xlane.f32.xlu1 %v6632_v2 }
0x2cb2   :  { %6648 = vadd.xlane.f32.xlu1 %v6647_v61 }
0x2d06   :  { %v7705_v38 = vpop.xlane.xlu1 %7704 }
0x2d07   :  { %20105 = vrcp.f32 %v7705_v38 }
0x2d0a   :  { %v7761_v36 = vpop.permute.xlu1 %7760 }
0x2d0b   :  { %v7766_v15 = vsel %vm330_vm3, %v7761_v36, 0 }
0x2d0c   :  { %19025 = vmatpush3.bf16.msra.mxu1 %v7766_v15 }
0x2d0d   :  { %19036 = vmatprep.subr.bf16.mxu1 %v20245_v5 }
0x2d11   :  { %v20106_v45 = vpop.eup %20105 }
0x2d12   :  { %v7709_v11 = vmul.f32 %v20106_v45, %v20102_v26 }
0x2d14   :  { %v7711_v16 = vpack.c.bf16 %v7709_v11, %v7709_v11 }
0x2d16   :  { %19027 = vmatmul.mubr.msk.bf16.vlgmr.msra.gmra.mrb[184].mxu1 %vm205_vm2, %v7711_v16 }
0x2d17   :  { %19040 = vmatprep.mubr.msk.bf16.mxu1 %vm20247_vm0, %v20245_v5 }
0x2d3b   :  { %v6634_v4 = vpop.xlane.xlu1 %6633 }
0x2d3c   :  { %v6638_v58 = vmul.f32 0.03125, %v6634_v4 }
0x2d3e   :  { %v6640_v39 = vsub.f32 %v6628_v62, %v6638_v58 }
0x2d3f   :  { %v6649_v56 = vpop.xlane.xlu1 %6648 }
0x2d40   :  { %v6651_v17 = vmul.f32 0.03125, %v6649_v56  ;;  %v6642_v12 = vmul.f32 %v6640_v39, %v6640_v39 }
0x2d42   :  { %v6653_v20 = vadd.f32 1e-05, %v6651_v17  ;;  %v6644_v19 = vsel %vm150_vm1, %v6642_v12, 0.0 }
0x2d43   :  { %6645 = vadd.xlane.f32.xlu0 %v6644_v19 }
0x2d44   :  { %20107 = vrsqrt.f32 %v6653_v20 }
0x2d4e   :  { %v20108_v18 = vpop.eup %20107 }
0x2d4f   :  { %v6657_v27 = vmul.f32 %v20108_v18, %v6641_v63 }
0x2d50   :  { %v7754_v10 = vpop.f32.mrb[184].mxu0 }
0x2d51   :  { %v19022_v30 = vpop.f32.mrb[185].mxu0  ;;  %v6663_v31 = vmul.f32 %v16593_v37, %v6657_v27 }
0x2d52   :  { %v7757_v46 = vpop.f32.mrb[186].mxu0 }
0x2d53   :  { %v19023_v33 = vpop.f32.mrb[187].mxu0  ;;  %v6669_v34 = vadd.f32 %v16594_v21, %v6663_v31 }
0x2d55   :  { %v6675_v35 = vsel %vm150_vm1, %v6669_v34, 0.0 }
0x2d56   :  { %6676 = vadd.xlane.f32.xlu1 %v6675_v35 }
0x2dd0   :  { %v6646_v0 = vpop.xlane.xlu0 %6645 }
0x2dd1   :  { %v6650_v59 = vmul.f32 0.03125, %v6646_v0 }
0x2dd3   :  { %v6652_v55 = vadd.f32 1e-05, %v6650_v59  ;;  %v16595_v59 = vld [vmem:[%s24190_s5 + $0x2b] ss:$0 sm:$0xff] }
0x2dd5   :  { %20109 = vrsqrt.f32 %v6652_v55 }
0x2ddf   :  { %v20110_v14 = vpop.eup %20109 }
0x2de0   :  { %v6656_v22 = vmul.f32 %v20110_v14, %v6640_v39 }
0x2de2   :  { %v6662_v43 = vmul.f32 %v16593_v37, %v6656_v22 }
0x2de3   :  { %v6677_v7 = vpop.xlane.xlu1 %6676 }
0x2de4   :  { %v6668_v41 = vadd.f32 %v16594_v21, %v6662_v43  ;;  %v6679_v63 = vmul.f32 0.03125, %v6677_v7 }
0x2de6   :  { %v6672_v47 = vsel %vm150_vm1, %v6668_v41, 0.0  ;;  %v6681_v45 = vsub.f32 %v6669_v34, %v6679_v63 }
0x2de7   :  { %6673 = vadd.xlane.f32.xlu0 %v6672_v47 }
0x2de9   :  { %v7802_v54 = vpop.f32.mrb[184].mxu1 }
0x2dea   :  { %v7808_v57 = vpack.c.bf16 %v7802_v54, %v7754_v10  ;;  %v19028_v25 = vpop.f32.mrb[185].mxu1 }
0x2deb   :  { %v7805_v26 = vpop.f32.mrb[186].mxu1 }
0x2dec   :  { %v19029_v44 = vpop.f32.mrb[187].mxu1  ;;  %19033 = vmatmul.mubr.msk.bf16.vlgmr.msra.gmra.mrb[188].mxu0 %vm205_vm2, %v7808_v57  ;;  %v19733_v26 = vld [vmem:[%s24189_s2 + $0x70] sm:$0xff]  }
0x2ded   :  { %19048 = vmatprep.mubr.msk.bf16.mxu0 %vm20247_vm0, %v20245_v5  ;;  %19037 = vmatpush3.bf16.msra.mxu1 %v19733_v26  ;;  %v19734_v44 = vld [vmem:[%s24189_s2 + $0x78] sm:$0xff]  }
0x2dee   :  { %19038 = vmatprep.subr.bf16.mxu1 %v20245_v5 }
0x2df1   :  { %19039 = vmatpush3.bf16.msra.mxu1 %v19734_v44 }
0x2df2   :  { %19052 = vmatprep.subr.bf16.mxu1 %v20245_v5 }
0x2e74   :  { %v6674_v6 = vpop.xlane.xlu0 %6673 }
0x2e75   :  { %v6678_v24 = vmul.f32 0.03125, %v6674_v6 }
0x2e77   :  { %v6680_v61 = vsub.f32 %v6668_v41, %v6678_v24  ;;  %v16596_v41 = vld [vmem:[%s24190_s5 + $0x2c] ss:$0 sm:$0xff] }
0x2e79   :  { %v6682_v39 = vmul.f32 %v6680_v61, %v6680_v61 }
0x2e7b   :  { %v6684_v17 = vsel %vm150_vm1, %v6682_v39, 0.0 }
0x2ebf   :  { %v7849_v8 = vpop.f32.mrb[188].mxu0 }
0x2ec0   :  { %v7856_v62 = vadd.f32 %v7849_v8, %v22189_v23  ;;  %v19034_v2 = vpop.f32.mrb[189].mxu0  ;;  %v6683_v23 = vmul.f32 %v6681_v45, %v6681_v45 }
0x2ec1   :  { %v7852_v3 = vpop.f32.mrb[190].mxu0  ;;  %v16630_v2 = vld [vmem:[%s24190_s5 + $0x18] ss:$0 sm:$0xff] }
0x2ec2   :  { %v7863_v38 = vadd.f32 %v16629_v9, %v7856_v62  ;;  %v7857_v36 = vadd.f32 %v7852_v3, %v22192_v32  ;;  %v19035_v15 = vpop.f32.mrb[191].mxu0  ;;  %v6687_v32 = vsel %vm150_vm1, %v6683_v23, 0.0 }
0x2ec3   :  { %v16631_v15 = vld [vmem:[%s24190_s5 + $0x19] ss:$0 sm:$0xff] }
0x2ec4   :  { %v7864_v11 = vadd.f32 %v16629_v9, %v7857_v36  ;;  %v7865_v16 = vadd.f32 %v7863_v38, %v21997_v13  ;;  %v19731_v13 = vld [vmem:[%s24189_s2 + $0x80] sm:$0xff]  }
0x2ec5   :  { %19045 = vmatpush3.bf16.msra.mxu0 %v19731_v13 }
0x2ec6   :  { %v7869_v4 = vsel %vm150_vm1, %v7865_v16, 0.0  ;;  %v7866_v58 = vadd.f32 %v7864_v11, %v21999_v60  ;;  %v19732_v60 = vld [vmem:[%s24189_s2 + $0x88] sm:$0xff]   ;;  %19046 = vmatprep.subr.bf16.mxu0 %v20245_v5 }
0x2ec7   :  { %7870 = vadd.xlane.f32.xlu0 %v7869_v4 }
0x2ec8   :  { %v7872_v56 = vsel %vm150_vm1, %v7866_v58, 0.0 }
0x2ec9   :  { %7873 = vadd.xlane.f32.xlu1 %v7872_v56  ;;  %19047 = vmatpush3.bf16.msra.mxu0 %v19732_v60 }
0x2eca   :  { %19058 = vmatprep.subr.bf16.mxu0 %v20245_v5 }
0x2ecb   :  { %6685 = vadd.xlane.f32.xlu0 %v6684_v17 }
0x2ecd   :  { %6688 = vadd.xlane.f32.xlu1 %v6687_v32 }
0x2f54   :  { %v7871_v12 = vpop.xlane.xlu0 %7870 }
0x2f55   :  { %v7875_v20 = vmul.f32 0.03125, %v7871_v12 }
0x2f56   :  { %v7874_v19 = vpop.xlane.xlu1 %7873 }
0x2f57   :  { %v7877_v18 = vsub.f32 %v7865_v16, %v7875_v20  ;;  %v7876_v37 = vmul.f32 0.03125, %v7874_v19 }
0x2f58   :  { %v6686_v27 = vpop.xlane.xlu0 %6685 }
0x2f59   :  { %v7878_v10 = vsub.f32 %v7866_v58, %v7876_v37  ;;  %v6690_v21 = vmul.f32 0.03125, %v6686_v27  ;;  %v7879_v30 = vmul.f32 %v7877_v18, %v7877_v18  ;;  %v16644_v58 = vld [vmem:[%s24190_s5 + $0x16] ss:$0 sm:$0xff] }
0x2f5a   :  { %v6689_v31 = vpop.xlane.xlu1 %6688 }
0x2f5b   :  { %v6692_v46 = vadd.f32 1e-05, %v6690_v21  ;;  %v6691_v33 = vmul.f32 0.03125, %v6689_v31  ;;  %v7881_v34 = vsel %vm150_vm1, %v7879_v30, 0.0  ;;  %v7880_v35 = vmul.f32 %v7878_v10, %v7878_v10 }
0x2f5c   :  { %7882 = vadd.xlane.f32.xlu0 %v7881_v34 }
0x2f5d   :  { %20111 = vrsqrt.f32 %v6692_v46  ;;  %v6693_v40 = vadd.f32 1e-05, %v6691_v33  ;;  %v7884_v42 = vsel %vm150_vm1, %v7880_v35, 0.0 }
0x2f5e   :  { %7885 = vadd.xlane.f32.xlu1 %v7884_v42 }
0x2f5f   :  { %20113 = vrsqrt.f32 %v6693_v40 }
0x2f67   :  { %v20112_v0 = vpop.eup %20111 }
0x2f68   :  { %v6696_v55 = vmul.f32 %v20112_v0, %v6680_v61 }
0x2f69   :  { %v20114_v14 = vpop.eup %20113 }
0x2f6a   :  { %v6702_v22 = vmul.f32 %v16595_v59, %v6696_v55  ;;  %v6697_v43 = vmul.f32 %v20114_v14, %v6681_v45 }
0x2f6c   :  { %v6703_v47 = vmul.f32 %v16595_v59, %v6697_v43  ;;  %v6708_v54 = vadd.f32 %v16596_v41, %v6702_v22 }
0x2f6e   :  { %v6709_v57 = vadd.f32 %v16596_v41, %v6703_v47 }
0x2f70   :  { %v22262_v25 = vpack.c.bf16 %v6709_v57, %v6708_v54 }
0x2f72   :  { %19049 = vmatmul.mubr.msk.bf16.vlgmr.msra.gmra.mrb[192].mxu0 %vm150_vm1, %v22262_v25 }
0x2f73   :  { %19060 = vmatprep.mubr.msk.bf16.mxu0 %vm20247_vm0, %v20245_v5 }
0x2fe9   :  { %v7883_v6 = vpop.xlane.xlu0 %7882 }
0x2fea   :  { %v7887_v7 = vmul.f32 0.03125, %v7883_v6 }
0x2feb   :  { %v7886_v24 = vpop.xlane.xlu1 %7885 }
0x2fec   :  { %v7889_v8 = vadd.f32 1e-05, %v7887_v7  ;;  %v7888_v9 = vmul.f32 0.03125, %v7886_v24 }
0x2fee   :  { %20115 = vrsqrt.f32 %v7889_v8  ;;  %v7890_v63 = vadd.f32 1e-05, %v7888_v9 }
0x2ff0   :  { %20117 = vrsqrt.f32 %v7890_v63 }
0x2ff8   :  { %v20116_v62 = vpop.eup %20115 }
0x2ff9   :  { %v7893_v3 = vmul.f32 %v20116_v62, %v7877_v18  ;;  %v16636_v18 = vld [vmem:[%s24190_s5 + $0x15] ss:$0 sm:$0xff] }
0x2ffa   :  { %v20118_v61 = vpop.eup %20117 }
0x2ffb   :  { %v7899_v38 = vmul.f32 %v16630_v2, %v7893_v3  ;;  %v7894_v36 = vmul.f32 %v20118_v61, %v7878_v10 }
0x2ffd   :  { %v7900_v45 = vmul.f32 %v16630_v2, %v7894_v36  ;;  %v22282_v11 = vadd.f32 %v16631_v15, %v7899_v38 }
0x2fff   :  { %v22284_v16 = vadd.f32 %v16631_v15, %v7900_v45 }
0x3001   :  { %v7912_v4 = vpack.c.bf16 %v22284_v16, %v22282_v11 }
0x3003   :  { %19041 = vmatmul.mubr.msk.bf16.vlgmr.msra.gmra.mrb[188].mxu1 %vm150_vm1, %v7912_v4 }
0x3004   :  { %19054 = vmatprep.mubr.msk.bf16.mxu1 %vm20247_vm0, %v20245_v5 }
0x3045   :  { %v8034_v39 = vpop.f32.mrb[192].mxu0 }
0x3046   :  { %v8035_v56 = vadd.f32 %v16644_v58, %v8034_v39  ;;  %v19050_v23 = vpop.f32.mrb[193].mxu0 }
0x3047   :  { %v8037_v17 = vpop.f32.mrb[194].mxu0 }
0x3048   :  { %v22294_v32 = vpack.c.bf16 %v8035_v56, %v8035_v56  ;;  %v8038_v13 = vadd.f32 %v16644_v58, %v8037_v17  ;;  %v19051_v60 = vpop.f32.mrb[195].mxu0 }
0x304a   :  { %v22296_v12 = vpack.c.bf16 %v8038_v13, %v8038_v13  ;;  %v8054_v20 = vsel %vm205_vm2, %v22294_v32, 0 }
0x304b   :  { %19053 = vmatpush3.bf16.xpose.msra.mxu1 %v8054_v20 }
0x304c   :  { %v8100_v19 = vsel %vm205_vm2, %v22296_v12, 0  ;;  %19064 = vmatprep.subr.bf16.mxu1 %v20245_v5 }
0x304d   :  { %19059 = vmatpush3.bf16.xpose.msra.mxu0 %v8100_v19 }
0x304e   :  { %19070 = vmatprep.subr.bf16.mxu0 %v20245_v5 }
0x30d6   :  { %v7967_v37 = vpop.f32.mrb[188].mxu1 }
0x30d7   :  { %v7968_v27 = vadd.f32 %v16636_v18, %v7967_v37  ;;  %v19042_v10 = vpop.f32.mrb[189].mxu1 }
0x30d8   :  { %v7970_v21 = vpop.f32.mrb[190].mxu1 }
0x30d9   :  { %v22307_v30 = vpack.c.bf16 %v7968_v27, %v7968_v27  ;;  %v7971_v31 = vadd.f32 %v16636_v18, %v7970_v21  ;;  %v19043_v46 = vpop.f32.mrb[191].mxu1 }
0x30db   :  { %v22309_v33 = vpack.c.bf16 %v7971_v31, %v7971_v31  ;;  %19055 = vmatmul.mubr.msk.bf16.vlgmr.msra.gmra.mrb[192].mxu1 %vm205_vm2, %v22307_v30 }
0x30dc   :  { %19066 = vmatprep.mubr.msk.bf16.mxu1 %vm20247_vm0, %v20245_v5 }
0x30dd   :  { %19061 = vmatmul.mubr.msk.bf16.vlgmr.msra.gmra.mrb[196].mxu0 %vm205_vm2, %v22309_v33 }
0x30de   :  { %19072 = vmatprep.mubr.msk.bf16.mxu0 %vm20247_vm0, %v20245_v5 }
0x31ae   :  { %v8090_v34 = vpop.f32.mrb[192].mxu1 }
0x31af   :  { %v19056_v35 = vpop.f32.mrb[193].mxu1  ;;  %v8142_v40 = vsel %vm205_vm2, %v8090_v34, -inf }
0x31b0   :  { %v8136_v42 = vpop.f32.mrb[196].mxu0  ;;  %8143 = vmax.xlane.f32.xlu0 %v8142_v40  ;;  %v8093_v0 = vpop.f32.mrb[194].mxu1 }
0x31b1   :  { %v19057_v59 = vpop.f32.mrb[195].mxu1  ;;  %v19062_v55 = vpop.f32.mrb[197].mxu0  ;;  %v8145_v14 = vsel %vm205_vm2, %v8136_v42, -inf }
0x31b2   :  { %8146 = vmax.xlane.f32.xlu1 %v8145_v14  ;;  %v8139_v22 = vpop.f32.mrb[198].mxu0 }
0x31b3   :  { %v19063_v43 = vpop.f32.mrb[199].mxu0 }
0x31c3   :  { %8216 = vrot.lane.b32.xlu1 %v22296_v12, %s20248_s18 }
0x31c6   :  { %8167 = vrot.lane.b32.xlu0 %v22294_v32, %s20248_s18 }
0x323d   :  { %v8144_v41 = vpop.xlane.xlu0 %8143 }
0x323e   :  { %v8148_v47 = vsub.f32 %v8090_v34, %v8144_v41 }
0x323f   :  { %v8147_v54 = vpop.xlane.xlu1 %8146 }
0x3240   :  { %v8150_v57 = vmul.f32 1.442695, %v8148_v47  ;;  %v8149_v26 = vsub.f32 %v8136_v42, %v8147_v54 }
0x3241   :  { %v8168_v44 = vpop.permute.xlu0 %8167 }
0x3242   :  { %20119 = vpow2.f32 %v8150_v57  ;;  %v8152_v6 = vmul.f32 1.442695, %v8149_v26  ;;  %v8173_v7 = vsel %vm330_vm3, %v8168_v44, 0 }
0x3243   :  { %v8217_v24 = vpop.permute.xlu1 %8216  ;;  %19065 = vmatpush3.bf16.msra.mxu1 %v8173_v7 }
0x3244   :  { %20121 = vpow2.f32 %v8152_v6  ;;  %v8222_v8 = vsel %vm330_vm3, %v8217_v24, 0  ;;  %19076 = vmatprep.subr.bf16.mxu1 %v20245_v5 }
0x3245   :  { %19071 = vmatpush3.bf16.msra.mxu0 %v8222_v8 }
0x3246   :  { %19082 = vmatprep.subr.bf16.mxu0 %v20245_v5 }
0x324c   :  { %v20120_v9 = vpop.eup %20119 }
0x324d   :  { %v8154_v63 = vsel %vm205_vm2, %v20120_v9, 0.0 }
0x324e   :  { %v20122_v62 = vpop.eup %20121  ;;  %8155 = vadd.xlane.f32.xlu0 %v8154_v63 }
0x324f   :  { %v8157_v2 = vsel %vm205_vm2, %v20122_v62, 0.0 }
0x3250   :  { %8158 = vadd.xlane.f32.xlu1 %v8157_v2 }
0x3261   :  { %8268 = vrot.lane.b32.xlu1 %v22294_v32, %s20251_s21 }
0x3264   :  { %8319 = vrot.lane.b32.xlu0 %v22296_v12, %s20251_s21 }
0x3265   :  { %8266 = vrot.lane.b32.xlu1 %v22307_v30, %s20251_s21 }
0x3268   :  { %8317 = vrot.lane.b32.xlu0 %v22309_v33, %s20251_s21 }
0x32db   :  { %v8156_v3 = vpop.xlane.xlu0 %8155 }
0x32dc   :  { %20123 = vrcp.f32 %v8156_v3 }
0x32dd   :  { %v8159_v61 = vpop.xlane.xlu1 %8158 }
0x32de   :  { %20125 = vrcp.f32 %v8159_v61 }
0x32df   :  { %v8320_v39 = vpop.permute.xlu0 %8319 }
0x32e0   :  { %v8325_v17 = vsel %vm205_vm2, %v8320_v39, 0 }
0x32e1   :  { %v8269_v45 = vpop.permute.xlu1 %8268 }
0x32e2   :  { %v8274_v56 = vsel %vm205_vm2, %v8269_v45, 0 }
0x32e3   :  { %v8318_v60 = vpop.permute.xlu0 %8317 }
0x32e5   :  { %v8267_v13 = vpop.permute.xlu1 %8266 }
0x32e6   :  { %v20124_v38 = vpop.eup %20123 }
0x32e7   :  { %v8162_v36 = vmul.f32 %v20124_v38, %v20120_v9 }
0x32e8   :  { %v20126_v15 = vpop.eup %20125 }
0x32e9   :  { %v8164_v4 = vpack.c.bf16 %v8162_v36, %v8162_v36  ;;  %v8163_v58 = vmul.f32 %v20126_v15, %v20122_v62  ;;  %v16649_v36 = vld [vmem:[%s24189_s2 + $0x94] sm:$0xf] }
0x32eb   :  { %19067 = vmatmul.mubr.msk.bf16.vlgmr.msra.gmra.mrb[196].mxu1 %vm205_vm2, %v8164_v4  ;;  %v8165_v23 = vpack.c.bf16 %v8163_v58, %v8163_v58  ;;  %v16648_v4 = vld [vmem:[%s24189_s2 + $0x90] sm:$0xf] }
0x32ec   :  { %19077 = vmatpush3.bf16.xpose.msra.mxu1 %v8274_v56  ;;  %19078 = vmatprep.mubr.msk.bf16.mxu1 %vm20247_vm0, %v20245_v5  ;;  %v8492_v56 = vsel %vm330_vm3, %v16649_v36, 0 }
0x32ed   :  { %19073 = vmatmul.mubr.msk.bf16.vlgmr.msra.gmra.mrb[200].mxu0 %vm205_vm2, %v8165_v23  ;;  %19088 = vmatprep.subr.bf16.mxu1 %v20245_v5 }
0x32ee   :  { %19083 = vmatpush3.bf16.xpose.msra.mxu0 %v8325_v17  ;;  %19084 = vmatprep.mubr.msk.bf16.mxu0 %vm20247_vm0, %v20245_v5  ;;  %v8539_v17 = vsel %vm330_vm3, %v16648_v4, 0 }
0x32ef   :  { %19094 = vmatprep.subr.bf16.mxu0 %v20245_v5 }
0x32f3   :  { %19079 = vmatmul.mubr.msk.bf16.vlgmr.msra.gmra.mrb[200].mxu1 %vm205_vm2, %v8267_v13 }
0x32f4   :  { %19090 = vmatprep.mubr.msk.bf16.mxu1 %vm20247_vm0, %v20245_v5 }
0x32f5   :  { %19085 = vmatmul.mubr.msk.bf16.vlgmr.msra.gmra.mrb[204].mxu0 %vm205_vm2, %v8318_v60 }
0x32f6   :  { %19096 = vmatprep.mubr.msk.bf16.mxu0 %vm20247_vm0, %v20245_v5 }
0x33be   :  { %v22355_v20 = vpop.f32.mrb[196].mxu1 }
0x33bf   :  { %v19068_v19 = vpop.f32.mrb[197].mxu1 }
0x33c0   :  { %v8212_v18 = vpop.f32.mrb[198].mxu1  ;;  %v22357_v37 = vpop.f32.mrb[200].mxu0 }
0x33c1   :  { %v8264_v27 = vpack.c.bf16 %v22357_v37, %v22355_v20  ;;  %v19069_v10 = vpop.f32.mrb[199].mxu1  ;;  %v19074_v21 = vpop.f32.mrb[201].mxu0 }
0x33c2   :  { %v8261_v31 = vpop.f32.mrb[202].mxu0 }
0x33c3   :  { %v19075_v46 = vpop.f32.mrb[203].mxu0 }
0x33c6   :  { %v8310_v34 = vpop.f32.mrb[200].mxu1 }
0x33c7   :  { %v19080_v35 = vpop.f32.mrb[201].mxu1  ;;  %v8367_v40 = vsel %vm205_vm2, %v8310_v34, -inf }
0x33c8   :  { %v8361_v42 = vpop.f32.mrb[204].mxu0  ;;  %8368 = vmax.xlane.f32.xlu1 %v8367_v40  ;;  %v8313_v0 = vpop.f32.mrb[202].mxu1 }
0x33c9   :  { %v19081_v59 = vpop.f32.mrb[203].mxu1  ;;  %v19086_v55 = vpop.f32.mrb[205].mxu0  ;;  %v8370_v14 = vsel %vm205_vm2, %v8361_v42, -inf }
0x33ca   :  { %8371 = vmax.xlane.f32.xlu0 %v8370_v14  ;;  %v8364_v22 = vpop.f32.mrb[206].mxu0 }
0x33cb   :  { %v19087_v43 = vpop.f32.mrb[207].mxu0 }
0x3455   :  { %v8369_v41 = vpop.xlane.xlu1 %8368 }
0x3456   :  { %v8373_v47 = vsub.f32 %v8310_v34, %v8369_v41 }
0x3457   :  { %v8372_v54 = vpop.xlane.xlu0 %8371 }
0x3458   :  { %v8375_v57 = vmul.f32 1.442695, %v8373_v47  ;;  %v8374_v26 = vsub.f32 %v8361_v42, %v8372_v54 }
0x345a   :  { %20127 = vpow2.f32 %v8375_v57  ;;  %v8377_v44 = vmul.f32 1.442695, %v8374_v26 }
0x345c   :  { %20129 = vpow2.f32 %v8377_v44 }
0x3464   :  { %v20128_v6 = vpop.eup %20127 }
0x3465   :  { %v8379_v7 = vsel %vm205_vm2, %v20128_v6, 0.0 }
0x3466   :  { %v20130_v24 = vpop.eup %20129  ;;  %8380 = vadd.xlane.f32.xlu0 %v8379_v7 }
0x3467   :  { %v8382_v8 = vsel %vm205_vm2, %v20130_v24, 0.0 }
0x3468   :  { %8383 = vadd.xlane.f32.xlu1 %v8382_v8 }
0x3479   :  { %8439 = vrot.lane.b32.xlu1 %v22296_v12, %s20250_s20 }
0x347c   :  { %8391 = vrot.lane.b32.xlu0 %v22294_v32, %s20250_s20 }
0x347d   :  { %8584 = vrot.lane.b32.xlu1 %v22294_v32, %s20254_s24 }
0x3480   :  { %8634 = vrot.lane.b32.xlu0 %v22296_v12, %s20254_s24 }
0x3481   :  { %8582 = vrot.lane.b32.xlu1 %v22307_v30, %s20254_s24 }
0x3484   :  { %8632 = vrot.lane.b32.xlu0 %v22309_v33, %s20254_s24 }
0x34f3   :  { %v8381_v9 = vpop.xlane.xlu0 %8380 }
0x34f4   :  { %20131 = vrcp.f32 %v8381_v9 }
0x34f5   :  { %v8384_v63 = vpop.xlane.xlu1 %8383 }
0x34f6   :  { %20133 = vrcp.f32 %v8384_v63 }
0x34f7   :  { %v8392_v62 = vpop.permute.xlu0 %8391 }
0x34f8   :  { %v8397_v2 = vsel %vm330_vm3, %v8392_v62, 0 }
0x34f9   :  { %19089 = vmatpush3.bf16.msra.mxu1 %v8397_v2  ;;  %v8440_v3 = vpop.permute.xlu1 %8439 }
0x34fa   :  { %v8445_v61 = vsel %vm330_vm3, %v8440_v3, 0  ;;  %19100 = vmatprep.subr.bf16.mxu1 %v20245_v5 }
0x34fb   :  { %19095 = vmatpush3.bf16.msra.mxu0 %v8445_v61  ;;  %v8635_v13 = vpop.permute.xlu0 %8634 }
0x34fc   :  { %19106 = vmatprep.subr.bf16.mxu0 %v20245_v5  ;;  %v8640_v60 = vsel %vm205_vm2, %v8635_v13, 0 }
0x34fd   :  { %v8585_v10 = vpop.permute.xlu1 %8584 }
0x34fe   :  { %v20132_v38 = vpop.eup %20131  ;;  %v8590_v35 = vsel %vm205_vm2, %v8585_v10, 0 }
0x34ff   :  { %v8387_v15 = vmul.f32 %v20132_v38, %v20128_v6  ;;  %v8633_v19 = vpop.permute.xlu0 %8632 }
0x3500   :  { %v20134_v45 = vpop.eup %20133 }
0x3501   :  { %v8389_v58 = vpack.c.bf16 %v8387_v15, %v8387_v15  ;;  %v8388_v39 = vmul.f32 %v20134_v45, %v20130_v24  ;;  %v8583_v59 = vpop.permute.xlu1 %8582 }
0x3503   :  { %19091 = vmatmul.mubr.msk.bf16.vlgmr.msra.gmra.mrb[204].mxu1 %vm205_vm2, %v8389_v58  ;;  %v8390_v23 = vpack.c.bf16 %v8388_v39, %v8388_v39 }
0x3504   :  { %19101 = vmatpush3.bf16.msra.mxu1 %v8492_v56  ;;  %19102 = vmatprep.mubr.msk.bf16.mxu1 %vm20247_vm0, %v20245_v5 }
0x3505   :  { %19097 = vmatmul.mubr.msk.bf16.vlgmr.msra.gmra.mrb[208].mxu0 %vm205_vm2, %v8390_v23  ;;  %19112 = vmatprep.subr.bf16.mxu1 %v20245_v5 }
0x3506   :  { %19107 = vmatpush3.bf16.msra.mxu0 %v8539_v17  ;;  %19108 = vmatprep.mubr.msk.bf16.mxu0 %vm20247_vm0, %v20245_v5 }
0x3507   :  { %19118 = vmatprep.subr.bf16.mxu0 %v20245_v5 }
0x350d   :  { %19109 = vmatmul.mubr.msk.bf16.vlgmr.msra.gmra.mrb[212].mxu0 %vm205_vm2, %v8264_v27 }
0x350e   :  { %19120 = vmatprep.mubr.msk.bf16.mxu0 %vm20247_vm0, %v20245_v5 }
0x350f   :  { %19119 = vmatpush3.bf16.xpose.msra.mxu0 %v8640_v60 }
0x3510   :  { %19130 = vmatprep.subr.bf16.mxu0 %v20245_v5 }
0x3516   :  { %19121 = vmatmul.mubr.msk.bf16.vlgmr.msra.gmra.mrb[216].mxu0 %vm205_vm2, %v8633_v19 }
0x3517   :  { %19132 = vmatprep.mubr.msk.bf16.mxu0 %vm20247_vm0, %v20245_v5 }
0x35d6   :  { %v8433_v18 = vpop.f32.mrb[204].mxu1 }
0x35d7   :  { %v19092_v21 = vpop.f32.mrb[205].mxu1 }
0x35d8   :  { %v8436_v20 = vpop.f32.mrb[206].mxu1  ;;  %v8481_v37 = vpop.f32.mrb[208].mxu0 }
0x35d9   :  { %v8487_v27 = vpack.c.bf16 %v8481_v37, %v8433_v18  ;;  %v19093_v31 = vpop.f32.mrb[207].mxu1  ;;  %v19098_v46 = vpop.f32.mrb[209].mxu0 }
0x35da   :  { %v8484_v34 = vpop.f32.mrb[210].mxu0  ;;  %v16650_v46 = vld [vmem:[%s24189_s2 + $0x98] sm:$0xf] }
0x35db   :  { %v19099_v40 = vpop.f32.mrb[211].mxu0  ;;  %19103 = vmatmul.mubr.msk.bf16.vlgmr.msra.gmra.mrb[208].mxu1 %vm205_vm2, %v8487_v27 }
0x35dc   :  { %19113 = vmatpush3.bf16.xpose.msra.mxu1 %v8590_v35  ;;  %19114 = vmatprep.mubr.msk.bf16.mxu1 %vm20247_vm0, %v20245_v5  ;;  %v8807_v40 = vsel %vm330_vm3, %v16650_v46, 0 }
0x35dd   :  { %19124 = vmatprep.subr.bf16.mxu1 %v20245_v5 }
0x35e0   :  { %v8575_v42 = vpop.f32.mrb[212].mxu0 }
0x35e1   :  { %v19110_v0 = vpop.f32.mrb[213].mxu0 }
0x35e2   :  { %v8578_v55 = vpop.f32.mrb[214].mxu0 }
0x35e3   :  { %v19111_v14 = vpop.f32.mrb[215].mxu0  ;;  %19115 = vmatmul.mubr.msk.bf16.vlgmr.msra.gmra.mrb[212].mxu1 %vm205_vm2, %v8583_v59 }
0x35e4   :  { %19126 = vmatprep.mubr.msk.bf16.mxu1 %vm20247_vm0, %v20245_v5 }
0x35e9   :  { %v8676_v22 = vpop.f32.mrb[216].mxu0 }
0x35ea   :  { %v19122_v43 = vpop.f32.mrb[217].mxu0  ;;  %v8685_v41 = vsel %vm205_vm2, %v8676_v22, -inf }
0x35eb   :  { %8686 = vmax.xlane.f32.xlu0 %v8685_v41  ;;  %v8679_v47 = vpop.f32.mrb[218].mxu0 }
0x35ec   :  { %v19123_v54 = vpop.f32.mrb[219].mxu0 }
0x3678   :  { %v8687_v57 = vpop.xlane.xlu0 %8686 }
0x3679   :  { %v8689_v26 = vsub.f32 %v8676_v22, %v8687_v57 }
0x367b   :  { %v8692_v44 = vmul.f32 1.442695, %v8689_v26 }
0x367d   :  { %20135 = vpow2.f32 %v8692_v44 }
0x3687   :  { %v20136_v61 = vpop.eup %20135 }
0x3688   :  { %v8697_v15 = vsel %vm205_vm2, %v20136_v61, 0.0 }
0x36ae   :  { %v8528_v6 = vpop.f32.mrb[208].mxu1 }
0x36af   :  { %v22417_v7 = vadd.f32 %v8575_v42, %v8528_v6  ;;  %v19104_v24 = vpop.f32.mrb[209].mxu1 }
0x36b0   :  { %v8531_v8 = vpop.f32.mrb[210].mxu1 }
0x36b1   :  { %v22419_v9 = vadd.f32 %v8578_v55, %v8531_v8  ;;  %v19105_v63 = vpop.f32.mrb[211].mxu1 }
0x36b6   :  { %v8626_v62 = vpop.f32.mrb[212].mxu1 }
0x36b7   :  { %v19116_v2 = vpop.f32.mrb[213].mxu1  ;;  %v8682_v3 = vsel %vm205_vm2, %v8626_v62, -inf }
0x36b8   :  { %8683 = vmax.xlane.f32.xlu1 %v8682_v3  ;;  %v8629_v38 = vpop.f32.mrb[214].mxu1 }
0x36b9   :  { %v19117_v36 = vpop.f32.mrb[215].mxu1 }
0x36bc   :  { %8698 = vadd.xlane.f32.xlu1 %v8697_v15 }
0x36cd   :  { %8754 = vrot.lane.b32.xlu1 %v22296_v12, %s20253_s23 }
0x36d1   :  { %8854 = vrot.lane.b32.xlu1 %v22294_v32, %s20257_s30 }
0x36d5   :  { %8852 = vrot.lane.b32.xlu1 %v22307_v30, %s20257_s30 }
0x3745   :  { %v8684_v45 = vpop.xlane.xlu1 %8683 }
0x3746   :  { %v8688_v4 = vsub.f32 %v8626_v62, %v8684_v45 }
0x3748   :  { %v8690_v58 = vmul.f32 1.442695, %v8688_v4 }
0x3749   :  { %v8699_v39 = vpop.xlane.xlu1 %8698 }
0x374a   :  { %20137 = vpow2.f32 %v8690_v58 }
0x374b   :  { %20139 = vrcp.f32 %v8699_v39 }
0x374d   :  { %v8755_v56 = vpop.permute.xlu1 %8754 }
0x374e   :  { %v8760_v23 = vsel %vm330_vm3, %v8755_v56, 0 }
0x374f   :  { %19131 = vmatpush3.bf16.msra.mxu0 %v8760_v23 }
0x3750   :  { %19142 = vmatprep.subr.bf16.mxu0 %v20245_v5 }
0x3751   :  { %v8855_v18 = vpop.permute.xlu1 %8854 }
0x3752   :  { %v8860_v10 = vsel %vm205_vm2, %v8855_v18, 0 }
0x3754   :  { %v20138_v17 = vpop.eup %20137 }
0x3755   :  { %v20140_v13 = vpop.eup %20139  ;;  %v8694_v60 = vsel %vm205_vm2, %v20138_v17, 0.0  ;;  %v8853_v21 = vpop.permute.xlu1 %8852 }
0x3756   :  { %8695 = vadd.xlane.f32.xlu0 %v8694_v60  ;;  %v8703_v19 = vmul.f32 %v20140_v13, %v20136_v61 }
0x3758   :  { %v8705_v30 = vpack.c.bf16 %v8703_v19, %v8703_v19 }
0x375a   :  { %19133 = vmatmul.mubr.msk.bf16.vlgmr.msra.gmra.mrb[220].mxu0 %vm205_vm2, %v8705_v30 }
0x375b   :  { %19143 = vmatpush3.bf16.xpose.msra.mxu0 %v8860_v10  ;;  %19144 = vmatprep.mubr.msk.bf16.mxu0 %vm20247_vm0, %v20245_v5 }
0x375c   :  { %19154 = vmatprep.subr.bf16.mxu0 %v20245_v5 }
0x3762   :  { %19145 = vmatmul.mubr.msk.bf16.vlgmr.msra.gmra.mrb[224].mxu0 %vm205_vm2, %v8853_v21 }
0x3763   :  { %19156 = vmatprep.mubr.msk.bf16.mxu0 %vm20247_vm0, %v20245_v5 }
0x376c   :  { %8706 = vrot.lane.b32.xlu0 %v22294_v32, %s20253_s23 }
0x3770   :  { %8904 = vrot.lane.b32.xlu0 %v22296_v12, %s20257_s30 }
0x3774   :  { %8902 = vrot.lane.b32.xlu0 %v22309_v33, %s20257_s30 }
0x37e3   :  { %v8696_v20 = vpop.xlane.xlu0 %8695 }
0x37e4   :  { %20141 = vrcp.f32 %v8696_v20 }
0x37e7   :  { %v8707_v37 = vpop.permute.xlu0 %8706 }
0x37e8   :  { %v8712_v27 = vsel %vm330_vm3, %v8707_v37, 0 }
0x37e9   :  { %19125 = vmatpush3.bf16.msra.mxu1 %v8712_v27 }
0x37ea   :  { %19136 = vmatprep.subr.bf16.mxu1 %v20245_v5 }
0x37eb   :  { %v8905_v47 = vpop.permute.xlu0 %8904 }
0x37ec   :  { %v8910_v6 = vsel %vm205_vm2, %v8905_v47, 0 }
0x37ee   :  { %v20142_v31 = vpop.eup %20141 }
0x37ef   :  { %v8702_v34 = vmul.f32 %v20142_v31, %v20138_v17  ;;  %v8903_v8 = vpop.permute.xlu0 %8902 }
0x37f1   :  { %v8704_v35 = vpack.c.bf16 %v8702_v34, %v8702_v34 }
0x37f3   :  { %19127 = vmatmul.mubr.msk.bf16.vlgmr.msra.gmra.mrb[216].mxu1 %vm205_vm2, %v8704_v35 }
0x37f4   :  { %19137 = vmatpush3.bf16.msra.mxu1 %v8807_v40  ;;  %19138 = vmatprep.mubr.msk.bf16.mxu1 %vm20247_vm0, %v20245_v5 }
0x37f5   :  { %19148 = vmatprep.subr.bf16.mxu1 %v20245_v5 }
0x382d   :  { %v8796_v33 = vpop.f32.mrb[220].mxu0 }
0x382e   :  { %v19134_v42 = vpop.f32.mrb[221].mxu0 }
0x382f   :  { %v8799_v0 = vpop.f32.mrb[222].mxu0 }
0x3830   :  { %v19135_v59 = vpop.f32.mrb[223].mxu0 }
0x3835   :  { %v8896_v55 = vpop.f32.mrb[224].mxu0 }
0x3836   :  { %v19146_v14 = vpop.f32.mrb[225].mxu0  ;;  %v8952_v22 = vsel %vm205_vm2, %v8896_v55, -inf }
0x3837   :  { %8953 = vmax.xlane.f32.xlu1 %v8952_v22  ;;  %v8899_v43 = vpop.f32.mrb[226].mxu0 }
0x3838   :  { %v19147_v41 = vpop.f32.mrb[227].mxu0 }
0x38c4   :  { %v8954_v63 = vpop.xlane.xlu1 %8953 }
0x38c5   :  { %v8958_v62 = vsub.f32 %v8896_v55, %v8954_v63 }
0x38c6   :  { %v8748_v54 = vpop.f32.mrb[216].mxu1 }
0x38c7   :  { %v8802_v57 = vpack.c.bf16 %v8796_v33, %v8748_v54  ;;  %v19128_v26 = vpop.f32.mrb[217].mxu1  ;;  %v8960_v2 = vmul.f32 1.442695, %v8958_v62 }
0x38c8   :  { %v8751_v44 = vpop.f32.mrb[218].mxu1 }
0x38c9   :  { %v19129_v24 = vpop.f32.mrb[219].mxu1  ;;  %19139 = vmatmul.mubr.msk.bf16.vlgmr.msra.gmra.mrb[220].mxu1 %vm205_vm2, %v8802_v57  ;;  %20143 = vpow2.f32 %v8960_v2  ;;  %v16672_v57 = vld [vmem:[%s24190_s5 + $0x17] ss:$0 sm:$0xff] }
0x38ca   :  { %19149 = vmatpush3.bf16.xpose.msra.mxu1 %v8910_v6  ;;  %19150 = vmatprep.mubr.msk.bf16.mxu1 %vm20247_vm0, %v20245_v5 }
0x38cb   :  { %19160 = vmatprep.subr.bf16.mxu1 %v20245_v5 }
0x38d1   :  { %19151 = vmatmul.mubr.msk.bf16.vlgmr.msra.gmra.mrb[224].mxu1 %vm205_vm2, %v8903_v8 }
0x38d2   :  { %19162 = vmatprep.mubr.msk.bf16.mxu1 %vm20247_vm0, %v20245_v5 }
0x38d3   :  { %v20144_v56 = vpop.eup %20143 }
0x38d4   :  { %v8964_v13 = vsel %vm205_vm2, %v20144_v56, 0.0 }
0x399c   :  { %v8843_v3 = vpop.f32.mrb[220].mxu1 }
0x399d   :  { %v8850_v61 = vadd.f32 %v8843_v3, %v22417_v7  ;;  %v19140_v38 = vpop.f32.mrb[221].mxu1 }
0x399e   :  { %v8846_v36 = vpop.f32.mrb[222].mxu1 }
0x399f   :  { %v8851_v15 = vadd.f32 %v8846_v36, %v22419_v9  ;;  %v19141_v45 = vpop.f32.mrb[223].mxu1 }
0x39a4   :  { %v8946_v4 = vpop.f32.mrb[224].mxu1 }
0x39a5   :  { %v19152_v58 = vpop.f32.mrb[225].mxu1  ;;  %v8955_v39 = vsel %vm205_vm2, %v8946_v4, -inf }
0x39a6   :  { %8956 = vmax.xlane.f32.xlu0 %v8955_v39  ;;  %v8949_v23 = vpop.f32.mrb[226].mxu1 }
0x39a7   :  { %v19153_v17 = vpop.f32.mrb[227].mxu1 }
0x39aa   :  { %8965 = vadd.xlane.f32.xlu0 %v8964_v13  ;;  %v16683_v13 = vld [vmem:[%s24191_s3 + $0x240] sm:$0xff] }
0x39c0   :  { %8976 = vrot.lane.b32.xlu0 %v22294_v32, %s20256_s0  ;;  %v16651_v32 = vld [vmem:[%s24189_s2 + $0x9c] sm:$0xf] }
0x39c1   :  { %v9077_v31 = vsel %vm330_vm3, %v16651_v32, 0 }
0x3a33   :  { %v8957_v7 = vpop.xlane.xlu0 %8956 }
0x3a34   :  { %v8959_v60 = vsub.f32 %v8946_v4, %v8957_v7  ;;  %v16676_v7 = vld [vmem:[%s24191_s3 + $0x208] sm:$0xff] }
0x3a36   :  { %v8962_v19 = vmul.f32 1.442695, %v8959_v60 }
0x3a37   :  { %v8966_v18 = vpop.xlane.xlu0 %8965 }
0x3a38   :  { %20145 = vpow2.f32 %v8962_v19  ;;  %v16684_v19 = vld [vmem:[%s24191_s3 + $0x248] sm:$0xff] }
0x3a39   :  { %20147 = vrcp.f32 %v8966_v18 }
0x3a3b   :  { %v8977_v9 = vpop.permute.xlu0 %8976 }
0x3a3c   :  { %v8982_v30 = vsel %vm330_vm3, %v8977_v9, 0  ;;  %v16711_v9 = vcombine.low %v16676_v7, %v16684_v19 }
0x3a3d   :  { %19155 = vmatpush3.bf16.msra.mxu0 %v8982_v30  ;;  %v16712_v30 = vcombine.high %v16676_v7, %v16684_v19  ;;  %v16695_v7 = vld [vmem:[%s24191_s3 + $0x2a0] sm:$0xff]  ;;  %v16696_v19 = vld [vmem:[%s24191_s3 + $0x2a8] sm:$0xff] }
0x3a3e   :  { %19166 = vmatprep.subr.bf16.mxu0 %v20245_v5 }
0x3a42   :  { %v20146_v10 = vpop.eup %20145 }
0x3a43   :  { %v20148_v21 = vpop.eup %20147  ;;  %v8967_v20 = vsel %vm205_vm2, %v20146_v10, 0.0 }
0x3a44   :  { %8968 = vadd.xlane.f32.xlu1 %v8967_v20  ;;  %v8972_v37 = vmul.f32 %v20148_v21, %v20144_v56  ;;  %v16699_v21 = vld [vmem:[%s24191_s3 + $0x2c0] sm:$0xff]  ;;  %v16692_v20 = vld [vmem:[%s24191_s3 + $0x288] sm:$0xff] }
0x3a46   :  { %v8974_v27 = vpack.c.bf16 %v8972_v37, %v8972_v37 }
0x3a48   :  { %19157 = vmatmul.mubr.msk.bf16.vlgmr.msra.gmra.mrb[228].mxu0 %vm205_vm2, %v8974_v27  ;;  %v16700_v27 = vld [vmem:[%s24191_s3 + $0x2c8] sm:$0xff] }
0x3a49   :  { %19168 = vmatprep.mubr.msk.bf16.mxu0 %vm20247_vm0, %v20245_v5  ;;  %19167 = vmatpush3.bf16.msra.mxu0 %v9077_v31  ;;  %v16727_v31 = vcombine.low %v16692_v20, %v16700_v27 }
0x3a4a   :  { %9496 = vmatprep.subr.bf16.mxu0 %v16712_v30 }
0x3a55   :  { %9024 = vrot.lane.b32.xlu1 %v22296_v12, %s20256_s0 }
0x3ad1   :  { %v8969_v46 = vpop.xlane.xlu1 %8968 }
0x3ad2   :  { %20149 = vrcp.f32 %v8969_v46  ;;  %v16728_v46 = vcombine.high %v16692_v20, %v16700_v27  ;;  %v16681_v20 = vld [vmem:[%s24191_s3 + $0x230] sm:$0xff]  ;;  %v16682_v27 = vld [vmem:[%s24191_s3 + $0x238] sm:$0xff] }
0x3ad5   :  { %v9025_v34 = vpop.permute.xlu1 %9024 }
0x3ad6   :  { %v9030_v35 = vsel %vm330_vm3, %v9025_v34, 0  ;;  %v16677_v34 = vld [vmem:[%s24191_s3 + $0x210] sm:$0xff] }
0x3ad7   :  { %19161 = vmatpush3.bf16.msra.mxu1 %v9030_v35  ;;  %v16685_v35 = vld [vmem:[%s24191_s3 + $0x250] sm:$0xff] }
0x3adc   :  { %v20150_v40 = vpop.eup %20149 }
0x3add   :  { %v8973_v33 = vmul.f32 %v20150_v40, %v20146_v10  ;;  %v16691_v10 = vld [vmem:[%s24191_s3 + $0x280] sm:$0xff]  ;;  %v16678_v40 = vld [vmem:[%s24191_s3 + $0x218] sm:$0xff] }
0x3ade   :  { %v16726_v37 = vcombine.high %v16691_v10, %v16699_v21  ;;  %v16725_v32 = vcombine.low %v16691_v10, %v16699_v21 }
0x3adf   :  { %v8975_v42 = vpack.c.bf16 %v8973_v33, %v8973_v33  ;;  %v16713_v33 = vcombine.low %v16677_v34, %v16685_v35 }
0x3ae1   :  { %19163 = vmatmul.mubr.msk.bf16.vlgmr.msra.gmra.mrb[228].mxu1 %vm205_vm2, %v8975_v42  ;;  %v16714_v42 = vcombine.high %v16677_v34, %v16685_v35 }
0x3ae2   :  { %9485 = vmatprep.mubr.bf16.mxu1 %v20244_v1 }
0x3b1b   :  { %v9018_v12 = vpop.f32.mrb[228].mxu0 }
0x3b1c   :  { %v19158_v0 = vpop.f32.mrb[229].mxu0 }
0x3b1d   :  { %v9021_v59 = vpop.f32.mrb[230].mxu0 }
0x3b1e   :  { %v19159_v55 = vpop.f32.mrb[231].mxu0 }
0x3bb4   :  { %v9066_v14 = vpop.f32.mrb[228].mxu1 }
0x3bb5   :  { %v9072_v22 = vpack.c.bf16 %v9066_v14, %v9018_v12  ;;  %v19164_v43 = vpop.f32.mrb[229].mxu1  ;;  %v16686_v12 = vld [vmem:[%s24191_s3 + $0x258] sm:$0xff] }
0x3bb6   :  { %v9069_v41 = vpop.f32.mrb[230].mxu1  ;;  %v16715_v0 = vcombine.low %v16678_v40, %v16686_v12  ;;  %v16716_v59 = vcombine.high %v16678_v40, %v16686_v12  ;;  %v16697_v40 = vld [vmem:[%s24191_s3 + $0x2b0] sm:$0xff]  ;;  %v16706_v12 = vld [vmem:[%s24191_s3 + $0x2f8] sm:$0xff] }
0x3bb7   :  { %v19165_v47 = vpop.f32.mrb[231].mxu1  ;;  %19169 = vmatmul.mubr.msk.bf16.vlgmr.msra.gmra.mrb[232].mxu0 %vm205_vm2, %v9072_v22 }
0x3bb8   :  { %9528 = vmatprep.mubr.bf16.mxu0 %v20244_v1  ;;  %9497 = vmatpush1.bf16.msra.mxu0 %v16711_v9 }
0x3bb9   :  { %9498 = vmatprep.subr.bf16.mxu0 %v16728_v46 }
0x3bbc   :  { %9499 = vmatpush1.bf16.msra.mxu0 %v16727_v31 }
0x3bbd   :  { %9582 = vmatprep.subr.bf16.mxu0 %v16716_v59 }
0x3c8a   :  { %v9113_v54 = vpop.f32.mrb[232].mxu0 }
0x3c8b   :  { %v9120_v26 = vadd.f32 %v9113_v54, %v8850_v61  ;;  %v19170_v44 = vpop.f32.mrb[233].mxu0 }
0x3c8c   :  { %v9116_v6 = vpop.f32.mrb[234].mxu0 }
0x3c8d   :  { %v9127_v24 = vadd.f32 %v16672_v57, %v9120_v26  ;;  %v9121_v8 = vadd.f32 %v9116_v6, %v8851_v15  ;;  %v19171_v63 = vpop.f32.mrb[235].mxu0 }
0x3c8f   :  { %v9128_v62 = vadd.f32 %v16672_v57, %v9121_v8  ;;  %v9129_v2 = vadd.f32 %v9127_v24, %v22282_v11  ;;  %v16673_v57 = vld [vmem:[%s24190_s5 + $0x1a] ss:$0 sm:$0xff]  ;;  %v16674_v8 = vld [vmem:[%s24190_s5 + $0x1b] ss:$0 sm:$0xff] }
0x3c91   :  { %v9133_v3 = vsel %vm150_vm1, %v9129_v2, 0.0  ;;  %v9130_v38 = vadd.f32 %v9128_v62, %v22284_v16  ;;  %v16675_v16 = vld [vmem:[%s24191_s3 + $0x200] sm:$0xff]  ;;  %v16693_v62 = vld [vmem:[%s24191_s3 + $0x290] sm:$0xff] }
0x3c92   :  { %9134 = vadd.xlane.f32.xlu1 %v9133_v3  ;;  %v16710_v60 = vcombine.high %v16675_v16, %v16683_v13  ;;  %v16709_v18 = vcombine.low %v16675_v16, %v16683_v13  ;;  %v16694_v3 = vld [vmem:[%s24191_s3 + $0x298] sm:$0xff] }
0x3c93   :  { %v9136_v36 = vsel %vm150_vm1, %v9130_v38, 0.0 }
0x3c94   :  { %9137 = vadd.xlane.f32.xlu0 %v9136_v36  ;;  %9453 = vmatprep.subr.bf16.mxu1 %v16710_v60  ;;  %v16703_v60 = vld [vmem:[%s24191_s3 + $0x2e0] sm:$0xff] }
0x3c95   :  { %9454 = vmatpush1.bf16.msra.mxu1 %v16709_v18  ;;  %v16704_v18 = vld [vmem:[%s24191_s3 + $0x2e8] sm:$0xff]  ;;  %v16734_v10 = vcombine.high %v16695_v7, %v16703_v60  ;;  %v16733_v31 = vcombine.low %v16695_v7, %v16703_v60  ;;  %v19760_v7 = vld [vmem:[%s24192_s4 + $0x8f0] sm:$0xff]  }
0x3c96   :  { %9455 = vmatprep.subr.bf16.mxu1 %v16726_v37  ;;  %v16736_v21 = vcombine.high %v16696_v19, %v16704_v18  ;;  %v16689_v37 = vld [vmem:[%s24191_s3 + $0x270] sm:$0xff]  ;;  %v16735_v46 = vcombine.low %v16696_v19, %v16704_v18  ;;  %v19763_v18 = vld [vmem:[%s24192_s4 + $0x878] sm:$0xff]  }
0x3c97   :  { %v16722_v34 = vcombine.high %v16681_v20, %v16689_v37  ;;  %v19761_v60 = vld [vmem:[%s24192_s4 + $0x830] sm:$0xff]  }
0x3c98   :  { %v19762_v19 = vld [vmem:[%s24192_s4 + $0x8b0] sm:$0xff]  }
0x3c99   :  { %9456 = vmatpush1.bf16.msra.mxu1 %v16725_v32  ;;  %v16690_v32 = vld [vmem:[%s24191_s3 + $0x278] sm:$0xff] }
0x3c9a   :  { %9539 = vmatprep.subr.bf16.mxu1 %v16714_v42  ;;  %v16724_v35 = vcombine.high %v16682_v27, %v16690_v32  ;;  %v16698_v42 = vld [vmem:[%s24191_s3 + $0x2b8] sm:$0xff]  ;;  %v16723_v59 = vcombine.low %v16682_v27, %v16690_v32 }
0x3d1f   :  { %v9135_v45 = vpop.xlane.xlu1 %9134 }
0x3d20   :  { %v9139_v4 = vmul.f32 0.03125, %v9135_v45 }
0x3d21   :  { %v9138_v58 = vpop.xlane.xlu0 %9137 }
0x3d22   :  { %v9141_v61 = vsub.f32 %v9129_v2, %v9139_v4  ;;  %v9140_v39 = vmul.f32 0.03125, %v9138_v58  ;;  %v16701_v2 = vld [vmem:[%s24191_s3 + $0x2d0] sm:$0xff] }
0x3d23   :  { %v16730_v58 = vcombine.high %v16693_v62, %v16701_v2 }
0x3d24   :  { %v9142_v56 = vsub.f32 %v9130_v38, %v9140_v39  ;;  %v9143_v23 = vmul.f32 %v9141_v61, %v9141_v61  ;;  %v16702_v38 = vld [vmem:[%s24191_s3 + $0x2d8] sm:$0xff]  ;;  %v16679_v39 = vld [vmem:[%s24191_s3 + $0x220] sm:$0xff] }
0x3d26   :  { %v9145_v15 = vsel %vm150_vm1, %v9143_v23, 0.0  ;;  %v9144_v17 = vmul.f32 %v9142_v56, %v9142_v56  ;;  %v16680_v23 = vld [vmem:[%s24191_s3 + $0x228] sm:$0xff] }
0x3d27   :  { %9146 = vadd.xlane.f32.xlu0 %v9145_v15  ;;  %v16688_v15 = vld [vmem:[%s24191_s3 + $0x268] sm:$0xff] }
0x3d28   :  { %v9148_v11 = vsel %vm150_vm1, %v9144_v17, 0.0  ;;  %v16729_v17 = vcombine.low %v16693_v62, %v16701_v2  ;;  %v16720_v13 = vcombine.high %v16680_v23, %v16688_v15  ;;  %v16719_v30 = vcombine.low %v16680_v23, %v16688_v15  ;;  %v19745_v62 = vld [vmem:[%s24192_s4 + $0x810] sm:$0xff]   ;;  %v19754_v23 = vld [vmem:[%s24192_s4 + $0x8a0] sm:$0xff]   ;;  %v19755_v15 = vld [vmem:[%s24192_s4 + $0x868] sm:$0xff]  }
0x3d29   :  { %9149 = vadd.xlane.f32.xlu1 %v9148_v11  ;;  %v16731_v11 = vcombine.low %v16694_v3, %v16702_v38  ;;  %v19746_v2 = vld [vmem:[%s24192_s4 + $0x890] sm:$0xff]  }
0x3db4   :  { %v9147_v55 = vpop.xlane.xlu0 %9146 }
0x3db5   :  { %v9151_v14 = vmul.f32 0.03125, %v9147_v55 }
0x3db6   :  { %v9150_v22 = vpop.xlane.xlu1 %9149 }
0x3db7   :  { %v9153_v43 = vadd.f32 1e-05, %v9151_v14  ;;  %v9152_v41 = vmul.f32 0.03125, %v9150_v22  ;;  %v16740_v14 = vcombine.high %v16698_v42, %v16706_v12 }
0x3db9   :  { %20151 = vrsqrt.f32 %v9153_v43  ;;  %v9154_v47 = vadd.f32 1e-05, %v9152_v41  ;;  %v16739_v43 = vcombine.low %v16698_v42, %v16706_v12  ;;  %v19735_v41 = vld [vmem:[%s24192_s4 + $0x840] sm:$0xff]  }
0x3dbb   :  { %20153 = vrsqrt.f32 %v9154_v47  ;;  %v19736_v47 = vld [vmem:[%s24192_s4 + $0x8c0] sm:$0xff]  }
0x3dc3   :  { %v20152_v54 = vpop.eup %20151 }
0x3dc4   :  { %v9157_v26 = vmul.f32 %v20152_v54, %v9141_v61  ;;  %v16732_v61 = vcombine.high %v16694_v3, %v16702_v38  ;;  %v19737_v54 = vld [vmem:[%s24192_s4 + $0x800] sm:$0xff]   ;;  %v19747_v3 = vld [vmem:[%s24192_s4 + $0x858] sm:$0xff]  }
0x3dc5   :  { %v20154_v44 = vpop.eup %20153  ;;  %v19748_v38 = vld [vmem:[%s24192_s4 + $0x8d8] sm:$0xff]  }
0x3dc6   :  { %v9163_v6 = vmul.f32 %v16673_v57, %v9157_v26  ;;  %v9158_v24 = vmul.f32 %v20154_v44, %v9142_v56  ;;  %v16687_v56 = vld [vmem:[%s24191_s3 + $0x260] sm:$0xff]  ;;  %v19739_v26 = vld [vmem:[%s24192_s4 + $0x848] sm:$0xff]  }
0x3dc7   :  { %v16718_v16 = vcombine.high %v16679_v39, %v16687_v56  ;;  %v16717_v9 = vcombine.low %v16679_v39, %v16687_v56  ;;  %v19740_v44 = vld [vmem:[%s24192_s4 + $0x8c8] sm:$0xff]   ;;  %v19752_v39 = vld [vmem:[%s24192_s4 + $0x8e0] sm:$0xff]  }
0x3dc8   :  { %v9164_v63 = vmul.f32 %v16673_v57, %v9158_v24  ;;  %v22551_v36 = vadd.f32 %v16674_v8, %v9163_v6  ;;  %v19738_v57 = vld [vmem:[%s24192_s4 + $0x880] sm:$0xff]   ;;  %v19741_v6 = vld [vmem:[%s24192_s4 + $0x808] sm:$0xff]  }
0x3dc9   :  { %v19742_v24 = vld [vmem:[%s24192_s4 + $0x888] sm:$0xff]   ;;  %v19753_v56 = vld [vmem:[%s24192_s4 + $0x820] sm:$0xff]  }
0x3dca   :  { %v22553_v45 = vadd.f32 %v16674_v8, %v9164_v63  ;;  %v19743_v8 = vld [vmem:[%s24192_s4 + $0x850] sm:$0xff]  }
0x3dcb   :  { %v19744_v63 = vld [vmem:[%s24192_s4 + $0x8d0] sm:$0xff]  }
0x3dcc   :  { %v22557_v4 = vpack.c.bf16 %v22553_v45, %v22551_v36 }
0x3dce   :  { %16741 = vmatmul.mubr.msk.bf16.vlgmr.msra.gmra.mrb[232].mxu1 %vm150_vm1, %v22557_v4  ;;  %16742 = vmatmul.mubr.msk.bf16.vlgmr.msra.gmra.mrb[236].mxu0 %vm150_vm1, %v22557_v4 }
0x3dcf   :  { %9540 = vmatpush1.bf16.msra.mxu1 %v16713_v33  ;;  %9583 = vmatpush1.bf16.msra.mxu0 %v16715_v0  ;;  %v16705_v33 = vld [vmem:[%s24191_s3 + $0x2f0] sm:$0xff]  ;;  %v16721_v0 = vcombine.low %v16681_v20, %v16689_v37  ;;  %v19768_v20 = vld [vmem:[%s24192_s4 + $0x9c0] sm:$0xff]  }
0x3dd0   :  { %9541 = vmatprep.subr.bf16.mxu1 %v16730_v58  ;;  %9584 = vmatprep.subr.bf16.mxu0 %v16732_v61  ;;  %v16738_v55 = vcombine.high %v16697_v40, %v16705_v33  ;;  %v16737_v22 = vcombine.low %v16697_v40, %v16705_v33  ;;  %v19750_v58 = vld [vmem:[%s24192_s4 + $0x898] sm:$0xff]   ;;  %v19751_v61 = vld [vmem:[%s24192_s4 + $0x860] sm:$0xff]  }
0x3dd1   :  { %9571 = vmatprep.mubr.bf16.mxu1 %v20244_v1  ;;  %9614 = vmatprep.mubr.bf16.mxu0 %v20244_v1  ;;  %v16707_v37 = vld [vmem:[%s24193_s6 + $0x20] sm:$0xff] }
0x3dd2   :  { %v9213_v27 = vrot.slane %v16707_v37, %v20781_v29  ;;  %v9221_v32 = vrot.slane %v16707_v37, %v20783_v28 }
0x3dd3   :  { %9542 = vmatpush1.bf16.msra.mxu1 %v16729_v17  ;;  %9585 = vmatpush1.bf16.msra.mxu0 %v16731_v11  ;;  %v19756_v17 = vld [vmem:[%s24192_s4 + $0x8e8] sm:$0xff]  }
0x3dd4   :  { %9625 = vmatprep.subr.bf16.mxu1 %v16718_v16  ;;  %9668 = vmatprep.subr.bf16.mxu0 %v16720_v13  ;;  %v19757_v11 = vld [vmem:[%s24192_s4 + $0x828] sm:$0xff]   ;;  %v19759_v13 = vld [vmem:[%s24192_s4 + $0x870] sm:$0xff]  }
0x3dd5   :  { %v19758_v16 = vld [vmem:[%s24192_s4 + $0x8a8] sm:$0xff]  }
0x3dd6   :  { %16743 = vmatmul.mubr.msk.bf16.vlgmr.msra.gmra.mrb[236].mxu1 %vm150_vm1, %v22557_v4  ;;  %16744 = vmatmul.mubr.msk.bf16.vlgmr.msra.gmra.mrb[240].mxu0 %vm150_vm1, %v22557_v4 }
0x3dd7   :  { %9626 = vmatpush1.bf16.msra.mxu1 %v16717_v9  ;;  %9669 = vmatpush1.bf16.msra.mxu0 %v16719_v30  ;;  %v19764_v9 = vld [vmem:[%s24192_s4 + $0x8f8] sm:$0xff]  }
0x3dd8   :  { %9627 = vmatprep.subr.bf16.mxu1 %v16734_v10  ;;  %9670 = vmatprep.subr.bf16.mxu0 %v16736_v21  ;;  %v19765_v30 = vld [vmem:[%s24192_s4 + $0x838] sm:$0xff]   ;;  %v19767_v21 = vld [vmem:[%s24192_s4 + $0x940] sm:$0xff]  }
0x3dd9   :  { %9657 = vmatprep.mubr.bf16.mxu1 %v20244_v1  ;;  %9700 = vmatprep.mubr.bf16.mxu0 %v20244_v1  ;;  %v19766_v10 = vld [vmem:[%s24192_s4 + $0x8b8] sm:$0xff]  }
0x3ddb   :  { %9628 = vmatpush1.bf16.msra.mxu1 %v16733_v31  ;;  %9671 = vmatpush1.bf16.msra.mxu0 %v16735_v46  ;;  %v9217_v31 = vrot.slane %v16707_v37, %v20785_v48  ;;  %v9225_v46 = vrot.slane %v16707_v37, %v20787_v49 }
0x3ddc   :  { %9711 = vmatprep.subr.bf16.mxu1 %v16722_v34  ;;  %9754 = vmatprep.subr.bf16.mxu0 %v16724_v35 }
0x3dde   :  { %16745 = vmatmul.mubr.msk.bf16.vlgmr.msra.gmra.mrb[240].mxu1 %vm150_vm1, %v22557_v4  ;;  %16746 = vmatmul.mubr.msk.bf16.vlgmr.msra.gmra.mrb[244].mxu0 %vm150_vm1, %v22557_v4 }
0x3ddf   :  { %9712 = vmatpush1.bf16.msra.mxu1 %v16721_v0  ;;  %9755 = vmatpush1.bf16.msra.mxu0 %v16723_v59 }
0x3de0   :  { %9713 = vmatprep.subr.bf16.mxu1 %v16738_v55  ;;  %9756 = vmatprep.subr.bf16.mxu0 %v16740_v14 }
0x3de1   :  { %9743 = vmatprep.mubr.bf16.mxu1 %v20244_v1  ;;  %9786 = vmatprep.mubr.bf16.mxu0 %v20244_v1 }
0x3de3   :  { %9714 = vmatpush1.bf16.msra.mxu1 %v16737_v22  ;;  %9757 = vmatpush1.bf16.msra.mxu0 %v16739_v43 }
0x3de4   :  { %18208 = vmatprep.subr.bf16.mxu1 %v19735_v41  ;;  %18230 = vmatprep.subr.bf16.mxu0 %v19736_v47 }
0x3de6   :  { %16747 = vmatmul.mubr.msk.bf16.vlgmr.msra.gmra.mrb[244].mxu1 %vm150_vm1, %v22557_v4  ;;  %16748 = vmatmul.mubr.msk.bf16.vlgmr.msra.gmra.mrb[248].mxu0 %vm150_vm1, %v22557_v4  ;;  %v19749_v4 = vld [vmem:[%s24192_s4 + $0x818] sm:$0xff]  }
0x3de7   :  { %18209 = vmatpush3.bf16.msra.mxu1 %v19737_v54  ;;  %18231 = vmatpush3.bf16.msra.mxu0 %v19738_v57  ;;  %v9229_v54 = vrot.slane %v16707_v37, %v20789_v50  ;;  %v9237_v57 = vrot.slane %v16707_v37, %v20791_v51 }
0x3de8   :  { %18210 = vmatprep.subr.bf16.mxu1 %v19739_v26  ;;  %18232 = vmatprep.subr.bf16.mxu0 %v19740_v44 }
0x3deb   :  { %18211 = vmatpush3.bf16.msra.mxu1 %v19741_v6  ;;  %18233 = vmatpush3.bf16.msra.mxu0 %v19742_v24  ;;  %v9233_v6 = vrot.slane %v16707_v37, %v20793_v52  ;;  %v9241_v24 = vrot.slane %v16707_v37, %v20795_v53 }
0x3dec   :  { %18212 = vmatprep.subr.bf16.mxu1 %v19743_v8  ;;  %18234 = vmatprep.subr.bf16.mxu0 %v19744_v63 }
0x3def   :  { %18213 = vmatpush3.bf16.msra.mxu1 %v19745_v62  ;;  %18235 = vmatpush3.bf16.msra.mxu0 %v19746_v2 }
0x3df0   :  { %18214 = vmatprep.subr.bf16.mxu1 %v19747_v3  ;;  %18236 = vmatprep.subr.bf16.mxu0 %v19748_v38 }
0x3df3   :  { %18215 = vmatpush3.bf16.msra.mxu1 %v19749_v4  ;;  %18237 = vmatpush3.bf16.msra.mxu0 %v19750_v58 }
0x3df4   :  { %18216 = vmatprep.subr.bf16.mxu1 %v19751_v61  ;;  %18238 = vmatprep.subr.bf16.mxu0 %v19752_v39  ;;  %v22745_v61 = vld [vmem:[%s24193_s6 + $0x28] sm:$0xff] }
0x3df7   :  { %18217 = vmatpush3.bf16.msra.mxu1 %v19753_v56  ;;  %18239 = vmatpush3.bf16.msra.mxu0 %v19754_v23 }
0x3df8   :  { %18218 = vmatprep.subr.bf16.mxu1 %v19755_v15  ;;  %18240 = vmatprep.subr.bf16.mxu0 %v19756_v17 }
0x3dfb   :  { %18219 = vmatpush3.bf16.msra.mxu1 %v19757_v11  ;;  %18241 = vmatpush3.bf16.msra.mxu0 %v19758_v16  ;;  %v19769_v16 = vld [vmem:[%s24192_s4 + $0x900] sm:$0xff]  }
0x3dfc   :  { %18220 = vmatprep.subr.bf16.mxu1 %v19759_v13  ;;  %18242 = vmatprep.subr.bf16.mxu0 %v19760_v7  ;;  %v19770_v13 = vld [vmem:[%s24192_s4 + $0x980] sm:$0xff]  }
0x3dff   :  { %18221 = vmatpush3.bf16.msra.mxu1 %v19761_v60  ;;  %18243 = vmatpush3.bf16.msra.mxu0 %v19762_v19 }
0x3e00   :  { %18222 = vmatprep.subr.bf16.mxu1 %v19763_v18  ;;  %18244 = vmatprep.subr.bf16.mxu0 %v19764_v9  ;;  %v19771_v9 = vld [vmem:[%s24192_s4 + $0x948] sm:$0xff]  }
0x3e03   :  { %18223 = vmatpush3.bf16.msra.mxu1 %v19765_v30  ;;  %18245 = vmatpush3.bf16.msra.mxu0 %v19766_v10  ;;  %v19772_v30 = vld [vmem:[%s24192_s4 + $0x9c8] sm:$0xff]   ;;  %v9245_v10 = vrot.slane %v22745_v61, %v20781_v29 }
0x3e04   :  { %18252 = vmatprep.subr.bf16.mxu1 %v19767_v21  ;;  %18274 = vmatprep.subr.bf16.mxu0 %v19768_v20 }
0x3ea1   :  { %v9487_v34 = vpop.f32.mrb[232].mxu1  ;;  %v9530_v35 = vpop.f32.mrb[236].mxu0 }
0x3ea2   :  { %v9488_v40 = vadd.f32 %v9487_v34, %v9213_v27  ;;  %v9531_v33 = vadd.f32 %v9530_v35, %v9221_v32  ;;  %v9489_v42 = vpop.f32.mrb[233].mxu1  ;;  %v9532_v12 = vpop.f32.mrb[237].mxu0 }
0x3ea3   :  { %v9490_v0 = vadd.f32 %v9489_v42, %v9217_v31  ;;  %v9533_v59 = vadd.f32 %v9532_v12, %v9225_v46  ;;  %v9491_v55 = vpop.f32.mrb[234].mxu1  ;;  %v9534_v14 = vpop.f32.mrb[238].mxu0  ;;  %v19773_v12 = vld [vmem:[%s24192_s4 + $0x908] sm:$0xff]  }
0x3ea4   :  { %v9492_v22 = vadd.f32 %v9491_v55, %v9213_v27  ;;  %v9535_v43 = vadd.f32 %v9534_v14, %v9221_v32  ;;  %v9493_v41 = vpop.f32.mrb[235].mxu1  ;;  %v9536_v47 = vpop.f32.mrb[239].mxu0  ;;  %v9797_v8 = vmax.f32 %v9488_v40, 0.0  ;;  %v9799_v63 = vmax.f32 %v9531_v33, 0.0 }
0x3ea5   :  { %v9494_v26 = vadd.f32 %v9493_v41, %v9217_v31  ;;  %v9537_v44 = vadd.f32 %v9536_v47, %v9225_v46  ;;  %v9798_v3 = vmax.f32 %v9490_v0, 0.0  ;;  %v9800_v38 = vmax.f32 %v9533_v59, 0.0  ;;  %v19774_v0 = vld [vmem:[%s24192_s4 + $0x988] sm:$0xff]   ;;  %v19775_v41 = vld [vmem:[%s24192_s4 + $0x950] sm:$0xff]  }
0x3ea6   :  { %v9813_v62 = vmax.f32 %v9492_v22, 0.0  ;;  %v9815_v2 = vmax.f32 %v9535_v43, 0.0  ;;  %v9253_v32 = vrot.slane %v22745_v61, %v20783_v28  ;;  %v9249_v40 = vrot.slane %v22745_v61, %v20785_v48  ;;  %v19776_v47 = vld [vmem:[%s24192_s4 + $0x9d0] sm:$0xff]  }
0x3ea7   :  { %v9814_v4 = vmax.f32 %v9494_v26, 0.0  ;;  %v9816_v58 = vmax.f32 %v9537_v44, 0.0  ;;  %v9257_v59 = vrot.slane %v22745_v61, %v20787_v49 }
0x3ea8   :  { %v9829_v39 = vpack.c.bf16 %v9813_v62, %v9797_v8  ;;  %v9831_v56 = vpack.c.bf16 %v9815_v2, %v9799_v63 }
0x3ea9   :  { %v9830_v23 = vpack.c.bf16 %v9814_v4, %v9798_v3  ;;  %v9832_v15 = vpack.c.bf16 %v9816_v58, %v9800_v38  ;;  %v9573_v17 = vpop.f32.mrb[236].mxu1  ;;  %v9616_v11 = vpop.f32.mrb[240].mxu0  ;;  %v19777_v3 = vld [vmem:[%s24192_s4 + $0x910] sm:$0xff]  }
0x3eaa   :  { %v9574_v7 = vadd.f32 %v9573_v17, %v9229_v54  ;;  %v9617_v60 = vadd.f32 %v9616_v11, %v9237_v57  ;;  %v9575_v19 = vpop.f32.mrb[237].mxu1  ;;  %v9618_v18 = vpop.f32.mrb[241].mxu0  ;;  %v19778_v38 = vld [vmem:[%s24192_s4 + $0x990] sm:$0xff]  }
0x3eab   :  { %v9576_v21 = vadd.f32 %v9575_v19, %v9233_v6  ;;  %v9619_v20 = vadd.f32 %v9618_v18, %v9241_v24  ;;  %v9577_v37 = vpop.f32.mrb[238].mxu1  ;;  %v9620_v27 = vpop.f32.mrb[242].mxu0  ;;  %10907 = vmatprep.mubr.bf16.mxu1 %v9830_v23  ;;  %10948 = vmatprep.mubr.bf16.mxu0 %v9832_v15  ;;  %v19779_v23 = vld [vmem:[%s24192_s4 + $0x958] sm:$0xff]  }
0x3eac   :  { %v9578_v31 = vadd.f32 %v9577_v37, %v9229_v54  ;;  %v9621_v46 = vadd.f32 %v9620_v27, %v9237_v57  ;;  %v9579_v34 = vpop.f32.mrb[239].mxu1  ;;  %v9622_v35 = vpop.f32.mrb[243].mxu0  ;;  %10908 = vmatmul.mubr.bf16.vlgmr.msra.gmra.mrb[248].mxu1 %v9829_v39  ;;  %10949 = vmatmul.mubr.bf16.vlgmr.msra.gmra.mrb[252].mxu0 %v9831_v56  ;;  %v9801_v55 = vmax.f32 %v9574_v7, 0.0  ;;  %v9803_v14 = vmax.f32 %v9617_v60, 0.0  ;;  %v19780_v15 = vld [vmem:[%s24192_s4 + $0x9d8] sm:$0xff]  }
0x3ead   :  { %v9580_v33 = vadd.f32 %v9579_v34, %v9233_v6  ;;  %v9623_v42 = vadd.f32 %v9622_v35, %v9241_v24  ;;  %18253 = vmatpush3.bf16.msra.mxu1 %v19769_v16  ;;  %18275 = vmatpush3.bf16.msra.mxu0 %v19770_v13  ;;  %v9802_v54 = vmax.f32 %v9576_v21, 0.0  ;;  %v9804_v57 = vmax.f32 %v9619_v20, 0.0  ;;  %v19781_v27 = vld [vmem:[%s24192_s4 + $0x918] sm:$0xff]  }
0x3eae   :  { %v9817_v22 = vmax.f32 %v9578_v31, 0.0  ;;  %v9819_v43 = vmax.f32 %v9621_v46, 0.0  ;;  %18254 = vmatprep.subr.bf16.mxu1 %v19771_v9  ;;  %18276 = vmatprep.subr.bf16.mxu0 %v19772_v30  ;;  %v9261_v7 = vrot.slane %v22745_v61, %v20789_v50  ;;  %v9269_v30 = vrot.slane %v22745_v61, %v20791_v51 }
0x3eaf   :  { %v9818_v26 = vmax.f32 %v9580_v33, 0.0  ;;  %v9820_v44 = vmax.f32 %v9623_v42, 0.0  ;;  %v9265_v21 = vrot.slane %v22745_v61, %v20793_v52  ;;  %v19784_v33 = vld [vmem:[%s24192_s4 + $0x9e0] sm:$0xff]  }
0x3eb0   :  { %v22779_v6 = vpack.c.bf16 %v9817_v22, %v9801_v55  ;;  %v22781_v24 = vpack.c.bf16 %v9819_v43, %v9803_v14 }
0x3eb1   :  { %v9834_v8 = vpack.c.bf16 %v9818_v26, %v9802_v54  ;;  %v9836_v63 = vpack.c.bf16 %v9820_v44, %v9804_v57  ;;  %18255 = vmatpush3.bf16.msra.mxu1 %v19773_v12  ;;  %18277 = vmatpush3.bf16.msra.mxu0 %v19774_v0  ;;  %v9659_v62 = vpop.f32.mrb[240].mxu1  ;;  %v9702_v2 = vpop.f32.mrb[244].mxu0  ;;  %v19786_v54 = vld [vmem:[%s24192_s4 + $0x9a0] sm:$0xff]  }
0x3eb2   :  { %v9660_v4 = vadd.f32 %v9659_v62, %v9245_v10  ;;  %v9703_v58 = vadd.f32 %v9702_v2, %v9253_v32  ;;  %v9661_v39 = vpop.f32.mrb[241].mxu1  ;;  %v9704_v56 = vpop.f32.mrb[245].mxu0  ;;  %18256 = vmatprep.subr.bf16.mxu1 %v19775_v41  ;;  %18278 = vmatprep.subr.bf16.mxu0 %v19776_v47  ;;  %v19785_v47 = vld [vmem:[%s24192_s4 + $0x920] sm:$0xff]   ;;  %v19788_v62 = vld [vmem:[%s24192_s4 + $0x9e8] sm:$0xff]  }
0x3eb3   :  { %v9662_v17 = vadd.f32 %v9661_v39, %v9249_v40  ;;  %v9705_v11 = vadd.f32 %v9704_v56, %v9257_v59  ;;  %v9663_v16 = vpop.f32.mrb[242].mxu1  ;;  %v9706_v13 = vpop.f32.mrb[246].mxu0  ;;  %10989 = vmatprep.mubr.bf16.mxu1 %v9834_v8  ;;  %11030 = vmatprep.mubr.bf16.mxu0 %v9836_v63  ;;  %v19787_v63 = vld [vmem:[%s24192_s4 + $0x968] sm:$0xff]  }
0x3eb4   :  { %v9664_v60 = vadd.f32 %v9663_v16, %v9245_v10  ;;  %v9707_v19 = vadd.f32 %v9706_v13, %v9253_v32  ;;  %v9665_v18 = vpop.f32.mrb[243].mxu1  ;;  %v9708_v9 = vpop.f32.mrb[247].mxu0  ;;  %v19782_v10 = vld [vmem:[%s24192_s4 + $0x998] sm:$0xff]   ;;  %v9273_v32 = vrot.slane %v22745_v61, %v20795_v53  ;;  %v9805_v31 = vmax.f32 %v9660_v4, 0.0  ;;  %v19790_v16 = vld [vmem:[%s24192_s4 + $0x9a8] sm:$0xff]  }
0x3eb5   :  { %v9666_v20 = vadd.f32 %v9665_v18, %v9249_v40  ;;  %v9709_v37 = vadd.f32 %v9708_v9, %v9257_v59  ;;  %18257 = vmatpush3.bf16.msra.mxu1 %v19777_v3  ;;  %18279 = vmatpush3.bf16.msra.mxu0 %v19778_v38  ;;  %v9807_v46 = vmax.f32 %v9703_v58, 0.0  ;;  %v19783_v40 = vld [vmem:[%s24192_s4 + $0x960] sm:$0xff]   ;;  %v9806_v42 = vmax.f32 %v9662_v17, 0.0  ;;  %v19792_v9 = vld [vmem:[%s24192_s4 + $0x9f0] sm:$0xff]  }
0x3eb6   :  { %v9821_v34 = vmax.f32 %v9664_v60, 0.0  ;;  %v9823_v35 = vmax.f32 %v9707_v19, 0.0  ;;  %18258 = vmatprep.subr.bf16.mxu1 %v19779_v23  ;;  %18280 = vmatprep.subr.bf16.mxu0 %v19780_v15  ;;  %v9808_v12 = vmax.f32 %v9705_v11, 0.0  ;;  %v19789_v11 = vld [vmem:[%s24192_s4 + $0x928] sm:$0xff]  }
0x3eb7   :  { %v9822_v0 = vmax.f32 %v9666_v20, 0.0  ;;  %v9824_v59 = vmax.f32 %v9709_v37, 0.0 }
0x3eb8   :  { %v22815_v55 = vpack.c.bf16 %v9821_v34, %v9805_v31  ;;  %v22817_v61 = vpack.c.bf16 %v9823_v35, %v9807_v46  ;;  %v19793_v46 = vld [vmem:[%s24192_s4 + $0x930] sm:$0xff]   ;;  %v19795_v35 = vld [vmem:[%s24192_s4 + $0x978] sm:$0xff]  }
0x3eb9   :  { %v22819_v14 = vpack.c.bf16 %v9822_v0, %v9806_v42  ;;  %v22821_v22 = vpack.c.bf16 %v9824_v59, %v9808_v12  ;;  %18259 = vmatpush3.bf16.msra.mxu1 %v19781_v27  ;;  %18281 = vmatpush3.bf16.msra.mxu0 %v19782_v10  ;;  %v9745_v43 = vpop.f32.mrb[244].mxu1  ;;  %v9788_v41 = vpop.f32.mrb[248].mxu0  ;;  %v19794_v34 = vld [vmem:[%s24192_s4 + $0x9b0] sm:$0xff]   ;;  %v19798_v42 = vld [vmem:[%s24192_s4 + $0x9b8] sm:$0xff]   ;;  %v19799_v12 = vld [vmem:[%s24192_s4 + $0xa40] sm:$0xff]  }
0x3eba   :  { %v9746_v57 = vadd.f32 %v9745_v43, %v9261_v7  ;;  %v9789_v26 = vadd.f32 %v9788_v41, %v9269_v30  ;;  %v9747_v44 = vpop.f32.mrb[245].mxu1  ;;  %v9790_v8 = vpop.f32.mrb[249].mxu0  ;;  %18260 = vmatprep.subr.bf16.mxu1 %v19783_v40  ;;  %18282 = vmatprep.subr.bf16.mxu0 %v19784_v33  ;;  %v19796_v40 = vld [vmem:[%s24192_s4 + $0x9f8] sm:$0xff]   ;;  %v19800_v0 = vld [vmem:[%s24192_s4 + $0xac0] sm:$0xff]   ;;  %v19803_v41 = vld [vmem:[%s24192_s4 + $0xa48] sm:$0xff]  }
0x3ebb   :  { %v9748_v2 = vadd.f32 %v9747_v44, %v9265_v21  ;;  %v9791_v3 = vadd.f32 %v9790_v8, %v9273_v32  ;;  %v9749_v38 = vpop.f32.mrb[246].mxu1  ;;  %v9792_v4 = vpop.f32.mrb[250].mxu0  ;;  %v19797_v33 = vld [vmem:[%s24192_s4 + $0x938] sm:$0xff]   ;;  %v19801_v59 = vld [vmem:[%s24192_s4 + $0xa00] sm:$0xff]  }
0x3ebc   :  { %v9750_v58 = vadd.f32 %v9749_v38, %v9261_v7  ;;  %v9793_v39 = vadd.f32 %v9792_v4, %v9269_v30  ;;  %v9751_v56 = vpop.f32.mrb[247].mxu1  ;;  %v9794_v23 = vpop.f32.mrb[251].mxu0  ;;  %v9809_v13 = vmax.f32 %v9746_v57, 0.0  ;;  %v9811_v60 = vmax.f32 %v9789_v26, 0.0  ;;  %v19791_v7 = vld [vmem:[%s24192_s4 + $0x970] sm:$0xff]   ;;  %v19802_v43 = vld [vmem:[%s24192_s4 + $0xa80] sm:$0xff]  }
0x3ebd   :  { %v9752_v15 = vadd.f32 %v9751_v56, %v9265_v21  ;;  %v9795_v17 = vadd.f32 %v9794_v23, %v9273_v32  ;;  %18261 = vmatpush3.bf16.msra.mxu1 %v19785_v47  ;;  %18283 = vmatpush3.bf16.msra.mxu0 %v19786_v54  ;;  %v9810_v30 = vmax.f32 %v9748_v2, 0.0  ;;  %v9812_v21 = vmax.f32 %v9791_v3, 0.0  ;;  %v19804_v47 = vld [vmem:[%s24192_s4 + $0xac8] sm:$0xff]   ;;  %v19811_v26 = vld [vmem:[%s24192_s4 + $0xa58] sm:$0xff]   ;;  %v19816_v2 = vld [vmem:[%s24192_s4 + $0xae0] sm:$0xff]  }
0x3ebe   :  { %v9825_v19 = vmax.f32 %v9750_v58, 0.0  ;;  %v9827_v18 = vmax.f32 %v9793_v39, 0.0  ;;  %18262 = vmatprep.subr.bf16.mxu1 %v19787_v63  ;;  %18284 = vmatprep.subr.bf16.mxu0 %v19788_v62  ;;  %v19805_v54 = vld [vmem:[%s24192_s4 + $0xa08] sm:$0xff]   ;;  %v19812_v44 = vld [vmem:[%s24192_s4 + $0xad8] sm:$0xff]   ;;  %v19815_v62 = vld [vmem:[%s24192_s4 + $0xa60] sm:$0xff]  }
0x3ebf   :  { %v9826_v20 = vmax.f32 %v9752_v15, 0.0  ;;  %v9828_v37 = vmax.f32 %v9795_v17, 0.0  ;;  %v19806_v57 = vld [vmem:[%s24192_s4 + $0xa88] sm:$0xff]   ;;  %v19813_v8 = vld [vmem:[%s24192_s4 + $0xa18] sm:$0xff]   ;;  %v19817_v3 = vld [vmem:[%s24192_s4 + $0xa20] sm:$0xff]  }
0x3ec0   :  { %v22847_v27 = vpack.c.bf16 %v9825_v19, %v9809_v13  ;;  %v22849_v10 = vpack.c.bf16 %v9827_v18, %v9811_v60  ;;  %v19814_v63 = vld [vmem:[%s24192_s4 + $0xa98] sm:$0xff]   ;;  %v19818_v38 = vld [vmem:[%s24192_s4 + $0xaa0] sm:$0xff]   ;;  %v19819_v4 = vld [vmem:[%s24192_s4 + $0xa68] sm:$0xff]  }
0x3ec1   :  { %v22851_v32 = vpack.c.bf16 %v9826_v20, %v9810_v30  ;;  %v22853_v31 = vpack.c.bf16 %v9828_v37, %v9812_v21  ;;  %18263 = vmatpush3.bf16.msra.mxu1 %v19789_v11  ;;  %18285 = vmatpush3.bf16.msra.mxu0 %v19790_v16  ;;  %v19820_v58 = vld [vmem:[%s24192_s4 + $0xae8] sm:$0xff]   ;;  %v19823_v23 = vld [vmem:[%s24192_s4 + $0xa70] sm:$0xff]   ;;  %v19827_v16 = vld [vmem:[%s24192_s4 + $0xa78] sm:$0xff]  }
0x3ec2   :  { %18264 = vmatprep.subr.bf16.mxu1 %v19791_v7  ;;  %18286 = vmatprep.subr.bf16.mxu0 %v19792_v9  ;;  %v19821_v39 = vld [vmem:[%s24192_s4 + $0xa28] sm:$0xff]   ;;  %v19824_v15 = vld [vmem:[%s24192_s4 + $0xaf0] sm:$0xff]   ;;  %v19828_v13 = vld [vmem:[%s24192_s4 + $0xaf8] sm:$0xff]  }
0x3ec3   :  { %v19822_v56 = vld [vmem:[%s24192_s4 + $0xaa8] sm:$0xff]   ;;  %v19825_v17 = vld [vmem:[%s24192_s4 + $0xa30] sm:$0xff]   ;;  %v19829_v60 = vld [vmem:[%s24192_s4 + $0xa38] sm:$0xff]  }
0x3ec4   :  { %v19826_v11 = vld [vmem:[%s24192_s4 + $0xab0] sm:$0xff]   ;;  %v19830_v19 = vld [vmem:[%s24192_s4 + $0xab8] sm:$0xff]   ;;  %v19831_v18 = vld [vmem:[%s24192_s4 + $0xb40] sm:$0xff]  }
0x3ec5   :  { %18265 = vmatpush3.bf16.msra.mxu1 %v19793_v46  ;;  %18287 = vmatpush3.bf16.msra.mxu0 %v19794_v34  ;;  %v19832_v7 = vld [vmem:[%s24192_s4 + $0xbc0] sm:$0xff]   ;;  %v19835_v21 = vld [vmem:[%s24192_s4 + $0xb48] sm:$0xff]   ;;  %v19842_v34 = vld [vmem:[%s24192_s4 + $0xb90] sm:$0xff]  }
0x3ec6   :  { %18266 = vmatprep.subr.bf16.mxu1 %v19795_v35  ;;  %18288 = vmatprep.subr.bf16.mxu0 %v19796_v40  ;;  %v19833_v9 = vld [vmem:[%s24192_s4 + $0xb00] sm:$0xff]   ;;  %v19836_v20 = vld [vmem:[%s24192_s4 + $0xbc8] sm:$0xff]   ;;  %v19844_v35 = vld [vmem:[%s24192_s4 + $0xbd8] sm:$0xff]  }
0x3ec7   :  { %v19834_v30 = vld [vmem:[%s24192_s4 + $0xb80] sm:$0xff]   ;;  %v19837_v37 = vld [vmem:[%s24192_s4 + $0xb08] sm:$0xff]   ;;  %v19845_v40 = vld [vmem:[%s24192_s4 + $0xb18] sm:$0xff]  }
0x3ec8   :  { %v19838_v46 = vld [vmem:[%s24192_s4 + $0xb88] sm:$0xff]  }
0x3ec9   :  { %18267 = vmatpush3.bf16.msra.mxu1 %v19797_v33  ;;  %18289 = vmatpush3.bf16.msra.mxu0 %v19798_v42  ;;  %v19846_v33 = vld [vmem:[%s24192_s4 + $0xb98] sm:$0xff]   ;;  %v19847_v42 = vld [vmem:[%s24192_s4 + $0xb60] sm:$0xff]  }
0x3eca   :  { %18296 = vmatprep.subr.bf16.mxu1 %v19799_v12  ;;  %18318 = vmatprep.subr.bf16.mxu0 %v19800_v0  ;;  %v19848_v12 = vld [vmem:[%s24192_s4 + $0xbe0] sm:$0xff]  }
0x3ecb   :  { %v19849_v0 = vld [vmem:[%s24192_s4 + $0xb20] sm:$0xff]  }
0x3ecc   :  { %10990 = vmatmul.mubr.bf16.vlgmr.msra.gmra.mrb[252].mxu1 %v22779_v6  ;;  %11031 = vmatmul.mubr.bf16.vlgmr.msra.gmra.mrb[0].mxu0 %v22781_v24  ;;  %v19807_v6 = vld [vmem:[%s24192_s4 + $0xa50] sm:$0xff]  }
0x3ecd   :  { %18297 = vmatpush3.bf16.msra.mxu1 %v19801_v59  ;;  %11071 = vmatprep.mubr.bf16.mxu1 %v22819_v14  ;;  %v19808_v24 = vld [vmem:[%s24192_s4 + $0xad0] sm:$0xff]   ;;  %v19850_v59 = vld [vmem:[%s24192_s4 + $0xba0] sm:$0xff]  }
0x3ece   :  { %18319 = vmatpush3.bf16.msra.mxu0 %v19802_v43  ;;  %11112 = vmatprep.mubr.bf16.mxu0 %v22821_v22  ;;  %v19809_v14 = vld [vmem:[%s24192_s4 + $0xa10] sm:$0xff]   ;;  %v19851_v43 = vld [vmem:[%s24192_s4 + $0xb68] sm:$0xff]  }
0x3ecf   :  { %18298 = vmatprep.subr.bf16.mxu1 %v19803_v41  ;;  %18320 = vmatprep.subr.bf16.mxu0 %v19804_v47  ;;  %v19810_v22 = vld [vmem:[%s24192_s4 + $0xa90] sm:$0xff]   ;;  %v19852_v41 = vld [vmem:[%s24192_s4 + $0xbe8] sm:$0xff]  }
0x3ed0   :  { %v19853_v47 = vld [vmem:[%s24192_s4 + $0xb28] sm:$0xff]  }
0x3ed1   :  { %18299 = vmatpush3.bf16.msra.mxu1 %v19805_v54  ;;  %v19854_v54 = vld [vmem:[%s24192_s4 + $0xba8] sm:$0xff]  }
0x3ed2   :  { %18321 = vmatpush3.bf16.msra.mxu0 %v19806_v57  ;;  %18300 = vmatprep.subr.bf16.mxu1 %v19807_v6  ;;  %v19855_v57 = vld [vmem:[%s24192_s4 + $0xb70] sm:$0xff]  }
0x3ed3   :  { %18322 = vmatprep.subr.bf16.mxu0 %v19808_v24  ;;  %v19856_v6 = vld [vmem:[%s24192_s4 + $0xbf0] sm:$0xff]  }
0x3ed4   :  { %v19857_v24 = vld [vmem:[%s24192_s4 + $0xb30] sm:$0xff]  }
0x3ed5   :  { %18301 = vmatpush3.bf16.msra.mxu1 %v19809_v14  ;;  %v19858_v14 = vld [vmem:[%s24192_s4 + $0xbb0] sm:$0xff]  }
0x3ed6   :  { %18323 = vmatpush3.bf16.msra.mxu0 %v19810_v22  ;;  %18302 = vmatprep.subr.bf16.mxu1 %v19811_v26  ;;  %v19859_v22 = vld [vmem:[%s24192_s4 + $0xb78] sm:$0xff]  }
0x3ed7   :  { %18324 = vmatprep.subr.bf16.mxu0 %v19812_v44  ;;  %v19860_v26 = vld [vmem:[%s24192_s4 + $0xbf8] sm:$0xff]  }
0x3ed8   :  { %v19861_v44 = vld [vmem:[%s24192_s4 + $0xb38] sm:$0xff]  }
0x3ed9   :  { %18303 = vmatpush3.bf16.msra.mxu1 %v19813_v8  ;;  %v19862_v8 = vld [vmem:[%s24192_s4 + $0xbb8] sm:$0xff]  }
0x3eda   :  { %18325 = vmatpush3.bf16.msra.mxu0 %v19814_v63  ;;  %18304 = vmatprep.subr.bf16.mxu1 %v19815_v62 }
0x3edb   :  { %18326 = vmatprep.subr.bf16.mxu0 %v19816_v2  ;;  %v17005_v2 = vld [vmem:[%s24190_s5 + $0x1e] ss:$0 sm:$0xff] }
0x3edd   :  { %18305 = vmatpush3.bf16.msra.mxu1 %v19817_v3 }
0x3ede   :  { %18327 = vmatpush3.bf16.msra.mxu0 %v19818_v38  ;;  %18306 = vmatprep.subr.bf16.mxu1 %v19819_v4 }
0x3edf   :  { %18328 = vmatprep.subr.bf16.mxu0 %v19820_v58 }
0x3ee1   :  { %18307 = vmatpush3.bf16.msra.mxu1 %v19821_v39 }
0x3ee2   :  { %18329 = vmatpush3.bf16.msra.mxu0 %v19822_v56  ;;  %18308 = vmatprep.subr.bf16.mxu1 %v19823_v23 }
0x3ee3   :  { %18330 = vmatprep.subr.bf16.mxu0 %v19824_v15 }
0x3ee5   :  { %18309 = vmatpush3.bf16.msra.mxu1 %v19825_v17 }
0x3ee6   :  { %18331 = vmatpush3.bf16.msra.mxu0 %v19826_v11  ;;  %18310 = vmatprep.subr.bf16.mxu1 %v19827_v16 }
0x3ee7   :  { %18332 = vmatprep.subr.bf16.mxu0 %v19828_v13 }
0x3ee9   :  { %18311 = vmatpush3.bf16.msra.mxu1 %v19829_v60 }
0x3eea   :  { %18333 = vmatpush3.bf16.msra.mxu0 %v19830_v19  ;;  %18340 = vmatprep.subr.bf16.mxu1 %v19831_v18 }
0x3eeb   :  { %18362 = vmatprep.subr.bf16.mxu0 %v19832_v7 }
0x3eec   :  { %11072 = vmatmul.mubr.bf16.vlgmr.msra.gmra.mrb[0].mxu1 %v22815_v55  ;;  %v19839_v55 = vld [vmem:[%s24192_s4 + $0xb50] sm:$0xff]  }
0x3eed   :  { %11113 = vmatmul.mubr.bf16.vlgmr.msra.gmra.mrb[4].mxu0 %v22817_v61  ;;  %18341 = vmatpush3.bf16.msra.mxu1 %v19833_v9  ;;  %v19840_v61 = vld [vmem:[%s24192_s4 + $0xbd0] sm:$0xff]  }
0x3eee   :  { %11153 = vmatprep.mubr.bf16.mxu1 %v22851_v32  ;;  %18363 = vmatpush3.bf16.msra.mxu0 %v19834_v30  ;;  %v19841_v32 = vld [vmem:[%s24192_s4 + $0xb10] sm:$0xff]  }
0x3eef   :  { %11194 = vmatprep.mubr.bf16.mxu0 %v22853_v31  ;;  %18342 = vmatprep.subr.bf16.mxu1 %v19835_v21  ;;  %v19843_v31 = vld [vmem:[%s24192_s4 + $0xb58] sm:$0xff]  }
0x3ef0   :  { %18364 = vmatprep.subr.bf16.mxu0 %v19836_v20 }
0x3ef1   :  { %18343 = vmatpush3.bf16.msra.mxu1 %v19837_v37 }
0x3ef2   :  { %18365 = vmatpush3.bf16.msra.mxu0 %v19838_v46  ;;  %18344 = vmatprep.subr.bf16.mxu1 %v19839_v55 }
0x3ef3   :  { %18366 = vmatprep.subr.bf16.mxu0 %v19840_v61 }
0x3ef5   :  { %18345 = vmatpush3.bf16.msra.mxu1 %v19841_v32 }
0x3ef6   :  { %18367 = vmatpush3.bf16.msra.mxu0 %v19842_v34  ;;  %18346 = vmatprep.subr.bf16.mxu1 %v19843_v31 }
0x3ef7   :  { %18368 = vmatprep.subr.bf16.mxu0 %v19844_v35 }
0x3ef9   :  { %18347 = vmatpush3.bf16.msra.mxu1 %v19845_v40 }
0x3efa   :  { %18369 = vmatpush3.bf16.msra.mxu0 %v19846_v33  ;;  %18348 = vmatprep.subr.bf16.mxu1 %v19847_v42 }
0x3efb   :  { %18370 = vmatprep.subr.bf16.mxu0 %v19848_v12 }
0x3efd   :  { %18349 = vmatpush3.bf16.msra.mxu1 %v19849_v0 }
0x3efe   :  { %18371 = vmatpush3.bf16.msra.mxu0 %v19850_v59  ;;  %18350 = vmatprep.subr.bf16.mxu1 %v19851_v43 }
0x3eff   :  { %18372 = vmatprep.subr.bf16.mxu0 %v19852_v41 }
0x3f01   :  { %18351 = vmatpush3.bf16.msra.mxu1 %v19853_v47 }
0x3f02   :  { %18373 = vmatpush3.bf16.msra.mxu0 %v19854_v54  ;;  %18352 = vmatprep.subr.bf16.mxu1 %v19855_v57 }
0x3f03   :  { %18374 = vmatprep.subr.bf16.mxu0 %v19856_v6 }
0x3f05   :  { %18353 = vmatpush3.bf16.msra.mxu1 %v19857_v24 }
0x3f06   :  { %18375 = vmatpush3.bf16.msra.mxu0 %v19858_v14  ;;  %18354 = vmatprep.subr.bf16.mxu1 %v19859_v22 }
0x3f07   :  { %18376 = vmatprep.subr.bf16.mxu0 %v19860_v26 }
0x3f09   :  { %18355 = vmatpush3.bf16.msra.mxu1 %v19861_v44 }
0x3f0a   :  { %18377 = vmatpush3.bf16.msra.mxu0 %v19862_v8  ;;  %19172 = vmatprep.subr.bf16.mxu1 %v20245_v5 }
0x3f0b   :  { %19180 = vmatprep.subr.bf16.mxu0 %v20245_v5 }
0x3f0c   :  { %11154 = vmatmul.mubr.bf16.vlgmr.msra.gmra.mrb[4].mxu1 %v22847_v27 }
0x3f0d   :  { %11195 = vmatmul.mubr.bf16.vlgmr.msra.gmra.mrb[8].mxu0 %v22849_v10  ;;  %19176 = vmatprep.mubr.msk.bf16.mxu1 %vm20247_vm0, %v20245_v5 }
0x3f0e   :  { %19182 = vmatprep.mubr.msk.bf16.mxu0 %vm20247_vm0, %v20245_v5 }
0x3f7f   :  { %v18224_v63 = vpop.f32.mrb[248].mxu1  ;;  %v18246_v62 = vpop.f32.mrb[252].mxu0 }
0x3f80   :  { %v18225_v3 = vpop.f32.mrb[249].mxu1  ;;  %v18247_v38 = vpop.f32.mrb[253].mxu0 }
0x3f81   :  { %v18226_v4 = vadd.f32 %v18225_v3, %v18224_v63  ;;  %v18248_v58 = vadd.f32 %v18247_v38, %v18246_v62  ;;  %v18227_v39 = vpop.f32.mrb[250].mxu1  ;;  %v18249_v27 = vpop.f32.mrb[254].mxu0 }
0x3f82   :  { %v18228_v56 = vpop.f32.mrb[251].mxu1  ;;  %v18250_v10 = vpop.f32.mrb[255].mxu0 }
0x3f83   :  { %v10910_v23 = vadd.f32 %v18226_v4, %v17005_v2  ;;  %v18229_v15 = vadd.f32 %v18228_v56, %v18227_v39  ;;  %v18251_v17 = vadd.f32 %v18250_v10, %v18249_v27 }
0x3f85   :  { %v10951_v11 = vadd.f32 %v18248_v58, %v10910_v23  ;;  %v10913_v16 = vadd.f32 %v18229_v15, %v17005_v2 }
0x3f87   :  { %v10954_v13 = vadd.f32 %v18251_v17, %v10913_v16 }
0x3f9f   :  { %v18268_v60 = vpop.f32.mrb[252].mxu1  ;;  %v18290_v19 = vpop.f32.mrb[0].mxu0 }
0x3fa0   :  { %v18269_v18 = vpop.f32.mrb[253].mxu1  ;;  %v18291_v7 = vpop.f32.mrb[1].mxu0 }
0x3fa1   :  { %v18270_v9 = vadd.f32 %v18269_v18, %v18268_v60  ;;  %v18292_v30 = vadd.f32 %v18291_v7, %v18290_v19  ;;  %v18271_v21 = vpop.f32.mrb[254].mxu1  ;;  %v18293_v20 = vpop.f32.mrb[2].mxu0 }
0x3fa2   :  { %v18272_v37 = vpop.f32.mrb[255].mxu1  ;;  %v18294_v46 = vpop.f32.mrb[3].mxu0 }
0x3fa3   :  { %v10992_v55 = vadd.f32 %v18270_v9, %v10951_v11  ;;  %v18273_v61 = vadd.f32 %v18272_v37, %v18271_v21  ;;  %v18295_v32 = vadd.f32 %v18294_v46, %v18293_v20 }
0x3fa5   :  { %v11033_v34 = vadd.f32 %v18292_v30, %v10992_v55  ;;  %v10995_v31 = vadd.f32 %v18273_v61, %v10954_v13  ;;  %v19864_v55 = vld [vmem:[%s24189_s2 + $0xa8] sm:$0xff]  }
0x3fa7   :  { %v11036_v35 = vadd.f32 %v18295_v32, %v10995_v31 }
0x3fbf   :  { %v18312_v40 = vpop.f32.mrb[0].mxu1 }
0x3fc0   :  { %v18334_v33 = vpop.f32.mrb[4].mxu0  ;;  %v18313_v42 = vpop.f32.mrb[1].mxu1 }
0x3fc1   :  { %v18314_v12 = vadd.f32 %v18313_v42, %v18312_v40  ;;  %v18335_v0 = vpop.f32.mrb[5].mxu0  ;;  %v18315_v59 = vpop.f32.mrb[2].mxu1  ;;  %v17134_v42 = vld [vmem:[%s24190_s5 + $0x1c] ss:$0 sm:$0xff] }
0x3fc2   :  { %v18336_v43 = vadd.f32 %v18335_v0, %v18334_v33  ;;  %v18337_v41 = vpop.f32.mrb[6].mxu0  ;;  %v18316_v47 = vpop.f32.mrb[3].mxu1 }
0x3fc3   :  { %v11074_v54 = vadd.f32 %v18314_v12, %v11033_v34  ;;  %v18317_v57 = vadd.f32 %v18316_v47, %v18315_v59  ;;  %v18338_v6 = vpop.f32.mrb[7].mxu0 }
0x3fc4   :  { %v18339_v24 = vadd.f32 %v18338_v6, %v18337_v41  ;;  %v17135_v41 = vld [vmem:[%s24190_s5 + $0x1d] ss:$0 sm:$0xff] }
0x3fc5   :  { %v11115_v14 = vadd.f32 %v18336_v43, %v11074_v54  ;;  %v11077_v22 = vadd.f32 %v18317_v57, %v11036_v35 }
0x3fc7   :  { %v11118_v26 = vadd.f32 %v18339_v24, %v11077_v22  ;;  %v17140_v24 = vld [vmem:[%s24190_s5 + $0x1f] ss:$0 sm:$0xff] }
0x3fdf   :  { %v18356_v44 = vpop.f32.mrb[4].mxu1 }
0x3fe0   :  { %v18378_v8 = vpop.f32.mrb[8].mxu0  ;;  %v18357_v63 = vpop.f32.mrb[5].mxu1 }
0x3fe1   :  { %v18358_v62 = vadd.f32 %v18357_v63, %v18356_v44  ;;  %v18379_v2 = vpop.f32.mrb[9].mxu0  ;;  %v18359_v3 = vpop.f32.mrb[6].mxu1 }
0x3fe2   :  { %v18380_v38 = vadd.f32 %v18379_v2, %v18378_v8  ;;  %v18381_v4 = vpop.f32.mrb[10].mxu0  ;;  %v18360_v58 = vpop.f32.mrb[7].mxu1 }
0x3fe3   :  { %v11156_v39 = vadd.f32 %v18358_v62, %v11115_v14  ;;  %v18361_v27 = vadd.f32 %v18360_v58, %v18359_v3  ;;  %v18382_v56 = vpop.f32.mrb[11].mxu0 }
0x3fe4   :  { %v18383_v10 = vadd.f32 %v18382_v56, %v18381_v4 }
0x3fe5   :  { %v11197_v23 = vadd.f32 %v18380_v38, %v11156_v39  ;;  %v11159_v15 = vadd.f32 %v18361_v27, %v11118_v26 }
0x3fe7   :  { %v11200_v17 = vadd.f32 %v18383_v10, %v11159_v15  ;;  %v11203_v11 = vadd.f32 %v11197_v23, %v22551_v36 }
0x3fe9   :  { %v11207_v16 = vsel %vm150_vm1, %v11203_v11, 0.0  ;;  %v11204_v13 = vadd.f32 %v11200_v17, %v22553_v45  ;;  %v19863_v45 = vld [vmem:[%s24189_s2 + $0xa0] sm:$0xff]  }
0x3fea   :  { %11208 = vadd.xlane.f32.xlu0 %v11207_v16  ;;  %19173 = vmatpush3.bf16.msra.mxu1 %v19863_v45 }
0x3feb   :  { %v11210_v60 = vsel %vm150_vm1, %v11204_v13, 0.0  ;;  %19174 = vmatprep.subr.bf16.mxu1 %v20245_v5 }
0x3fec   :  { %11211 = vadd.xlane.f32.xlu1 %v11210_v60 }
0x3fee   :  { %19175 = vmatpush3.bf16.msra.mxu1 %v19864_v55 }
0x3fef   :  { %19186 = vmatprep.subr.bf16.mxu1 %v20245_v5 }
0x4077   :  { %v11209_v19 = vpop.xlane.xlu0 %11208 }
0x4078   :  { %v11213_v18 = vmul.f32 0.03125, %v11209_v19 }
0x4079   :  { %v11212_v7 = vpop.xlane.xlu1 %11211 }
0x407a   :  { %v11215_v9 = vsub.f32 %v11203_v11, %v11213_v18  ;;  %v11214_v30 = vmul.f32 0.03125, %v11212_v7 }
0x407c   :  { %v11216_v21 = vsub.f32 %v11204_v13, %v11214_v30  ;;  %v11217_v20 = vmul.f32 %v11215_v9, %v11215_v9 }
0x407e   :  { %v11219_v37 = vsel %vm150_vm1, %v11217_v20, 0.0  ;;  %v11218_v46 = vmul.f32 %v11216_v21, %v11216_v21 }
0x407f   :  { %11220 = vadd.xlane.f32.xlu0 %v11219_v37 }
0x4080   :  { %v11222_v36 = vsel %vm150_vm1, %v11218_v46, 0.0 }
0x4081   :  { %11223 = vadd.xlane.f32.xlu1 %v11222_v36 }
0x410c   :  { %v11221_v61 = vpop.xlane.xlu0 %11220 }
0x410d   :  { %v11225_v32 = vmul.f32 0.03125, %v11221_v61 }
0x410e   :  { %v11224_v34 = vpop.xlane.xlu1 %11223 }
0x410f   :  { %v11227_v31 = vadd.f32 1e-05, %v11225_v32  ;;  %v11226_v35 = vmul.f32 0.03125, %v11224_v34 }
0x4111   :  { %20155 = vrsqrt.f32 %v11227_v31  ;;  %v11228_v40 = vadd.f32 1e-05, %v11226_v35 }
0x4113   :  { %20157 = vrsqrt.f32 %v11228_v40 }
0x411b   :  { %v20156_v33 = vpop.eup %20155 }
0x411c   :  { %v11231_v12 = vmul.f32 %v20156_v33, %v11215_v9 }
0x411d   :  { %v20158_v0 = vpop.eup %20157 }
0x411e   :  { %v11237_v59 = vmul.f32 %v17134_v42, %v11231_v12  ;;  %v11232_v43 = vmul.f32 %v20158_v0, %v11216_v21 }
0x4120   :  { %v11238_v47 = vmul.f32 %v17134_v42, %v11232_v43  ;;  %v23104_v54 = vadd.f32 %v17135_v41, %v11237_v59 }
0x4122   :  { %v23106_v57 = vadd.f32 %v17135_v41, %v11238_v47 }
0x4124   :  { %v11250_v6 = vpack.c.bf16 %v23106_v57, %v23104_v54 }
0x4126   :  { %19177 = vmatmul.mubr.msk.bf16.vlgmr.msra.gmra.mrb[8].mxu1 %vm150_vm1, %v11250_v6 }
0x4127   :  { %19188 = vmatprep.mubr.msk.bf16.mxu1 %vm20247_vm0, %v20245_v5 }
0x41f9   :  { %v11305_v14 = vpop.f32.mrb[8].mxu1 }
0x41fa   :  { %v11306_v22 = vadd.f32 %v17140_v24, %v11305_v14  ;;  %v19178_v26 = vpop.f32.mrb[9].mxu1 }
0x41fb   :  { %v11308_v44 = vpop.f32.mrb[10].mxu1 }
0x41fc   :  { %v23116_v8 = vpack.c.bf16 %v11306_v22, %v11306_v22  ;;  %v11309_v63 = vadd.f32 %v17140_v24, %v11308_v44  ;;  %v19179_v62 = vpop.f32.mrb[11].mxu1 }
0x41fe   :  { %v23118_v2 = vpack.c.bf16 %v11309_v63, %v11309_v63  ;;  %11320 = vrot.lane.b32.xlu0 %v23116_v8, %s20248_s18 }
0x4200   :  { %11369 = vrot.lane.b32.xlu1 %v23118_v2, %s20248_s18 }
0x4270   :  { %v11321_v3 = vpop.permute.xlu0 %11320 }
0x4271   :  { %v11326_v38 = vsel %vm205_vm2, %v11321_v3, 0 }
0x4272   :  { %19181 = vmatpush3.bf16.xpose.msra.mxu0 %v11326_v38  ;;  %v11370_v4 = vpop.permute.xlu1 %11369 }
0x4273   :  { %v11375_v58 = vsel %vm205_vm2, %v11370_v4, 0  ;;  %19192 = vmatprep.subr.bf16.mxu0 %v20245_v5 }
0x4274   :  { %19187 = vmatpush3.bf16.xpose.msra.mxu1 %v11375_v58 }
0x4275   :  { %19198 = vmatprep.subr.bf16.mxu1 %v20245_v5 }
0x4279   :  { %19183 = vmatmul.mubr.msk.bf16.vlgmr.msra.gmra.mrb[12].mxu0 %vm205_vm2, %v23116_v8 }
0x427a   :  { %19194 = vmatprep.mubr.msk.bf16.mxu0 %vm20247_vm0, %v20245_v5 }
0x427b   :  { %19189 = vmatmul.mubr.msk.bf16.vlgmr.msra.gmra.mrb[12].mxu1 %vm205_vm2, %v23118_v2 }
0x427c   :  { %19200 = vmatprep.mubr.msk.bf16.mxu1 %vm20247_vm0, %v20245_v5 }
0x434c   :  { %v11362_v39 = vpop.f32.mrb[12].mxu0 }
0x434d   :  { %v19184_v27 = vpop.f32.mrb[13].mxu0  ;;  %v11417_v56 = vsel %vm205_vm2, %v11362_v39, -inf }
0x434e   :  { %v11365_v10 = vpop.f32.mrb[14].mxu0  ;;  %11418 = vmax.xlane.f32.xlu1 %v11417_v56  ;;  %v11411_v23 = vpop.f32.mrb[12].mxu1 }
0x434f   :  { %v19185_v15 = vpop.f32.mrb[15].mxu0  ;;  %v19190_v17 = vpop.f32.mrb[13].mxu1  ;;  %v11420_v11 = vsel %vm205_vm2, %v11411_v23, -inf }
0x4350   :  { %11421 = vmax.xlane.f32.xlu0 %v11420_v11  ;;  %v11414_v16 = vpop.f32.mrb[14].mxu1 }
0x4351   :  { %v19191_v13 = vpop.f32.mrb[15].mxu1 }
0x435f   :  { %11489 = vrot.lane.b32.xlu1 %v23118_v2, %s20249_s19 }
0x4366   :  { %11441 = vrot.lane.b32.xlu0 %v23116_v8, %s20249_s19 }
0x43db   :  { %v11419_v60 = vpop.xlane.xlu1 %11418 }
0x43dc   :  { %v11423_v19 = vsub.f32 %v11362_v39, %v11419_v60 }
0x43dd   :  { %v11422_v18 = vpop.xlane.xlu0 %11421 }
0x43de   :  { %v11425_v7 = vmul.f32 1.442695, %v11423_v19  ;;  %v11424_v9 = vsub.f32 %v11411_v23, %v11422_v18 }
0x43df   :  { %v11490_v30 = vpop.permute.xlu1 %11489 }
0x43e0   :  { %20159 = vpow2.f32 %v11425_v7  ;;  %v11427_v21 = vmul.f32 1.442695, %v11424_v9  ;;  %v11495_v20 = vsel %vm330_vm3, %v11490_v30, 0 }
0x43e1   :  { %19199 = vmatpush3.bf16.msra.mxu1 %v11495_v20  ;;  %v11442_v37 = vpop.permute.xlu0 %11441 }
0x43e2   :  { %20161 = vpow2.f32 %v11427_v21  ;;  %v11447_v46 = vsel %vm330_vm3, %v11442_v37, 0  ;;  %19210 = vmatprep.subr.bf16.mxu1 %v20245_v5 }
0x43e3   :  { %19193 = vmatpush3.bf16.msra.mxu0 %v11447_v46 }
0x43e4   :  { %19204 = vmatprep.subr.bf16.mxu0 %v20245_v5 }
0x43ea   :  { %v20160_v36 = vpop.eup %20159 }
0x43eb   :  { %v11429_v45 = vsel %vm205_vm2, %v20160_v36, 0.0 }
0x43ec   :  { %v20162_v55 = vpop.eup %20161  ;;  %11430 = vadd.xlane.f32.xlu0 %v11429_v45 }
0x43ed   :  { %v11432_v61 = vsel %vm205_vm2, %v20162_v55, 0.0 }
0x43ee   :  { %11433 = vadd.xlane.f32.xlu1 %v11432_v61 }
0x43ff   :  { %11540 = vrot.lane.b32.xlu1 %v23116_v8, %s20250_s20 }
0x4402   :  { %11590 = vrot.lane.b32.xlu0 %v23118_v2, %s20250_s20 }
0x4403   :  { %11538 = vrot.lane.b32.xlu1 %v23116_v8, %s20251_s21 }
0x4406   :  { %11588 = vrot.lane.b32.xlu0 %v23118_v2, %s20251_s21 }
0x4479   :  { %v11431_v32 = vpop.xlane.xlu0 %11430 }
0x447a   :  { %20163 = vrcp.f32 %v11431_v32 }
0x447b   :  { %v11434_v34 = vpop.xlane.xlu1 %11433 }
0x447c   :  { %20165 = vrcp.f32 %v11434_v34  ;;  %v17145_v34 = vld [vmem:[%s24189_s2 + $0xb4] sm:$0xf] }
0x447d   :  { %v11591_v0 = vpop.permute.xlu0 %11590 }
0x447e   :  { %v11596_v41 = vsel %vm205_vm2, %v11591_v0, 0 }
0x447f   :  { %v11541_v33 = vpop.permute.xlu1 %11540 }
0x4480   :  { %v11546_v43 = vsel %vm205_vm2, %v11541_v33, 0 }
0x4481   :  { %v11589_v6 = vpop.permute.xlu0 %11588 }
0x4483   :  { %v11539_v47 = vpop.permute.xlu1 %11538 }
0x4484   :  { %v20164_v31 = vpop.eup %20163 }
0x4485   :  { %v11437_v35 = vmul.f32 %v20164_v31, %v20160_v36 }
0x4486   :  { %v20166_v40 = vpop.eup %20165 }
0x4487   :  { %v11439_v42 = vpack.c.bf16 %v11437_v35, %v11437_v35  ;;  %v11438_v12 = vmul.f32 %v20166_v40, %v20162_v55  ;;  %v17144_v40 = vld [vmem:[%s24189_s2 + $0xb0] sm:$0xf] }
0x4489   :  { %v11440_v59 = vpack.c.bf16 %v11438_v12, %v11438_v12  ;;  %19195 = vmatmul.mubr.msk.bf16.vlgmr.msra.gmra.mrb[16].mxu0 %vm205_vm2, %v11439_v42  ;;  %v11763_v12 = vsel %vm330_vm3, %v17145_v34, 0 }
0x448a   :  { %19205 = vmatpush3.bf16.xpose.msra.mxu0 %v11546_v43  ;;  %19206 = vmatprep.mubr.msk.bf16.mxu0 %vm20247_vm0, %v20245_v5 }
0x448b   :  { %19201 = vmatmul.mubr.msk.bf16.vlgmr.msra.gmra.mrb[16].mxu1 %vm205_vm2, %v11440_v59  ;;  %19216 = vmatprep.subr.bf16.mxu0 %v20245_v5  ;;  %v11810_v59 = vsel %vm330_vm3, %v17144_v40, 0 }
0x448c   :  { %19211 = vmatpush3.bf16.xpose.msra.mxu1 %v11596_v41  ;;  %19212 = vmatprep.mubr.msk.bf16.mxu1 %vm20247_vm0, %v20245_v5 }
0x448d   :  { %19222 = vmatprep.subr.bf16.mxu1 %v20245_v5 }
0x4491   :  { %19207 = vmatmul.mubr.msk.bf16.vlgmr.msra.gmra.mrb[20].mxu0 %vm205_vm2, %v11539_v47 }
0x4492   :  { %19218 = vmatprep.mubr.msk.bf16.mxu0 %vm20247_vm0, %v20245_v5 }
0x4493   :  { %19213 = vmatmul.mubr.msk.bf16.vlgmr.msra.gmra.mrb[20].mxu1 %vm205_vm2, %v11589_v6 }
0x4494   :  { %19224 = vmatprep.mubr.msk.bf16.mxu1 %vm20247_vm0, %v20245_v5 }
0x455c   :  { %v23172_v24 = vpop.f32.mrb[16].mxu0 }
0x455d   :  { %v19196_v14 = vpop.f32.mrb[17].mxu0 }
0x455e   :  { %v11486_v22 = vpop.f32.mrb[18].mxu0  ;;  %v23174_v26 = vpop.f32.mrb[16].mxu1 }
0x455f   :  { %v11537_v44 = vpack.c.bf16 %v23174_v26, %v23172_v24  ;;  %v19197_v63 = vpop.f32.mrb[19].mxu0  ;;  %v19202_v62 = vpop.f32.mrb[17].mxu1 }
0x4560   :  { %v11534_v3 = vpop.f32.mrb[18].mxu1 }
0x4561   :  { %v19203_v38 = vpop.f32.mrb[19].mxu1 }
0x4564   :  { %v11582_v4 = vpop.f32.mrb[20].mxu0 }
0x4565   :  { %v19208_v58 = vpop.f32.mrb[21].mxu0  ;;  %v11638_v39 = vsel %vm205_vm2, %v11582_v4, -inf }
0x4566   :  { %11639 = vmax.xlane.f32.xlu1 %v11638_v39  ;;  %v11585_v27 = vpop.f32.mrb[22].mxu0  ;;  %v11632_v56 = vpop.f32.mrb[20].mxu1 }
0x4567   :  { %v19209_v10 = vpop.f32.mrb[23].mxu0  ;;  %v19214_v23 = vpop.f32.mrb[21].mxu1  ;;  %v11641_v15 = vsel %vm205_vm2, %v11632_v56, -inf }
0x4568   :  { %11642 = vmax.xlane.f32.xlu0 %v11641_v15  ;;  %v11635_v17 = vpop.f32.mrb[22].mxu1 }
0x4569   :  { %v19215_v11 = vpop.f32.mrb[23].mxu1 }
0x45f3   :  { %v11640_v16 = vpop.xlane.xlu1 %11639 }
0x45f4   :  { %v11644_v13 = vsub.f32 %v11582_v4, %v11640_v16 }
0x45f5   :  { %v11643_v60 = vpop.xlane.xlu0 %11642 }
0x45f6   :  { %v11646_v19 = vmul.f32 1.442695, %v11644_v13  ;;  %v11645_v18 = vsub.f32 %v11632_v56, %v11643_v60 }
0x45f8   :  { %20167 = vpow2.f32 %v11646_v19  ;;  %v11648_v7 = vmul.f32 1.442695, %v11645_v18 }
0x45fa   :  { %20169 = vpow2.f32 %v11648_v7 }
0x4602   :  { %v20168_v9 = vpop.eup %20167 }
0x4603   :  { %v11650_v30 = vsel %vm205_vm2, %v20168_v9, 0.0 }
0x4604   :  { %v20170_v21 = vpop.eup %20169  ;;  %11651 = vadd.xlane.f32.xlu0 %v11650_v30 }
0x4605   :  { %v11653_v20 = vsel %vm205_vm2, %v20170_v21, 0.0 }
0x4606   :  { %11654 = vadd.xlane.f32.xlu1 %v11653_v20 }
0x4617   :  { %11710 = vrot.lane.b32.xlu1 %v23118_v2, %s20252_s22 }
0x461a   :  { %11662 = vrot.lane.b32.xlu0 %v23116_v8, %s20252_s22 }
0x461b   :  { %11855 = vrot.lane.b32.xlu1 %v23116_v8, %s20253_s23 }
0x461e   :  { %11905 = vrot.lane.b32.xlu0 %v23118_v2, %s20253_s23 }
0x461f   :  { %11853 = vrot.lane.b32.xlu1 %v23116_v8, %s20254_s24 }
0x4622   :  { %11903 = vrot.lane.b32.xlu0 %v23118_v2, %s20254_s24 }
0x4691   :  { %v11652_v37 = vpop.xlane.xlu0 %11651 }
0x4692   :  { %20171 = vrcp.f32 %v11652_v37 }
0x4693   :  { %v11655_v46 = vpop.xlane.xlu1 %11654 }
0x4694   :  { %20173 = vrcp.f32 %v11655_v46 }
0x4695   :  { %v11663_v36 = vpop.permute.xlu0 %11662 }
0x4696   :  { %v11668_v45 = vsel %vm330_vm3, %v11663_v36, 0 }
0x4697   :  { %v11711_v55 = vpop.permute.xlu1 %11710  ;;  %19217 = vmatpush3.bf16.msra.mxu0 %v11668_v45 }
0x4698   :  { %v11716_v61 = vsel %vm330_vm3, %v11711_v55, 0  ;;  %19228 = vmatprep.subr.bf16.mxu0 %v20245_v5 }
0x4699   :  { %19223 = vmatpush3.bf16.msra.mxu1 %v11716_v61  ;;  %v11906_v43 = vpop.permute.xlu0 %11905 }
0x469a   :  { %19234 = vmatprep.subr.bf16.mxu1 %v20245_v5  ;;  %v11911_v41 = vsel %vm205_vm2, %v11906_v43, 0 }
0x469b   :  { %v11856_v14 = vpop.permute.xlu1 %11855 }
0x469c   :  { %v20172_v32 = vpop.eup %20171  ;;  %v11861_v38 = vsel %vm205_vm2, %v11856_v14, 0 }
0x469d   :  { %v11658_v31 = vmul.f32 %v20172_v32, %v20168_v9  ;;  %v11904_v47 = vpop.permute.xlu0 %11903 }
0x469e   :  { %v20174_v35 = vpop.eup %20173 }
0x469f   :  { %v11660_v33 = vpack.c.bf16 %v11658_v31, %v11658_v31  ;;  %v11659_v42 = vmul.f32 %v20174_v35, %v20170_v21  ;;  %v11854_v27 = vpop.permute.xlu1 %11853 }
0x46a1   :  { %v11661_v0 = vpack.c.bf16 %v11659_v42, %v11659_v42  ;;  %19219 = vmatmul.mubr.msk.bf16.vlgmr.msra.gmra.mrb[24].mxu0 %vm205_vm2, %v11660_v33 }
0x46a2   :  { %19229 = vmatpush3.bf16.msra.mxu0 %v11763_v12  ;;  %19230 = vmatprep.mubr.msk.bf16.mxu0 %vm20247_vm0, %v20245_v5 }
0x46a3   :  { %19225 = vmatmul.mubr.msk.bf16.vlgmr.msra.gmra.mrb[24].mxu1 %vm205_vm2, %v11661_v0  ;;  %19240 = vmatprep.subr.bf16.mxu0 %v20245_v5 }
0x46a4   :  { %19235 = vmatpush3.bf16.msra.mxu1 %v11810_v59  ;;  %19236 = vmatprep.mubr.msk.bf16.mxu1 %vm20247_vm0, %v20245_v5 }
0x46a5   :  { %19246 = vmatprep.subr.bf16.mxu1 %v20245_v5 }
0x46ab   :  { %19237 = vmatmul.mubr.msk.bf16.vlgmr.msra.gmra.mrb[28].mxu1 %vm205_vm2, %v11537_v44 }
0x46ac   :  { %19248 = vmatprep.mubr.msk.bf16.mxu1 %vm20247_vm0, %v20245_v5 }
0x46ad   :  { %19247 = vmatpush3.bf16.xpose.msra.mxu1 %v11911_v41 }
0x46ae   :  { %19258 = vmatprep.subr.bf16.mxu1 %v20245_v5 }
0x46b4   :  { %19249 = vmatmul.mubr.msk.bf16.vlgmr.msra.gmra.mrb[32].mxu1 %vm205_vm2, %v11904_v47 }
0x46b5   :  { %19260 = vmatprep.mubr.msk.bf16.mxu1 %vm20247_vm0, %v20245_v5 }
0x4774   :  { %v11704_v6 = vpop.f32.mrb[24].mxu0 }
0x4775   :  { %v19220_v22 = vpop.f32.mrb[25].mxu0 }
0x4776   :  { %v11707_v24 = vpop.f32.mrb[26].mxu0  ;;  %v11752_v26 = vpop.f32.mrb[24].mxu1 }
0x4777   :  { %v11758_v44 = vpack.c.bf16 %v11752_v26, %v11704_v6  ;;  %v19221_v63 = vpop.f32.mrb[27].mxu0  ;;  %v19226_v62 = vpop.f32.mrb[25].mxu1 }
0x4778   :  { %v11755_v3 = vpop.f32.mrb[26].mxu1  ;;  %v17146_v63 = vld [vmem:[%s24189_s2 + $0xb8] sm:$0xf] }
0x4779   :  { %v19227_v4 = vpop.f32.mrb[27].mxu1  ;;  %19231 = vmatmul.mubr.msk.bf16.vlgmr.msra.gmra.mrb[28].mxu0 %vm205_vm2, %v11758_v44 }
0x477a   :  { %19241 = vmatpush3.bf16.xpose.msra.mxu0 %v11861_v38  ;;  %19242 = vmatprep.mubr.msk.bf16.mxu0 %vm20247_vm0, %v20245_v5  ;;  %v12078_v38 = vsel %vm330_vm3, %v17146_v63, 0 }
0x477b   :  { %19252 = vmatprep.subr.bf16.mxu0 %v20245_v5 }
0x477e   :  { %v11846_v58 = vpop.f32.mrb[28].mxu1 }
0x477f   :  { %v19238_v39 = vpop.f32.mrb[29].mxu1 }
0x4780   :  { %v11849_v56 = vpop.f32.mrb[30].mxu1 }
0x4781   :  { %v19239_v10 = vpop.f32.mrb[31].mxu1  ;;  %19243 = vmatmul.mubr.msk.bf16.vlgmr.msra.gmra.mrb[32].mxu0 %vm205_vm2, %v11854_v27 }
0x4782   :  { %19254 = vmatprep.mubr.msk.bf16.mxu0 %vm20247_vm0, %v20245_v5 }
0x4787   :  { %v11947_v23 = vpop.f32.mrb[32].mxu1 }
0x4788   :  { %v19250_v15 = vpop.f32.mrb[33].mxu1  ;;  %v11956_v17 = vsel %vm205_vm2, %v11947_v23, -inf }
0x4789   :  { %11957 = vmax.xlane.f32.xlu0 %v11956_v17  ;;  %v11950_v11 = vpop.f32.mrb[34].mxu1 }
0x478a   :  { %v19251_v16 = vpop.f32.mrb[35].mxu1 }
0x4816   :  { %v11958_v13 = vpop.xlane.xlu0 %11957 }
0x4817   :  { %v11960_v60 = vsub.f32 %v11947_v23, %v11958_v13 }
0x4819   :  { %v11963_v19 = vmul.f32 1.442695, %v11960_v60 }
0x481b   :  { %20175 = vpow2.f32 %v11963_v19 }
0x4825   :  { %v20176_v45 = vpop.eup %20175 }
0x4826   :  { %v11968_v32 = vsel %vm205_vm2, %v20176_v45, 0.0 }
0x484c   :  { %v11799_v18 = vpop.f32.mrb[28].mxu0 }
0x484d   :  { %v23234_v7 = vadd.f32 %v11846_v58, %v11799_v18  ;;  %v19232_v9 = vpop.f32.mrb[29].mxu0 }
0x484e   :  { %v11802_v30 = vpop.f32.mrb[30].mxu0 }
0x484f   :  { %v23236_v21 = vadd.f32 %v11849_v56, %v11802_v30  ;;  %v19233_v20 = vpop.f32.mrb[31].mxu0 }
0x4854   :  { %v11897_v37 = vpop.f32.mrb[32].mxu0 }
0x4855   :  { %v19244_v46 = vpop.f32.mrb[33].mxu0  ;;  %v11953_v36 = vsel %vm205_vm2, %v11897_v37, -inf }
0x4856   :  { %11954 = vmax.xlane.f32.xlu1 %v11953_v36  ;;  %v11900_v55 = vpop.f32.mrb[34].mxu0 }
0x4857   :  { %v19245_v61 = vpop.f32.mrb[35].mxu0 }
0x485a   :  { %11969 = vadd.xlane.f32.xlu1 %v11968_v32 }
0x486b   :  { %12025 = vrot.lane.b32.xlu1 %v23118_v2, %s20255_s29 }
0x486f   :  { %12125 = vrot.lane.b32.xlu1 %v23116_v8, %s20256_s0 }
0x4873   :  { %12123 = vrot.lane.b32.xlu1 %v23116_v8, %s20257_s30 }
0x48e3   :  { %v11955_v34 = vpop.xlane.xlu1 %11954 }
0x48e4   :  { %v11959_v31 = vsub.f32 %v11897_v37, %v11955_v34 }
0x48e6   :  { %v11961_v35 = vmul.f32 1.442695, %v11959_v31 }
0x48e7   :  { %v11970_v40 = vpop.xlane.xlu1 %11969 }
0x48e8   :  { %20177 = vpow2.f32 %v11961_v35 }
0x48e9   :  { %20179 = vrcp.f32 %v11970_v40 }
0x48eb   :  { %v12026_v33 = vpop.permute.xlu1 %12025 }
0x48ec   :  { %v12031_v42 = vsel %vm330_vm3, %v12026_v33, 0 }
0x48ed   :  { %19259 = vmatpush3.bf16.msra.mxu1 %v12031_v42 }
0x48ee   :  { %19270 = vmatprep.subr.bf16.mxu1 %v20245_v5 }
0x48ef   :  { %v12126_v41 = vpop.permute.xlu1 %12125 }
0x48f0   :  { %v12131_v6 = vsel %vm205_vm2, %v12126_v41, 0 }
0x48f2   :  { %v20178_v12 = vpop.eup %20177 }
0x48f3   :  { %v20180_v0 = vpop.eup %20179  ;;  %v11965_v59 = vsel %vm205_vm2, %v20178_v12, 0.0  ;;  %v12124_v14 = vpop.permute.xlu1 %12123 }
0x48f4   :  { %v11974_v43 = vmul.f32 %v20180_v0, %v20176_v45  ;;  %11966 = vadd.xlane.f32.xlu0 %v11965_v59 }
0x48f6   :  { %v11976_v47 = vpack.c.bf16 %v11974_v43, %v11974_v43 }
0x48f8   :  { %19261 = vmatmul.mubr.msk.bf16.vlgmr.msra.gmra.mrb[36].mxu1 %vm205_vm2, %v11976_v47 }
0x48f9   :  { %19271 = vmatpush3.bf16.xpose.msra.mxu1 %v12131_v6  ;;  %19272 = vmatprep.mubr.msk.bf16.mxu1 %vm20247_vm0, %v20245_v5 }
0x48fa   :  { %19282 = vmatprep.subr.bf16.mxu1 %v20245_v5 }
0x4900   :  { %19273 = vmatmul.mubr.msk.bf16.vlgmr.msra.gmra.mrb[40].mxu1 %vm205_vm2, %v12124_v14 }
0x4901   :  { %19284 = vmatprep.mubr.msk.bf16.mxu1 %vm20247_vm0, %v20245_v5 }
0x490a   :  { %11977 = vrot.lane.b32.xlu0 %v23116_v8, %s20255_s29 }
0x490e   :  { %12175 = vrot.lane.b32.xlu0 %v23118_v2, %s20256_s0 }
0x4912   :  { %12173 = vrot.lane.b32.xlu0 %v23118_v2, %s20257_s30 }
0x4981   :  { %v11967_v22 = vpop.xlane.xlu0 %11966 }
0x4982   :  { %20181 = vrcp.f32 %v11967_v22 }
0x4985   :  { %v11978_v24 = vpop.permute.xlu0 %11977 }
0x4986   :  { %v11983_v26 = vsel %vm330_vm3, %v11978_v24, 0 }
0x4987   :  { %19253 = vmatpush3.bf16.msra.mxu0 %v11983_v26 }
0x4988   :  { %19264 = vmatprep.subr.bf16.mxu0 %v20245_v5 }
0x4989   :  { %v12176_v11 = vpop.permute.xlu0 %12175 }
0x498a   :  { %v12181_v18 = vsel %vm205_vm2, %v12176_v11, 0 }
0x498c   :  { %v20182_v44 = vpop.eup %20181 }
0x498d   :  { %v11973_v62 = vmul.f32 %v20182_v44, %v20178_v12  ;;  %v12174_v30 = vpop.permute.xlu0 %12173 }
0x498f   :  { %v11975_v3 = vpack.c.bf16 %v11973_v62, %v11973_v62 }
0x4991   :  { %19255 = vmatmul.mubr.msk.bf16.vlgmr.msra.gmra.mrb[36].mxu0 %vm205_vm2, %v11975_v3 }
0x4992   :  { %19265 = vmatpush3.bf16.msra.mxu0 %v12078_v38  ;;  %19266 = vmatprep.mubr.msk.bf16.mxu0 %vm20247_vm0, %v20245_v5 }
0x4993   :  { %19276 = vmatprep.subr.bf16.mxu0 %v20245_v5 }
0x49cb   :  { %v12067_v4 = vpop.f32.mrb[36].mxu1 }
0x49cc   :  { %v19262_v58 = vpop.f32.mrb[37].mxu1 }
0x49cd   :  { %v12070_v39 = vpop.f32.mrb[38].mxu1 }
0x49ce   :  { %v19263_v27 = vpop.f32.mrb[39].mxu1 }
0x49d3   :  { %v12167_v56 = vpop.f32.mrb[40].mxu1 }
0x49d4   :  { %v19274_v10 = vpop.f32.mrb[41].mxu1  ;;  %v12223_v23 = vsel %vm205_vm2, %v12167_v56, -inf }
0x49d5   :  { %12224 = vmax.xlane.f32.xlu1 %v12223_v23  ;;  %v12170_v15 = vpop.f32.mrb[42].mxu1  ;;  %v19865_v23 = vld [vmem:[%s24189_s2 + $0xd0] sm:$0xff]  }
0x49d6   :  { %v19275_v17 = vpop.f32.mrb[43].mxu1 }
0x4a62   :  { %v12225_v20 = vpop.xlane.xlu1 %12224 }
0x4a63   :  { %v12229_v37 = vsub.f32 %v12167_v56, %v12225_v20 }
0x4a64   :  { %v12019_v16 = vpop.f32.mrb[36].mxu0 }
0x4a65   :  { %v12073_v13 = vpack.c.bf16 %v12067_v4, %v12019_v16  ;;  %v19256_v60 = vpop.f32.mrb[37].mxu0  ;;  %v12231_v46 = vmul.f32 1.442695, %v12229_v37 }
0x4a66   :  { %v12022_v19 = vpop.f32.mrb[38].mxu0 }
0x4a67   :  { %v19257_v9 = vpop.f32.mrb[39].mxu0  ;;  %19267 = vmatmul.mubr.msk.bf16.vlgmr.msra.gmra.mrb[40].mxu0 %vm205_vm2, %v12073_v13  ;;  %20183 = vpow2.f32 %v12231_v46  ;;  %v19866_v13 = vld [vmem:[%s24189_s2 + $0xd8] sm:$0xff]   ;;  %v17168_v19 = vld [vmem:[%s24190_s5 + $0x20] ss:$0 sm:$0xff] }
0x4a68   :  { %19277 = vmatpush3.bf16.xpose.msra.mxu0 %v12181_v18  ;;  %19278 = vmatprep.mubr.msk.bf16.mxu0 %vm20247_vm0, %v20245_v5 }
0x4a69   :  { %19288 = vmatprep.subr.bf16.mxu0 %v20245_v5 }
0x4a6f   :  { %19279 = vmatmul.mubr.msk.bf16.vlgmr.msra.gmra.mrb[44].mxu0 %vm205_vm2, %v12174_v30 }
0x4a70   :  { %19290 = vmatprep.mubr.msk.bf16.mxu0 %vm20247_vm0, %v20245_v5 }
0x4a71   :  { %v20184_v33 = vpop.eup %20183 }
0x4a72   :  { %v12235_v0 = vsel %vm205_vm2, %v20184_v33, 0.0 }
0x4b3a   :  { %v12114_v36 = vpop.f32.mrb[40].mxu0 }
0x4b3b   :  { %v23283_v45 = vadd.f32 %v12114_v36, %v23234_v7  ;;  %v19268_v55 = vpop.f32.mrb[41].mxu0 }
0x4b3c   :  { %v12117_v61 = vpop.f32.mrb[42].mxu0 }
0x4b3d   :  { %v23286_v32 = vadd.f32 %v12117_v61, %v23236_v21  ;;  %v19269_v34 = vpop.f32.mrb[43].mxu0 }
0x4b42   :  { %v12217_v31 = vpop.f32.mrb[44].mxu0 }
0x4b43   :  { %v19280_v35 = vpop.f32.mrb[45].mxu0  ;;  %v12226_v40 = vsel %vm205_vm2, %v12217_v31, -inf }
0x4b44   :  { %12227 = vmax.xlane.f32.xlu0 %v12226_v40  ;;  %v12220_v42 = vpop.f32.mrb[46].mxu0 }
0x4b45   :  { %v19281_v12 = vpop.f32.mrb[47].mxu0 }
0x4b48   :  { %12236 = vadd.xlane.f32.xlu0 %v12235_v0 }
0x4b5e   :  { %12247 = vrot.lane.b32.xlu0 %v23116_v8, %s20258_s10  ;;  %v17147_v8 = vld [vmem:[%s24189_s2 + $0xbc] sm:$0xf] }
0x4b5f   :  { %v12348_v44 = vsel %vm330_vm3, %v17147_v8, 0 }
0x4bd1   :  { %v12228_v7 = vpop.xlane.xlu0 %12227 }
0x4bd2   :  { %v12230_v59 = vsub.f32 %v12217_v31, %v12228_v7 }
0x4bd4   :  { %v12233_v43 = vmul.f32 1.442695, %v12230_v59 }
0x4bd5   :  { %v12237_v21 = vpop.xlane.xlu0 %12236 }
0x4bd6   :  { %20185 = vpow2.f32 %v12233_v43 }
0x4bd7   :  { %20187 = vrcp.f32 %v12237_v21 }
0x4bd9   :  { %v12248_v41 = vpop.permute.xlu0 %12247 }
0x4bda   :  { %v12253_v47 = vsel %vm330_vm3, %v12248_v41, 0 }
0x4bdb   :  { %19283 = vmatpush3.bf16.msra.mxu1 %v12253_v47 }
0x4bdc   :  { %19294 = vmatprep.subr.bf16.mxu1 %v20245_v5 }
0x4be0   :  { %v20186_v6 = vpop.eup %20185 }
0x4be1   :  { %v20188_v14 = vpop.eup %20187  ;;  %v12238_v22 = vsel %vm205_vm2, %v20186_v6, 0.0 }
0x4be2   :  { %v12243_v24 = vmul.f32 %v20188_v14, %v20184_v33  ;;  %12239 = vadd.xlane.f32.xlu1 %v12238_v22  ;;  %v19867_v22 = vld [vmem:[%s24189_s2 + $0xc0] sm:$0xff]  }
0x4be4   :  { %v12245_v26 = vpack.c.bf16 %v12243_v24, %v12243_v24  ;;  %v19868_v24 = vld [vmem:[%s24189_s2 + $0xc8] sm:$0xff]  }
0x4be6   :  { %19285 = vmatmul.mubr.msk.bf16.vlgmr.msra.gmra.mrb[44].mxu1 %vm205_vm2, %v12245_v26 }
0x4be7   :  { %19296 = vmatprep.mubr.msk.bf16.mxu1 %vm20247_vm0, %v20245_v5  ;;  %19295 = vmatpush3.bf16.msra.mxu1 %v12348_v44 }
0x4be8   :  { %19308 = vmatprep.subr.bf16.mxu1 %v20245_v5 }
0x4bf3   :  { %12295 = vrot.lane.b32.xlu1 %v23118_v2, %s20258_s10 }
0x4c6f   :  { %v12240_v63 = vpop.xlane.xlu1 %12239 }
0x4c70   :  { %20189 = vrcp.f32 %v12240_v63 }
0x4c73   :  { %v12296_v62 = vpop.permute.xlu1 %12295 }
0x4c74   :  { %v12301_v3 = vsel %vm330_vm3, %v12296_v62, 0 }
0x4c75   :  { %19289 = vmatpush3.bf16.msra.mxu0 %v12301_v3 }
0x4c76   :  { %19300 = vmatprep.subr.bf16.mxu0 %v20245_v5 }
0x4c7a   :  { %v20190_v38 = vpop.eup %20189 }
0x4c7b   :  { %v12244_v4 = vmul.f32 %v20190_v38, %v20186_v6 }
0x4c7d   :  { %v12246_v2 = vpack.c.bf16 %v12244_v4, %v12244_v4  ;;  %v17169_v4 = vld [vmem:[%s24190_s5 + $0x24] ss:$0 sm:$0xff] }
0x4c7f   :  { %19291 = vmatmul.mubr.msk.bf16.vlgmr.msra.gmra.mrb[48].mxu0 %vm205_vm2, %v12246_v2 }
0x4c80   :  { %19304 = vmatprep.mubr.msk.bf16.mxu0 %vm20247_vm0, %v20245_v5  ;;  %19301 = vmatpush3.bf16.msra.mxu0 %v19867_v22 }
0x4c81   :  { %19302 = vmatprep.subr.bf16.mxu0 %v20245_v5 }
0x4c84   :  { %19303 = vmatpush3.bf16.msra.mxu0 %v19868_v24 }
0x4c85   :  { %19316 = vmatprep.subr.bf16.mxu0 %v20245_v5 }
0x4cb9   :  { %v12289_v58 = vpop.f32.mrb[44].mxu1 }
0x4cba   :  { %v19286_v39 = vpop.f32.mrb[45].mxu1 }
0x4cbb   :  { %v12292_v27 = vpop.f32.mrb[46].mxu1 }
0x4cbc   :  { %v19287_v56 = vpop.f32.mrb[47].mxu1 }
0x4cbd   :  { %v17170_v56 = vld [vmem:[%s24190_s5 + $0x25] ss:$0 sm:$0xff] }
0x4d52   :  { %v12337_v10 = vpop.f32.mrb[48].mxu0 }
0x4d53   :  { %v12343_v15 = vpack.c.bf16 %v12337_v10, %v12289_v58  ;;  %v19292_v17 = vpop.f32.mrb[49].mxu0 }
0x4d54   :  { %v12340_v11 = vpop.f32.mrb[50].mxu0 }
0x4d55   :  { %v19293_v16 = vpop.f32.mrb[51].mxu0  ;;  %19297 = vmatmul.mubr.msk.bf16.vlgmr.msra.gmra.mrb[48].mxu1 %vm205_vm2, %v12343_v15 }
0x4d56   :  { %19309 = vmatpush3.bf16.msra.mxu1 %v19865_v23  ;;  %19312 = vmatprep.mubr.msk.bf16.mxu1 %vm20247_vm0, %v20245_v5 }
0x4d57   :  { %19310 = vmatprep.subr.bf16.mxu1 %v20245_v5 }
0x4d5a   :  { %19311 = vmatpush3.bf16.msra.mxu1 %v19866_v13  ;;  %v17175_v13 = vld [vmem:[%s24190_s5 + $0x21] ss:$0 sm:$0xff] }
0x4d5b   :  { %19322 = vmatprep.subr.bf16.mxu1 %v20245_v5 }
0x4d5d   :  { %19313 = vmatmul.mubr.msk.bf16.vlgmr.msra.gmra.mrb[52].mxu1 %vm150_vm1, %v22262_v25  ;;  %v17183_v25 = vld [vmem:[%s24190_s5 + $0x22] ss:$0 sm:$0xff] }
0x4d5e   :  { %19324 = vmatprep.mubr.msk.bf16.mxu1 %vm20247_vm0, %v20245_v5 }
0x4e28   :  { %v12384_v60 = vpop.f32.mrb[48].mxu1 }
0x4e29   :  { %v12391_v18 = vadd.f32 %v12384_v60, %v23283_v45  ;;  %v19298_v9 = vpop.f32.mrb[49].mxu1 }
0x4e2a   :  { %v12387_v30 = vpop.f32.mrb[50].mxu1 }
0x4e2b   :  { %v12398_v20 = vadd.f32 %v17168_v19, %v12391_v18  ;;  %v12392_v37 = vadd.f32 %v12387_v30, %v23286_v32  ;;  %v19299_v46 = vpop.f32.mrb[51].mxu1 }
0x4e2d   :  { %v12399_v36 = vadd.f32 %v17168_v19, %v12392_v37  ;;  %v12400_v55 = vadd.f32 %v12398_v20, %v23104_v54 }
0x4e2f   :  { %v12404_v61 = vsel %vm150_vm1, %v12400_v55, 0.0  ;;  %v12401_v34 = vadd.f32 %v12399_v36, %v23106_v57 }
0x4e30   :  { %12405 = vadd.xlane.f32.xlu1 %v12404_v61  ;;  %v12565_v31 = vpop.f32.mrb[52].mxu1 }
0x4e31   :  { %v12566_v45 = vadd.f32 %v17183_v25, %v12565_v31  ;;  %v19314_v35 = vpop.f32.mrb[53].mxu1  ;;  %v12407_v40 = vsel %vm150_vm1, %v12401_v34, 0.0 }
0x4e32   :  { %12408 = vadd.xlane.f32.xlu0 %v12407_v40  ;;  %v12568_v32 = vpop.f32.mrb[54].mxu1 }
0x4e33   :  { %v12569_v33 = vadd.f32 %v17183_v25, %v12568_v32  ;;  %v19315_v42 = vpop.f32.mrb[55].mxu1  ;;  %v23358_v23 = vpack.c.bf16 %v12566_v45, %v12566_v45 }
0x4e35   :  { %v23337_v12 = vpack.c.bf16 %v12569_v33, %v12569_v33  ;;  %v12585_v16 = vsel %vm205_vm2, %v23358_v23, 0 }
0x4e37   :  { %v12631_v54 = vsel %vm205_vm2, %v23337_v12, 0 }
0x4e38   :  { %19323 = vmatpush3.bf16.xpose.msra.mxu1 %v12631_v54 }
0x4e39   :  { %19334 = vmatprep.subr.bf16.mxu1 %v20245_v5 }
0x4ebd   :  { %v12406_v0 = vpop.xlane.xlu1 %12405 }
0x4ebe   :  { %v12410_v57 = vmul.f32 0.03125, %v12406_v0 }
0x4ebf   :  { %v12409_v7 = vpop.xlane.xlu0 %12408 }
0x4ec0   :  { %v12412_v59 = vsub.f32 %v12400_v55, %v12410_v57  ;;  %v12411_v43 = vmul.f32 0.03125, %v12409_v7 }
0x4ec2   :  { %v12413_v21 = vsub.f32 %v12401_v34, %v12411_v43  ;;  %v12414_v41 = vmul.f32 %v12412_v59, %v12412_v59 }
0x4ec4   :  { %v12416_v47 = vsel %vm150_vm1, %v12414_v41, 0.0  ;;  %v12415_v6 = vmul.f32 %v12413_v21, %v12413_v21 }
0x4ec5   :  { %12417 = vadd.xlane.f32.xlu0 %v12416_v47 }
0x4ec6   :  { %v12419_v14 = vsel %vm150_vm1, %v12415_v6, 0.0 }
0x4ec7   :  { %12420 = vadd.xlane.f32.xlu1 %v12419_v14 }
0x4f52   :  { %v12418_v26 = vpop.xlane.xlu0 %12417 }
0x4f53   :  { %v12422_v8 = vmul.f32 0.03125, %v12418_v26 }
0x4f54   :  { %v12421_v44 = vpop.xlane.xlu1 %12420 }
0x4f55   :  { %v12424_v63 = vadd.f32 1e-05, %v12422_v8  ;;  %v12423_v62 = vmul.f32 0.03125, %v12421_v44 }
0x4f57   :  { %20191 = vrsqrt.f32 %v12424_v63  ;;  %v12425_v3 = vadd.f32 1e-05, %v12423_v62 }
0x4f59   :  { %20193 = vrsqrt.f32 %v12425_v3 }
0x4f61   :  { %v20192_v38 = vpop.eup %20191 }
0x4f62   :  { %v12428_v2 = vmul.f32 %v20192_v38, %v12412_v59 }
0x4f63   :  { %v20194_v58 = vpop.eup %20193 }
0x4f64   :  { %v12434_v39 = vmul.f32 %v17169_v4, %v12428_v2  ;;  %v12429_v27 = vmul.f32 %v20194_v58, %v12413_v21 }
0x4f66   :  { %v12435_v10 = vmul.f32 %v17169_v4, %v12429_v27  ;;  %v23360_v15 = vadd.f32 %v17170_v56, %v12434_v39 }
0x4f68   :  { %v23362_v17 = vadd.f32 %v17170_v56, %v12435_v10 }
0x4f6a   :  { %v12447_v11 = vpack.c.bf16 %v23362_v17, %v23360_v15 }
0x4f6c   :  { %19305 = vmatmul.mubr.msk.bf16.vlgmr.msra.gmra.mrb[52].mxu0 %vm150_vm1, %v12447_v11 }
0x4f6d   :  { %19317 = vmatpush3.bf16.xpose.msra.mxu0 %v12585_v16  ;;  %19318 = vmatprep.mubr.msk.bf16.mxu0 %vm20247_vm0, %v20245_v5 }
0x4f6e   :  { %19328 = vmatprep.subr.bf16.mxu0 %v20245_v5 }
0x503f   :  { %v12502_v60 = vpop.f32.mrb[52].mxu0 }
0x5040   :  { %v12503_v19 = vadd.f32 %v17175_v13, %v12502_v60  ;;  %v19306_v18 = vpop.f32.mrb[53].mxu0 }
0x5041   :  { %v12505_v9 = vpop.f32.mrb[54].mxu0 }
0x5042   :  { %v23375_v30 = vpack.c.bf16 %v12503_v19, %v12503_v19  ;;  %v12506_v20 = vadd.f32 %v17175_v13, %v12505_v9  ;;  %v19307_v37 = vpop.f32.mrb[55].mxu0 }
0x5044   :  { %v23377_v46 = vpack.c.bf16 %v12506_v20, %v12506_v20  ;;  %19319 = vmatmul.mubr.msk.bf16.vlgmr.msra.gmra.mrb[56].mxu0 %vm205_vm2, %v23375_v30 }
0x5045   :  { %19330 = vmatprep.mubr.msk.bf16.mxu0 %vm20247_vm0, %v20245_v5 }
0x5046   :  { %19325 = vmatmul.mubr.msk.bf16.vlgmr.msra.gmra.mrb[56].mxu1 %vm205_vm2, %v23377_v46 }
0x5047   :  { %19336 = vmatprep.mubr.msk.bf16.mxu1 %vm20247_vm0, %v20245_v5 }
0x5117   :  { %v12621_v36 = vpop.f32.mrb[56].mxu0 }
0x5118   :  { %v19320_v55 = vpop.f32.mrb[57].mxu0  ;;  %v12673_v25 = vsel %vm205_vm2, %v12621_v36, -inf }
0x5119   :  { %12674 = vmax.xlane.f32.xlu0 %v12673_v25  ;;  %v12624_v61 = vpop.f32.mrb[58].mxu0  ;;  %v12667_v34 = vpop.f32.mrb[56].mxu1 }
0x511a   :  { %v19321_v31 = vpop.f32.mrb[59].mxu0  ;;  %v19326_v45 = vpop.f32.mrb[57].mxu1  ;;  %v12676_v35 = vsel %vm205_vm2, %v12667_v34, -inf }
0x511b   :  { %12677 = vmax.xlane.f32.xlu1 %v12676_v35  ;;  %v12670_v40 = vpop.f32.mrb[58].mxu1 }
0x511c   :  { %v19327_v32 = vpop.f32.mrb[59].mxu1 }
0x512c   :  { %12747 = vrot.lane.b32.xlu1 %v23337_v12, %s20248_s18 }
0x512f   :  { %12698 = vrot.lane.b32.xlu0 %v23358_v23, %s20248_s18 }
0x51a6   :  { %v12675_v33 = vpop.xlane.xlu0 %12674 }
0x51a7   :  { %v12679_v42 = vsub.f32 %v12621_v36, %v12675_v33 }
0x51a8   :  { %v12678_v54 = vpop.xlane.xlu1 %12677 }
0x51a9   :  { %v12681_v0 = vmul.f32 1.442695, %v12679_v42  ;;  %v12680_v57 = vsub.f32 %v12667_v34, %v12678_v54 }
0x51aa   :  { %v12699_v7 = vpop.permute.xlu0 %12698 }
0x51ab   :  { %20195 = vpow2.f32 %v12681_v0  ;;  %v12683_v59 = vmul.f32 1.442695, %v12680_v57  ;;  %v12704_v43 = vsel %vm330_vm3, %v12699_v7, 0 }
0x51ac   :  { %19329 = vmatpush3.bf16.msra.mxu0 %v12704_v43  ;;  %v12748_v21 = vpop.permute.xlu1 %12747 }
0x51ad   :  { %20197 = vpow2.f32 %v12683_v59  ;;  %v12753_v41 = vsel %vm330_vm3, %v12748_v21, 0  ;;  %19340 = vmatprep.subr.bf16.mxu0 %v20245_v5 }
0x51ae   :  { %19335 = vmatpush3.bf16.msra.mxu1 %v12753_v41 }
0x51af   :  { %19346 = vmatprep.subr.bf16.mxu1 %v20245_v5 }
0x51b5   :  { %v20196_v47 = vpop.eup %20195 }
0x51b6   :  { %v12685_v6 = vsel %vm205_vm2, %v20196_v47, 0.0 }
0x51b7   :  { %v20198_v14 = vpop.eup %20197  ;;  %12686 = vadd.xlane.f32.xlu0 %v12685_v6 }
0x51b8   :  { %v12688_v22 = vsel %vm205_vm2, %v20198_v14, 0.0 }
0x51b9   :  { %12689 = vadd.xlane.f32.xlu1 %v12688_v22 }
0x51ca   :  { %12799 = vrot.lane.b32.xlu1 %v23358_v23, %s20251_s21 }
0x51cd   :  { %12850 = vrot.lane.b32.xlu0 %v23337_v12, %s20251_s21 }
0x51ce   :  { %12797 = vrot.lane.b32.xlu1 %v23375_v30, %s20251_s21 }
0x51d1   :  { %12848 = vrot.lane.b32.xlu0 %v23377_v46, %s20251_s21 }
0x5244   :  { %v12687_v24 = vpop.xlane.xlu0 %12686 }
0x5245   :  { %20199 = vrcp.f32 %v12687_v24 }
0x5246   :  { %v12690_v26 = vpop.xlane.xlu1 %12689 }
0x5247   :  { %20201 = vrcp.f32 %v12690_v26 }
0x5248   :  { %v12851_v4 = vpop.permute.xlu0 %12850 }
0x5249   :  { %v12856_v39 = vsel %vm205_vm2, %v12851_v4, 0 }
0x524a   :  { %v12800_v62 = vpop.permute.xlu1 %12799 }
0x524b   :  { %v12805_v58 = vsel %vm205_vm2, %v12800_v62, 0  ;;  %v17187_v62 = vld [vmem:[%s24189_s2 + $0xe0] sm:$0xf] }
0x524c   :  { %v12849_v56 = vpop.permute.xlu0 %12848 }
0x524e   :  { %v12798_v27 = vpop.permute.xlu1 %12797 }
0x524f   :  { %v20200_v8 = vpop.eup %20199 }
0x5250   :  { %v12693_v44 = vmul.f32 %v20200_v8, %v20196_v47  ;;  %v17188_v8 = vld [vmem:[%s24189_s2 + $0xe4] sm:$0xf] }
0x5251   :  { %v20202_v63 = vpop.eup %20201  ;;  %v13023_v4 = vsel %vm330_vm3, %v17188_v8, 0 }
0x5252   :  { %v12695_v3 = vpack.c.bf16 %v12693_v44, %v12693_v44  ;;  %v12694_v38 = vmul.f32 %v20202_v63, %v20198_v14 }
0x5254   :  { %v12696_v2 = vpack.c.bf16 %v12694_v38, %v12694_v38  ;;  %19331 = vmatmul.mubr.msk.bf16.vlgmr.msra.gmra.mrb[60].mxu0 %vm205_vm2, %v12695_v3 }
0x5255   :  { %19341 = vmatpush3.bf16.xpose.msra.mxu0 %v12805_v58  ;;  %19342 = vmatprep.mubr.msk.bf16.mxu0 %vm20247_vm0, %v20245_v5  ;;  %v13070_v58 = vsel %vm330_vm3, %v17187_v62, 0 }
0x5256   :  { %19337 = vmatmul.mubr.msk.bf16.vlgmr.msra.gmra.mrb[60].mxu1 %vm205_vm2, %v12696_v2  ;;  %19352 = vmatprep.subr.bf16.mxu0 %v20245_v5 }
0x5257   :  { %19347 = vmatpush3.bf16.xpose.msra.mxu1 %v12856_v39  ;;  %19348 = vmatprep.mubr.msk.bf16.mxu1 %vm20247_vm0, %v20245_v5 }
0x5258   :  { %19358 = vmatprep.subr.bf16.mxu1 %v20245_v5 }
0x525c   :  { %19343 = vmatmul.mubr.msk.bf16.vlgmr.msra.gmra.mrb[64].mxu0 %vm205_vm2, %v12798_v27 }
0x525d   :  { %19354 = vmatprep.mubr.msk.bf16.mxu0 %vm20247_vm0, %v20245_v5 }
0x525e   :  { %19349 = vmatmul.mubr.msk.bf16.vlgmr.msra.gmra.mrb[64].mxu1 %vm205_vm2, %v12849_v56 }
0x525f   :  { %19360 = vmatprep.mubr.msk.bf16.mxu1 %vm20247_vm0, %v20245_v5 }
0x5327   :  { %v23423_v10 = vpop.f32.mrb[60].mxu0 }
0x5328   :  { %v19332_v11 = vpop.f32.mrb[61].mxu0 }
0x5329   :  { %v12743_v16 = vpop.f32.mrb[62].mxu0  ;;  %v23425_v13 = vpop.f32.mrb[60].mxu1 }
0x532a   :  { %v12795_v60 = vpack.c.bf16 %v23425_v13, %v23423_v10  ;;  %v19333_v19 = vpop.f32.mrb[63].mxu0  ;;  %v19338_v18 = vpop.f32.mrb[61].mxu1 }
0x532b   :  { %v12792_v9 = vpop.f32.mrb[62].mxu1 }
0x532c   :  { %v19339_v20 = vpop.f32.mrb[63].mxu1 }
0x532f   :  { %v12841_v37 = vpop.f32.mrb[64].mxu0 }
0x5330   :  { %v19344_v36 = vpop.f32.mrb[65].mxu0  ;;  %v12898_v55 = vsel %vm205_vm2, %v12841_v37, -inf }
0x5331   :  { %12899 = vmax.xlane.f32.xlu1 %v12898_v55  ;;  %v12844_v25 = vpop.f32.mrb[66].mxu0  ;;  %v12892_v61 = vpop.f32.mrb[64].mxu1 }
0x5332   :  { %v19345_v34 = vpop.f32.mrb[67].mxu0  ;;  %v19350_v31 = vpop.f32.mrb[65].mxu1  ;;  %v12901_v45 = vsel %vm205_vm2, %v12892_v61, -inf }
0x5333   :  { %12902 = vmax.xlane.f32.xlu0 %v12901_v45  ;;  %v12895_v35 = vpop.f32.mrb[66].mxu1 }
0x5334   :  { %v19351_v40 = vpop.f32.mrb[67].mxu1 }
0x53be   :  { %v12900_v32 = vpop.xlane.xlu1 %12899 }
0x53bf   :  { %v12904_v33 = vsub.f32 %v12841_v37, %v12900_v32 }
0x53c0   :  { %v12903_v42 = vpop.xlane.xlu0 %12902 }
0x53c1   :  { %v12906_v54 = vmul.f32 1.442695, %v12904_v33  ;;  %v12905_v0 = vsub.f32 %v12892_v61, %v12903_v42 }
0x53c3   :  { %20203 = vpow2.f32 %v12906_v54  ;;  %v12908_v57 = vmul.f32 1.442695, %v12905_v0 }
0x53c5   :  { %20205 = vpow2.f32 %v12908_v57 }
0x53cd   :  { %v20204_v7 = vpop.eup %20203 }
0x53ce   :  { %v12910_v59 = vsel %vm205_vm2, %v20204_v7, 0.0 }
0x53cf   :  { %v20206_v43 = vpop.eup %20205  ;;  %12911 = vadd.xlane.f32.xlu0 %v12910_v59 }
0x53d0   :  { %v12913_v21 = vsel %vm205_vm2, %v20206_v43, 0.0 }
0x53d1   :  { %12914 = vadd.xlane.f32.xlu1 %v12913_v21 }
0x53e2   :  { %12970 = vrot.lane.b32.xlu1 %v23337_v12, %s20250_s20 }
0x53e5   :  { %12922 = vrot.lane.b32.xlu0 %v23358_v23, %s20250_s20 }
0x53e6   :  { %13115 = vrot.lane.b32.xlu1 %v23358_v23, %s20254_s24 }
0x53e9   :  { %13165 = vrot.lane.b32.xlu0 %v23337_v12, %s20254_s24 }
0x53ea   :  { %13113 = vrot.lane.b32.xlu1 %v23375_v30, %s20254_s24 }
0x53ed   :  { %13163 = vrot.lane.b32.xlu0 %v23377_v46, %s20254_s24 }
0x545c   :  { %v12912_v41 = vpop.xlane.xlu0 %12911 }
0x545d   :  { %20207 = vrcp.f32 %v12912_v41 }
0x545e   :  { %v12915_v47 = vpop.xlane.xlu1 %12914 }
0x545f   :  { %20209 = vrcp.f32 %v12915_v47 }
0x5460   :  { %v12923_v6 = vpop.permute.xlu0 %12922 }
0x5461   :  { %v12928_v14 = vsel %vm330_vm3, %v12923_v6, 0 }
0x5462   :  { %v12971_v22 = vpop.permute.xlu1 %12970  ;;  %19353 = vmatpush3.bf16.msra.mxu0 %v12928_v14 }
0x5463   :  { %v12976_v24 = vsel %vm330_vm3, %v12971_v22, 0  ;;  %19364 = vmatprep.subr.bf16.mxu0 %v20245_v5 }
0x5464   :  { %19359 = vmatpush3.bf16.msra.mxu1 %v12976_v24  ;;  %v13166_v39 = vpop.permute.xlu0 %13165 }
0x5465   :  { %19370 = vmatprep.subr.bf16.mxu1 %v20245_v5  ;;  %v13171_v27 = vsel %vm205_vm2, %v13166_v39, 0 }
0x5466   :  { %v13116_v16 = vpop.permute.xlu1 %13115 }
0x5467   :  { %v20208_v26 = vpop.eup %20207  ;;  %v13121_v37 = vsel %vm205_vm2, %v13116_v16, 0 }
0x5468   :  { %v12918_v44 = vmul.f32 %v20208_v26, %v20204_v7  ;;  %v13164_v56 = vpop.permute.xlu0 %13163 }
0x5469   :  { %v20210_v63 = vpop.eup %20209 }
0x546a   :  { %v12920_v3 = vpack.c.bf16 %v12918_v44, %v12918_v44  ;;  %v12919_v38 = vmul.f32 %v20210_v63, %v20206_v43  ;;  %v13114_v61 = vpop.permute.xlu1 %13113 }
0x546c   :  { %v12921_v2 = vpack.c.bf16 %v12919_v38, %v12919_v38  ;;  %19355 = vmatmul.mubr.msk.bf16.vlgmr.msra.gmra.mrb[68].mxu0 %vm205_vm2, %v12920_v3 }
0x546d   :  { %19365 = vmatpush3.bf16.msra.mxu0 %v13023_v4  ;;  %19366 = vmatprep.mubr.msk.bf16.mxu0 %vm20247_vm0, %v20245_v5 }
0x546e   :  { %19361 = vmatmul.mubr.msk.bf16.vlgmr.msra.gmra.mrb[68].mxu1 %vm205_vm2, %v12921_v2  ;;  %19376 = vmatprep.subr.bf16.mxu0 %v20245_v5 }
0x546f   :  { %19371 = vmatpush3.bf16.msra.mxu1 %v13070_v58  ;;  %19372 = vmatprep.mubr.msk.bf16.mxu1 %vm20247_vm0, %v20245_v5 }
0x5470   :  { %19382 = vmatprep.subr.bf16.mxu1 %v20245_v5 }
0x5476   :  { %19373 = vmatmul.mubr.msk.bf16.vlgmr.msra.gmra.mrb[72].mxu1 %vm205_vm2, %v12795_v60 }
0x5477   :  { %19384 = vmatprep.mubr.msk.bf16.mxu1 %vm20247_vm0, %v20245_v5 }
0x5478   :  { %19383 = vmatpush3.bf16.xpose.msra.mxu1 %v13171_v27 }
0x5479   :  { %19394 = vmatprep.subr.bf16.mxu1 %v20245_v5 }
0x547f   :  { %19385 = vmatmul.mubr.msk.bf16.vlgmr.msra.gmra.mrb[76].mxu1 %vm205_vm2, %v13164_v56 }
0x5480   :  { %19396 = vmatprep.mubr.msk.bf16.mxu1 %vm20247_vm0, %v20245_v5 }
0x553f   :  { %v12964_v11 = vpop.f32.mrb[68].mxu0 }
0x5540   :  { %v19356_v19 = vpop.f32.mrb[69].mxu0 }
0x5541   :  { %v12967_v10 = vpop.f32.mrb[70].mxu0  ;;  %v13012_v13 = vpop.f32.mrb[68].mxu1 }
0x5542   :  { %v13018_v60 = vpack.c.bf16 %v13012_v13, %v12964_v11  ;;  %v19357_v18 = vpop.f32.mrb[71].mxu0  ;;  %v19362_v9 = vpop.f32.mrb[69].mxu1 }
0x5543   :  { %v13015_v20 = vpop.f32.mrb[70].mxu1  ;;  %v17189_v18 = vld [vmem:[%s24189_s2 + $0xe8] sm:$0xf] }
0x5544   :  { %v19363_v36 = vpop.f32.mrb[71].mxu1  ;;  %19367 = vmatmul.mubr.msk.bf16.vlgmr.msra.gmra.mrb[72].mxu0 %vm205_vm2, %v13018_v60 }
0x5545   :  { %19377 = vmatpush3.bf16.xpose.msra.mxu0 %v13121_v37  ;;  %19378 = vmatprep.mubr.msk.bf16.mxu0 %vm20247_vm0, %v20245_v5  ;;  %v13338_v37 = vsel %vm330_vm3, %v17189_v18, 0 }
0x5546   :  { %19388 = vmatprep.subr.bf16.mxu0 %v20245_v5 }
0x5549   :  { %v13106_v55 = vpop.f32.mrb[72].mxu1 }
0x554a   :  { %v19374_v25 = vpop.f32.mrb[73].mxu1 }
0x554b   :  { %v13109_v34 = vpop.f32.mrb[74].mxu1 }
0x554c   :  { %v19375_v31 = vpop.f32.mrb[75].mxu1  ;;  %19379 = vmatmul.mubr.msk.bf16.vlgmr.msra.gmra.mrb[76].mxu0 %vm205_vm2, %v13114_v61 }
0x554d   :  { %19390 = vmatprep.mubr.msk.bf16.mxu0 %vm20247_vm0, %v20245_v5 }
0x5552   :  { %v13207_v45 = vpop.f32.mrb[76].mxu1 }
0x5553   :  { %v19386_v35 = vpop.f32.mrb[77].mxu1  ;;  %v13216_v40 = vsel %vm205_vm2, %v13207_v45, -inf }
0x5554   :  { %13217 = vmax.xlane.f32.xlu0 %v13216_v40  ;;  %v13210_v32 = vpop.f32.mrb[78].mxu1 }
0x5555   :  { %v19387_v33 = vpop.f32.mrb[79].mxu1 }
0x55e1   :  { %v13218_v42 = vpop.xlane.xlu0 %13217 }
0x55e2   :  { %v13220_v54 = vsub.f32 %v13207_v45, %v13218_v42 }
0x55e4   :  { %v13223_v0 = vmul.f32 1.442695, %v13220_v54 }
0x55e6   :  { %20211 = vpow2.f32 %v13223_v0 }
0x55f0   :  { %v20212_v22 = vpop.eup %20211 }
0x55f1   :  { %v13228_v8 = vsel %vm205_vm2, %v20212_v22, 0.0 }
0x5617   :  { %v13059_v57 = vpop.f32.mrb[72].mxu0 }
0x5618   :  { %v23485_v7 = vadd.f32 %v13106_v55, %v13059_v57  ;;  %v19368_v59 = vpop.f32.mrb[73].mxu0 }
0x5619   :  { %v13062_v43 = vpop.f32.mrb[74].mxu0 }
0x561a   :  { %v23487_v21 = vadd.f32 %v13109_v34, %v13062_v43  ;;  %v19369_v41 = vpop.f32.mrb[75].mxu0 }
0x561f   :  { %v13157_v47 = vpop.f32.mrb[76].mxu0 }
0x5620   :  { %v19380_v6 = vpop.f32.mrb[77].mxu0  ;;  %v13213_v14 = vsel %vm205_vm2, %v13157_v47, -inf }
0x5621   :  { %13214 = vmax.xlane.f32.xlu1 %v13213_v14  ;;  %v13160_v24 = vpop.f32.mrb[78].mxu0 }
0x5622   :  { %v19381_v26 = vpop.f32.mrb[79].mxu0 }
0x5625   :  { %13229 = vadd.xlane.f32.xlu1 %v13228_v8 }
0x5636   :  { %13285 = vrot.lane.b32.xlu1 %v23337_v12, %s20253_s23 }
0x563a   :  { %13385 = vrot.lane.b32.xlu1 %v23358_v23, %s20257_s30 }
0x563e   :  { %13383 = vrot.lane.b32.xlu1 %v23375_v30, %s20257_s30 }
0x56ae   :  { %v13215_v44 = vpop.xlane.xlu1 %13214 }
0x56af   :  { %v13219_v63 = vsub.f32 %v13157_v47, %v13215_v44 }
0x56b1   :  { %v13221_v62 = vmul.f32 1.442695, %v13219_v63 }
0x56b2   :  { %v13230_v3 = vpop.xlane.xlu1 %13229 }
0x56b3   :  { %20213 = vpow2.f32 %v13221_v62 }
0x56b4   :  { %20215 = vrcp.f32 %v13230_v3 }
0x56b6   :  { %v13286_v38 = vpop.permute.xlu1 %13285 }
0x56b7   :  { %v13291_v4 = vsel %vm330_vm3, %v13286_v38, 0 }
0x56b8   :  { %19395 = vmatpush3.bf16.msra.mxu1 %v13291_v4 }
0x56b9   :  { %19406 = vmatprep.subr.bf16.mxu1 %v20245_v5 }
0x56ba   :  { %v13386_v56 = vpop.permute.xlu1 %13385 }
0x56bb   :  { %v13391_v11 = vsel %vm205_vm2, %v13386_v56, 0 }
0x56bd   :  { %v20214_v2 = vpop.eup %20213 }
0x56be   :  { %v20216_v58 = vpop.eup %20215  ;;  %v13225_v39 = vsel %vm205_vm2, %v20214_v2, 0.0  ;;  %v13384_v16 = vpop.permute.xlu1 %13383 }
0x56bf   :  { %v13234_v27 = vmul.f32 %v20216_v58, %v20212_v22  ;;  %13226 = vadd.xlane.f32.xlu0 %v13225_v39 }
0x56c1   :  { %v13236_v30 = vpack.c.bf16 %v13234_v27, %v13234_v27 }
0x56c3   :  { %19397 = vmatmul.mubr.msk.bf16.vlgmr.msra.gmra.mrb[80].mxu1 %vm205_vm2, %v13236_v30 }
0x56c4   :  { %19407 = vmatpush3.bf16.xpose.msra.mxu1 %v13391_v11  ;;  %19408 = vmatprep.mubr.msk.bf16.mxu1 %vm20247_vm0, %v20245_v5 }
0x56c5   :  { %19418 = vmatprep.subr.bf16.mxu1 %v20245_v5 }
0x56cb   :  { %19409 = vmatmul.mubr.msk.bf16.vlgmr.msra.gmra.mrb[84].mxu1 %vm205_vm2, %v13384_v16 }
0x56cc   :  { %19420 = vmatprep.mubr.msk.bf16.mxu1 %vm20247_vm0, %v20245_v5 }
0x56d5   :  { %13237 = vrot.lane.b32.xlu0 %v23358_v23, %s20253_s23 }
0x56d9   :  { %13435 = vrot.lane.b32.xlu0 %v23337_v12, %s20257_s30 }
0x56dd   :  { %13433 = vrot.lane.b32.xlu0 %v23377_v46, %s20257_s30 }
0x574c   :  { %v13227_v19 = vpop.xlane.xlu0 %13226 }
0x574d   :  { %20217 = vrcp.f32 %v13227_v19 }
0x5750   :  { %v13238_v10 = vpop.permute.xlu0 %13237 }
0x5751   :  { %v13243_v13 = vsel %vm330_vm3, %v13238_v10, 0 }
0x5752   :  { %19389 = vmatpush3.bf16.msra.mxu0 %v13243_v13 }
0x5753   :  { %19400 = vmatprep.subr.bf16.mxu0 %v20245_v5 }
0x5754   :  { %v13436_v40 = vpop.permute.xlu0 %13435 }
0x5755   :  { %v13441_v0 = vsel %vm205_vm2, %v13436_v40, 0 }
0x5757   :  { %v20218_v60 = vpop.eup %20217 }
0x5758   :  { %v13233_v9 = vmul.f32 %v20218_v60, %v20214_v2  ;;  %v13434_v59 = vpop.permute.xlu0 %13433 }
0x575a   :  { %v13235_v20 = vpack.c.bf16 %v13233_v9, %v13233_v9 }
0x575c   :  { %19391 = vmatmul.mubr.msk.bf16.vlgmr.msra.gmra.mrb[80].mxu0 %vm205_vm2, %v13235_v20 }
0x575d   :  { %19401 = vmatpush3.bf16.msra.mxu0 %v13338_v37  ;;  %19402 = vmatprep.mubr.msk.bf16.mxu0 %vm20247_vm0, %v20245_v5 }
0x575e   :  { %19412 = vmatprep.subr.bf16.mxu0 %v20245_v5 }
0x5796   :  { %v13327_v46 = vpop.f32.mrb[80].mxu1 }
0x5797   :  { %v19398_v36 = vpop.f32.mrb[81].mxu1 }
0x5798   :  { %v13330_v55 = vpop.f32.mrb[82].mxu1 }
0x5799   :  { %v19399_v25 = vpop.f32.mrb[83].mxu1 }
0x579e   :  { %v13427_v61 = vpop.f32.mrb[84].mxu1 }
0x579f   :  { %v19410_v34 = vpop.f32.mrb[85].mxu1  ;;  %v13483_v31 = vsel %vm205_vm2, %v13427_v61, -inf }
0x57a0   :  { %13484 = vmax.xlane.f32.xlu1 %v13483_v31  ;;  %v13430_v45 = vpop.f32.mrb[86].mxu1 }
0x57a1   :  { %v19411_v35 = vpop.f32.mrb[87].mxu1 }
0x582d   :  { %v13485_v43 = vpop.xlane.xlu1 %13484 }
0x582e   :  { %v13489_v41 = vsub.f32 %v13427_v61, %v13485_v43 }
0x582f   :  { %v13279_v32 = vpop.f32.mrb[80].mxu0 }
0x5830   :  { %v13333_v33 = vpack.c.bf16 %v13327_v46, %v13279_v32  ;;  %v19392_v42 = vpop.f32.mrb[81].mxu0  ;;  %v13491_v47 = vmul.f32 1.442695, %v13489_v41  ;;  %v17211_v32 = vld [vmem:[%s24190_s5 + $0x23] ss:$0 sm:$0xff] }
0x5831   :  { %v13282_v54 = vpop.f32.mrb[82].mxu0 }
0x5832   :  { %v19393_v57 = vpop.f32.mrb[83].mxu0  ;;  %19403 = vmatmul.mubr.msk.bf16.vlgmr.msra.gmra.mrb[84].mxu0 %vm205_vm2, %v13333_v33  ;;  %20219 = vpow2.f32 %v13491_v47 }
0x5833   :  { %19413 = vmatpush3.bf16.xpose.msra.mxu0 %v13441_v0  ;;  %19414 = vmatprep.mubr.msk.bf16.mxu0 %vm20247_vm0, %v20245_v5 }
0x5834   :  { %19424 = vmatprep.subr.bf16.mxu0 %v20245_v5 }
0x583a   :  { %19415 = vmatmul.mubr.msk.bf16.vlgmr.msra.gmra.mrb[88].mxu0 %vm205_vm2, %v13434_v59 }
0x583b   :  { %19426 = vmatprep.mubr.msk.bf16.mxu0 %vm20247_vm0, %v20245_v5 }
0x583c   :  { %v20220_v3 = vpop.eup %20219 }
0x583d   :  { %v13495_v2 = vsel %vm205_vm2, %v20220_v3, 0.0 }
0x5905   :  { %v13374_v6 = vpop.f32.mrb[84].mxu0 }
0x5906   :  { %v13381_v14 = vadd.f32 %v13374_v6, %v23485_v7  ;;  %v19404_v22 = vpop.f32.mrb[85].mxu0 }
0x5907   :  { %v13377_v24 = vpop.f32.mrb[86].mxu0 }
0x5908   :  { %v13382_v26 = vadd.f32 %v13377_v24, %v23487_v21  ;;  %v19405_v8 = vpop.f32.mrb[87].mxu0 }
0x590d   :  { %v13477_v44 = vpop.f32.mrb[88].mxu0 }
0x590e   :  { %v19416_v63 = vpop.f32.mrb[89].mxu0  ;;  %v13486_v62 = vsel %vm205_vm2, %v13477_v44, -inf }
0x590f   :  { %13487 = vmax.xlane.f32.xlu0 %v13486_v62  ;;  %v13480_v38 = vpop.f32.mrb[90].mxu0 }
0x5910   :  { %v19417_v4 = vpop.f32.mrb[91].mxu0 }
0x5911   :  { %v17222_v4 = vld [vmem:[%s24191_s3 + $0x340] sm:$0xff] }
0x5913   :  { %13496 = vadd.xlane.f32.xlu0 %v13495_v2  ;;  %v17215_v2 = vld [vmem:[%s24191_s3 + $0x308] sm:$0xff] }
0x5929   :  { %13507 = vrot.lane.b32.xlu0 %v23358_v23, %s20256_s0  ;;  %v17190_v23 = vld [vmem:[%s24189_s2 + $0xec] sm:$0xf] }
0x592a   :  { %v13608_v13 = vsel %vm330_vm3, %v17190_v23, 0 }
0x599c   :  { %v13488_v7 = vpop.xlane.xlu0 %13487 }
0x599d   :  { %v13490_v58 = vsub.f32 %v13477_v44, %v13488_v7 }
0x599f   :  { %v13493_v39 = vmul.f32 1.442695, %v13490_v58  ;;  %v17223_v58 = vld [vmem:[%s24191_s3 + $0x348] sm:$0xff] }
0x59a0   :  { %v13497_v27 = vpop.xlane.xlu0 %13496 }
0x59a1   :  { %20221 = vpow2.f32 %v13493_v39 }
0x59a2   :  { %20223 = vrcp.f32 %v13497_v27  ;;  %v17250_v27 = vcombine.low %v17215_v2, %v17223_v58 }
0x59a4   :  { %v13508_v21 = vpop.permute.xlu0 %13507 }
0x59a5   :  { %v13513_v56 = vsel %vm330_vm3, %v13508_v21, 0  ;;  %v17251_v21 = vcombine.high %v17215_v2, %v17223_v58  ;;  %v17242_v2 = vld [vmem:[%s24191_s3 + $0x3e0] sm:$0xff]  ;;  %v17243_v58 = vld [vmem:[%s24191_s3 + $0x3e8] sm:$0xff] }
0x59a6   :  { %19419 = vmatpush3.bf16.msra.mxu1 %v13513_v56  ;;  %v17230_v56 = vld [vmem:[%s24191_s3 + $0x380] sm:$0xff] }
0x59a7   :  { %19430 = vmatprep.subr.bf16.mxu1 %v20245_v5 }
0x59ab   :  { %v20222_v30 = vpop.eup %20221 }
0x59ac   :  { %v20224_v11 = vpop.eup %20223  ;;  %v13498_v16 = vsel %vm205_vm2, %v20222_v30, 0.0 }
0x59ad   :  { %v13503_v19 = vmul.f32 %v20224_v11, %v20220_v3  ;;  %13499 = vadd.xlane.f32.xlu1 %v13498_v16  ;;  %v17231_v11 = vld [vmem:[%s24191_s3 + $0x388] sm:$0xff] }
0x59af   :  { %v13505_v10 = vpack.c.bf16 %v13503_v19, %v13503_v19  ;;  %v17239_v19 = vld [vmem:[%s24191_s3 + $0x3c8] sm:$0xff] }
0x59b0   :  { %v17266_v23 = vcombine.low %v17231_v11, %v17239_v19 }
0x59b1   :  { %19421 = vmatmul.mubr.msk.bf16.vlgmr.msra.gmra.mrb[88].mxu1 %vm205_vm2, %v13505_v10 }
0x59b2   :  { %19432 = vmatprep.mubr.msk.bf16.mxu1 %vm20247_vm0, %v20245_v5  ;;  %19431 = vmatpush3.bf16.msra.mxu1 %v13608_v13  ;;  %v17267_v13 = vcombine.high %v17231_v11, %v17239_v19  ;;  %v17228_v11 = vld [vmem:[%s24191_s3 + $0x370] sm:$0xff]  ;;  %v17229_v19 = vld [vmem:[%s24191_s3 + $0x378] sm:$0xff] }
0x59b3   :  { %14027 = vmatprep.subr.bf16.mxu1 %v17251_v21 }
0x59be   :  { %13555 = vrot.lane.b32.xlu1 %v23337_v12, %s20256_s0 }
0x5a3a   :  { %v13500_v60 = vpop.xlane.xlu1 %13499 }
0x5a3b   :  { %20225 = vrcp.f32 %v13500_v60  ;;  %v17216_v60 = vld [vmem:[%s24191_s3 + $0x310] sm:$0xff] }
0x5a3e   :  { %v13556_v18 = vpop.permute.xlu1 %13555 }
0x5a3f   :  { %v13561_v9 = vsel %vm330_vm3, %v13556_v18, 0  ;;  %v17224_v18 = vld [vmem:[%s24191_s3 + $0x350] sm:$0xff] }
0x5a40   :  { %19425 = vmatpush3.bf16.msra.mxu0 %v13561_v9  ;;  %v17217_v9 = vld [vmem:[%s24191_s3 + $0x318] sm:$0xff] }
0x5a45   :  { %v20226_v20 = vpop.eup %20225 }
0x5a46   :  { %v13504_v37 = vmul.f32 %v20226_v20, %v20222_v30  ;;  %v17238_v30 = vld [vmem:[%s24191_s3 + $0x3c0] sm:$0xff]  ;;  %v17252_v20 = vcombine.low %v17216_v60, %v17224_v18 }
0x5a47   :  { %v17265_v16 = vcombine.high %v17230_v56, %v17238_v30  ;;  %v17264_v10 = vcombine.low %v17230_v56, %v17238_v30  ;;  %v17220_v30 = vld [vmem:[%s24191_s3 + $0x330] sm:$0xff] }
0x5a48   :  { %v13506_v46 = vpack.c.bf16 %v13504_v37, %v13504_v37  ;;  %v17253_v37 = vcombine.high %v17216_v60, %v17224_v18  ;;  %v17236_v18 = vld [vmem:[%s24191_s3 + $0x3b0] sm:$0xff] }
0x5a4a   :  { %19427 = vmatmul.mubr.msk.bf16.vlgmr.msra.gmra.mrb[92].mxu0 %vm205_vm2, %v13506_v46  ;;  %v17225_v46 = vld [vmem:[%s24191_s3 + $0x358] sm:$0xff] }
0x5a4b   :  { %14016 = vmatprep.mubr.bf16.mxu0 %v20244_v1 }
0x5a84   :  { %v13549_v12 = vpop.f32.mrb[88].mxu1 }
0x5a85   :  { %v19422_v36 = vpop.f32.mrb[89].mxu1 }
0x5a86   :  { %v13552_v55 = vpop.f32.mrb[90].mxu1  ;;  %v17255_v36 = vcombine.high %v17217_v9, %v17225_v46 }
0x5a87   :  { %v19423_v25 = vpop.f32.mrb[91].mxu1 }
0x5b1d   :  { %v13597_v61 = vpop.f32.mrb[92].mxu0 }
0x5b1e   :  { %v13603_v34 = vpack.c.bf16 %v13597_v61, %v13549_v12  ;;  %v19428_v31 = vpop.f32.mrb[93].mxu0  ;;  %v17254_v12 = vcombine.low %v17217_v9, %v17225_v46  ;;  %v17244_v9 = vld [vmem:[%s24191_s3 + $0x3f0] sm:$0xff]  ;;  %v17260_v46 = vcombine.low %v17220_v30, %v17228_v11 }
0x5b1f   :  { %v13600_v45 = vpop.f32.mrb[94].mxu0 }
0x5b20   :  { %v19429_v35 = vpop.f32.mrb[95].mxu0  ;;  %19433 = vmatmul.mubr.msk.bf16.vlgmr.msra.gmra.mrb[92].mxu1 %vm205_vm2, %v13603_v34 }
0x5b21   :  { %14059 = vmatprep.mubr.bf16.mxu1 %v20244_v1  ;;  %14028 = vmatpush1.bf16.msra.mxu1 %v17250_v27 }
0x5b22   :  { %14029 = vmatprep.subr.bf16.mxu1 %v17267_v13  ;;  %v17261_v13 = vcombine.high %v17220_v30, %v17228_v11 }
0x5b25   :  { %14030 = vmatpush1.bf16.msra.mxu1 %v17266_v23 }
0x5b26   :  { %14113 = vmatprep.subr.bf16.mxu1 %v17255_v36  ;;  %v17277_v36 = vcombine.high %v17236_v18, %v17244_v9 }
0x5bf3   :  { %v13644_v40 = vpop.f32.mrb[92].mxu1 }
0x5bf4   :  { %v13651_v33 = vadd.f32 %v13644_v40, %v13381_v14  ;;  %v19434_v42 = vpop.f32.mrb[93].mxu1  ;;  %v17212_v40 = vld [vmem:[%s24190_s5 + $0x26] ss:$0 sm:$0xff] }
0x5bf5   :  { %v13647_v54 = vpop.f32.mrb[94].mxu1 }
0x5bf6   :  { %v13658_v0 = vadd.f32 %v17211_v32, %v13651_v33  ;;  %v13652_v57 = vadd.f32 %v13647_v54, %v13382_v26  ;;  %v19435_v59 = vpop.f32.mrb[95].mxu1 }
0x5bf7   :  { %v17232_v59 = vld [vmem:[%s24191_s3 + $0x390] sm:$0xff] }
0x5bf8   :  { %v13659_v43 = vadd.f32 %v17211_v32, %v13652_v57  ;;  %v13660_v41 = vadd.f32 %v13658_v0, %v23360_v15  ;;  %v17213_v0 = vld [vmem:[%s24190_s5 + $0x27] ss:$0 sm:$0xff] }
0x5bfa   :  { %v13664_v47 = vsel %vm150_vm1, %v13660_v41, 0.0  ;;  %v13661_v6 = vadd.f32 %v13659_v43, %v23362_v17  ;;  %v17214_v17 = vld [vmem:[%s24191_s3 + $0x300] sm:$0xff]  ;;  %v17240_v43 = vld [vmem:[%s24191_s3 + $0x3d0] sm:$0xff] }
0x5bfb   :  { %13665 = vadd.xlane.f32.xlu1 %v13664_v47  ;;  %v17249_v7 = vcombine.high %v17214_v17, %v17222_v4  ;;  %v17248_v39 = vcombine.low %v17214_v17, %v17222_v4  ;;  %v17241_v47 = vld [vmem:[%s24191_s3 + $0x3d8] sm:$0xff]  ;;  %v17234_v4 = vld [vmem:[%s24191_s3 + $0x3a0] sm:$0xff] }
0x5bfc   :  { %v13667_v22 = vsel %vm150_vm1, %v13661_v6, 0.0  ;;  %v17273_v21 = vcombine.high %v17234_v4, %v17242_v2 }
0x5bfd   :  { %13668 = vadd.xlane.f32.xlu0 %v13667_v22  ;;  %13984 = vmatprep.subr.bf16.mxu0 %v17249_v7  ;;  %v17235_v7 = vld [vmem:[%s24191_s3 + $0x3a8] sm:$0xff] }
0x5bfe   :  { %13985 = vmatpush1.bf16.msra.mxu0 %v17248_v39  ;;  %v17275_v56 = vcombine.high %v17235_v7, %v17243_v58  ;;  %v17274_v23 = vcombine.low %v17235_v7, %v17243_v58  ;;  %v19898_v7 = vld [vmem:[%s24192_s4 + $0xcf8] sm:$0xff]  }
0x5bff   :  { %13986 = vmatprep.subr.bf16.mxu0 %v17265_v16  ;;  %v17221_v16 = vld [vmem:[%s24191_s3 + $0x338] sm:$0xff] }
0x5c00   :  { %v17263_v60 = vcombine.high %v17221_v16, %v17229_v19  ;;  %v19899_v58 = vld [vmem:[%s24192_s4 + $0xc38] sm:$0xff]  }
0x5c02   :  { %13987 = vmatpush1.bf16.msra.mxu0 %v17264_v10  ;;  %v17272_v10 = vcombine.low %v17234_v4, %v17242_v2  ;;  %v19896_v4 = vld [vmem:[%s24192_s4 + $0xcb0] sm:$0xff]   ;;  %v19897_v2 = vld [vmem:[%s24192_s4 + $0xc78] sm:$0xff]  }
0x5c03   :  { %14070 = vmatprep.subr.bf16.mxu0 %v17253_v37  ;;  %v17245_v37 = vld [vmem:[%s24191_s3 + $0x3f8] sm:$0xff] }
0x5c88   :  { %v13666_v24 = vpop.xlane.xlu1 %13665 }
0x5c89   :  { %v13670_v8 = vmul.f32 0.03125, %v13666_v24 }
0x5c8a   :  { %v13669_v44 = vpop.xlane.xlu0 %13668 }
0x5c8b   :  { %v13672_v14 = vsub.f32 %v13660_v41, %v13670_v8  ;;  %v13671_v63 = vmul.f32 0.03125, %v13669_v44  ;;  %v17233_v41 = vld [vmem:[%s24191_s3 + $0x398] sm:$0xff]  ;;  %v17269_v8 = vcombine.high %v17232_v59, %v17240_v43 }
0x5c8c   :  { %v17271_v44 = vcombine.high %v17233_v41, %v17241_v47 }
0x5c8d   :  { %v13673_v62 = vsub.f32 %v13661_v6, %v13671_v63  ;;  %v13674_v3 = vmul.f32 %v13672_v14, %v13672_v14  ;;  %v17226_v63 = vld [vmem:[%s24191_s3 + $0x360] sm:$0xff] }
0x5c8f   :  { %v13676_v26 = vsel %vm150_vm1, %v13674_v3, 0.0  ;;  %v13675_v38 = vmul.f32 %v13673_v62, %v13673_v62  ;;  %v17227_v3 = vld [vmem:[%s24191_s3 + $0x368] sm:$0xff] }
0x5c90   :  { %13677 = vadd.xlane.f32.xlu0 %v13676_v26  ;;  %v17268_v26 = vcombine.low %v17232_v59, %v17240_v43  ;;  %v19881_v59 = vld [vmem:[%s24192_s4 + $0xc58] sm:$0xff]  }
0x5c91   :  { %v13679_v15 = vsel %vm150_vm1, %v13675_v38, 0.0  ;;  %v17270_v38 = vcombine.low %v17233_v41, %v17241_v47  ;;  %v19882_v43 = vld [vmem:[%s24192_s4 + $0xcd8] sm:$0xff]  }
0x5c92   :  { %13680 = vadd.xlane.f32.xlu1 %v13679_v15  ;;  %v19883_v41 = vld [vmem:[%s24192_s4 + $0xc18] sm:$0xff]  }
0x5c93   :  { %v19884_v47 = vld [vmem:[%s24192_s4 + $0xc98] sm:$0xff]  }
0x5d1d   :  { %v13678_v55 = vpop.xlane.xlu0 %13677 }
0x5d1e   :  { %v13682_v25 = vmul.f32 0.03125, %v13678_v55 }
0x5d1f   :  { %v13681_v61 = vpop.xlane.xlu1 %13680 }
0x5d20   :  { %v13684_v34 = vadd.f32 1e-05, %v13682_v25  ;;  %v13683_v31 = vmul.f32 0.03125, %v13681_v61  ;;  %v17276_v25 = vcombine.low %v17236_v18, %v17244_v9 }
0x5d22   :  { %20227 = vrsqrt.f32 %v13684_v34  ;;  %v13685_v45 = vadd.f32 1e-05, %v13683_v31  ;;  %v19869_v34 = vld [vmem:[%s24192_s4 + $0xc40] sm:$0xff]  }
0x5d23   :  { %v19870_v31 = vld [vmem:[%s24192_s4 + $0xcc0] sm:$0xff]  }
0x5d24   :  { %20229 = vrsqrt.f32 %v13685_v45  ;;  %v19871_v45 = vld [vmem:[%s24192_s4 + $0xc00] sm:$0xff]  }
0x5d2c   :  { %v20228_v35 = vpop.eup %20227 }
0x5d2d   :  { %v13688_v32 = vmul.f32 %v20228_v35, %v13672_v14  ;;  %v17218_v14 = vld [vmem:[%s24191_s3 + $0x320] sm:$0xff] }
0x5d2e   :  { %v20230_v33 = vpop.eup %20229  ;;  %v17257_v15 = vcombine.high %v17218_v14, %v17226_v63  ;;  %v17256_v39 = vcombine.low %v17218_v14, %v17226_v63  ;;  %v19872_v35 = vld [vmem:[%s24192_s4 + $0xc80] sm:$0xff]   ;;  %v19889_v63 = vld [vmem:[%s24192_s4 + $0xc68] sm:$0xff]  }
0x5d2f   :  { %v13694_v42 = vmul.f32 %v17212_v40, %v13688_v32  ;;  %v13689_v54 = vmul.f32 %v20230_v33, %v13673_v62  ;;  %v17219_v62 = vld [vmem:[%s24191_s3 + $0x328] sm:$0xff]  ;;  %v19888_v14 = vld [vmem:[%s24192_s4 + $0xca0] sm:$0xff]  }
0x5d30   :  { %v17259_v17 = vcombine.high %v17219_v62, %v17227_v3  ;;  %v17258_v27 = vcombine.low %v17219_v62, %v17227_v3  ;;  %v19875_v32 = vld [vmem:[%s24192_s4 + $0xc08] sm:$0xff]  }
0x5d31   :  { %v13695_v57 = vmul.f32 %v17212_v40, %v13689_v54  ;;  %v23619_v6 = vadd.f32 %v17213_v0, %v13694_v42  ;;  %v19873_v40 = vld [vmem:[%s24192_s4 + $0xc48] sm:$0xff]   ;;  %v19877_v42 = vld [vmem:[%s24192_s4 + $0xc50] sm:$0xff]  }
0x5d32   :  { %v19876_v33 = vld [vmem:[%s24192_s4 + $0xc88] sm:$0xff]   ;;  %v19878_v54 = vld [vmem:[%s24192_s4 + $0xcd0] sm:$0xff]  }
0x5d33   :  { %v23621_v22 = vadd.f32 %v17213_v0, %v13695_v57  ;;  %v19879_v0 = vld [vmem:[%s24192_s4 + $0xc10] sm:$0xff]   ;;  %v19890_v62 = vld [vmem:[%s24192_s4 + $0xce8] sm:$0xff]  }
0x5d34   :  { %v19880_v57 = vld [vmem:[%s24192_s4 + $0xc90] sm:$0xff]   ;;  %v19891_v3 = vld [vmem:[%s24192_s4 + $0xc28] sm:$0xff]  }
0x5d35   :  { %v23625_v24 = vpack.c.bf16 %v23621_v22, %v23619_v6 }
0x5d37   :  { %17280 = vmatmul.mubr.msk.bf16.vlgmr.msra.gmra.mrb[96].mxu0 %vm150_vm1, %v23625_v24  ;;  %17281 = vmatmul.mubr.msk.bf16.vlgmr.msra.gmra.mrb[96].mxu1 %vm150_vm1, %v23625_v24 }
0x5d38   :  { %14071 = vmatpush1.bf16.msra.mxu0 %v17252_v20  ;;  %14114 = vmatpush1.bf16.msra.mxu1 %v17254_v12  ;;  %v17237_v20 = vld [vmem:[%s24191_s3 + $0x3b8] sm:$0xff]  ;;  %v17262_v12 = vcombine.low %v17221_v16, %v17229_v19 }
0x5d39   :  { %14072 = vmatprep.subr.bf16.mxu0 %v17269_v8  ;;  %14115 = vmatprep.subr.bf16.mxu1 %v17271_v44  ;;  %v17279_v55 = vcombine.high %v17237_v20, %v17245_v37  ;;  %v17278_v61 = vcombine.low %v17237_v20, %v17245_v37  ;;  %v19886_v8 = vld [vmem:[%s24192_s4 + $0xce0] sm:$0xff]  }
0x5d3a   :  { %14102 = vmatprep.mubr.bf16.mxu0 %v20244_v1  ;;  %14145 = vmatprep.mubr.bf16.mxu1 %v20244_v1  ;;  %v19887_v44 = vld [vmem:[%s24192_s4 + $0xc20] sm:$0xff]  }
0x5d3c   :  { %14073 = vmatpush1.bf16.msra.mxu0 %v17268_v26  ;;  %14116 = vmatpush1.bf16.msra.mxu1 %v17270_v38  ;;  %v19892_v26 = vld [vmem:[%s24192_s4 + $0xca8] sm:$0xff]   ;;  %v19893_v38 = vld [vmem:[%s24192_s4 + $0xc70] sm:$0xff]  }
0x5d3d   :  { %14156 = vmatprep.subr.bf16.mxu0 %v17257_v15  ;;  %14199 = vmatprep.subr.bf16.mxu1 %v17259_v17  ;;  %v19894_v15 = vld [vmem:[%s24192_s4 + $0xcf0] sm:$0xff]  }
0x5d3e   :  { %v19895_v17 = vld [vmem:[%s24192_s4 + $0xc30] sm:$0xff]  }
0x5d3f   :  { %17282 = vmatmul.mubr.msk.bf16.vlgmr.msra.gmra.mrb[100].mxu0 %vm150_vm1, %v23625_v24  ;;  %17283 = vmatmul.mubr.msk.bf16.vlgmr.msra.gmra.mrb[100].mxu1 %vm150_vm1, %v23625_v24 }
0x5d40   :  { %14157 = vmatpush1.bf16.msra.mxu0 %v17256_v39  ;;  %14200 = vmatpush1.bf16.msra.mxu1 %v17258_v27  ;;  %v19900_v39 = vld [vmem:[%s24192_s4 + $0xcb8] sm:$0xff]   ;;  %v19901_v27 = vld [vmem:[%s24192_s4 + $0xd40] sm:$0xff]  }
0x5d41   :  { %14158 = vmatprep.subr.bf16.mxu0 %v17273_v21  ;;  %14201 = vmatprep.subr.bf16.mxu1 %v17275_v56  ;;  %v19902_v21 = vld [vmem:[%s24192_s4 + $0xdc0] sm:$0xff]   ;;  %v17246_v56 = vld [vmem:[%s24193_s6 + $0x30] sm:$0xff] }
0x5d42   :  { %14188 = vmatprep.mubr.bf16.mxu0 %v20244_v1  ;;  %14231 = vmatprep.mubr.bf16.mxu1 %v20244_v1  ;;  %v13744_v30 = vrot.slane %v17246_v56, %v20781_v29  ;;  %v13752_v11 = vrot.slane %v17246_v56, %v20783_v28  ;;  %v13748_v16 = vrot.slane %v17246_v56, %v20785_v48 }
0x5d43   :  { %v13756_v19 = vrot.slane %v17246_v56, %v20787_v49 }
0x5d44   :  { %14159 = vmatpush1.bf16.msra.mxu0 %v17272_v10  ;;  %14202 = vmatpush1.bf16.msra.mxu1 %v17274_v23 }
0x5d45   :  { %14242 = vmatprep.subr.bf16.mxu0 %v17261_v13  ;;  %14285 = vmatprep.subr.bf16.mxu1 %v17263_v60 }
0x5d47   :  { %17284 = vmatmul.mubr.msk.bf16.vlgmr.msra.gmra.mrb[104].mxu0 %vm150_vm1, %v23625_v24  ;;  %17285 = vmatmul.mubr.msk.bf16.vlgmr.msra.gmra.mrb[104].mxu1 %vm150_vm1, %v23625_v24 }
0x5d48   :  { %14243 = vmatpush1.bf16.msra.mxu0 %v17260_v46  ;;  %14286 = vmatpush1.bf16.msra.mxu1 %v17262_v12 }
0x5d49   :  { %14244 = vmatprep.subr.bf16.mxu0 %v17277_v36  ;;  %14287 = vmatprep.subr.bf16.mxu1 %v17279_v55 }
0x5d4a   :  { %14274 = vmatprep.mubr.bf16.mxu0 %v20244_v1  ;;  %14317 = vmatprep.mubr.bf16.mxu1 %v20244_v1  ;;  %v19874_v1 = vld [vmem:[%s24192_s4 + $0xcc8] sm:$0xff]  }
0x5d4c   :  { %14245 = vmatpush1.bf16.msra.mxu0 %v17276_v25  ;;  %14288 = vmatpush1.bf16.msra.mxu1 %v17278_v61 }
0x5d4d   :  { %18473 = vmatprep.subr.bf16.mxu0 %v19869_v34  ;;  %18495 = vmatprep.subr.bf16.mxu1 %v19870_v31  ;;  %v13760_v34 = vrot.slane %v17246_v56, %v20789_v50  ;;  %v13768_v31 = vrot.slane %v17246_v56, %v20791_v51 }
0x5d4f   :  { %17286 = vmatmul.mubr.msk.bf16.vlgmr.msra.gmra.mrb[108].mxu0 %vm150_vm1, %v23625_v24  ;;  %17287 = vmatmul.mubr.msk.bf16.vlgmr.msra.gmra.mrb[108].mxu1 %vm150_vm1, %v23625_v24  ;;  %v19885_v24 = vld [vmem:[%s24192_s4 + $0xc60] sm:$0xff]  }
0x5d50   :  { %18474 = vmatpush3.bf16.msra.mxu0 %v19871_v45  ;;  %18496 = vmatpush3.bf16.msra.mxu1 %v19872_v35 }
0x5d51   :  { %18475 = vmatprep.subr.bf16.mxu0 %v19873_v40  ;;  %18497 = vmatprep.subr.bf16.mxu1 %v19874_v1  ;;  %v13764_v40 = vrot.slane %v17246_v56, %v20793_v52  ;;  %v13772_v1 = vrot.slane %v17246_v56, %v20795_v53 }
0x5d54   :  { %18476 = vmatpush3.bf16.msra.mxu0 %v19875_v32  ;;  %18498 = vmatpush3.bf16.msra.mxu1 %v19876_v33 }
0x5d55   :  { %18477 = vmatprep.subr.bf16.mxu0 %v19877_v42  ;;  %18499 = vmatprep.subr.bf16.mxu1 %v19878_v54 }
0x5d58   :  { %18478 = vmatpush3.bf16.msra.mxu0 %v19879_v0  ;;  %18500 = vmatpush3.bf16.msra.mxu1 %v19880_v57 }
0x5d59   :  { %18479 = vmatprep.subr.bf16.mxu0 %v19881_v59  ;;  %18501 = vmatprep.subr.bf16.mxu1 %v19882_v43 }
0x5d5c   :  { %18480 = vmatpush3.bf16.msra.mxu0 %v19883_v41  ;;  %18502 = vmatpush3.bf16.msra.mxu1 %v19884_v47  ;;  %v23813_v41 = vld [vmem:[%s24193_s6 + $0x38] sm:$0xff] }
0x5d5d   :  { %18481 = vmatprep.subr.bf16.mxu0 %v19885_v24  ;;  %18503 = vmatprep.subr.bf16.mxu1 %v19886_v8  ;;  %v13784_v56 = vrot.slane %v23813_v41, %v20783_v28  ;;  %v19908_v28 = vld [vmem:[%s24192_s4 + $0xd88] sm:$0xff]  }
0x5d60   :  { %18482 = vmatpush3.bf16.msra.mxu0 %v19887_v44  ;;  %18504 = vmatpush3.bf16.msra.mxu1 %v19888_v14 }
0x5d61   :  { %18483 = vmatprep.subr.bf16.mxu0 %v19889_v63  ;;  %18505 = vmatprep.subr.bf16.mxu1 %v19890_v62  ;;  %v19903_v62 = vld [vmem:[%s24192_s4 + $0xd00] sm:$0xff]  }
0x5d64   :  { %18484 = vmatpush3.bf16.msra.mxu0 %v19891_v3  ;;  %18506 = vmatpush3.bf16.msra.mxu1 %v19892_v26  ;;  %v19904_v3 = vld [vmem:[%s24192_s4 + $0xd80] sm:$0xff]  }
0x5d65   :  { %18485 = vmatprep.subr.bf16.mxu0 %v19893_v38  ;;  %18507 = vmatprep.subr.bf16.mxu1 %v19894_v15 }
0x5d68   :  { %18486 = vmatpush3.bf16.msra.mxu0 %v19895_v17  ;;  %18508 = vmatpush3.bf16.msra.mxu1 %v19896_v4  ;;  %v19905_v4 = vld [vmem:[%s24192_s4 + $0xd48] sm:$0xff]  }
0x5d69   :  { %18487 = vmatprep.subr.bf16.mxu0 %v19897_v2  ;;  %18509 = vmatprep.subr.bf16.mxu1 %v19898_v7  ;;  %v19906_v2 = vld [vmem:[%s24192_s4 + $0xdc8] sm:$0xff]   ;;  %v13776_v7 = vrot.slane %v23813_v41, %v20781_v29 }
0x5d6c   :  { %18488 = vmatpush3.bf16.msra.mxu0 %v19899_v58  ;;  %18510 = vmatpush3.bf16.msra.mxu1 %v19900_v39 }
0x5d6d   :  { %18517 = vmatprep.subr.bf16.mxu0 %v19901_v27  ;;  %18539 = vmatprep.subr.bf16.mxu1 %v19902_v21 }
0x5e0a   :  { %v14018_v10 = vpop.f32.mrb[96].mxu0  ;;  %v14061_v23 = vpop.f32.mrb[96].mxu1 }
0x5e0b   :  { %v14019_v13 = vadd.f32 %v14018_v10, %v13744_v30  ;;  %v14062_v60 = vadd.f32 %v14061_v23, %v13752_v11  ;;  %v14020_v18 = vpop.f32.mrb[97].mxu0  ;;  %v14063_v9 = vpop.f32.mrb[97].mxu1  ;;  %v13780_v10 = vrot.slane %v23813_v41, %v20785_v48  ;;  %v19909_v48 = vld [vmem:[%s24192_s4 + $0xd50] sm:$0xff]  }
0x5e0c   :  { %v14021_v20 = vadd.f32 %v14020_v18, %v13748_v16  ;;  %v14064_v37 = vadd.f32 %v14063_v9, %v13756_v19  ;;  %v14022_v46 = vpop.f32.mrb[98].mxu0  ;;  %v14065_v12 = vpop.f32.mrb[98].mxu1 }
0x5e0d   :  { %v14023_v36 = vadd.f32 %v14022_v46, %v13744_v30  ;;  %v14066_v55 = vadd.f32 %v14065_v12, %v13752_v11  ;;  %v14024_v25 = vpop.f32.mrb[99].mxu0  ;;  %v14067_v61 = vpop.f32.mrb[99].mxu1  ;;  %v14328_v32 = vmax.f32 %v14019_v13, 0.0  ;;  %v14330_v33 = vmax.f32 %v14062_v60, 0.0  ;;  %v19907_v13 = vld [vmem:[%s24192_s4 + $0xd08] sm:$0xff]   ;;  %v19910_v46 = vld [vmem:[%s24192_s4 + $0xdd0] sm:$0xff]  }
0x5e0e   :  { %v14025_v45 = vadd.f32 %v14024_v25, %v13748_v16  ;;  %v14068_v35 = vadd.f32 %v14067_v61, %v13756_v19  ;;  %v14329_v0 = vmax.f32 %v14021_v20, 0.0  ;;  %v14331_v57 = vmax.f32 %v14064_v37, 0.0 }
0x5e0f   :  { %v14344_v42 = vmax.f32 %v14023_v36, 0.0  ;;  %v14346_v54 = vmax.f32 %v14066_v55, 0.0  ;;  %v13788_v60 = vrot.slane %v23813_v41, %v20787_v49 }
0x5e10   :  { %v14345_v59 = vmax.f32 %v14025_v45, 0.0  ;;  %v14347_v43 = vmax.f32 %v14068_v35, 0.0 }
0x5e11   :  { %v14360_v47 = vpack.c.bf16 %v14344_v42, %v14328_v32  ;;  %v14362_v24 = vpack.c.bf16 %v14346_v54, %v14330_v33 }
0x5e12   :  { %v14361_v8 = vpack.c.bf16 %v14345_v59, %v14329_v0  ;;  %v14363_v44 = vpack.c.bf16 %v14347_v43, %v14331_v57  ;;  %v14104_v14 = vpop.f32.mrb[100].mxu0  ;;  %v14147_v63 = vpop.f32.mrb[100].mxu1  ;;  %v19913_v0 = vld [vmem:[%s24192_s4 + $0xd58] sm:$0xff]  }
0x5e13   :  { %v14105_v26 = vadd.f32 %v14104_v14, %v13760_v34  ;;  %v14148_v38 = vadd.f32 %v14147_v63, %v13768_v31  ;;  %v14106_v15 = vpop.f32.mrb[101].mxu0  ;;  %v14149_v17 = vpop.f32.mrb[101].mxu1  ;;  %v19914_v57 = vld [vmem:[%s24192_s4 + $0xdd8] sm:$0xff]  }
0x5e14   :  { %v14107_v58 = vadd.f32 %v14106_v15, %v13764_v40  ;;  %v14150_v39 = vadd.f32 %v14149_v17, %v13772_v1  ;;  %v14108_v27 = vpop.f32.mrb[102].mxu0  ;;  %v14151_v21 = vpop.f32.mrb[102].mxu1  ;;  %15438 = vmatprep.mubr.bf16.mxu0 %v14361_v8  ;;  %15479 = vmatprep.mubr.bf16.mxu1 %v14363_v44  ;;  %v13792_v8 = vrot.slane %v23813_v41, %v20789_v50  ;;  %v19915_v17 = vld [vmem:[%s24192_s4 + $0xd18] sm:$0xff]  }
0x5e15   :  { %v14109_v30 = vadd.f32 %v14108_v27, %v13760_v34  ;;  %v14152_v11 = vadd.f32 %v14151_v21, %v13768_v31  ;;  %v14110_v16 = vpop.f32.mrb[103].mxu0  ;;  %v14153_v19 = vpop.f32.mrb[103].mxu1  ;;  %15439 = vmatmul.mubr.bf16.vlgmr.msra.gmra.mrb[112].mxu0 %v14360_v47  ;;  %15480 = vmatmul.mubr.bf16.vlgmr.msra.gmra.mrb[112].mxu1 %v14362_v24  ;;  %v14332_v18 = vmax.f32 %v14105_v26, 0.0  ;;  %v14334_v9 = vmax.f32 %v14148_v38, 0.0  ;;  %v19916_v50 = vld [vmem:[%s24192_s4 + $0xd98] sm:$0xff]  }
0x5e16   :  { %v14111_v23 = vadd.f32 %v14110_v16, %v13764_v40  ;;  %v14154_v29 = vadd.f32 %v14153_v19, %v13772_v1  ;;  %18518 = vmatpush3.bf16.msra.mxu0 %v19903_v62  ;;  %18540 = vmatpush3.bf16.msra.mxu1 %v19904_v3  ;;  %v14333_v12 = vmax.f32 %v14107_v58, 0.0  ;;  %v14335_v36 = vmax.f32 %v14150_v39, 0.0  ;;  %v19911_v40 = vld [vmem:[%s24192_s4 + $0xd10] sm:$0xff]   ;;  %v19918_v39 = vld [vmem:[%s24192_s4 + $0xde0] sm:$0xff]  }
0x5e17   :  { %v14348_v20 = vmax.f32 %v14109_v30, 0.0  ;;  %v14350_v37 = vmax.f32 %v14152_v11, 0.0  ;;  %18519 = vmatprep.subr.bf16.mxu0 %v19905_v4  ;;  %18541 = vmatprep.subr.bf16.mxu1 %v19906_v2  ;;  %v19912_v1 = vld [vmem:[%s24192_s4 + $0xd90] sm:$0xff]   ;;  %v13800_v3 = vrot.slane %v23813_v41, %v20791_v51  ;;  %v13796_v26 = vrot.slane %v23813_v41, %v20793_v52  ;;  %v19917_v52 = vld [vmem:[%s24192_s4 + $0xd60] sm:$0xff]  }
0x5e18   :  { %v14349_v55 = vmax.f32 %v14111_v23, 0.0  ;;  %v14351_v25 = vmax.f32 %v14154_v29, 0.0  ;;  %v13804_v4 = vrot.slane %v23813_v41, %v20795_v53  ;;  %v19919_v23 = vld [vmem:[%s24192_s4 + $0xd20] sm:$0xff]  }
0x5e19   :  { %v23847_v61 = vpack.c.bf16 %v14348_v20, %v14332_v18  ;;  %v23849_v49 = vpack.c.bf16 %v14350_v37, %v14334_v9  ;;  %v19920_v29 = vld [vmem:[%s24192_s4 + $0xda0] sm:$0xff]   ;;  %v19921_v9 = vld [vmem:[%s24192_s4 + $0xd68] sm:$0xff]  }
0x5e1a   :  { %v14365_v34 = vpack.c.bf16 %v14349_v55, %v14333_v12  ;;  %v14367_v31 = vpack.c.bf16 %v14351_v25, %v14335_v36  ;;  %18520 = vmatpush3.bf16.msra.mxu0 %v19907_v13  ;;  %18542 = vmatpush3.bf16.msra.mxu1 %v19908_v28  ;;  %v14190_v45 = vpop.f32.mrb[104].mxu0  ;;  %v14233_v35 = vpop.f32.mrb[104].mxu1  ;;  %v19922_v20 = vld [vmem:[%s24192_s4 + $0xde8] sm:$0xff]  }
0x5e1b   :  { %v14191_v32 = vadd.f32 %v14190_v45, %v13776_v7  ;;  %v14234_v33 = vadd.f32 %v14233_v35, %v13784_v56  ;;  %v14192_v42 = vpop.f32.mrb[105].mxu0  ;;  %v14235_v54 = vpop.f32.mrb[105].mxu1  ;;  %18521 = vmatprep.subr.bf16.mxu0 %v19909_v48  ;;  %18543 = vmatprep.subr.bf16.mxu1 %v19910_v46  ;;  %v19923_v35 = vld [vmem:[%s24192_s4 + $0xd28] sm:$0xff]  }
0x5e1c   :  { %v14193_v59 = vadd.f32 %v14192_v42, %v13780_v10  ;;  %v14236_v43 = vadd.f32 %v14235_v54, %v13788_v60  ;;  %v14194_v47 = vpop.f32.mrb[106].mxu0  ;;  %v14237_v24 = vpop.f32.mrb[106].mxu1  ;;  %15520 = vmatprep.mubr.bf16.mxu0 %v14365_v34  ;;  %15561 = vmatprep.mubr.bf16.mxu1 %v14367_v31  ;;  %v19925_v54 = vld [vmem:[%s24192_s4 + $0xd70] sm:$0xff]  }
0x5e1d   :  { %v14195_v44 = vadd.f32 %v14194_v47, %v13776_v7  ;;  %v14238_v14 = vadd.f32 %v14237_v24, %v13784_v56  ;;  %v14196_v63 = vpop.f32.mrb[107].mxu0  ;;  %v14239_v62 = vpop.f32.mrb[107].mxu1  ;;  %v14336_v2 = vmax.f32 %v14191_v32, 0.0  ;;  %v14338_v51 = vmax.f32 %v14234_v33, 0.0 }
0x5e1e   :  { %v14197_v38 = vadd.f32 %v14196_v63, %v13780_v10  ;;  %v14240_v15 = vadd.f32 %v14239_v62, %v13788_v60  ;;  %18522 = vmatpush3.bf16.msra.mxu0 %v19911_v40  ;;  %18544 = vmatpush3.bf16.msra.mxu1 %v19912_v1  ;;  %v14337_v27 = vmax.f32 %v14193_v59, 0.0  ;;  %v14339_v21 = vmax.f32 %v14236_v43, 0.0  ;;  %v19924_v40 = vld [vmem:[%s24192_s4 + $0xda8] sm:$0xff]   ;;  %v19927_v63 = vld [vmem:[%s24192_s4 + $0xd30] sm:$0xff]  }
0x5e1f   :  { %v14352_v7 = vmax.f32 %v14195_v44, 0.0  ;;  %v14354_v58 = vmax.f32 %v14238_v14, 0.0  ;;  %18523 = vmatprep.subr.bf16.mxu0 %v19913_v0  ;;  %18545 = vmatprep.subr.bf16.mxu1 %v19914_v57  ;;  %v19926_v0 = vld [vmem:[%s24192_s4 + $0xdf0] sm:$0xff]  }
0x5e20   :  { %v14353_v56 = vmax.f32 %v14197_v38, 0.0  ;;  %v14355_v30 = vmax.f32 %v14240_v15, 0.0  ;;  %v19928_v62 = vld [vmem:[%s24192_s4 + $0xdb0] sm:$0xff]   ;;  %v19931_v38 = vld [vmem:[%s24192_s4 + $0xd38] sm:$0xff]  }
0x5e21   :  { %v23883_v11 = vpack.c.bf16 %v14352_v7, %v14336_v2  ;;  %v23885_v53 = vpack.c.bf16 %v14354_v58, %v14338_v51  ;;  %v19932_v15 = vld [vmem:[%s24192_s4 + $0xdb8] sm:$0xff]   ;;  %v19936_v2 = vld [vmem:[%s24192_s4 + $0xe80] sm:$0xff]   ;;  %v19937_v51 = vld [vmem:[%s24192_s4 + $0xe48] sm:$0xff]  }
0x5e22   :  { %v23887_v41 = vpack.c.bf16 %v14353_v56, %v14337_v27  ;;  %v23889_v16 = vpack.c.bf16 %v14355_v30, %v14339_v21  ;;  %18524 = vmatpush3.bf16.msra.mxu0 %v19915_v17  ;;  %18546 = vmatpush3.bf16.msra.mxu1 %v19916_v50  ;;  %v14276_v19 = vpop.f32.mrb[108].mxu0  ;;  %v14319_v10 = vpop.f32.mrb[108].mxu1  ;;  %v19933_v17 = vld [vmem:[%s24192_s4 + $0xe40] sm:$0xff]   ;;  %v19938_v7 = vld [vmem:[%s24192_s4 + $0xec8] sm:$0xff]   ;;  %v19944_v27 = vld [vmem:[%s24192_s4 + $0xe90] sm:$0xff]  }
0x5e23   :  { %v14277_v13 = vadd.f32 %v14276_v19, %v13792_v8  ;;  %v14320_v28 = vadd.f32 %v14319_v10, %v13800_v3  ;;  %v14278_v60 = vpop.f32.mrb[109].mxu0  ;;  %v14321_v18 = vpop.f32.mrb[109].mxu1  ;;  %18525 = vmatprep.subr.bf16.mxu0 %v19917_v52  ;;  %18547 = vmatprep.subr.bf16.mxu1 %v19918_v39  ;;  %v19934_v50 = vld [vmem:[%s24192_s4 + $0xec0] sm:$0xff]   ;;  %v19939_v58 = vld [vmem:[%s24192_s4 + $0xe08] sm:$0xff]   ;;  %v19943_v39 = vld [vmem:[%s24192_s4 + $0xe10] sm:$0xff]  }
0x5e24   :  { %v14279_v37 = vadd.f32 %v14278_v60, %v13796_v26  ;;  %v14322_v48 = vadd.f32 %v14321_v18, %v13804_v4  ;;  %v14280_v46 = vpop.f32.mrb[110].mxu0  ;;  %v14323_v12 = vpop.f32.mrb[110].mxu1  ;;  %v19940_v52 = vld [vmem:[%s24192_s4 + $0xe88] sm:$0xff]   ;;  %v19945_v21 = vld [vmem:[%s24192_s4 + $0xe58] sm:$0xff]   ;;  %v19950_v19 = vld [vmem:[%s24192_s4 + $0xee0] sm:$0xff]  }
0x5e25   :  { %v14281_v36 = vadd.f32 %v14280_v46, %v13792_v8  ;;  %v14324_v55 = vadd.f32 %v14323_v12, %v13800_v3  ;;  %v14282_v25 = vpop.f32.mrb[111].mxu0  ;;  %v14325_v34 = vpop.f32.mrb[111].mxu1  ;;  %v14340_v1 = vmax.f32 %v14277_v13, 0.0  ;;  %v14342_v32 = vmax.f32 %v14320_v28, 0.0  ;;  %v19929_v3 = vld [vmem:[%s24192_s4 + $0xd78] sm:$0xff]   ;;  %v19951_v10 = vld [vmem:[%s24192_s4 + $0xe20] sm:$0xff]  }
0x5e26   :  { %v14283_v31 = vadd.f32 %v14282_v25, %v13796_v26  ;;  %v14326_v45 = vadd.f32 %v14325_v34, %v13804_v4  ;;  %18526 = vmatpush3.bf16.msra.mxu0 %v19919_v23  ;;  %18548 = vmatpush3.bf16.msra.mxu1 %v19920_v29  ;;  %v14341_v57 = vmax.f32 %v14279_v37, 0.0  ;;  %v14343_v59 = vmax.f32 %v14322_v48, 0.0  ;;  %v19930_v26 = vld [vmem:[%s24192_s4 + $0xdf8] sm:$0xff]   ;;  %v19935_v4 = vld [vmem:[%s24192_s4 + $0xe00] sm:$0xff]   ;;  %v19953_v29 = vld [vmem:[%s24192_s4 + $0xe68] sm:$0xff]  }
0x5e27   :  { %v14356_v33 = vmax.f32 %v14281_v36, 0.0  ;;  %v14358_v42 = vmax.f32 %v14324_v55, 0.0  ;;  %18527 = vmatprep.subr.bf16.mxu0 %v19921_v9  ;;  %18549 = vmatprep.subr.bf16.mxu1 %v19922_v20  ;;  %v19946_v56 = vld [vmem:[%s24192_s4 + $0xed8] sm:$0xff]   ;;  %v19952_v23 = vld [vmem:[%s24192_s4 + $0xea0] sm:$0xff]   ;;  %v19954_v13 = vld [vmem:[%s24192_s4 + $0xee8] sm:$0xff]  }
0x5e28   :  { %v14357_v43 = vmax.f32 %v14283_v31, 0.0  ;;  %v14359_v47 = vmax.f32 %v14326_v45, 0.0  ;;  %v19947_v30 = vld [vmem:[%s24192_s4 + $0xe18] sm:$0xff]   ;;  %v19955_v28 = vld [vmem:[%s24192_s4 + $0xe28] sm:$0xff]   ;;  %v19957_v18 = vld [vmem:[%s24192_s4 + $0xe70] sm:$0xff]  }
0x5e29   :  { %v23915_v24 = vpack.c.bf16 %v14356_v33, %v14340_v1  ;;  %v23917_v8 = vpack.c.bf16 %v14358_v42, %v14342_v32  ;;  %v19956_v60 = vld [vmem:[%s24192_s4 + $0xea8] sm:$0xff]   ;;  %v19958_v9 = vld [vmem:[%s24192_s4 + $0xef0] sm:$0xff]   ;;  %v19961_v48 = vld [vmem:[%s24192_s4 + $0xe78] sm:$0xff]  }
0x5e2a   :  { %v23919_v44 = vpack.c.bf16 %v14357_v43, %v14341_v57  ;;  %v23921_v14 = vpack.c.bf16 %v14359_v47, %v14343_v59  ;;  %18528 = vmatpush3.bf16.msra.mxu0 %v19923_v35  ;;  %18550 = vmatpush3.bf16.msra.mxu1 %v19924_v40  ;;  %v19959_v20 = vld [vmem:[%s24192_s4 + $0xe30] sm:$0xff]   ;;  %v19962_v46 = vld [vmem:[%s24192_s4 + $0xef8] sm:$0xff]   ;;  %v19965_v55 = vld [vmem:[%s24192_s4 + $0xf40] sm:$0xff]  }
0x5e2b   :  { %18529 = vmatprep.subr.bf16.mxu0 %v19925_v54  ;;  %18551 = vmatprep.subr.bf16.mxu1 %v19926_v0  ;;  %v19960_v37 = vld [vmem:[%s24192_s4 + $0xeb0] sm:$0xff]   ;;  %v19963_v12 = vld [vmem:[%s24192_s4 + $0xe38] sm:$0xff]   ;;  %v19966_v25 = vld [vmem:[%s24192_s4 + $0xfc0] sm:$0xff]  }
0x5e2c   :  { %v19964_v36 = vld [vmem:[%s24192_s4 + $0xeb8] sm:$0xff]   ;;  %v19967_v34 = vld [vmem:[%s24192_s4 + $0xf00] sm:$0xff]   ;;  %v19969_v45 = vld [vmem:[%s24192_s4 + $0xf48] sm:$0xff]  }
0x5e2d   :  { %v19968_v31 = vld [vmem:[%s24192_s4 + $0xf80] sm:$0xff]   ;;  %v19970_v35 = vld [vmem:[%s24192_s4 + $0xfc8] sm:$0xff]   ;;  %v19975_v32 = vld [vmem:[%s24192_s4 + $0xf10] sm:$0xff]  }
0x5e2e   :  { %18530 = vmatpush3.bf16.msra.mxu0 %v19927_v63  ;;  %18552 = vmatpush3.bf16.msra.mxu1 %v19928_v62  ;;  %v19971_v40 = vld [vmem:[%s24192_s4 + $0xf08] sm:$0xff]   ;;  %v19976_v33 = vld [vmem:[%s24192_s4 + $0xf90] sm:$0xff]   ;;  %v19977_v42 = vld [vmem:[%s24192_s4 + $0xf58] sm:$0xff]  }
0x5e2f   :  { %18531 = vmatprep.subr.bf16.mxu0 %v19929_v3  ;;  %18553 = vmatprep.subr.bf16.mxu1 %v19930_v26  ;;  %v19972_v1 = vld [vmem:[%s24192_s4 + $0xf88] sm:$0xff]   ;;  %v19978_v54 = vld [vmem:[%s24192_s4 + $0xfd8] sm:$0xff]   ;;  %v19981_v59 = vld [vmem:[%s24192_s4 + $0xf60] sm:$0xff]  }
0x5e30   :  { %v19979_v0 = vld [vmem:[%s24192_s4 + $0xf18] sm:$0xff]   ;;  %v19982_v43 = vld [vmem:[%s24192_s4 + $0xfe0] sm:$0xff]   ;;  %v19986_v63 = vld [vmem:[%s24192_s4 + $0xfe8] sm:$0xff]  }
0x5e31   :  { %v19980_v57 = vld [vmem:[%s24192_s4 + $0xf98] sm:$0xff]   ;;  %v19983_v47 = vld [vmem:[%s24192_s4 + $0xf20] sm:$0xff]   ;;  %v19987_v62 = vld [vmem:[%s24192_s4 + $0xf28] sm:$0xff]  }
0x5e32   :  { %18532 = vmatpush3.bf16.msra.mxu0 %v19931_v38  ;;  %18554 = vmatpush3.bf16.msra.mxu1 %v19932_v15  ;;  %v19988_v3 = vld [vmem:[%s24192_s4 + $0xfa8] sm:$0xff]   ;;  %v19989_v26 = vld [vmem:[%s24192_s4 + $0xf70] sm:$0xff]  }
0x5e33   :  { %18561 = vmatprep.subr.bf16.mxu0 %v19933_v17  ;;  %18583 = vmatprep.subr.bf16.mxu1 %v19934_v50  ;;  %v19990_v38 = vld [vmem:[%s24192_s4 + $0xff0] sm:$0xff]   ;;  %v19993_v50 = vld [vmem:[%s24192_s4 + $0xf78] sm:$0xff]  }
0x5e34   :  { %v19991_v15 = vld [vmem:[%s24192_s4 + $0xf30] sm:$0xff]  }
0x5e35   :  { %15521 = vmatmul.mubr.bf16.vlgmr.msra.gmra.mrb[116].mxu0 %v23847_v61  ;;  %15562 = vmatmul.mubr.bf16.vlgmr.msra.gmra.mrb[116].mxu1 %v23849_v49  ;;  %v19941_v61 = vld [vmem:[%s24192_s4 + $0xe50] sm:$0xff]  }
0x5e36   :  { %18562 = vmatpush3.bf16.msra.mxu0 %v19935_v4  ;;  %15602 = vmatprep.mubr.bf16.mxu0 %v23887_v41  ;;  %v19942_v49 = vld [vmem:[%s24192_s4 + $0xed0] sm:$0xff]   ;;  %v19948_v41 = vld [vmem:[%s24192_s4 + $0xe98] sm:$0xff]  }
0x5e37   :  { %18584 = vmatpush3.bf16.msra.mxu1 %v19936_v2  ;;  %15643 = vmatprep.mubr.bf16.mxu1 %v23889_v16  ;;  %v19949_v16 = vld [vmem:[%s24192_s4 + $0xe60] sm:$0xff]   ;;  %v19992_v17 = vld [vmem:[%s24192_s4 + $0xfb0] sm:$0xff]   ;;  %v19994_v4 = vld [vmem:[%s24192_s4 + $0xff8] sm:$0xff]  }
0x5e38   :  { %18563 = vmatprep.subr.bf16.mxu0 %v19937_v51  ;;  %18585 = vmatprep.subr.bf16.mxu1 %v19938_v7  ;;  %v19995_v2 = vld [vmem:[%s24192_s4 + $0xf38] sm:$0xff]  }
0x5e39   :  { %v19996_v51 = vld [vmem:[%s24192_s4 + $0xfb8] sm:$0xff]  }
0x5e3a   :  { %18564 = vmatpush3.bf16.msra.mxu0 %v19939_v58 }
0x5e3b   :  { %18586 = vmatpush3.bf16.msra.mxu1 %v19940_v52  ;;  %18565 = vmatprep.subr.bf16.mxu0 %v19941_v61  ;;  %v17544_v52 = vld [vmem:[%s24190_s5 + $0x2a] ss:$0 sm:$0xff] }
0x5e3c   :  { %18587 = vmatprep.subr.bf16.mxu1 %v19942_v49 }
0x5e3e   :  { %18566 = vmatpush3.bf16.msra.mxu0 %v19943_v39 }
0x5e3f   :  { %18588 = vmatpush3.bf16.msra.mxu1 %v19944_v27  ;;  %18567 = vmatprep.subr.bf16.mxu0 %v19945_v21 }
0x5e40   :  { %18589 = vmatprep.subr.bf16.mxu1 %v19946_v56 }
0x5e42   :  { %18568 = vmatpush3.bf16.msra.mxu0 %v19947_v30 }
0x5e43   :  { %18590 = vmatpush3.bf16.msra.mxu1 %v19948_v41  ;;  %18569 = vmatprep.subr.bf16.mxu0 %v19949_v16 }
0x5e44   :  { %18591 = vmatprep.subr.bf16.mxu1 %v19950_v19 }
0x5e46   :  { %18570 = vmatpush3.bf16.msra.mxu0 %v19951_v10 }
0x5e47   :  { %18592 = vmatpush3.bf16.msra.mxu1 %v19952_v23  ;;  %18571 = vmatprep.subr.bf16.mxu0 %v19953_v29 }
0x5e48   :  { %18593 = vmatprep.subr.bf16.mxu1 %v19954_v13 }
0x5e4a   :  { %18572 = vmatpush3.bf16.msra.mxu0 %v19955_v28 }
0x5e4b   :  { %18594 = vmatpush3.bf16.msra.mxu1 %v19956_v60  ;;  %18573 = vmatprep.subr.bf16.mxu0 %v19957_v18 }
0x5e4c   :  { %18595 = vmatprep.subr.bf16.mxu1 %v19958_v9 }
0x5e4e   :  { %18574 = vmatpush3.bf16.msra.mxu0 %v19959_v20 }
0x5e4f   :  { %18596 = vmatpush3.bf16.msra.mxu1 %v19960_v37  ;;  %18575 = vmatprep.subr.bf16.mxu0 %v19961_v48 }
0x5e50   :  { %18597 = vmatprep.subr.bf16.mxu1 %v19962_v46 }
0x5e52   :  { %18576 = vmatpush3.bf16.msra.mxu0 %v19963_v12 }
0x5e53   :  { %18598 = vmatpush3.bf16.msra.mxu1 %v19964_v36  ;;  %18605 = vmatprep.subr.bf16.mxu0 %v19965_v55 }
0x5e54   :  { %18627 = vmatprep.subr.bf16.mxu1 %v19966_v25 }
0x5e55   :  { %15603 = vmatmul.mubr.bf16.vlgmr.msra.gmra.mrb[120].mxu0 %v23883_v11  ;;  %v19973_v11 = vld [vmem:[%s24192_s4 + $0xf50] sm:$0xff]  }
0x5e56   :  { %15644 = vmatmul.mubr.bf16.vlgmr.msra.gmra.mrb[120].mxu1 %v23885_v53  ;;  %18606 = vmatpush3.bf16.msra.mxu0 %v19967_v34  ;;  %v19974_v53 = vld [vmem:[%s24192_s4 + $0xfd0] sm:$0xff]  }
0x5e57   :  { %15684 = vmatprep.mubr.bf16.mxu0 %v23919_v44  ;;  %18628 = vmatpush3.bf16.msra.mxu1 %v19968_v31  ;;  %v19984_v44 = vld [vmem:[%s24192_s4 + $0xfa0] sm:$0xff]  }
0x5e58   :  { %15725 = vmatprep.mubr.bf16.mxu1 %v23921_v14  ;;  %18607 = vmatprep.subr.bf16.mxu0 %v19969_v45  ;;  %v19985_v14 = vld [vmem:[%s24192_s4 + $0xf68] sm:$0xff]  }
0x5e59   :  { %18629 = vmatprep.subr.bf16.mxu1 %v19970_v35 }
0x5e5a   :  { %18608 = vmatpush3.bf16.msra.mxu0 %v19971_v40 }
0x5e5b   :  { %18630 = vmatpush3.bf16.msra.mxu1 %v19972_v1  ;;  %18609 = vmatprep.subr.bf16.mxu0 %v19973_v11 }
0x5e5c   :  { %18631 = vmatprep.subr.bf16.mxu1 %v19974_v53 }
0x5e5e   :  { %18610 = vmatpush3.bf16.msra.mxu0 %v19975_v32 }
0x5e5f   :  { %18632 = vmatpush3.bf16.msra.mxu1 %v19976_v33  ;;  %18611 = vmatprep.subr.bf16.mxu0 %v19977_v42 }
0x5e60   :  { %18633 = vmatprep.subr.bf16.mxu1 %v19978_v54 }
0x5e62   :  { %18612 = vmatpush3.bf16.msra.mxu0 %v19979_v0 }
0x5e63   :  { %18634 = vmatpush3.bf16.msra.mxu1 %v19980_v57  ;;  %18613 = vmatprep.subr.bf16.mxu0 %v19981_v59 }
0x5e64   :  { %18635 = vmatprep.subr.bf16.mxu1 %v19982_v43 }
0x5e66   :  { %18614 = vmatpush3.bf16.msra.mxu0 %v19983_v47 }
0x5e67   :  { %18636 = vmatpush3.bf16.msra.mxu1 %v19984_v44  ;;  %18615 = vmatprep.subr.bf16.mxu0 %v19985_v14 }
0x5e68   :  { %18637 = vmatprep.subr.bf16.mxu1 %v19986_v63 }
0x5e6a   :  { %18616 = vmatpush3.bf16.msra.mxu0 %v19987_v62 }
0x5e6b   :  { %18638 = vmatpush3.bf16.msra.mxu1 %v19988_v3  ;;  %18617 = vmatprep.subr.bf16.mxu0 %v19989_v26 }
0x5e6c   :  { %18639 = vmatprep.subr.bf16.mxu1 %v19990_v38 }
0x5e6e   :  { %18618 = vmatpush3.bf16.msra.mxu0 %v19991_v15 }
0x5e6f   :  { %18640 = vmatpush3.bf16.msra.mxu1 %v19992_v17  ;;  %18619 = vmatprep.subr.bf16.mxu0 %v19993_v50 }
0x5e70   :  { %18641 = vmatprep.subr.bf16.mxu1 %v19994_v4 }
0x5e72   :  { %18620 = vmatpush3.bf16.msra.mxu0 %v19995_v2 }
0x5e73   :  { %18642 = vmatpush3.bf16.msra.mxu1 %v19996_v51  ;;  %19436 = vmatprep.subr.bf16.mxu0 %v20245_v5 }
0x5e75   :  { %15685 = vmatmul.mubr.bf16.vlgmr.msra.gmra.mrb[124].mxu0 %v23915_v24 }
0x5e76   :  { %15726 = vmatmul.mubr.bf16.vlgmr.msra.gmra.mrb[124].mxu1 %v23917_v8  ;;  %19440 = vmatprep.mubr.msk.bf16.mxu0 %vm20247_vm0, %v20245_v5 }
0x5ee8   :  { %v18489_v7 = vpop.f32.mrb[112].mxu0  ;;  %v18511_v58 = vpop.f32.mrb[112].mxu1 }
0x5ee9   :  { %v18490_v61 = vpop.f32.mrb[113].mxu0  ;;  %v18512_v49 = vpop.f32.mrb[113].mxu1 }
0x5eea   :  { %v18491_v39 = vadd.f32 %v18490_v61, %v18489_v7  ;;  %v18513_v27 = vadd.f32 %v18512_v49, %v18511_v58  ;;  %v18492_v21 = vpop.f32.mrb[114].mxu0  ;;  %v18514_v56 = vpop.f32.mrb[114].mxu1 }
0x5eeb   :  { %v18493_v30 = vpop.f32.mrb[115].mxu0  ;;  %v18515_v41 = vpop.f32.mrb[115].mxu1 }
0x5eec   :  { %v15441_v24 = vadd.f32 %v18491_v39, %v17544_v52  ;;  %v18494_v16 = vadd.f32 %v18493_v30, %v18492_v21  ;;  %v18516_v8 = vadd.f32 %v18515_v41, %v18514_v56 }
0x5eee   :  { %v15482_v19 = vadd.f32 %v18513_v27, %v15441_v24  ;;  %v15444_v10 = vadd.f32 %v18494_v16, %v17544_v52 }
0x5ef0   :  { %v15485_v23 = vadd.f32 %v18516_v8, %v15444_v10 }
0x5f08   :  { %v18533_v29 = vpop.f32.mrb[116].mxu0  ;;  %v18555_v13 = vpop.f32.mrb[116].mxu1 }
0x5f09   :  { %v18534_v28 = vpop.f32.mrb[117].mxu0  ;;  %v18556_v60 = vpop.f32.mrb[117].mxu1 }
0x5f0a   :  { %v18535_v18 = vadd.f32 %v18534_v28, %v18533_v29  ;;  %v18557_v9 = vadd.f32 %v18556_v60, %v18555_v13  ;;  %v18536_v20 = vpop.f32.mrb[118].mxu0  ;;  %v18558_v37 = vpop.f32.mrb[118].mxu1 }
0x5f0b   :  { %v18537_v48 = vpop.f32.mrb[119].mxu0  ;;  %v18559_v46 = vpop.f32.mrb[119].mxu1 }
0x5f0c   :  { %v15523_v12 = vadd.f32 %v18535_v18, %v15482_v19  ;;  %v18538_v36 = vadd.f32 %v18537_v48, %v18536_v20  ;;  %v18560_v55 = vadd.f32 %v18559_v46, %v18558_v37  ;;  %v17673_v20 = vld [vmem:[%s24190_s5 + $0x28] ss:$0 sm:$0xff]  ;;  %v17674_v46 = vld [vmem:[%s24190_s5 + $0x29] ss:$0 sm:$0xff] }
0x5f0e   :  { %v15564_v25 = vadd.f32 %v18557_v9, %v15523_v12  ;;  %v15526_v34 = vadd.f32 %v18538_v36, %v15485_v23 }
0x5f10   :  { %v15567_v31 = vadd.f32 %v18560_v55, %v15526_v34 }
0x5f28   :  { %v18577_v45 = vpop.f32.mrb[120].mxu0 }
0x5f29   :  { %v18599_v35 = vpop.f32.mrb[120].mxu1  ;;  %v18578_v40 = vpop.f32.mrb[121].mxu0 }
0x5f2a   :  { %v18579_v1 = vadd.f32 %v18578_v40, %v18577_v45  ;;  %v18600_v11 = vpop.f32.mrb[121].mxu1  ;;  %v18580_v53 = vpop.f32.mrb[122].mxu0 }
0x5f2b   :  { %v18601_v32 = vadd.f32 %v18600_v11, %v18599_v35  ;;  %v18602_v33 = vpop.f32.mrb[122].mxu1  ;;  %v18581_v42 = vpop.f32.mrb[123].mxu0 }
0x5f2c   :  { %v15605_v54 = vadd.f32 %v18579_v1, %v15564_v25  ;;  %v18582_v0 = vadd.f32 %v18581_v42, %v18580_v53  ;;  %v18603_v57 = vpop.f32.mrb[123].mxu1 }
0x5f2d   :  { %v18604_v59 = vadd.f32 %v18603_v57, %v18602_v33  ;;  %v19997_v57 = vld [vmem:[%s24189_s2] sm:$0xff]  }
0x5f2e   :  { %v15646_v43 = vadd.f32 %v18601_v32, %v15605_v54  ;;  %v15608_v47 = vadd.f32 %v18582_v0, %v15567_v31  ;;  %19437 = vmatpush3.bf16.msra.mxu0 %v19997_v57 }
0x5f2f   :  { %19438 = vmatprep.subr.bf16.mxu0 %v20245_v5 }
0x5f30   :  { %v15649_v44 = vadd.f32 %v18604_v59, %v15608_v47  ;;  %v19998_v59 = vld [vmem:[%s24189_s2 + $0x8] sm:$0xff]  }
0x5f32   :  { %19439 = vmatpush3.bf16.msra.mxu0 %v19998_v59 }
0x5f48   :  { %v18621_v14 = vpop.f32.mrb[124].mxu0 }
0x5f49   :  { %v18643_v63 = vpop.f32.mrb[124].mxu1  ;;  %v18622_v62 = vpop.f32.mrb[125].mxu0 }
0x5f4a   :  { %v18623_v3 = vadd.f32 %v18622_v62, %v18621_v14  ;;  %v18644_v26 = vpop.f32.mrb[125].mxu1  ;;  %v18624_v38 = vpop.f32.mrb[126].mxu0 }
0x5f4b   :  { %v18645_v15 = vadd.f32 %v18644_v26, %v18643_v63  ;;  %v18646_v17 = vpop.f32.mrb[126].mxu1  ;;  %v18625_v50 = vpop.f32.mrb[127].mxu0  ;;  %v17675_v26 = vld [vmem:[%s24190_s5 + $0x2d] ss:$0 sm:$0xff] }
0x5f4c   :  { %v15687_v4 = vadd.f32 %v18623_v3, %v15646_v43  ;;  %v18626_v2 = vadd.f32 %v18625_v50, %v18624_v38  ;;  %v18647_v51 = vpop.f32.mrb[127].mxu1  ;;  %v17676_v50 = vld [vmem:[%s24190_s5 + $0x2e] ss:$0 sm:$0xff] }
0x5f4d   :  { %v18648_v7 = vadd.f32 %v18647_v51, %v18646_v17 }
0x5f4e   :  { %v15728_v58 = vadd.f32 %v18645_v15, %v15687_v4  ;;  %v15690_v52 = vadd.f32 %v18626_v2, %v15649_v44 }
0x5f50   :  { %v15731_v61 = vadd.f32 %v18648_v7, %v15690_v52  ;;  %v15734_v49 = vadd.f32 %v15728_v58, %v23619_v6  ;;  %v17677_v58 = vld [vmem:[%s24190_s5 + $0x4] ss:$0 sm:$0xff] }
0x5f52   :  { %v15738_v39 = vsel %vm150_vm1, %v15734_v49, 0.0  ;;  %v15735_v27 = vadd.f32 %v15731_v61, %v23621_v22 }
0x5f53   :  { %15739 = vadd.xlane.f32.xlu0 %v15738_v39 }
0x5f54   :  { %v15741_v21 = vsel %vm150_vm1, %v15735_v27, 0.0 }
0x5f55   :  { %15742 = vadd.xlane.f32.xlu1 %v15741_v21 }
0x5fe0   :  { %v15740_v56 = vpop.xlane.xlu0 %15739 }
0x5fe1   :  { %v15744_v30 = vmul.f32 0.03125, %v15740_v56 }
0x5fe2   :  { %v15743_v41 = vpop.xlane.xlu1 %15742 }
0x5fe3   :  { %v15746_v24 = vsub.f32 %v15734_v49, %v15744_v30  ;;  %v15745_v16 = vmul.f32 0.03125, %v15743_v41 }
0x5fe5   :  { %v15747_v8 = vsub.f32 %v15735_v27, %v15745_v16  ;;  %v15748_v19 = vmul.f32 %v15746_v24, %v15746_v24 }
0x5fe7   :  { %v15750_v10 = vsel %vm150_vm1, %v15748_v19, 0.0  ;;  %v15749_v23 = vmul.f32 %v15747_v8, %v15747_v8 }
0x5fe8   :  { %15751 = vadd.xlane.f32.xlu0 %v15750_v10 }
0x5fe9   :  { %v15753_v6 = vsel %vm150_vm1, %v15749_v23, 0.0 }
0x5fea   :  { %15754 = vadd.xlane.f32.xlu1 %v15753_v6 }
0x6075   :  { %v15752_v29 = vpop.xlane.xlu0 %15751 }
0x6076   :  { %v15756_v22 = vmul.f32 0.03125, %v15752_v29 }
0x6077   :  { %v15755_v13 = vpop.xlane.xlu1 %15754 }
0x6078   :  { %v15758_v28 = vadd.f32 1e-05, %v15756_v22  ;;  %v15757_v60 = vmul.f32 0.03125, %v15755_v13 }
0x607a   :  { %20231 = vrsqrt.f32 %v15758_v28  ;;  %v15759_v18 = vadd.f32 1e-05, %v15757_v60 }
0x607c   :  { %20233 = vrsqrt.f32 %v15759_v18 }
0x6084   :  { %v20232_v9 = vpop.eup %20231 }
0x6085   :  { %v15762_v37 = vmul.f32 %v20232_v9, %v15746_v24 }
0x6086   :  { %v20234_v48 = vpop.eup %20233 }
0x6087   :  { %v15768_v12 = vmul.f32 %v17673_v20, %v15762_v37  ;;  %v15763_v36 = vmul.f32 %v20234_v48, %v15747_v8 }
0x6089   :  { %v15774_v55 = vadd.f32 %v17674_v46, %v15768_v12  ;;  %v15769_v25 = vmul.f32 %v17673_v20, %v15763_v36 }
0x608b   :  { %v15778_v34 = vsel %vm150_vm1, %v15774_v55, 0.0  ;;  %v15775_v31 = vadd.f32 %v17674_v46, %v15769_v25 }
0x608c   :  { %15779 = vadd.xlane.f32.xlu0 %v15778_v34 }
0x608d   :  { %v15781_v45 = vsel %vm150_vm1, %v15775_v31, 0.0 }
0x608e   :  { %15782 = vadd.xlane.f32.xlu1 %v15781_v45 }
0x6119   :  { %v15780_v35 = vpop.xlane.xlu0 %15779 }
0x611a   :  { %v15784_v40 = vmul.f32 0.03125, %v15780_v35 }
0x611b   :  { %v15783_v1 = vpop.xlane.xlu1 %15782 }
0x611c   :  { %v15786_v11 = vsub.f32 %v15774_v55, %v15784_v40  ;;  %v15785_v53 = vmul.f32 0.03125, %v15783_v1 }
0x611e   :  { %v15787_v32 = vsub.f32 %v15775_v31, %v15785_v53  ;;  %v15788_v33 = vmul.f32 %v15786_v11, %v15786_v11 }
0x6120   :  { %v15790_v42 = vsel %vm150_vm1, %v15788_v33, 0.0  ;;  %v15789_v54 = vmul.f32 %v15787_v32, %v15787_v32 }
0x6121   :  { %15791 = vadd.xlane.f32.xlu0 %v15790_v42 }
0x6122   :  { %v15793_v0 = vsel %vm150_vm1, %v15789_v54, 0.0 }
0x6123   :  { %15794 = vadd.xlane.f32.xlu1 %v15793_v0 }
0x61ae   :  { %v15792_v43 = vpop.xlane.xlu0 %15791 }
0x61af   :  { %v15796_v47 = vmul.f32 0.03125, %v15792_v43 }
0x61b0   :  { %v15795_v44 = vpop.xlane.xlu1 %15794 }
0x61b1   :  { %v15798_v14 = vadd.f32 1e-05, %v15796_v47  ;;  %v15797_v63 = vmul.f32 0.03125, %v15795_v44 }
0x61b3   :  { %20235 = vrsqrt.f32 %v15798_v14  ;;  %v15799_v62 = vadd.f32 1e-05, %v15797_v63 }
0x61b5   :  { %20237 = vrsqrt.f32 %v15799_v62 }
0x61bd   :  { %v20236_v3 = vpop.eup %20235 }
0x61be   :  { %v15802_v38 = vmul.f32 %v20236_v3, %v15786_v11 }
0x61bf   :  { %v20238_v5 = vpop.eup %20237 }
0x61c0   :  { %v15808_v15 = vmul.f32 %v17675_v26, %v15802_v38  ;;  %v15803_v17 = vmul.f32 %v20238_v5, %v15787_v32 }
0x61c2   :  { %v15809_v4 = vmul.f32 %v17675_v26, %v15803_v17  ;;  %v15814_v2 = vadd.f32 %v17676_v50, %v15808_v15 }
0x61c4   :  { %v15815_v51 = vadd.f32 %v17676_v50, %v15809_v4 }
0x61c6   :  { %v15820_v7 = vpack.c.bf16 %v15815_v51, %v15814_v2 }
0x61c8   :  { %19441 = vmatmul.mubr.msk.bf16.vlgmr.msra.gmra.mrb[128].mxu0 %vm150_vm1, %v15820_v7 }
0x629b   :  { %v15875_v52 = vpop.f32.mrb[128].mxu0 }
0x629c   :  { %v15876_v61 = vadd.f32 %v17677_v58, %v15875_v52  ;;  %v19442_v49 = vpop.f32.mrb[129].mxu0 }
0x629d   :  { %v15878_v39 = vpop.f32.mrb[130].mxu0 }
0x629e   :  { %15883 = vst.msk [vmem:[%s24195_s7] sm:$0xff] %vm15882_vm4, %v15876_v61  ;;  %v15879_v27 = vadd.f32 %v17677_v58, %v15878_v39  ;;  %v19443_v21 = vpop.f32.mrb[131].mxu0 }
0x62a0   :  { %15884 = vst.msk [vmem:[%s24195_s7 + $0x8] sm:$0xff] %vm15882_vm4, %v15879_v27 }

</bundles_post_ra>
